<compile_context>
chip_gen: v6e
topology: v6e:2x2x1
jax: 0.10.0
libtpu: 0.0.40
codegen_flags: <defaults>
</compile_context>

<pallas_src>
import jax
import jax.numpy as jnp
from jax.experimental import pallas as pl
from jax.experimental.pallas import tpu as pltpu


# ----------------------------- architecture constants ------------------------
H_IN = 84
C_IN = 3
K1, S1, HO1, C1 = 8, 4, 20, 32          # conv1: 3 -> 32, 8x8 / 4
K2, S2, HO2, C2 = 4, 2, 9, 64           # conv2: 32 -> 64, 4x4 / 2
K3, S3, HO3, C3 = 3, 1, 7, 64           # conv3: 64 -> 64, 3x3 / 1
KDIM1 = K1 * K1 * C_IN                  # 192
KDIM2 = K2 * K2 * C1                    # 512
KDIM3 = K3 * K3 * C2                    # 576
FLAT = HO3 * HO3 * C3                   # 3136
FC1 = 512
N_OUT = 3
N_OUT_PAD = 128                         # lane-dense fc2 output


# ----------------------------------------------------------------------------
# Kernel 1: fused conv1 -> conv2 -> conv3 (one grid step per image)
# ----------------------------------------------------------------------------
def _conv_stack_kernel(patch_ref, w1_ref, b1_ref, w2_ref, b2_ref, w3_ref, b3_ref,
                       o_ref,
                       y1_ref, a1_ref, p2c_ref, p2_ref, y2_ref, a2_ref,
                       p3c_ref, p3_ref):
    f32 = jnp.float32

    # ---- conv1: single MXU matmul over wrapper-built patches (1/255 folded) --
    y1 = jnp.dot(patch_ref[...], w1_ref[...], preferred_element_type=f32)
    y1 = jnp.maximum(y1 + b1_ref[...], 0.0)            # [400, 32]
    y1_ref[...] = y1

    # Re-layout [400, 32] -> [40, 10, 32].  Patch rows were ordered
    # r = cls*100 + hq*10 + wq (cls = 2*(h%2)+(w%2)), so 10-row runs are
    # contiguous and this is a pure slab copy (no strided access needed).
    for r in range(40):
        a1_ref[r] = y1_ref[r * 10:(r + 1) * 10, :]

    # ---- conv2 (4x4, stride 2): in-VMEM im2col, then one matmul -------------
    for i in range(K2):
        for j in range(K2):
            cls = (i % 2) * 2 + (j % 2)
            piece = a1_ref[cls * 10 + i // 2: cls * 10 + i // 2 + HO2,
                           j // 2: j // 2 + HO2, :]     # [9, 9, 32]
            t = i * K2 + j
            p2c_ref[:, :, t * C1:(t + 1) * C1] = piece
    for h in range(HO2):                                # flatten [9,9,512] -> [81,512]
        p2_ref[h * HO2:(h + 1) * HO2, :] = p2c_ref[h]
    y2 = jnp.dot(p2_ref[...], w2_ref[...], preferred_element_type=f32)
    y2 = jnp.maximum(y2 + b2_ref[...], 0.0)             # [81, 64]
    y2_ref[...] = y2
    for h in range(HO2):                                # [81,64] -> [9,9,64]
        a2_ref[h] = y2_ref[h * HO2:(h + 1) * HO2, :]

    # ---- conv3 (3x3, stride 1) ----------------------------------------------
    for i in range(K3):
        for j in range(K3):
            t = i * K3 + j
            p3c_ref[:, :, t * C2:(t + 1) * C2] = a2_ref[i:i + HO3, j:j + HO3, :]
    for h in range(HO3):                                # [7,7,576] -> [49,576]
        p3_ref[h * HO3:(h + 1) * HO3, :] = p3c_ref[h]
    y3 = jnp.dot(p3_ref[...], w3_ref[...], preferred_element_type=f32)
    y3 = jnp.maximum(y3 + b3_ref[...], 0.0)             # [49, 64]
    o_ref[...] = y3


def _conv_stack(patches, pk):
    """patches: [B, 400, 192] -> features [B, 49, 64] (rows = h*7+w, cols = c)."""
    B = patches.shape[0]
    flops = 2 * B * (400 * KDIM1 * C1 + 81 * KDIM2 * C2 + 49 * KDIM3 * C3)
    bytes_accessed = 4 * (B * 400 * KDIM1 + KDIM1 * C1 + KDIM2 * C2 + KDIM3 * C3
                          + C1 + C2 + C3 + B * 49 * C3)
    return pl.pallas_call(
        _conv_stack_kernel,
        out_shape=jax.ShapeDtypeStruct((B, 49, C3), jnp.float32),
        grid=(B,),
        in_specs=[
            pl.BlockSpec((None, 400, KDIM1), lambda b: (b, 0, 0)),
            pl.BlockSpec((KDIM1, C1), lambda b: (0, 0)),
            pl.BlockSpec((1, C1), lambda b: (0, 0)),
            pl.BlockSpec((KDIM2, C2), lambda b: (0, 0)),
            pl.BlockSpec((1, C2), lambda b: (0, 0)),
            pl.BlockSpec((KDIM3, C3), lambda b: (0, 0)),
            pl.BlockSpec((1, C3), lambda b: (0, 0)),
        ],
        out_specs=pl.BlockSpec((None, 49, C3), lambda b: (b, 0, 0)),
        scratch_shapes=[
            pltpu.VMEM((400, C1), jnp.float32),        # conv1 output (row-major)
            pltpu.VMEM((40, 10, C1), jnp.float32),     # conv1 output (class grid)
            pltpu.VMEM((HO2, HO2, KDIM2), jnp.float32),  # conv2 patches (3D)
            pltpu.VMEM((HO2 * HO2, KDIM2), jnp.float32),  # conv2 patches (2D)
            pltpu.VMEM((HO2 * HO2, C2), jnp.float32),  # conv2 output
            pltpu.VMEM((HO2, HO2, C2), jnp.float32),   # conv2 output (grid)
            pltpu.VMEM((HO3, HO3, KDIM3), jnp.float32),  # conv3 patches (3D)
            pltpu.VMEM((HO3 * HO3, KDIM3), jnp.float32),  # conv3 patches (2D)
        ],
        compiler_params=pltpu.CompilerParams(
            dimension_semantics=("parallel",)),
        cost_estimate=pl.CostEstimate(
            flops=int(flops), transcendentals=0,
            bytes_accessed=int(bytes_accessed)),
    )(patches, pk["w1"], pk["b1"], pk["w2"], pk["b2"], pk["w3"], pk["b3"])


# ----------------------------------------------------------------------------
# Kernel 2: fused fc1 (bf16 weight) -> relu -> fc2 (padded to 128) -> tanh
# ----------------------------------------------------------------------------
def _fc_kernel(x_ref, w1_ref, b1_ref, w2_ref, b2_ref, o_ref):
    x = x_ref[...].astype(jnp.bfloat16)
    h = jnp.dot(x, w1_ref[...], preferred_element_type=jnp.float32)
    h = jnp.maximum(h + b1_ref[...], 0.0)               # [B, 512]
    y = jnp.dot(h, w2_ref[...], preferred_element_type=jnp.float32)
    o_ref[...] = jnp.tanh(y + b2_ref[...])              # [B, 128]


def _fc_head(flat, pk):
    B = flat.shape[0]
    flops = 2 * B * (FLAT * FC1 + FC1 * N_OUT_PAD)
    bytes_accessed = (B * FLAT * 4 + FLAT * FC1 * 2 + FC1 * 4
                      + FC1 * N_OUT_PAD * 4 + N_OUT_PAD * 4 + B * N_OUT_PAD * 4)
    return pl.pallas_call(
        _fc_kernel,
        out_shape=jax.ShapeDtypeStruct((B, N_OUT_PAD), jnp.float32),
        grid=(1,),
        in_specs=[
            pl.BlockSpec((B, FLAT), lambda i: (0, 0)),
            pl.BlockSpec((FLAT, FC1), lambda i: (0, 0)),
            pl.BlockSpec((1, FC1), lambda i: (0, 0)),
            pl.BlockSpec((FC1, N_OUT_PAD), lambda i: (0, 0)),
            pl.BlockSpec((1, N_OUT_PAD), lambda i: (0, 0)),
        ],
        out_specs=pl.BlockSpec((B, N_OUT_PAD), lambda i: (0, 0)),
        compiler_params=pltpu.CompilerParams(
            dimension_semantics=("arbitrary",)),
        cost_estimate=pl.CostEstimate(
            flops=int(flops), transcendentals=int(B * N_OUT_PAD),
            bytes_accessed=int(bytes_accessed)),
    )(flat, pk["wf1"], pk["bf1"], pk["wf2"], pk["bf2"])


# ----------------------------------------------------------------------------
# Wrapper-side conv1 im2col (cheap XLA strided slices on the 169 KB input).
# K order = (i, j, ci); rows ordered r = (2*(h%2)+(w%2))*100 + (h//2)*10 + w//2
# so that conv2's stride-2 taps become unit-stride slices inside the kernel.
# ----------------------------------------------------------------------------
def _conv1_patches(x_nhwc):
    B = x_nhwc.shape[0]
    taps = []
    for i in range(K1):
        for j in range(K1):
            taps.append(x_nhwc[:, i:i + S1 * (HO1 - 1) + 1:S1,
                               j:j + S1 * (HO1 - 1) + 1:S1, :])   # [B,20,20,3]
    p = jnp.concatenate(taps, axis=-1)                  # [B, 20, 20, 192]
    p = p.reshape(B, 10, 2, 10, 2, KDIM1)               # h -> (hq, hb), w -> (wq, wb)
    p = p.transpose(0, 2, 4, 1, 3, 5)                   # [B, hb, wb, hq, wq, K]
    return p.reshape(B, 400, KDIM1)


# ----------------------------------------------------------------------------
# Parameters: PyTorch-layout init + one-time packing into kernel layout
# ----------------------------------------------------------------------------
def init_params(key):
    ks = jax.random.split(key, 10)

    def u(k, shape, fan_in):
        bound = 1.0 / jnp.sqrt(fan_in)
        return jax.random.uniform(k, shape, jnp.float32, -bound, bound)

    return {
        "c1_w": u(ks[0], (32, 3, 8, 8), 3 * 8 * 8),
        "c1_b": u(ks[1], (32,), 3 * 8 * 8),
        "c2_w": u(ks[2], (64, 32, 4, 4), 32 * 4 * 4),
        "c2_b": u(ks[3], (64,), 32 * 4 * 4),
        "c3_w": u(ks[4], (64, 64, 3, 3), 64 * 3 * 3),
        "c3_b": u(ks[5], (64,), 64 * 3 * 3),
        "fc1_w": u(ks[6], (512, 3136), 3136),   # PyTorch Linear: [out, in]
        "fc1_b": u(ks[7], (512,), 3136),
        "fc2_w": u(ks[8], (3, 512), 512),
        "fc2_b": u(ks[9], (3,), 512),
    }


def pack_params(p):
    """One-time (outside jit) weight re-layout: no runtime transposes."""
    def conv_mat(w):  # [Cout, Cin, kh, kw] -> [(i, j, ci), Cout]
        return jnp.transpose(w, (2, 3, 1, 0)).reshape(-1, w.shape[0])

    w1m = conv_mat(p["c1_w"]) * (1.0 / 255.0)          # fold x/255 into conv1
    w2m = conv_mat(p["c2_w"])
    w3m = conv_mat(p["c3_w"])
    # fc1 rows: PyTorch flatten order is (c, h, w); kernel produces (h, w, c).
    wf1 = p["fc1_w"].reshape(FC1, C3, HO3, HO3)
    wf1 = wf1.transpose(1, 2, 0, 3)                     # placeholder, fixed below
    wf1 = p["fc1_w"].reshape(FC1, C3, HO3, HO3).transpose(2, 3, 1, 0)
    wf1 = wf1.reshape(FLAT, FC1)
    wf2 = jnp.pad(p["fc2_w"].T, ((0, 0), (0, N_OUT_PAD - N_OUT)))  # [512,128]
    bf2 = jnp.pad(p["fc2_b"], (0, N_OUT_PAD - N_OUT))
    return {
        "w1": w1m, "b1": p["c1_b"].reshape(1, -1),
        "w2": w2m, "b2": p["c2_b"].reshape(1, -1),
        "w3": w3m, "b3": p["c3_b"].reshape(1, -1),
        "wf1": wf1.astype(jnp.bfloat16), "bf1": p["fc1_b"].reshape(1, -1),
        "wf2": wf2, "bf2": bf2.reshape(1, -1),
    }


# ----------------------------------------------------------------------------
# Full forward pass
# ----------------------------------------------------------------------------
@jax.jit
def car_racing_net(packed, x):
    # x: [B, 3, 84, 84] float32 (raw pixel values 0..255)
    B = x.shape[0]
    x_nhwc = jnp.transpose(x, (0, 2, 3, 1))             # [B, 84, 84, 3]
    patches = _conv1_patches(x_nhwc)                    # [B, 400, 192]
    feat = _conv_stack(patches, packed)                 # [B, 49, 64]
    flat = feat.reshape(B, FLAT)                        # free reshape, (h,w,c) order
    out = _fc_head(flat, packed)                        # [B, 128]
    return out[:, :N_OUT]                               # drop zero-weight pad lanes


if __name__ == "__main__":
    key = jax.random.PRNGKey(0)
    k_param, k_x = jax.random.split(key)
    params = init_params(k_param)
    packed = pack_params(params)                        # one-time weight packing

    # batch=2; spatial must be 84x84 so that the conv stack flattens to 3136.
    x = jax.random.uniform(k_x, (2, 3, 84, 84), jnp.float32, 0.0, 255.0)

    out = car_racing_net(packed, x)
    out = jax.block_until_ready(out)
    assert out.shape == (2, 3), out.shape
    assert bool(jnp.all(jnp.isfinite(out)))
    assert bool(jnp.all(jnp.abs(out) <= 1.0))           # tanh range
    print("KERNEL_OK")
</pallas_src>

<mosaic_0001>
module attributes {stable_mosaic.version = 11 : i64} {
  func.func @_conv_stack_kernel(%arg0: i32, %arg1: memref<1x400x192xf32, #tpu.memory_space<vmem>>, %arg2: memref<192x32xf32, #tpu.memory_space<vmem>>, %arg3: memref<1x32xf32, #tpu.memory_space<vmem>>, %arg4: memref<512x64xf32, #tpu.memory_space<vmem>>, %arg5: memref<1x64xf32, #tpu.memory_space<vmem>>, %arg6: memref<576x64xf32, #tpu.memory_space<vmem>>, %arg7: memref<1x64xf32, #tpu.memory_space<vmem>>, %arg8: memref<1x49x64xf32, #tpu.memory_space<vmem>>, %arg9: memref<400x32xf32, #tpu.memory_space<vmem>>, %arg10: memref<40x10x32xf32, #tpu.memory_space<vmem>>, %arg11: memref<9x9x512xf32, #tpu.memory_space<vmem>>, %arg12: memref<81x512xf32, #tpu.memory_space<vmem>>, %arg13: memref<81x64xf32, #tpu.memory_space<vmem>>, %arg14: memref<9x9x64xf32, #tpu.memory_space<vmem>>, %arg15: memref<7x7x576xf32, #tpu.memory_space<vmem>>, %arg16: memref<49x576xf32, #tpu.memory_space<vmem>>) attributes {dimension_semantics = [#tpu.dimension_semantics<parallel>], iteration_bounds = array<i64: 2>, scalar_prefetch = 0 : i64, scratch_operands = 8 : i64, tpu.core_type = #tpu.core_type<tc>, window_params = [{transform_indices = @transform_0, window_bounds = array<i64: 1, 400, 192>}, {pipeline_mode = #tpu.pipeline_mode<synchronous>, transform_indices = @transform_1, window_bounds = array<i64: 192, 32>}, {pipeline_mode = #tpu.pipeline_mode<synchronous>, transform_indices = @transform_2, window_bounds = array<i64: 1, 32>}, {pipeline_mode = #tpu.pipeline_mode<synchronous>, transform_indices = @transform_3, window_bounds = array<i64: 512, 64>}, {pipeline_mode = #tpu.pipeline_mode<synchronous>, transform_indices = @transform_4, window_bounds = array<i64: 1, 64>}, {pipeline_mode = #tpu.pipeline_mode<synchronous>, transform_indices = @transform_5, window_bounds = array<i64: 576, 64>}, {pipeline_mode = #tpu.pipeline_mode<synchronous>, transform_indices = @transform_6, window_bounds = array<i64: 1, 64>}, {transform_indices = @transform_7, window_bounds = array<i64: 1, 49, 64>}]} {
    %c0 = arith.constant 0 : index
    %c0_0 = arith.constant 0 : index
    %c0_1 = arith.constant 0 : index
    %0 = vector.load %arg1[%c0, %c0_0, %c0_1] : memref<1x400x192xf32, #tpu.memory_space<vmem>>, vector<1x400x192xf32>
    %1 = vector.shape_cast %0 : vector<1x400x192xf32> to vector<400x192xf32>
    %c0_2 = arith.constant 0 : index
    %c0_3 = arith.constant 0 : index
    %2 = vector.load %arg2[%c0_2, %c0_3] : memref<192x32xf32, #tpu.memory_space<vmem>>, vector<192x32xf32>
    %cst = arith.constant dense<0.000000e+00> : vector<400x32xf32>
    %3 = tpu.matmul %1, %2, %cst {dimension_numbers = #tpu.dot_dimension_numbers<[1], [0], [0], [1], [0, 0, 1, 1], [], []>} : vector<400x192xf32>, vector<192x32xf32>, vector<400x32xf32> -> vector<400x32xf32>
    %c0_4 = arith.constant 0 : index
    %c0_5 = arith.constant 0 : index
    %4 = vector.load %arg3[%c0_4, %c0_5] : memref<1x32xf32, #tpu.memory_space<vmem>>, vector<1x32xf32>
    %5 = vector.broadcast %4 : vector<1x32xf32> to vector<400x32xf32>
    %6 = arith.addf %3, %5 : vector<400x32xf32>
    %cst_6 = arith.constant 0.000000e+00 : f32
    %7 = vector.broadcast %cst_6 : f32 to vector<400x32xf32>
    %8 = arith.maximumf %6, %7 : vector<400x32xf32>
    %c0_7 = arith.constant 0 : index
    %c0_8 = arith.constant 0 : index
    %9 = vector.load %arg9[%c0_7, %c0_8] : memref<400x32xf32, #tpu.memory_space<vmem>>, vector<400x32xf32>
    tpu.vector_store %arg9[%c0_7, %c0_8], %8 {strides = array<i32>} : memref<400x32xf32, #tpu.memory_space<vmem>>, vector<400x32xf32>,
    %c0_9 = arith.constant 0 : index
    %c0_10 = arith.constant 0 : index
    %10 = vector.load %arg9[%c0_9, %c0_10] : memref<400x32xf32, #tpu.memory_space<vmem>>, vector<10x32xf32>
    %c0_11 = arith.constant 0 : index
    %c0_12 = arith.constant 0 : index
    %c0_13 = arith.constant 0 : index
    %11 = vector.load %arg10[%c0_11, %c0_12, %c0_13] : memref<40x10x32xf32, #tpu.memory_space<vmem>>, vector<1x10x32xf32>
    %12 = vector.shape_cast %11 : vector<1x10x32xf32> to vector<10x32xf32>
    %13 = vector.shape_cast %10 : vector<10x32xf32> to vector<1x10x32xf32>
    tpu.vector_store %arg10[%c0_11, %c0_12, %c0_13], %13 {strides = array<i32>} : memref<40x10x32xf32, #tpu.memory_space<vmem>>, vector<1x10x32xf32>,
    %c10 = arith.constant 10 : index
    %c0_14 = arith.constant 0 : index
    %14 = vector.load %arg9[%c10, %c0_14] : memref<400x32xf32, #tpu.memory_space<vmem>>, vector<10x32xf32>
    %c1 = arith.constant 1 : index
    %c0_15 = arith.constant 0 : index
    %c0_16 = arith.constant 0 : index
    %15 = vector.load %arg10[%c1, %c0_15, %c0_16] : memref<40x10x32xf32, #tpu.memory_space<vmem>>, vector<1x10x32xf32>
    %16 = vector.shape_cast %15 : vector<1x10x32xf32> to vector<10x32xf32>
    %17 = vector.shape_cast %14 : vector<10x32xf32> to vector<1x10x32xf32>
    tpu.vector_store %arg10[%c1, %c0_15, %c0_16], %17 {strides = array<i32>} : memref<40x10x32xf32, #tpu.memory_space<vmem>>, vector<1x10x32xf32>,
    %c20 = arith.constant 20 : index
    %c0_17 = arith.constant 0 : index
    %18 = vector.load %arg9[%c20, %c0_17] : memref<400x32xf32, #tpu.memory_space<vmem>>, vector<10x32xf32>
    %c2 = arith.constant 2 : index
    %c0_18 = arith.constant 0 : index
    %c0_19 = arith.constant 0 : index
    %19 = vector.load %arg10[%c2, %c0_18, %c0_19] : memref<40x10x32xf32, #tpu.memory_space<vmem>>, vector<1x10x32xf32>
    %20 = vector.shape_cast %19 : vector<1x10x32xf32> to vector<10x32xf32>
    %21 = vector.shape_cast %18 : vector<10x32xf32> to vector<1x10x32xf32>
    tpu.vector_store %arg10[%c2, %c0_18, %c0_19], %21 {strides = array<i32>} : memref<40x10x32xf32, #tpu.memory_space<vmem>>, vector<1x10x32xf32>,
    %c30 = arith.constant 30 : index
    %c0_20 = arith.constant 0 : index
    %22 = vector.load %arg9[%c30, %c0_20] : memref<400x32xf32, #tpu.memory_space<vmem>>, vector<10x32xf32>
    %c3 = arith.constant 3 : index
    %c0_21 = arith.constant 0 : index
    %c0_22 = arith.constant 0 : index
    %23 = vector.load %arg10[%c3, %c0_21, %c0_22] : memref<40x10x32xf32, #tpu.memory_space<vmem>>, vector<1x10x32xf32>
    %24 = vector.shape_cast %23 : vector<1x10x32xf32> to vector<10x32xf32>
    %25 = vector.shape_cast %22 : vector<10x32xf32> to vector<1x10x32xf32>
    tpu.vector_store %arg10[%c3, %c0_21, %c0_22], %25 {strides = array<i32>} : memref<40x10x32xf32, #tpu.memory_space<vmem>>, vector<1x10x32xf32>,
    %c40 = arith.constant 40 : index
    %c0_23 = arith.constant 0 : index
    %26 = vector.load %arg9[%c40, %c0_23] : memref<400x32xf32, #tpu.memory_space<vmem>>, vector<10x32xf32>
    %c4 = arith.constant 4 : index
    %c0_24 = arith.constant 0 : index
    %c0_25 = arith.constant 0 : index
    %27 = vector.load %arg10[%c4, %c0_24, %c0_25] : memref<40x10x32xf32, #tpu.memory_space<vmem>>, vector<1x10x32xf32>
    %28 = vector.shape_cast %27 : vector<1x10x32xf32> to vector<10x32xf32>
    %29 = vector.shape_cast %26 : vector<10x32xf32> to vector<1x10x32xf32>
    tpu.vector_store %arg10[%c4, %c0_24, %c0_25], %29 {strides = array<i32>} : memref<40x10x32xf32, #tpu.memory_space<vmem>>, vector<1x10x32xf32>,
    %c50 = arith.constant 50 : index
    %c0_26 = arith.constant 0 : index
    %30 = vector.load %arg9[%c50, %c0_26] : memref<400x32xf32, #tpu.memory_space<vmem>>, vector<10x32xf32>
    %c5 = arith.constant 5 : index
    %c0_27 = arith.constant 0 : index
    %c0_28 = arith.constant 0 : index
    %31 = vector.load %arg10[%c5, %c0_27, %c0_28] : memref<40x10x32xf32, #tpu.memory_space<vmem>>, vector<1x10x32xf32>
    %32 = vector.shape_cast %31 : vector<1x10x32xf32> to vector<10x32xf32>
    %33 = vector.shape_cast %30 : vector<10x32xf32> to vector<1x10x32xf32>
    tpu.vector_store %arg10[%c5, %c0_27, %c0_28], %33 {strides = array<i32>} : memref<40x10x32xf32, #tpu.memory_space<vmem>>, vector<1x10x32xf32>,
    %c60 = arith.constant 60 : index
    %c0_29 = arith.constant 0 : index
    %34 = vector.load %arg9[%c60, %c0_29] : memref<400x32xf32, #tpu.memory_space<vmem>>, vector<10x32xf32>
    %c6 = arith.constant 6 : index
    %c0_30 = arith.constant 0 : index
    %c0_31 = arith.constant 0 : index
    %35 = vector.load %arg10[%c6, %c0_30, %c0_31] : memref<40x10x32xf32, #tpu.memory_space<vmem>>, vector<1x10x32xf32>
    %36 = vector.shape_cast %35 : vector<1x10x32xf32> to vector<10x32xf32>
    %37 = vector.shape_cast %34 : vector<10x32xf32> to vector<1x10x32xf32>
    tpu.vector_store %arg10[%c6, %c0_30, %c0_31], %37 {strides = array<i32>} : memref<40x10x32xf32, #tpu.memory_space<vmem>>, vector<1x10x32xf32>,
    %c70 = arith.constant 70 : index
    %c0_32 = arith.constant 0 : index
    %38 = vector.load %arg9[%c70, %c0_32] : memref<400x32xf32, #tpu.memory_space<vmem>>, vector<10x32xf32>
    %c7 = arith.constant 7 : index
    %c0_33 = arith.constant 0 : index
    %c0_34 = arith.constant 0 : index
    %39 = vector.load %arg10[%c7, %c0_33, %c0_34] : memref<40x10x32xf32, #tpu.memory_space<vmem>>, vector<1x10x32xf32>
    %40 = vector.shape_cast %39 : vector<1x10x32xf32> to vector<10x32xf32>
    %41 = vector.shape_cast %38 : vector<10x32xf32> to vector<1x10x32xf32>
    tpu.vector_store %arg10[%c7, %c0_33, %c0_34], %41 {strides = array<i32>} : memref<40x10x32xf32, #tpu.memory_space<vmem>>, vector<1x10x32xf32>,
    %c80 = arith.constant 80 : index
    %c0_35 = arith.constant 0 : index
    %42 = vector.load %arg9[%c80, %c0_35] : memref<400x32xf32, #tpu.memory_space<vmem>>, vector<10x32xf32>
    %c8 = arith.constant 8 : index
    %c0_36 = arith.constant 0 : index
    %c0_37 = arith.constant 0 : index
    %43 = vector.load %arg10[%c8, %c0_36, %c0_37] : memref<40x10x32xf32, #tpu.memory_space<vmem>>, vector<1x10x32xf32>
    %44 = vector.shape_cast %43 : vector<1x10x32xf32> to vector<10x32xf32>
    %45 = vector.shape_cast %42 : vector<10x32xf32> to vector<1x10x32xf32>
    tpu.vector_store %arg10[%c8, %c0_36, %c0_37], %45 {strides = array<i32>} : memref<40x10x32xf32, #tpu.memory_space<vmem>>, vector<1x10x32xf32>,
    %c90 = arith.constant 90 : index
    %c0_38 = arith.constant 0 : index
    %46 = vector.load %arg9[%c90, %c0_38] : memref<400x32xf32, #tpu.memory_space<vmem>>, vector<10x32xf32>
    %c9 = arith.constant 9 : index
    %c0_39 = arith.constant 0 : index
    %c0_40 = arith.constant 0 : index
    %47 = vector.load %arg10[%c9, %c0_39, %c0_40] : memref<40x10x32xf32, #tpu.memory_space<vmem>>, vector<1x10x32xf32>
    %48 = vector.shape_cast %47 : vector<1x10x32xf32> to vector<10x32xf32>
    %49 = vector.shape_cast %46 : vector<10x32xf32> to vector<1x10x32xf32>
    tpu.vector_store %arg10[%c9, %c0_39, %c0_40], %49 {strides = array<i32>} : memref<40x10x32xf32, #tpu.memory_space<vmem>>, vector<1x10x32xf32>,
    %c100 = arith.constant 100 : index
    %c0_41 = arith.constant 0 : index
    %50 = vector.load %arg9[%c100, %c0_41] : memref<400x32xf32, #tpu.memory_space<vmem>>, vector<10x32xf32>
    %c10_42 = arith.constant 10 : index
    %c0_43 = arith.constant 0 : index
    %c0_44 = arith.constant 0 : index
    %51 = vector.load %arg10[%c10_42, %c0_43, %c0_44] : memref<40x10x32xf32, #tpu.memory_space<vmem>>, vector<1x10x32xf32>
    %52 = vector.shape_cast %51 : vector<1x10x32xf32> to vector<10x32xf32>
    %53 = vector.shape_cast %50 : vector<10x32xf32> to vector<1x10x32xf32>
    tpu.vector_store %arg10[%c10_42, %c0_43, %c0_44], %53 {strides = array<i32>} : memref<40x10x32xf32, #tpu.memory_space<vmem>>, vector<1x10x32xf32>,
    %c110 = arith.constant 110 : index
    %c0_45 = arith.constant 0 : index
    %54 = vector.load %arg9[%c110, %c0_45] : memref<400x32xf32, #tpu.memory_space<vmem>>, vector<10x32xf32>
    %c11 = arith.constant 11 : index
    %c0_46 = arith.constant 0 : index
    %c0_47 = arith.constant 0 : index
    %55 = vector.load %arg10[%c11, %c0_46, %c0_47] : memref<40x10x32xf32, #tpu.memory_space<vmem>>, vector<1x10x32xf32>
    %56 = vector.shape_cast %55 : vector<1x10x32xf32> to vector<10x32xf32>
    %57 = vector.shape_cast %54 : vector<10x32xf32> to vector<1x10x32xf32>
    tpu.vector_store %arg10[%c11, %c0_46, %c0_47], %57 {strides = array<i32>} : memref<40x10x32xf32, #tpu.memory_space<vmem>>, vector<1x10x32xf32>,
    %c120 = arith.constant 120 : index
    %c0_48 = arith.constant 0 : index
    %58 = vector.load %arg9[%c120, %c0_48] : memref<400x32xf32, #tpu.memory_space<vmem>>, vector<10x32xf32>
    %c12 = arith.constant 12 : index
    %c0_49 = arith.constant 0 : index
    %c0_50 = arith.constant 0 : index
    %59 = vector.load %arg10[%c12, %c0_49, %c0_50] : memref<40x10x32xf32, #tpu.memory_space<vmem>>, vector<1x10x32xf32>
    %60 = vector.shape_cast %59 : vector<1x10x32xf32> to vector<10x32xf32>
    %61 = vector.shape_cast %58 : vector<10x32xf32> to vector<1x10x32xf32>
    tpu.vector_store %arg10[%c12, %c0_49, %c0_50], %61 {strides = array<i32>} : memref<40x10x32xf32, #tpu.memory_space<vmem>>, vector<1x10x32xf32>,
    %c130 = arith.constant 130 : index
    %c0_51 = arith.constant 0 : index
    %62 = vector.load %arg9[%c130, %c0_51] : memref<400x32xf32, #tpu.memory_space<vmem>>, vector<10x32xf32>
    %c13 = arith.constant 13 : index
    %c0_52 = arith.constant 0 : index
    %c0_53 = arith.constant 0 : index
    %63 = vector.load %arg10[%c13, %c0_52, %c0_53] : memref<40x10x32xf32, #tpu.memory_space<vmem>>, vector<1x10x32xf32>
    %64 = vector.shape_cast %63 : vector<1x10x32xf32> to vector<10x32xf32>
    %65 = vector.shape_cast %62 : vector<10x32xf32> to vector<1x10x32xf32>
    tpu.vector_store %arg10[%c13, %c0_52, %c0_53], %65 {strides = array<i32>} : memref<40x10x32xf32, #tpu.memory_space<vmem>>, vector<1x10x32xf32>,
    %c140 = arith.constant 140 : index
    %c0_54 = arith.constant 0 : index
    %66 = vector.load %arg9[%c140, %c0_54] : memref<400x32xf32, #tpu.memory_space<vmem>>, vector<10x32xf32>
    %c14 = arith.constant 14 : index
    %c0_55 = arith.constant 0 : index
    %c0_56 = arith.constant 0 : index
    %67 = vector.load %arg10[%c14, %c0_55, %c0_56] : memref<40x10x32xf32, #tpu.memory_space<vmem>>, vector<1x10x32xf32>
    %68 = vector.shape_cast %67 : vector<1x10x32xf32> to vector<10x32xf32>
    %69 = vector.shape_cast %66 : vector<10x32xf32> to vector<1x10x32xf32>
    tpu.vector_store %arg10[%c14, %c0_55, %c0_56], %69 {strides = array<i32>} : memref<40x10x32xf32, #tpu.memory_space<vmem>>, vector<1x10x32xf32>,
    %c150 = arith.constant 150 : index
    %c0_57 = arith.constant 0 : index
    %70 = vector.load %arg9[%c150, %c0_57] : memref<400x32xf32, #tpu.memory_space<vmem>>, vector<10x32xf32>
    %c15 = arith.constant 15 : index
    %c0_58 = arith.constant 0 : index
    %c0_59 = arith.constant 0 : index
    %71 = vector.load %arg10[%c15, %c0_58, %c0_59] : memref<40x10x32xf32, #tpu.memory_space<vmem>>, vector<1x10x32xf32>
    %72 = vector.shape_cast %71 : vector<1x10x32xf32> to vector<10x32xf32>
    %73 = vector.shape_cast %70 : vector<10x32xf32> to vector<1x10x32xf32>
    tpu.vector_store %arg10[%c15, %c0_58, %c0_59], %73 {strides = array<i32>} : memref<40x10x32xf32, #tpu.memory_space<vmem>>, vector<1x10x32xf32>,
    %c160 = arith.constant 160 : index
    %c0_60 = arith.constant 0 : index
    %74 = vector.load %arg9[%c160, %c0_60] : memref<400x32xf32, #tpu.memory_space<vmem>>, vector<10x32xf32>
    %c16 = arith.constant 16 : index
    %c0_61 = arith.constant 0 : index
    %c0_62 = arith.constant 0 : index
    %75 = vector.load %arg10[%c16, %c0_61, %c0_62] : memref<40x10x32xf32, #tpu.memory_space<vmem>>, vector<1x10x32xf32>
    %76 = vector.shape_cast %75 : vector<1x10x32xf32> to vector<10x32xf32>
    %77 = vector.shape_cast %74 : vector<10x32xf32> to vector<1x10x32xf32>
    tpu.vector_store %arg10[%c16, %c0_61, %c0_62], %77 {strides = array<i32>} : memref<40x10x32xf32, #tpu.memory_space<vmem>>, vector<1x10x32xf32>,
    %c170 = arith.constant 170 : index
    %c0_63 = arith.constant 0 : index
    %78 = vector.load %arg9[%c170, %c0_63] : memref<400x32xf32, #tpu.memory_space<vmem>>, vector<10x32xf32>
    %c17 = arith.constant 17 : index
    %c0_64 = arith.constant 0 : index
    %c0_65 = arith.constant 0 : index
    %79 = vector.load %arg10[%c17, %c0_64, %c0_65] : memref<40x10x32xf32, #tpu.memory_space<vmem>>, vector<1x10x32xf32>
    %80 = vector.shape_cast %79 : vector<1x10x32xf32> to vector<10x32xf32>
    %81 = vector.shape_cast %78 : vector<10x32xf32> to vector<1x10x32xf32>
    tpu.vector_store %arg10[%c17, %c0_64, %c0_65], %81 {strides = array<i32>} : memref<40x10x32xf32, #tpu.memory_space<vmem>>, vector<1x10x32xf32>,
    %c180 = arith.constant 180 : index
    %c0_66 = arith.constant 0 : index
    %82 = vector.load %arg9[%c180, %c0_66] : memref<400x32xf32, #tpu.memory_space<vmem>>, vector<10x32xf32>
    %c18 = arith.constant 18 : index
    %c0_67 = arith.constant 0 : index
    %c0_68 = arith.constant 0 : index
    %83 = vector.load %arg10[%c18, %c0_67, %c0_68] : memref<40x10x32xf32, #tpu.memory_space<vmem>>, vector<1x10x32xf32>
    %84 = vector.shape_cast %83 : vector<1x10x32xf32> to vector<10x32xf32>
    %85 = vector.shape_cast %82 : vector<10x32xf32> to vector<1x10x32xf32>
    tpu.vector_store %arg10[%c18, %c0_67, %c0_68], %85 {strides = array<i32>} : memref<40x10x32xf32, #tpu.memory_space<vmem>>, vector<1x10x32xf32>,
    %c190 = arith.constant 190 : index
    %c0_69 = arith.constant 0 : index
    %86 = vector.load %arg9[%c190, %c0_69] : memref<400x32xf32, #tpu.memory_space<vmem>>, vector<10x32xf32>
    %c19 = arith.constant 19 : index
    %c0_70 = arith.constant 0 : index
    %c0_71 = arith.constant 0 : index
    %87 = vector.load %arg10[%c19, %c0_70, %c0_71] : memref<40x10x32xf32, #tpu.memory_space<vmem>>, vector<1x10x32xf32>
    %88 = vector.shape_cast %87 : vector<1x10x32xf32> to vector<10x32xf32>
    %89 = vector.shape_cast %86 : vector<10x32xf32> to vector<1x10x32xf32>
    tpu.vector_store %arg10[%c19, %c0_70, %c0_71], %89 {strides = array<i32>} : memref<40x10x32xf32, #tpu.memory_space<vmem>>, vector<1x10x32xf32>,
    %c200 = arith.constant 200 : index
    %c0_72 = arith.constant 0 : index
    %90 = vector.load %arg9[%c200, %c0_72] : memref<400x32xf32, #tpu.memory_space<vmem>>, vector<10x32xf32>
    %c20_73 = arith.constant 20 : index
    %c0_74 = arith.constant 0 : index
    %c0_75 = arith.constant 0 : index
    %91 = vector.load %arg10[%c20_73, %c0_74, %c0_75] : memref<40x10x32xf32, #tpu.memory_space<vmem>>, vector<1x10x32xf32>
    %92 = vector.shape_cast %91 : vector<1x10x32xf32> to vector<10x32xf32>
    %93 = vector.shape_cast %90 : vector<10x32xf32> to vector<1x10x32xf32>
    tpu.vector_store %arg10[%c20_73, %c0_74, %c0_75], %93 {strides = array<i32>} : memref<40x10x32xf32, #tpu.memory_space<vmem>>, vector<1x10x32xf32>,
    %c210 = arith.constant 210 : index
    %c0_76 = arith.constant 0 : index
    %94 = vector.load %arg9[%c210, %c0_76] : memref<400x32xf32, #tpu.memory_space<vmem>>, vector<10x32xf32>
    %c21 = arith.constant 21 : index
    %c0_77 = arith.constant 0 : index
    %c0_78 = arith.constant 0 : index
    %95 = vector.load %arg10[%c21, %c0_77, %c0_78] : memref<40x10x32xf32, #tpu.memory_space<vmem>>, vector<1x10x32xf32>
    %96 = vector.shape_cast %95 : vector<1x10x32xf32> to vector<10x32xf32>
    %97 = vector.shape_cast %94 : vector<10x32xf32> to vector<1x10x32xf32>
    tpu.vector_store %arg10[%c21, %c0_77, %c0_78], %97 {strides = array<i32>} : memref<40x10x32xf32, #tpu.memory_space<vmem>>, vector<1x10x32xf32>,
    %c220 = arith.constant 220 : index
    %c0_79 = arith.constant 0 : index
    %98 = vector.load %arg9[%c220, %c0_79] : memref<400x32xf32, #tpu.memory_space<vmem>>, vector<10x32xf32>
    %c22 = arith.constant 22 : index
    %c0_80 = arith.constant 0 : index
    %c0_81 = arith.constant 0 : index
    %99 = vector.load %arg10[%c22, %c0_80, %c0_81] : memref<40x10x32xf32, #tpu.memory_space<vmem>>, vector<1x10x32xf32>
    %100 = vector.shape_cast %99 : vector<1x10x32xf32> to vector<10x32xf32>
    %101 = vector.shape_cast %98 : vector<10x32xf32> to vector<1x10x32xf32>
    tpu.vector_store %arg10[%c22, %c0_80, %c0_81], %101 {strides = array<i32>} : memref<40x10x32xf32, #tpu.memory_space<vmem>>, vector<1x10x32xf32>,
    %c230 = arith.constant 230 : index
    %c0_82 = arith.constant 0 : index
    %102 = vector.load %arg9[%c230, %c0_82] : memref<400x32xf32, #tpu.memory_space<vmem>>, vector<10x32xf32>
    %c23 = arith.constant 23 : index
    %c0_83 = arith.constant 0 : index
    %c0_84 = arith.constant 0 : index
    %103 = vector.load %arg10[%c23, %c0_83, %c0_84] : memref<40x10x32xf32, #tpu.memory_space<vmem>>, vector<1x10x32xf32>
    %104 = vector.shape_cast %103 : vector<1x10x32xf32> to vector<10x32xf32>
    %105 = vector.shape_cast %102 : vector<10x32xf32> to vector<1x10x32xf32>
    tpu.vector_store %arg10[%c23, %c0_83, %c0_84], %105 {strides = array<i32>} : memref<40x10x32xf32, #tpu.memory_space<vmem>>, vector<1x10x32xf32>,
    %c240 = arith.constant 240 : index
    %c0_85 = arith.constant 0 : index
    %106 = vector.load %arg9[%c240, %c0_85] : memref<400x32xf32, #tpu.memory_space<vmem>>, vector<10x32xf32>
    %c24 = arith.constant 24 : index
    %c0_86 = arith.constant 0 : index
    %c0_87 = arith.constant 0 : index
    %107 = vector.load %arg10[%c24, %c0_86, %c0_87] : memref<40x10x32xf32, #tpu.memory_space<vmem>>, vector<1x10x32xf32>
    %108 = vector.shape_cast %107 : vector<1x10x32xf32> to vector<10x32xf32>
    %109 = vector.shape_cast %106 : vector<10x32xf32> to vector<1x10x32xf32>
    tpu.vector_store %arg10[%c24, %c0_86, %c0_87], %109 {strides = array<i32>} : memref<40x10x32xf32, #tpu.memory_space<vmem>>, vector<1x10x32xf32>,
    %c250 = arith.constant 250 : index
    %c0_88 = arith.constant 0 : index
    %110 = vector.load %arg9[%c250, %c0_88] : memref<400x32xf32, #tpu.memory_space<vmem>>, vector<10x32xf32>
    %c25 = arith.constant 25 : index
    %c0_89 = arith.constant 0 : index
    %c0_90 = arith.constant 0 : index
    %111 = vector.load %arg10[%c25, %c0_89, %c0_90] : memref<40x10x32xf32, #tpu.memory_space<vmem>>, vector<1x10x32xf32>
    %112 = vector.shape_cast %111 : vector<1x10x32xf32> to vector<10x32xf32>
    %113 = vector.shape_cast %110 : vector<10x32xf32> to vector<1x10x32xf32>
    tpu.vector_store %arg10[%c25, %c0_89, %c0_90], %113 {strides = array<i32>} : memref<40x10x32xf32, #tpu.memory_space<vmem>>, vector<1x10x32xf32>,
    %c260 = arith.constant 260 : index
    %c0_91 = arith.constant 0 : index
    %114 = vector.load %arg9[%c260, %c0_91] : memref<400x32xf32, #tpu.memory_space<vmem>>, vector<10x32xf32>
    %c26 = arith.constant 26 : index
    %c0_92 = arith.constant 0 : index
    %c0_93 = arith.constant 0 : index
    %115 = vector.load %arg10[%c26, %c0_92, %c0_93] : memref<40x10x32xf32, #tpu.memory_space<vmem>>, vector<1x10x32xf32>
    %116 = vector.shape_cast %115 : vector<1x10x32xf32> to vector<10x32xf32>
    %117 = vector.shape_cast %114 : vector<10x32xf32> to vector<1x10x32xf32>
    tpu.vector_store %arg10[%c26, %c0_92, %c0_93], %117 {strides = array<i32>} : memref<40x10x32xf32, #tpu.memory_space<vmem>>, vector<1x10x32xf32>,
    %c270 = arith.constant 270 : index
    %c0_94 = arith.constant 0 : index
    %118 = vector.load %arg9[%c270, %c0_94] : memref<400x32xf32, #tpu.memory_space<vmem>>, vector<10x32xf32>
    %c27 = arith.constant 27 : index
    %c0_95 = arith.constant 0 : index
    %c0_96 = arith.constant 0 : index
    %119 = vector.load %arg10[%c27, %c0_95, %c0_96] : memref<40x10x32xf32, #tpu.memory_space<vmem>>, vector<1x10x32xf32>
    %120 = vector.shape_cast %119 : vector<1x10x32xf32> to vector<10x32xf32>
    %121 = vector.shape_cast %118 : vector<10x32xf32> to vector<1x10x32xf32>
    tpu.vector_store %arg10[%c27, %c0_95, %c0_96], %121 {strides = array<i32>} : memref<40x10x32xf32, #tpu.memory_space<vmem>>, vector<1x10x32xf32>,
    %c280 = arith.constant 280 : index
    %c0_97 = arith.constant 0 : index
    %122 = vector.load %arg9[%c280, %c0_97] : memref<400x32xf32, #tpu.memory_space<vmem>>, vector<10x32xf32>
    %c28 = arith.constant 28 : index
    %c0_98 = arith.constant 0 : index
    %c0_99 = arith.constant 0 : index
    %123 = vector.load %arg10[%c28, %c0_98, %c0_99] : memref<40x10x32xf32, #tpu.memory_space<vmem>>, vector<1x10x32xf32>
    %124 = vector.shape_cast %123 : vector<1x10x32xf32> to vector<10x32xf32>
    %125 = vector.shape_cast %122 : vector<10x32xf32> to vector<1x10x32xf32>
    tpu.vector_store %arg10[%c28, %c0_98, %c0_99], %125 {strides = array<i32>} : memref<40x10x32xf32, #tpu.memory_space<vmem>>, vector<1x10x32xf32>,
    %c290 = arith.constant 290 : index
    %c0_100 = arith.constant 0 : index
    %126 = vector.load %arg9[%c290, %c0_100] : memref<400x32xf32, #tpu.memory_space<vmem>>, vector<10x32xf32>
    %c29 = arith.constant 29 : index
    %c0_101 = arith.constant 0 : index
    %c0_102 = arith.constant 0 : index
    %127 = vector.load %arg10[%c29, %c0_101, %c0_102] : memref<40x10x32xf32, #tpu.memory_space<vmem>>, vector<1x10x32xf32>
    %128 = vector.shape_cast %127 : vector<1x10x32xf32> to vector<10x32xf32>
    %129 = vector.shape_cast %126 : vector<10x32xf32> to vector<1x10x32xf32>
    tpu.vector_store %arg10[%c29, %c0_101, %c0_102], %129 {strides = array<i32>} : memref<40x10x32xf32, #tpu.memory_space<vmem>>, vector<1x10x32xf32>,
    %c300 = arith.constant 300 : index
    %c0_103 = arith.constant 0 : index
    %130 = vector.load %arg9[%c300, %c0_103] : memref<400x32xf32, #tpu.memory_space<vmem>>, vector<10x32xf32>
    %c30_104 = arith.constant 30 : index
    %c0_105 = arith.constant 0 : index
    %c0_106 = arith.constant 0 : index
    %131 = vector.load %arg10[%c30_104, %c0_105, %c0_106] : memref<40x10x32xf32, #tpu.memory_space<vmem>>, vector<1x10x32xf32>
    %132 = vector.shape_cast %131 : vector<1x10x32xf32> to vector<10x32xf32>
    %133 = vector.shape_cast %130 : vector<10x32xf32> to vector<1x10x32xf32>
    tpu.vector_store %arg10[%c30_104, %c0_105, %c0_106], %133 {strides = array<i32>} : memref<40x10x32xf32, #tpu.memory_space<vmem>>, vector<1x10x32xf32>,
    %c310 = arith.constant 310 : index
    %c0_107 = arith.constant 0 : index
    %134 = vector.load %arg9[%c310, %c0_107] : memref<400x32xf32, #tpu.memory_space<vmem>>, vector<10x32xf32>
    %c31 = arith.constant 31 : index
    %c0_108 = arith.constant 0 : index
    %c0_109 = arith.constant 0 : index
    %135 = vector.load %arg10[%c31, %c0_108, %c0_109] : memref<40x10x32xf32, #tpu.memory_space<vmem>>, vector<1x10x32xf32>
    %136 = vector.shape_cast %135 : vector<1x10x32xf32> to vector<10x32xf32>
    %137 = vector.shape_cast %134 : vector<10x32xf32> to vector<1x10x32xf32>
    tpu.vector_store %arg10[%c31, %c0_108, %c0_109], %137 {strides = array<i32>} : memref<40x10x32xf32, #tpu.memory_space<vmem>>, vector<1x10x32xf32>,
    %c320 = arith.constant 320 : index
    %c0_110 = arith.constant 0 : index
    %138 = vector.load %arg9[%c320, %c0_110] : memref<400x32xf32, #tpu.memory_space<vmem>>, vector<10x32xf32>
    %c32 = arith.constant 32 : index
    %c0_111 = arith.constant 0 : index
    %c0_112 = arith.constant 0 : index
    %139 = vector.load %arg10[%c32, %c0_111, %c0_112] : memref<40x10x32xf32, #tpu.memory_space<vmem>>, vector<1x10x32xf32>
    %140 = vector.shape_cast %139 : vector<1x10x32xf32> to vector<10x32xf32>
    %141 = vector.shape_cast %138 : vector<10x32xf32> to vector<1x10x32xf32>
    tpu.vector_store %arg10[%c32, %c0_111, %c0_112], %141 {strides = array<i32>} : memref<40x10x32xf32, #tpu.memory_space<vmem>>, vector<1x10x32xf32>,
    %c330 = arith.constant 330 : index
    %c0_113 = arith.constant 0 : index
    %142 = vector.load %arg9[%c330, %c0_113] : memref<400x32xf32, #tpu.memory_space<vmem>>, vector<10x32xf32>
    %c33 = arith.constant 33 : index
    %c0_114 = arith.constant 0 : index
    %c0_115 = arith.constant 0 : index
    %143 = vector.load %arg10[%c33, %c0_114, %c0_115] : memref<40x10x32xf32, #tpu.memory_space<vmem>>, vector<1x10x32xf32>
    %144 = vector.shape_cast %143 : vector<1x10x32xf32> to vector<10x32xf32>
    %145 = vector.shape_cast %142 : vector<10x32xf32> to vector<1x10x32xf32>
    tpu.vector_store %arg10[%c33, %c0_114, %c0_115], %145 {strides = array<i32>} : memref<40x10x32xf32, #tpu.memory_space<vmem>>, vector<1x10x32xf32>,
    %c340 = arith.constant 340 : index
    %c0_116 = arith.constant 0 : index
    %146 = vector.load %arg9[%c340, %c0_116] : memref<400x32xf32, #tpu.memory_space<vmem>>, vector<10x32xf32>
    %c34 = arith.constant 34 : index
    %c0_117 = arith.constant 0 : index
    %c0_118 = arith.constant 0 : index
    %147 = vector.load %arg10[%c34, %c0_117, %c0_118] : memref<40x10x32xf32, #tpu.memory_space<vmem>>, vector<1x10x32xf32>
    %148 = vector.shape_cast %147 : vector<1x10x32xf32> to vector<10x32xf32>
    %149 = vector.shape_cast %146 : vector<10x32xf32> to vector<1x10x32xf32>
    tpu.vector_store %arg10[%c34, %c0_117, %c0_118], %149 {strides = array<i32>} : memref<40x10x32xf32, #tpu.memory_space<vmem>>, vector<1x10x32xf32>,
    %c350 = arith.constant 350 : index
    %c0_119 = arith.constant 0 : index
    %150 = vector.load %arg9[%c350, %c0_119] : memref<400x32xf32, #tpu.memory_space<vmem>>, vector<10x32xf32>
    %c35 = arith.constant 35 : index
    %c0_120 = arith.constant 0 : index
    %c0_121 = arith.constant 0 : index
    %151 = vector.load %arg10[%c35, %c0_120, %c0_121] : memref<40x10x32xf32, #tpu.memory_space<vmem>>, vector<1x10x32xf32>
    %152 = vector.shape_cast %151 : vector<1x10x32xf32> to vector<10x32xf32>
    %153 = vector.shape_cast %150 : vector<10x32xf32> to vector<1x10x32xf32>
    tpu.vector_store %arg10[%c35, %c0_120, %c0_121], %153 {strides = array<i32>} : memref<40x10x32xf32, #tpu.memory_space<vmem>>, vector<1x10x32xf32>,
    %c360 = arith.constant 360 : index
    %c0_122 = arith.constant 0 : index
    %154 = vector.load %arg9[%c360, %c0_122] : memref<400x32xf32, #tpu.memory_space<vmem>>, vector<10x32xf32>
    %c36 = arith.constant 36 : index
    %c0_123 = arith.constant 0 : index
    %c0_124 = arith.constant 0 : index
    %155 = vector.load %arg10[%c36, %c0_123, %c0_124] : memref<40x10x32xf32, #tpu.memory_space<vmem>>, vector<1x10x32xf32>
    %156 = vector.shape_cast %155 : vector<1x10x32xf32> to vector<10x32xf32>
    %157 = vector.shape_cast %154 : vector<10x32xf32> to vector<1x10x32xf32>
    tpu.vector_store %arg10[%c36, %c0_123, %c0_124], %157 {strides = array<i32>} : memref<40x10x32xf32, #tpu.memory_space<vmem>>, vector<1x10x32xf32>,
    %c370 = arith.constant 370 : index
    %c0_125 = arith.constant 0 : index
    %158 = vector.load %arg9[%c370, %c0_125] : memref<400x32xf32, #tpu.memory_space<vmem>>, vector<10x32xf32>
    %c37 = arith.constant 37 : index
    %c0_126 = arith.constant 0 : index
    %c0_127 = arith.constant 0 : index
    %159 = vector.load %arg10[%c37, %c0_126, %c0_127] : memref<40x10x32xf32, #tpu.memory_space<vmem>>, vector<1x10x32xf32>
    %160 = vector.shape_cast %159 : vector<1x10x32xf32> to vector<10x32xf32>
    %161 = vector.shape_cast %158 : vector<10x32xf32> to vector<1x10x32xf32>
    tpu.vector_store %arg10[%c37, %c0_126, %c0_127], %161 {strides = array<i32>} : memref<40x10x32xf32, #tpu.memory_space<vmem>>, vector<1x10x32xf32>,
    %c380 = arith.constant 380 : index
    %c0_128 = arith.constant 0 : index
    %162 = vector.load %arg9[%c380, %c0_128] : memref<400x32xf32, #tpu.memory_space<vmem>>, vector<10x32xf32>
    %c38 = arith.constant 38 : index
    %c0_129 = arith.constant 0 : index
    %c0_130 = arith.constant 0 : index
    %163 = vector.load %arg10[%c38, %c0_129, %c0_130] : memref<40x10x32xf32, #tpu.memory_space<vmem>>, vector<1x10x32xf32>
    %164 = vector.shape_cast %163 : vector<1x10x32xf32> to vector<10x32xf32>
    %165 = vector.shape_cast %162 : vector<10x32xf32> to vector<1x10x32xf32>
    tpu.vector_store %arg10[%c38, %c0_129, %c0_130], %165 {strides = array<i32>} : memref<40x10x32xf32, #tpu.memory_space<vmem>>, vector<1x10x32xf32>,
    %c390 = arith.constant 390 : index
    %c0_131 = arith.constant 0 : index
    %166 = vector.load %arg9[%c390, %c0_131] : memref<400x32xf32, #tpu.memory_space<vmem>>, vector<10x32xf32>
    %c39 = arith.constant 39 : index
    %c0_132 = arith.constant 0 : index
    %c0_133 = arith.constant 0 : index
    %167 = vector.load %arg10[%c39, %c0_132, %c0_133] : memref<40x10x32xf32, #tpu.memory_space<vmem>>, vector<1x10x32xf32>
    %168 = vector.shape_cast %167 : vector<1x10x32xf32> to vector<10x32xf32>
    %169 = vector.shape_cast %166 : vector<10x32xf32> to vector<1x10x32xf32>
    tpu.vector_store %arg10[%c39, %c0_132, %c0_133], %169 {strides = array<i32>} : memref<40x10x32xf32, #tpu.memory_space<vmem>>, vector<1x10x32xf32>,
    %c0_134 = arith.constant 0 : index
    %c0_135 = arith.constant 0 : index
    %c0_136 = arith.constant 0 : index
    %170 = vector.load %arg10[%c0_134, %c0_135, %c0_136] : memref<40x10x32xf32, #tpu.memory_space<vmem>>, vector<9x9x32xf32>
    %c0_137 = arith.constant 0 : index
    %c0_138 = arith.constant 0 : index
    %c0_139 = arith.constant 0 : index
    %171 = vector.load %arg11[%c0_137, %c0_138, %c0_139] : memref<9x9x512xf32, #tpu.memory_space<vmem>>, vector<9x9x32xf32>
    tpu.vector_store %arg11[%c0_137, %c0_138, %c0_139], %170 {strides = array<i32>} : memref<9x9x512xf32, #tpu.memory_space<vmem>>, vector<9x9x32xf32>,
    %c10_140 = arith.constant 10 : index
    %c0_141 = arith.constant 0 : index
    %c0_142 = arith.constant 0 : index
    %172 = vector.load %arg10[%c10_140, %c0_141, %c0_142] : memref<40x10x32xf32, #tpu.memory_space<vmem>>, vector<9x9x32xf32>
    %c0_143 = arith.constant 0 : index
    %c0_144 = arith.constant 0 : index
    %c32_145 = arith.constant 32 : index
    %173 = vector.load %arg11[%c0_143, %c0_144, %c32_145] : memref<9x9x512xf32, #tpu.memory_space<vmem>>, vector<9x9x32xf32>
    tpu.vector_store %arg11[%c0_143, %c0_144, %c32_145], %172 {strides = array<i32>} : memref<9x9x512xf32, #tpu.memory_space<vmem>>, vector<9x9x32xf32>,
    %c0_146 = arith.constant 0 : index
    %c1_147 = arith.constant 1 : index
    %c0_148 = arith.constant 0 : index
    %174 = vector.load %arg10[%c0_146, %c1_147, %c0_148] : memref<40x10x32xf32, #tpu.memory_space<vmem>>, vector<9x9x32xf32>
    %c0_149 = arith.constant 0 : index
    %c0_150 = arith.constant 0 : index
    %c64 = arith.constant 64 : index
    %175 = vector.load %arg11[%c0_149, %c0_150, %c64] : memref<9x9x512xf32, #tpu.memory_space<vmem>>, vector<9x9x32xf32>
    tpu.vector_store %arg11[%c0_149, %c0_150, %c64], %174 {strides = array<i32>} : memref<9x9x512xf32, #tpu.memory_space<vmem>>, vector<9x9x32xf32>,
    %c10_151 = arith.constant 10 : index
    %c1_152 = arith.constant 1 : index
    %c0_153 = arith.constant 0 : index
    %176 = vector.load %arg10[%c10_151, %c1_152, %c0_153] : memref<40x10x32xf32, #tpu.memory_space<vmem>>, vector<9x9x32xf32>
    %c0_154 = arith.constant 0 : index
    %c0_155 = arith.constant 0 : index
    %c96 = arith.constant 96 : index
    %177 = vector.load %arg11[%c0_154, %c0_155, %c96] : memref<9x9x512xf32, #tpu.memory_space<vmem>>, vector<9x9x32xf32>
    tpu.vector_store %arg11[%c0_154, %c0_155, %c96], %176 {strides = array<i32>} : memref<9x9x512xf32, #tpu.memory_space<vmem>>, vector<9x9x32xf32>,
    %c20_156 = arith.constant 20 : index
    %c0_157 = arith.constant 0 : index
    %c0_158 = arith.constant 0 : index
    %178 = vector.load %arg10[%c20_156, %c0_157, %c0_158] : memref<40x10x32xf32, #tpu.memory_space<vmem>>, vector<9x9x32xf32>
    %c0_159 = arith.constant 0 : index
    %c0_160 = arith.constant 0 : index
    %c128 = arith.constant 128 : index
    %179 = vector.load %arg11[%c0_159, %c0_160, %c128] : memref<9x9x512xf32, #tpu.memory_space<vmem>>, vector<9x9x32xf32>
    tpu.vector_store %arg11[%c0_159, %c0_160, %c128], %178 {strides = array<i32>} : memref<9x9x512xf32, #tpu.memory_space<vmem>>, vector<9x9x32xf32>,
    %c30_161 = arith.constant 30 : index
    %c0_162 = arith.constant 0 : index
    %c0_163 = arith.constant 0 : index
    %180 = vector.load %arg10[%c30_161, %c0_162, %c0_163] : memref<40x10x32xf32, #tpu.memory_space<vmem>>, vector<9x9x32xf32>
    %c0_164 = arith.constant 0 : index
    %c0_165 = arith.constant 0 : index
    %c160_166 = arith.constant 160 : index
    %181 = vector.load %arg11[%c0_164, %c0_165, %c160_166] : memref<9x9x512xf32, #tpu.memory_space<vmem>>, vector<9x9x32xf32>
    tpu.vector_store %arg11[%c0_164, %c0_165, %c160_166], %180 {strides = array<i32>} : memref<9x9x512xf32, #tpu.memory_space<vmem>>, vector<9x9x32xf32>,
    %c20_167 = arith.constant 20 : index
    %c1_168 = arith.constant 1 : index
    %c0_169 = arith.constant 0 : index
    %182 = vector.load %arg10[%c20_167, %c1_168, %c0_169] : memref<40x10x32xf32, #tpu.memory_space<vmem>>, vector<9x9x32xf32>
    %c0_170 = arith.constant 0 : index
    %c0_171 = arith.constant 0 : index
    %c192 = arith.constant 192 : index
    %183 = vector.load %arg11[%c0_170, %c0_171, %c192] : memref<9x9x512xf32, #tpu.memory_space<vmem>>, vector<9x9x32xf32>
    tpu.vector_store %arg11[%c0_170, %c0_171, %c192], %182 {strides = array<i32>} : memref<9x9x512xf32, #tpu.memory_space<vmem>>, vector<9x9x32xf32>,
    %c30_172 = arith.constant 30 : index
    %c1_173 = arith.constant 1 : index
    %c0_174 = arith.constant 0 : index
    %184 = vector.load %arg10[%c30_172, %c1_173, %c0_174] : memref<40x10x32xf32, #tpu.memory_space<vmem>>, vector<9x9x32xf32>
    %c0_175 = arith.constant 0 : index
    %c0_176 = arith.constant 0 : index
    %c224 = arith.constant 224 : index
    %185 = vector.load %arg11[%c0_175, %c0_176, %c224] : memref<9x9x512xf32, #tpu.memory_space<vmem>>, vector<9x9x32xf32>
    tpu.vector_store %arg11[%c0_175, %c0_176, %c224], %184 {strides = array<i32>} : memref<9x9x512xf32, #tpu.memory_space<vmem>>, vector<9x9x32xf32>,
    %c1_177 = arith.constant 1 : index
    %c0_178 = arith.constant 0 : index
    %c0_179 = arith.constant 0 : index
    %186 = vector.load %arg10[%c1_177, %c0_178, %c0_179] : memref<40x10x32xf32, #tpu.memory_space<vmem>>, vector<9x9x32xf32>
    %c0_180 = arith.constant 0 : index
    %c0_181 = arith.constant 0 : index
    %c256 = arith.constant 256 : index
    %187 = vector.load %arg11[%c0_180, %c0_181, %c256] : memref<9x9x512xf32, #tpu.memory_space<vmem>>, vector<9x9x32xf32>
    tpu.vector_store %arg11[%c0_180, %c0_181, %c256], %186 {strides = array<i32>} : memref<9x9x512xf32, #tpu.memory_space<vmem>>, vector<9x9x32xf32>,
    %c11_182 = arith.constant 11 : index
    %c0_183 = arith.constant 0 : index
    %c0_184 = arith.constant 0 : index
    %188 = vector.load %arg10[%c11_182, %c0_183, %c0_184] : memref<40x10x32xf32, #tpu.memory_space<vmem>>, vector<9x9x32xf32>
    %c0_185 = arith.constant 0 : index
    %c0_186 = arith.constant 0 : index
    %c288 = arith.constant 288 : index
    %189 = vector.load %arg11[%c0_185, %c0_186, %c288] : memref<9x9x512xf32, #tpu.memory_space<vmem>>, vector<9x9x32xf32>
    tpu.vector_store %arg11[%c0_185, %c0_186, %c288], %188 {strides = array<i32>} : memref<9x9x512xf32, #tpu.memory_space<vmem>>, vector<9x9x32xf32>,
    %c1_187 = arith.constant 1 : index
    %c1_188 = arith.constant 1 : index
    %c0_189 = arith.constant 0 : index
    %190 = vector.load %arg10[%c1_187, %c1_188, %c0_189] : memref<40x10x32xf32, #tpu.memory_space<vmem>>, vector<9x9x32xf32>
    %c0_190 = arith.constant 0 : index
    %c0_191 = arith.constant 0 : index
    %c320_192 = arith.constant 320 : index
    %191 = vector.load %arg11[%c0_190, %c0_191, %c320_192] : memref<9x9x512xf32, #tpu.memory_space<vmem>>, vector<9x9x32xf32>
    tpu.vector_store %arg11[%c0_190, %c0_191, %c320_192], %190 {strides = array<i32>} : memref<9x9x512xf32, #tpu.memory_space<vmem>>, vector<9x9x32xf32>,
    %c11_193 = arith.constant 11 : index
    %c1_194 = arith.constant 1 : index
    %c0_195 = arith.constant 0 : index
    %192 = vector.load %arg10[%c11_193, %c1_194, %c0_195] : memref<40x10x32xf32, #tpu.memory_space<vmem>>, vector<9x9x32xf32>
    %c0_196 = arith.constant 0 : index
    %c0_197 = arith.constant 0 : index
    %c352 = arith.constant 352 : index
    %193 = vector.load %arg11[%c0_196, %c0_197, %c352] : memref<9x9x512xf32, #tpu.memory_space<vmem>>, vector<9x9x32xf32>
    tpu.vector_store %arg11[%c0_196, %c0_197, %c352], %192 {strides = array<i32>} : memref<9x9x512xf32, #tpu.memory_space<vmem>>, vector<9x9x32xf32>,
    %c21_198 = arith.constant 21 : index
    %c0_199 = arith.constant 0 : index
    %c0_200 = arith.constant 0 : index
    %194 = vector.load %arg10[%c21_198, %c0_199, %c0_200] : memref<40x10x32xf32, #tpu.memory_space<vmem>>, vector<9x9x32xf32>
    %c0_201 = arith.constant 0 : index
    %c0_202 = arith.constant 0 : index
    %c384 = arith.constant 384 : index
    %195 = vector.load %arg11[%c0_201, %c0_202, %c384] : memref<9x9x512xf32, #tpu.memory_space<vmem>>, vector<9x9x32xf32>
    tpu.vector_store %arg11[%c0_201, %c0_202, %c384], %194 {strides = array<i32>} : memref<9x9x512xf32, #tpu.memory_space<vmem>>, vector<9x9x32xf32>,
    %c31_203 = arith.constant 31 : index
    %c0_204 = arith.constant 0 : index
    %c0_205 = arith.constant 0 : index
    %196 = vector.load %arg10[%c31_203, %c0_204, %c0_205] : memref<40x10x32xf32, #tpu.memory_space<vmem>>, vector<9x9x32xf32>
    %c0_206 = arith.constant 0 : index
    %c0_207 = arith.constant 0 : index
    %c416 = arith.constant 416 : index
    %197 = vector.load %arg11[%c0_206, %c0_207, %c416] : memref<9x9x512xf32, #tpu.memory_space<vmem>>, vector<9x9x32xf32>
    tpu.vector_store %arg11[%c0_206, %c0_207, %c416], %196 {strides = array<i32>} : memref<9x9x512xf32, #tpu.memory_space<vmem>>, vector<9x9x32xf32>,
    %c21_208 = arith.constant 21 : index
    %c1_209 = arith.constant 1 : index
    %c0_210 = arith.constant 0 : index
    %198 = vector.load %arg10[%c21_208, %c1_209, %c0_210] : memref<40x10x32xf32, #tpu.memory_space<vmem>>, vector<9x9x32xf32>
    %c0_211 = arith.constant 0 : index
    %c0_212 = arith.constant 0 : index
    %c448 = arith.constant 448 : index
    %199 = vector.load %arg11[%c0_211, %c0_212, %c448] : memref<9x9x512xf32, #tpu.memory_space<vmem>>, vector<9x9x32xf32>
    tpu.vector_store %arg11[%c0_211, %c0_212, %c448], %198 {strides = array<i32>} : memref<9x9x512xf32, #tpu.memory_space<vmem>>, vector<9x9x32xf32>,
    %c31_213 = arith.constant 31 : index
    %c1_214 = arith.constant 1 : index
    %c0_215 = arith.constant 0 : index
    %200 = vector.load %arg10[%c31_213, %c1_214, %c0_215] : memref<40x10x32xf32, #tpu.memory_space<vmem>>, vector<9x9x32xf32>
    %c0_216 = arith.constant 0 : index
    %c0_217 = arith.constant 0 : index
    %c480 = arith.constant 480 : index
    %201 = vector.load %arg11[%c0_216, %c0_217, %c480] : memref<9x9x512xf32, #tpu.memory_space<vmem>>, vector<9x9x32xf32>
    tpu.vector_store %arg11[%c0_216, %c0_217, %c480], %200 {strides = array<i32>} : memref<9x9x512xf32, #tpu.memory_space<vmem>>, vector<9x9x32xf32>,
    %c0_218 = arith.constant 0 : index
    %c0_219 = arith.constant 0 : index
    %c0_220 = arith.constant 0 : index
    %202 = vector.load %arg11[%c0_218, %c0_219, %c0_220] : memref<9x9x512xf32, #tpu.memory_space<vmem>>, vector<1x9x512xf32>
    %203 = vector.shape_cast %202 : vector<1x9x512xf32> to vector<9x512xf32>
    %c0_221 = arith.constant 0 : index
    %c0_222 = arith.constant 0 : index
    %204 = vector.load %arg12[%c0_221, %c0_222] : memref<81x512xf32, #tpu.memory_space<vmem>>, vector<9x512xf32>
    tpu.vector_store %arg12[%c0_221, %c0_222], %203 {strides = array<i32>} : memref<81x512xf32, #tpu.memory_space<vmem>>, vector<9x512xf32>,
    %c1_223 = arith.constant 1 : index
    %c0_224 = arith.constant 0 : index
    %c0_225 = arith.constant 0 : index
    %205 = vector.load %arg11[%c1_223, %c0_224, %c0_225] : memref<9x9x512xf32, #tpu.memory_space<vmem>>, vector<1x9x512xf32>
    %206 = vector.shape_cast %205 : vector<1x9x512xf32> to vector<9x512xf32>
    %c9_226 = arith.constant 9 : index
    %c0_227 = arith.constant 0 : index
    %207 = vector.load %arg12[%c9_226, %c0_227] : memref<81x512xf32, #tpu.memory_space<vmem>>, vector<9x512xf32>
    tpu.vector_store %arg12[%c9_226, %c0_227], %206 {strides = array<i32>} : memref<81x512xf32, #tpu.memory_space<vmem>>, vector<9x512xf32>,
    %c2_228 = arith.constant 2 : index
    %c0_229 = arith.constant 0 : index
    %c0_230 = arith.constant 0 : index
    %208 = vector.load %arg11[%c2_228, %c0_229, %c0_230] : memref<9x9x512xf32, #tpu.memory_space<vmem>>, vector<1x9x512xf32>
    %209 = vector.shape_cast %208 : vector<1x9x512xf32> to vector<9x512xf32>
    %c18_231 = arith.constant 18 : index
    %c0_232 = arith.constant 0 : index
    %210 = vector.load %arg12[%c18_231, %c0_232] : memref<81x512xf32, #tpu.memory_space<vmem>>, vector<9x512xf32>
    tpu.vector_store %arg12[%c18_231, %c0_232], %209 {strides = array<i32>} : memref<81x512xf32, #tpu.memory_space<vmem>>, vector<9x512xf32>,
    %c3_233 = arith.constant 3 : index
    %c0_234 = arith.constant 0 : index
    %c0_235 = arith.constant 0 : index
    %211 = vector.load %arg11[%c3_233, %c0_234, %c0_235] : memref<9x9x512xf32, #tpu.memory_space<vmem>>, vector<1x9x512xf32>
    %212 = vector.shape_cast %211 : vector<1x9x512xf32> to vector<9x512xf32>
    %c27_236 = arith.constant 27 : index
    %c0_237 = arith.constant 0 : index
    %213 = vector.load %arg12[%c27_236, %c0_237] : memref<81x512xf32, #tpu.memory_space<vmem>>, vector<9x512xf32>
    tpu.vector_store %arg12[%c27_236, %c0_237], %212 {strides = array<i32>} : memref<81x512xf32, #tpu.memory_space<vmem>>, vector<9x512xf32>,
    %c4_238 = arith.constant 4 : index
    %c0_239 = arith.constant 0 : index
    %c0_240 = arith.constant 0 : index
    %214 = vector.load %arg11[%c4_238, %c0_239, %c0_240] : memref<9x9x512xf32, #tpu.memory_space<vmem>>, vector<1x9x512xf32>
    %215 = vector.shape_cast %214 : vector<1x9x512xf32> to vector<9x512xf32>
    %c36_241 = arith.constant 36 : index
    %c0_242 = arith.constant 0 : index
    %216 = vector.load %arg12[%c36_241, %c0_242] : memref<81x512xf32, #tpu.memory_space<vmem>>, vector<9x512xf32>
    tpu.vector_store %arg12[%c36_241, %c0_242], %215 {strides = array<i32>} : memref<81x512xf32, #tpu.memory_space<vmem>>, vector<9x512xf32>,
    %c5_243 = arith.constant 5 : index
    %c0_244 = arith.constant 0 : index
    %c0_245 = arith.constant 0 : index
    %217 = vector.load %arg11[%c5_243, %c0_244, %c0_245] : memref<9x9x512xf32, #tpu.memory_space<vmem>>, vector<1x9x512xf32>
    %218 = vector.shape_cast %217 : vector<1x9x512xf32> to vector<9x512xf32>
    %c45 = arith.constant 45 : index
    %c0_246 = arith.constant 0 : index
    %219 = vector.load %arg12[%c45, %c0_246] : memref<81x512xf32, #tpu.memory_space<vmem>>, vector<9x512xf32>
    tpu.vector_store %arg12[%c45, %c0_246], %218 {strides = array<i32>} : memref<81x512xf32, #tpu.memory_space<vmem>>, vector<9x512xf32>,
    %c6_247 = arith.constant 6 : index
    %c0_248 = arith.constant 0 : index
    %c0_249 = arith.constant 0 : index
    %220 = vector.load %arg11[%c6_247, %c0_248, %c0_249] : memref<9x9x512xf32, #tpu.memory_space<vmem>>, vector<1x9x512xf32>
    %221 = vector.shape_cast %220 : vector<1x9x512xf32> to vector<9x512xf32>
    %c54 = arith.constant 54 : index
    %c0_250 = arith.constant 0 : index
    %222 = vector.load %arg12[%c54, %c0_250] : memref<81x512xf32, #tpu.memory_space<vmem>>, vector<9x512xf32>
    tpu.vector_store %arg12[%c54, %c0_250], %221 {strides = array<i32>} : memref<81x512xf32, #tpu.memory_space<vmem>>, vector<9x512xf32>,
    %c7_251 = arith.constant 7 : index
    %c0_252 = arith.constant 0 : index
    %c0_253 = arith.constant 0 : index
    %223 = vector.load %arg11[%c7_251, %c0_252, %c0_253] : memref<9x9x512xf32, #tpu.memory_space<vmem>>, vector<1x9x512xf32>
    %224 = vector.shape_cast %223 : vector<1x9x512xf32> to vector<9x512xf32>
    %c63 = arith.constant 63 : index
    %c0_254 = arith.constant 0 : index
    %225 = vector.load %arg12[%c63, %c0_254] : memref<81x512xf32, #tpu.memory_space<vmem>>, vector<9x512xf32>
    tpu.vector_store %arg12[%c63, %c0_254], %224 {strides = array<i32>} : memref<81x512xf32, #tpu.memory_space<vmem>>, vector<9x512xf32>,
    %c8_255 = arith.constant 8 : index
    %c0_256 = arith.constant 0 : index
    %c0_257 = arith.constant 0 : index
    %226 = vector.load %arg11[%c8_255, %c0_256, %c0_257] : memref<9x9x512xf32, #tpu.memory_space<vmem>>, vector<1x9x512xf32>
    %227 = vector.shape_cast %226 : vector<1x9x512xf32> to vector<9x512xf32>
    %c72 = arith.constant 72 : index
    %c0_258 = arith.constant 0 : index
    %228 = vector.load %arg12[%c72, %c0_258] : memref<81x512xf32, #tpu.memory_space<vmem>>, vector<9x512xf32>
    tpu.vector_store %arg12[%c72, %c0_258], %227 {strides = array<i32>} : memref<81x512xf32, #tpu.memory_space<vmem>>, vector<9x512xf32>,
    %c0_259 = arith.constant 0 : index
    %c0_260 = arith.constant 0 : index
    %229 = vector.load %arg12[%c0_259, %c0_260] : memref<81x512xf32, #tpu.memory_space<vmem>>, vector<81x512xf32>
    %c0_261 = arith.constant 0 : index
    %c0_262 = arith.constant 0 : index
    %230 = vector.load %arg4[%c0_261, %c0_262] : memref<512x64xf32, #tpu.memory_space<vmem>>, vector<512x64xf32>
    %cst_263 = arith.constant dense<0.000000e+00> : vector<81x64xf32>
    %231 = tpu.matmul %229, %230, %cst_263 {dimension_numbers = #tpu.dot_dimension_numbers<[1], [0], [0], [1], [0, 0, 1, 1], [], []>} : vector<81x512xf32>, vector<512x64xf32>, vector<81x64xf32> -> vector<81x64xf32>
    %c0_264 = arith.constant 0 : index
    %c0_265 = arith.constant 0 : index
    %232 = vector.load %arg5[%c0_264, %c0_265] : memref<1x64xf32, #tpu.memory_space<vmem>>, vector<1x64xf32>
    %233 = vector.broadcast %232 : vector<1x64xf32> to vector<81x64xf32>
    %234 = arith.addf %231, %233 : vector<81x64xf32>
    %cst_266 = arith.constant 0.000000e+00 : f32
    %235 = vector.broadcast %cst_266 : f32 to vector<81x64xf32>
    %236 = arith.maximumf %234, %235 : vector<81x64xf32>
    %c0_267 = arith.constant 0 : index
    %c0_268 = arith.constant 0 : index
    %237 = vector.load %arg13[%c0_267, %c0_268] : memref<81x64xf32, #tpu.memory_space<vmem>>, vector<81x64xf32>
    tpu.vector_store %arg13[%c0_267, %c0_268], %236 {strides = array<i32>} : memref<81x64xf32, #tpu.memory_space<vmem>>, vector<81x64xf32>,
    %c0_269 = arith.constant 0 : index
    %c0_270 = arith.constant 0 : index
    %238 = vector.load %arg13[%c0_269, %c0_270] : memref<81x64xf32, #tpu.memory_space<vmem>>, vector<9x64xf32>
    %c0_271 = arith.constant 0 : index
    %c0_272 = arith.constant 0 : index
    %c0_273 = arith.constant 0 : index
    %239 = vector.load %arg14[%c0_271, %c0_272, %c0_273] : memref<9x9x64xf32, #tpu.memory_space<vmem>>, vector<1x9x64xf32>
    %240 = vector.shape_cast %239 : vector<1x9x64xf32> to vector<9x64xf32>
    %241 = vector.shape_cast %238 : vector<9x64xf32> to vector<1x9x64xf32>
    tpu.vector_store %arg14[%c0_271, %c0_272, %c0_273], %241 {strides = array<i32>} : memref<9x9x64xf32, #tpu.memory_space<vmem>>, vector<1x9x64xf32>,
    %c9_274 = arith.constant 9 : index
    %c0_275 = arith.constant 0 : index
    %242 = vector.load %arg13[%c9_274, %c0_275] : memref<81x64xf32, #tpu.memory_space<vmem>>, vector<9x64xf32>
    %c1_276 = arith.constant 1 : index
    %c0_277 = arith.constant 0 : index
    %c0_278 = arith.constant 0 : index
    %243 = vector.load %arg14[%c1_276, %c0_277, %c0_278] : memref<9x9x64xf32, #tpu.memory_space<vmem>>, vector<1x9x64xf32>
    %244 = vector.shape_cast %243 : vector<1x9x64xf32> to vector<9x64xf32>
    %245 = vector.shape_cast %242 : vector<9x64xf32> to vector<1x9x64xf32>
    tpu.vector_store %arg14[%c1_276, %c0_277, %c0_278], %245 {strides = array<i32>} : memref<9x9x64xf32, #tpu.memory_space<vmem>>, vector<1x9x64xf32>,
    %c18_279 = arith.constant 18 : index
    %c0_280 = arith.constant 0 : index
    %246 = vector.load %arg13[%c18_279, %c0_280] : memref<81x64xf32, #tpu.memory_space<vmem>>, vector<9x64xf32>
    %c2_281 = arith.constant 2 : index
    %c0_282 = arith.constant 0 : index
    %c0_283 = arith.constant 0 : index
    %247 = vector.load %arg14[%c2_281, %c0_282, %c0_283] : memref<9x9x64xf32, #tpu.memory_space<vmem>>, vector<1x9x64xf32>
    %248 = vector.shape_cast %247 : vector<1x9x64xf32> to vector<9x64xf32>
    %249 = vector.shape_cast %246 : vector<9x64xf32> to vector<1x9x64xf32>
    tpu.vector_store %arg14[%c2_281, %c0_282, %c0_283], %249 {strides = array<i32>} : memref<9x9x64xf32, #tpu.memory_space<vmem>>, vector<1x9x64xf32>,
    %c27_284 = arith.constant 27 : index
    %c0_285 = arith.constant 0 : index
    %250 = vector.load %arg13[%c27_284, %c0_285] : memref<81x64xf32, #tpu.memory_space<vmem>>, vector<9x64xf32>
    %c3_286 = arith.constant 3 : index
    %c0_287 = arith.constant 0 : index
    %c0_288 = arith.constant 0 : index
    %251 = vector.load %arg14[%c3_286, %c0_287, %c0_288] : memref<9x9x64xf32, #tpu.memory_space<vmem>>, vector<1x9x64xf32>
    %252 = vector.shape_cast %251 : vector<1x9x64xf32> to vector<9x64xf32>
    %253 = vector.shape_cast %250 : vector<9x64xf32> to vector<1x9x64xf32>
    tpu.vector_store %arg14[%c3_286, %c0_287, %c0_288], %253 {strides = array<i32>} : memref<9x9x64xf32, #tpu.memory_space<vmem>>, vector<1x9x64xf32>,
    %c36_289 = arith.constant 36 : index
    %c0_290 = arith.constant 0 : index
    %254 = vector.load %arg13[%c36_289, %c0_290] : memref<81x64xf32, #tpu.memory_space<vmem>>, vector<9x64xf32>
    %c4_291 = arith.constant 4 : index
    %c0_292 = arith.constant 0 : index
    %c0_293 = arith.constant 0 : index
    %255 = vector.load %arg14[%c4_291, %c0_292, %c0_293] : memref<9x9x64xf32, #tpu.memory_space<vmem>>, vector<1x9x64xf32>
    %256 = vector.shape_cast %255 : vector<1x9x64xf32> to vector<9x64xf32>
    %257 = vector.shape_cast %254 : vector<9x64xf32> to vector<1x9x64xf32>
    tpu.vector_store %arg14[%c4_291, %c0_292, %c0_293], %257 {strides = array<i32>} : memref<9x9x64xf32, #tpu.memory_space<vmem>>, vector<1x9x64xf32>,
    %c45_294 = arith.constant 45 : index
    %c0_295 = arith.constant 0 : index
    %258 = vector.load %arg13[%c45_294, %c0_295] : memref<81x64xf32, #tpu.memory_space<vmem>>, vector<9x64xf32>
    %c5_296 = arith.constant 5 : index
    %c0_297 = arith.constant 0 : index
    %c0_298 = arith.constant 0 : index
    %259 = vector.load %arg14[%c5_296, %c0_297, %c0_298] : memref<9x9x64xf32, #tpu.memory_space<vmem>>, vector<1x9x64xf32>
    %260 = vector.shape_cast %259 : vector<1x9x64xf32> to vector<9x64xf32>
    %261 = vector.shape_cast %258 : vector<9x64xf32> to vector<1x9x64xf32>
    tpu.vector_store %arg14[%c5_296, %c0_297, %c0_298], %261 {strides = array<i32>} : memref<9x9x64xf32, #tpu.memory_space<vmem>>, vector<1x9x64xf32>,
    %c54_299 = arith.constant 54 : index
    %c0_300 = arith.constant 0 : index
    %262 = vector.load %arg13[%c54_299, %c0_300] : memref<81x64xf32, #tpu.memory_space<vmem>>, vector<9x64xf32>
    %c6_301 = arith.constant 6 : index
    %c0_302 = arith.constant 0 : index
    %c0_303 = arith.constant 0 : index
    %263 = vector.load %arg14[%c6_301, %c0_302, %c0_303] : memref<9x9x64xf32, #tpu.memory_space<vmem>>, vector<1x9x64xf32>
    %264 = vector.shape_cast %263 : vector<1x9x64xf32> to vector<9x64xf32>
    %265 = vector.shape_cast %262 : vector<9x64xf32> to vector<1x9x64xf32>
    tpu.vector_store %arg14[%c6_301, %c0_302, %c0_303], %265 {strides = array<i32>} : memref<9x9x64xf32, #tpu.memory_space<vmem>>, vector<1x9x64xf32>,
    %c63_304 = arith.constant 63 : index
    %c0_305 = arith.constant 0 : index
    %266 = vector.load %arg13[%c63_304, %c0_305] : memref<81x64xf32, #tpu.memory_space<vmem>>, vector<9x64xf32>
    %c7_306 = arith.constant 7 : index
    %c0_307 = arith.constant 0 : index
    %c0_308 = arith.constant 0 : index
    %267 = vector.load %arg14[%c7_306, %c0_307, %c0_308] : memref<9x9x64xf32, #tpu.memory_space<vmem>>, vector<1x9x64xf32>
    %268 = vector.shape_cast %267 : vector<1x9x64xf32> to vector<9x64xf32>
    %269 = vector.shape_cast %266 : vector<9x64xf32> to vector<1x9x64xf32>
    tpu.vector_store %arg14[%c7_306, %c0_307, %c0_308], %269 {strides = array<i32>} : memref<9x9x64xf32, #tpu.memory_space<vmem>>, vector<1x9x64xf32>,
    %c72_309 = arith.constant 72 : index
    %c0_310 = arith.constant 0 : index
    %270 = vector.load %arg13[%c72_309, %c0_310] : memref<81x64xf32, #tpu.memory_space<vmem>>, vector<9x64xf32>
    %c8_311 = arith.constant 8 : index
    %c0_312 = arith.constant 0 : index
    %c0_313 = arith.constant 0 : index
    %271 = vector.load %arg14[%c8_311, %c0_312, %c0_313] : memref<9x9x64xf32, #tpu.memory_space<vmem>>, vector<1x9x64xf32>
    %272 = vector.shape_cast %271 : vector<1x9x64xf32> to vector<9x64xf32>
    %273 = vector.shape_cast %270 : vector<9x64xf32> to vector<1x9x64xf32>
    tpu.vector_store %arg14[%c8_311, %c0_312, %c0_313], %273 {strides = array<i32>} : memref<9x9x64xf32, #tpu.memory_space<vmem>>, vector<1x9x64xf32>,
    %c0_314 = arith.constant 0 : index
    %c0_315 = arith.constant 0 : index
    %c0_316 = arith.constant 0 : index
    %274 = vector.load %arg14[%c0_314, %c0_315, %c0_316] : memref<9x9x64xf32, #tpu.memory_space<vmem>>, vector<7x7x64xf32>
    %c0_317 = arith.constant 0 : index
    %c0_318 = arith.constant 0 : index
    %c0_319 = arith.constant 0 : index
    %275 = vector.load %arg15[%c0_317, %c0_318, %c0_319] : memref<7x7x576xf32, #tpu.memory_space<vmem>>, vector<7x7x64xf32>
    tpu.vector_store %arg15[%c0_317, %c0_318, %c0_319], %274 {strides = array<i32>} : memref<7x7x576xf32, #tpu.memory_space<vmem>>, vector<7x7x64xf32>,
    %c0_320 = arith.constant 0 : index
    %c1_321 = arith.constant 1 : index
    %c0_322 = arith.constant 0 : index
    %276 = vector.load %arg14[%c0_320, %c1_321, %c0_322] : memref<9x9x64xf32, #tpu.memory_space<vmem>>, vector<7x7x64xf32>
    %c0_323 = arith.constant 0 : index
    %c0_324 = arith.constant 0 : index
    %c64_325 = arith.constant 64 : index
    %277 = vector.load %arg15[%c0_323, %c0_324, %c64_325] : memref<7x7x576xf32, #tpu.memory_space<vmem>>, vector<7x7x64xf32>
    tpu.vector_store %arg15[%c0_323, %c0_324, %c64_325], %276 {strides = array<i32>} : memref<7x7x576xf32, #tpu.memory_space<vmem>>, vector<7x7x64xf32>,
    %c0_326 = arith.constant 0 : index
    %c2_327 = arith.constant 2 : index
    %c0_328 = arith.constant 0 : index
    %278 = vector.load %arg14[%c0_326, %c2_327, %c0_328] : memref<9x9x64xf32, #tpu.memory_space<vmem>>, vector<7x7x64xf32>
    %c0_329 = arith.constant 0 : index
    %c0_330 = arith.constant 0 : index
    %c128_331 = arith.constant 128 : index
    %279 = vector.load %arg15[%c0_329, %c0_330, %c128_331] : memref<7x7x576xf32, #tpu.memory_space<vmem>>, vector<7x7x64xf32>
    tpu.vector_store %arg15[%c0_329, %c0_330, %c128_331], %278 {strides = array<i32>} : memref<7x7x576xf32, #tpu.memory_space<vmem>>, vector<7x7x64xf32>,
    %c1_332 = arith.constant 1 : index
    %c0_333 = arith.constant 0 : index
    %c0_334 = arith.constant 0 : index
    %280 = vector.load %arg14[%c1_332, %c0_333, %c0_334] : memref<9x9x64xf32, #tpu.memory_space<vmem>>, vector<7x7x64xf32>
    %c0_335 = arith.constant 0 : index
    %c0_336 = arith.constant 0 : index
    %c192_337 = arith.constant 192 : index
    %281 = vector.load %arg15[%c0_335, %c0_336, %c192_337] : memref<7x7x576xf32, #tpu.memory_space<vmem>>, vector<7x7x64xf32>
    tpu.vector_store %arg15[%c0_335, %c0_336, %c192_337], %280 {strides = array<i32>} : memref<7x7x576xf32, #tpu.memory_space<vmem>>, vector<7x7x64xf32>,
    %c1_338 = arith.constant 1 : index
    %c1_339 = arith.constant 1 : index
    %c0_340 = arith.constant 0 : index
    %282 = vector.load %arg14[%c1_338, %c1_339, %c0_340] : memref<9x9x64xf32, #tpu.memory_space<vmem>>, vector<7x7x64xf32>
    %c0_341 = arith.constant 0 : index
    %c0_342 = arith.constant 0 : index
    %c256_343 = arith.constant 256 : index
    %283 = vector.load %arg15[%c0_341, %c0_342, %c256_343] : memref<7x7x576xf32, #tpu.memory_space<vmem>>, vector<7x7x64xf32>
    tpu.vector_store %arg15[%c0_341, %c0_342, %c256_343], %282 {strides = array<i32>} : memref<7x7x576xf32, #tpu.memory_space<vmem>>, vector<7x7x64xf32>,
    %c1_344 = arith.constant 1 : index
    %c2_345 = arith.constant 2 : index
    %c0_346 = arith.constant 0 : index
    %284 = vector.load %arg14[%c1_344, %c2_345, %c0_346] : memref<9x9x64xf32, #tpu.memory_space<vmem>>, vector<7x7x64xf32>
    %c0_347 = arith.constant 0 : index
    %c0_348 = arith.constant 0 : index
    %c320_349 = arith.constant 320 : index
    %285 = vector.load %arg15[%c0_347, %c0_348, %c320_349] : memref<7x7x576xf32, #tpu.memory_space<vmem>>, vector<7x7x64xf32>
    tpu.vector_store %arg15[%c0_347, %c0_348, %c320_349], %284 {strides = array<i32>} : memref<7x7x576xf32, #tpu.memory_space<vmem>>, vector<7x7x64xf32>,
    %c2_350 = arith.constant 2 : index
    %c0_351 = arith.constant 0 : index
    %c0_352 = arith.constant 0 : index
    %286 = vector.load %arg14[%c2_350, %c0_351, %c0_352] : memref<9x9x64xf32, #tpu.memory_space<vmem>>, vector<7x7x64xf32>
    %c0_353 = arith.constant 0 : index
    %c0_354 = arith.constant 0 : index
    %c384_355 = arith.constant 384 : index
    %287 = vector.load %arg15[%c0_353, %c0_354, %c384_355] : memref<7x7x576xf32, #tpu.memory_space<vmem>>, vector<7x7x64xf32>
    tpu.vector_store %arg15[%c0_353, %c0_354, %c384_355], %286 {strides = array<i32>} : memref<7x7x576xf32, #tpu.memory_space<vmem>>, vector<7x7x64xf32>,
    %c2_356 = arith.constant 2 : index
    %c1_357 = arith.constant 1 : index
    %c0_358 = arith.constant 0 : index
    %288 = vector.load %arg14[%c2_356, %c1_357, %c0_358] : memref<9x9x64xf32, #tpu.memory_space<vmem>>, vector<7x7x64xf32>
    %c0_359 = arith.constant 0 : index
    %c0_360 = arith.constant 0 : index
    %c448_361 = arith.constant 448 : index
    %289 = vector.load %arg15[%c0_359, %c0_360, %c448_361] : memref<7x7x576xf32, #tpu.memory_space<vmem>>, vector<7x7x64xf32>
    tpu.vector_store %arg15[%c0_359, %c0_360, %c448_361], %288 {strides = array<i32>} : memref<7x7x576xf32, #tpu.memory_space<vmem>>, vector<7x7x64xf32>,
    %c2_362 = arith.constant 2 : index
    %c2_363 = arith.constant 2 : index
    %c0_364 = arith.constant 0 : index
    %290 = vector.load %arg14[%c2_362, %c2_363, %c0_364] : memref<9x9x64xf32, #tpu.memory_space<vmem>>, vector<7x7x64xf32>
    %c0_365 = arith.constant 0 : index
    %c0_366 = arith.constant 0 : index
    %c512 = arith.constant 512 : index
    %291 = vector.load %arg15[%c0_365, %c0_366, %c512] : memref<7x7x576xf32, #tpu.memory_space<vmem>>, vector<7x7x64xf32>
    tpu.vector_store %arg15[%c0_365, %c0_366, %c512], %290 {strides = array<i32>} : memref<7x7x576xf32, #tpu.memory_space<vmem>>, vector<7x7x64xf32>,
    %c0_367 = arith.constant 0 : index
    %c0_368 = arith.constant 0 : index
    %c0_369 = arith.constant 0 : index
    %292 = vector.load %arg15[%c0_367, %c0_368, %c0_369] : memref<7x7x576xf32, #tpu.memory_space<vmem>>, vector<1x7x576xf32>
    %293 = vector.shape_cast %292 : vector<1x7x576xf32> to vector<7x576xf32>
    %c0_370 = arith.constant 0 : index
    %c0_371 = arith.constant 0 : index
    %294 = vector.load %arg16[%c0_370, %c0_371] : memref<49x576xf32, #tpu.memory_space<vmem>>, vector<7x576xf32>
    tpu.vector_store %arg16[%c0_370, %c0_371], %293 {strides = array<i32>} : memref<49x576xf32, #tpu.memory_space<vmem>>, vector<7x576xf32>,
    %c1_372 = arith.constant 1 : index
    %c0_373 = arith.constant 0 : index
    %c0_374 = arith.constant 0 : index
    %295 = vector.load %arg15[%c1_372, %c0_373, %c0_374] : memref<7x7x576xf32, #tpu.memory_space<vmem>>, vector<1x7x576xf32>
    %296 = vector.shape_cast %295 : vector<1x7x576xf32> to vector<7x576xf32>
    %c7_375 = arith.constant 7 : index
    %c0_376 = arith.constant 0 : index
    %297 = vector.load %arg16[%c7_375, %c0_376] : memref<49x576xf32, #tpu.memory_space<vmem>>, vector<7x576xf32>
    tpu.vector_store %arg16[%c7_375, %c0_376], %296 {strides = array<i32>} : memref<49x576xf32, #tpu.memory_space<vmem>>, vector<7x576xf32>,
    %c2_377 = arith.constant 2 : index
    %c0_378 = arith.constant 0 : index
    %c0_379 = arith.constant 0 : index
    %298 = vector.load %arg15[%c2_377, %c0_378, %c0_379] : memref<7x7x576xf32, #tpu.memory_space<vmem>>, vector<1x7x576xf32>
    %299 = vector.shape_cast %298 : vector<1x7x576xf32> to vector<7x576xf32>
    %c14_380 = arith.constant 14 : index
    %c0_381 = arith.constant 0 : index
    %300 = vector.load %arg16[%c14_380, %c0_381] : memref<49x576xf32, #tpu.memory_space<vmem>>, vector<7x576xf32>
    tpu.vector_store %arg16[%c14_380, %c0_381], %299 {strides = array<i32>} : memref<49x576xf32, #tpu.memory_space<vmem>>, vector<7x576xf32>,
    %c3_382 = arith.constant 3 : index
    %c0_383 = arith.constant 0 : index
    %c0_384 = arith.constant 0 : index
    %301 = vector.load %arg15[%c3_382, %c0_383, %c0_384] : memref<7x7x576xf32, #tpu.memory_space<vmem>>, vector<1x7x576xf32>
    %302 = vector.shape_cast %301 : vector<1x7x576xf32> to vector<7x576xf32>
    %c21_385 = arith.constant 21 : index
    %c0_386 = arith.constant 0 : index
    %303 = vector.load %arg16[%c21_385, %c0_386] : memref<49x576xf32, #tpu.memory_space<vmem>>, vector<7x576xf32>
    tpu.vector_store %arg16[%c21_385, %c0_386], %302 {strides = array<i32>} : memref<49x576xf32, #tpu.memory_space<vmem>>, vector<7x576xf32>,
    %c4_387 = arith.constant 4 : index
    %c0_388 = arith.constant 0 : index
    %c0_389 = arith.constant 0 : index
    %304 = vector.load %arg15[%c4_387, %c0_388, %c0_389] : memref<7x7x576xf32, #tpu.memory_space<vmem>>, vector<1x7x576xf32>
    %305 = vector.shape_cast %304 : vector<1x7x576xf32> to vector<7x576xf32>
    %c28_390 = arith.constant 28 : index
    %c0_391 = arith.constant 0 : index
    %306 = vector.load %arg16[%c28_390, %c0_391] : memref<49x576xf32, #tpu.memory_space<vmem>>, vector<7x576xf32>
    tpu.vector_store %arg16[%c28_390, %c0_391], %305 {strides = array<i32>} : memref<49x576xf32, #tpu.memory_space<vmem>>, vector<7x576xf32>,
    %c5_392 = arith.constant 5 : index
    %c0_393 = arith.constant 0 : index
    %c0_394 = arith.constant 0 : index
    %307 = vector.load %arg15[%c5_392, %c0_393, %c0_394] : memref<7x7x576xf32, #tpu.memory_space<vmem>>, vector<1x7x576xf32>
    %308 = vector.shape_cast %307 : vector<1x7x576xf32> to vector<7x576xf32>
    %c35_395 = arith.constant 35 : index
    %c0_396 = arith.constant 0 : index
    %309 = vector.load %arg16[%c35_395, %c0_396] : memref<49x576xf32, #tpu.memory_space<vmem>>, vector<7x576xf32>
    tpu.vector_store %arg16[%c35_395, %c0_396], %308 {strides = array<i32>} : memref<49x576xf32, #tpu.memory_space<vmem>>, vector<7x576xf32>,
    %c6_397 = arith.constant 6 : index
    %c0_398 = arith.constant 0 : index
    %c0_399 = arith.constant 0 : index
    %310 = vector.load %arg15[%c6_397, %c0_398, %c0_399] : memref<7x7x576xf32, #tpu.memory_space<vmem>>, vector<1x7x576xf32>
    %311 = vector.shape_cast %310 : vector<1x7x576xf32> to vector<7x576xf32>
    %c42 = arith.constant 42 : index
    %c0_400 = arith.constant 0 : index
    %312 = vector.load %arg16[%c42, %c0_400] : memref<49x576xf32, #tpu.memory_space<vmem>>, vector<7x576xf32>
    tpu.vector_store %arg16[%c42, %c0_400], %311 {strides = array<i32>} : memref<49x576xf32, #tpu.memory_space<vmem>>, vector<7x576xf32>,
    %c0_401 = arith.constant 0 : index
    %c0_402 = arith.constant 0 : index
    %313 = vector.load %arg16[%c0_401, %c0_402] : memref<49x576xf32, #tpu.memory_space<vmem>>, vector<49x576xf32>
    %c0_403 = arith.constant 0 : index
    %c0_404 = arith.constant 0 : index
    %314 = vector.load %arg6[%c0_403, %c0_404] : memref<576x64xf32, #tpu.memory_space<vmem>>, vector<576x64xf32>
    %cst_405 = arith.constant dense<0.000000e+00> : vector<49x64xf32>
    %315 = tpu.matmul %313, %314, %cst_405 {dimension_numbers = #tpu.dot_dimension_numbers<[1], [0], [0], [1], [0, 0, 1, 1], [], []>} : vector<49x576xf32>, vector<576x64xf32>, vector<49x64xf32> -> vector<49x64xf32>
    %c0_406 = arith.constant 0 : index
    %c0_407 = arith.constant 0 : index
    %316 = vector.load %arg7[%c0_406, %c0_407] : memref<1x64xf32, #tpu.memory_space<vmem>>, vector<1x64xf32>
    %317 = vector.broadcast %316 : vector<1x64xf32> to vector<49x64xf32>
    %318 = arith.addf %315, %317 : vector<49x64xf32>
    %cst_408 = arith.constant 0.000000e+00 : f32
    %319 = vector.broadcast %cst_408 : f32 to vector<49x64xf32>
    %320 = arith.maximumf %318, %319 : vector<49x64xf32>
    %c0_409 = arith.constant 0 : index
    %c0_410 = arith.constant 0 : index
    %c0_411 = arith.constant 0 : index
    %321 = vector.load %arg8[%c0_409, %c0_410, %c0_411] : memref<1x49x64xf32, #tpu.memory_space<vmem>>, vector<1x49x64xf32>
    %322 = vector.shape_cast %321 : vector<1x49x64xf32> to vector<49x64xf32>
    %323 = vector.shape_cast %320 : vector<49x64xf32> to vector<1x49x64xf32>
    tpu.vector_store %arg8[%c0_409, %c0_410, %c0_411], %323 {strides = array<i32>} : memref<1x49x64xf32, #tpu.memory_space<vmem>>, vector<1x49x64xf32>,
    return
  }
  func.func @transform_0(%arg0: i32) -> (i32, i32, i32) {
    %c0_i32 = arith.constant 0 : i32
    %c0_i32_0 = arith.constant 0 : i32
    %c0_i32_1 = arith.constant 0 : i32
    return %arg0, %c0_i32, %c0_i32_0 : i32, i32, i32
  }
  func.func @transform_1(%arg0: i32) -> (i32, i32) {
    %c0_i32 = arith.constant 0 : i32
    %c0_i32_0 = arith.constant 0 : i32
    %c0_i32_1 = arith.constant 0 : i32
    return %c0_i32, %c0_i32_0 : i32, i32
  }
  func.func @transform_2(%arg0: i32) -> (i32, i32) {
    %c0_i32 = arith.constant 0 : i32
    %c0_i32_0 = arith.constant 0 : i32
    %c0_i32_1 = arith.constant 0 : i32
    return %c0_i32, %c0_i32_0 : i32, i32
  }
  func.func @transform_3(%arg0: i32) -> (i32, i32) {
    %c0_i32 = arith.constant 0 : i32
    %c0_i32_0 = arith.constant 0 : i32
    %c0_i32_1 = arith.constant 0 : i32
    return %c0_i32, %c0_i32_0 : i32, i32
  }
  func.func @transform_4(%arg0: i32) -> (i32, i32) {
    %c0_i32 = arith.constant 0 : i32
    %c0_i32_0 = arith.constant 0 : i32
    %c0_i32_1 = arith.constant 0 : i32
    return %c0_i32, %c0_i32_0 : i32, i32
  }
  func.func @transform_5(%arg0: i32) -> (i32, i32) {
    %c0_i32 = arith.constant 0 : i32
    %c0_i32_0 = arith.constant 0 : i32
    %c0_i32_1 = arith.constant 0 : i32
    return %c0_i32, %c0_i32_0 : i32, i32
  }
  func.func @transform_6(%arg0: i32) -> (i32, i32) {
    %c0_i32 = arith.constant 0 : i32
    %c0_i32_0 = arith.constant 0 : i32
    %c0_i32_1 = arith.constant 0 : i32
    return %c0_i32, %c0_i32_0 : i32, i32
  }
  func.func @transform_7(%arg0: i32) -> (i32, i32, i32) {
    %c0_i32 = arith.constant 0 : i32
    %c0_i32_0 = arith.constant 0 : i32
    %c0_i32_1 = arith.constant 0 : i32
    return %arg0, %c0_i32, %c0_i32_0 : i32, i32, i32
  }
}

module attributes {stable_mosaic.version = 11 : i64} {
  func.func @_fc_kernel(%arg0: i32, %arg1: memref<2x3136xf32, #tpu.memory_space<vmem>>, %arg2: memref<3136x512xbf16, #tpu.memory_space<vmem>>, %arg3: memref<1x512xf32, #tpu.memory_space<vmem>>, %arg4: memref<512x128xf32, #tpu.memory_space<vmem>>, %arg5: memref<1x128xf32, #tpu.memory_space<vmem>>, %arg6: memref<2x128xf32, #tpu.memory_space<vmem>>) attributes {dimension_semantics = [#tpu.dimension_semantics<arbitrary>], iteration_bounds = array<i64: 1>, scalar_prefetch = 0 : i64, scratch_operands = 0 : i64, tpu.core_type = #tpu.core_type<tc>, window_params = [{pipeline_mode = #tpu.pipeline_mode<synchronous>, transform_indices = @transform_0, window_bounds = array<i64: 2, 3136>}, {pipeline_mode = #tpu.pipeline_mode<synchronous>, transform_indices = @transform_1, window_bounds = array<i64: 3136, 512>}, {pipeline_mode = #tpu.pipeline_mode<synchronous>, transform_indices = @transform_2, window_bounds = array<i64: 1, 512>}, {pipeline_mode = #tpu.pipeline_mode<synchronous>, transform_indices = @transform_3, window_bounds = array<i64: 512, 128>}, {pipeline_mode = #tpu.pipeline_mode<synchronous>, transform_indices = @transform_4, window_bounds = array<i64: 1, 128>}, {pipeline_mode = #tpu.pipeline_mode<synchronous>, transform_indices = @transform_5, window_bounds = array<i64: 2, 128>}]} {
    %c0 = arith.constant 0 : index
    %c0_0 = arith.constant 0 : index
    %0 = vector.load %arg1[%c0, %c0_0] : memref<2x3136xf32, #tpu.memory_space<vmem>>, vector<2x3136xf32>
    %1 = arith.truncf %0 : vector<2x3136xf32> to vector<2x3136xbf16>
    %c0_1 = arith.constant 0 : index
    %c0_2 = arith.constant 0 : index
    %2 = vector.load %arg2[%c0_1, %c0_2] : memref<3136x512xbf16, #tpu.memory_space<vmem>>, vector<3136x512xbf16>
    %cst = arith.constant dense<0.000000e+00> : vector<2x512xf32>
    %3 = tpu.matmul %1, %2, %cst {dimension_numbers = #tpu.dot_dimension_numbers<[1], [0], [0], [1], [0, 0, 1, 1], [], []>} : vector<2x3136xbf16>, vector<3136x512xbf16>, vector<2x512xf32> -> vector<2x512xf32>
    %c0_3 = arith.constant 0 : index
    %c0_4 = arith.constant 0 : index
    %4 = vector.load %arg3[%c0_3, %c0_4] : memref<1x512xf32, #tpu.memory_space<vmem>>, vector<1x512xf32>
    %5 = vector.broadcast %4 : vector<1x512xf32> to vector<2x512xf32>
    %6 = arith.addf %3, %5 : vector<2x512xf32>
    %cst_5 = arith.constant 0.000000e+00 : f32
    %7 = vector.broadcast %cst_5 : f32 to vector<2x512xf32>
    %8 = arith.maximumf %6, %7 : vector<2x512xf32>
    %c0_6 = arith.constant 0 : index
    %c0_7 = arith.constant 0 : index
    %9 = vector.load %arg4[%c0_6, %c0_7] : memref<512x128xf32, #tpu.memory_space<vmem>>, vector<512x128xf32>
    %cst_8 = arith.constant dense<0.000000e+00> : vector<2x128xf32>
    %10 = tpu.matmul %8, %9, %cst_8 {dimension_numbers = #tpu.dot_dimension_numbers<[1], [0], [0], [1], [0, 0, 1, 1], [], []>} : vector<2x512xf32>, vector<512x128xf32>, vector<2x128xf32> -> vector<2x128xf32>
    %c0_9 = arith.constant 0 : index
    %c0_10 = arith.constant 0 : index
    %11 = vector.load %arg5[%c0_9, %c0_10] : memref<1x128xf32, #tpu.memory_space<vmem>>, vector<1x128xf32>
    %12 = vector.broadcast %11 : vector<1x128xf32> to vector<2x128xf32>
    %13 = arith.addf %10, %12 : vector<2x128xf32>
    %14 = math.tanh %13 : vector<2x128xf32>
    %c0_11 = arith.constant 0 : index
    %c0_12 = arith.constant 0 : index
    %15 = vector.load %arg6[%c0_11, %c0_12] : memref<2x128xf32, #tpu.memory_space<vmem>>, vector<2x128xf32>
    tpu.vector_store %arg6[%c0_11, %c0_12], %14 {strides = array<i32>} : memref<2x128xf32, #tpu.memory_space<vmem>>, vector<2x128xf32>,
    return
  }
  func.func @transform_0(%arg0: i32) -> (i32, i32) {
    %c0_i32 = arith.constant 0 : i32
    %c0_i32_0 = arith.constant 0 : i32
    %c0_i32_1 = arith.constant 0 : i32
    return %c0_i32, %c0_i32_0 : i32, i32
  }
  func.func @transform_1(%arg0: i32) -> (i32, i32) {
    %c0_i32 = arith.constant 0 : i32
    %c0_i32_0 = arith.constant 0 : i32
    %c0_i32_1 = arith.constant 0 : i32
    return %c0_i32, %c0_i32_0 : i32, i32
  }
  func.func @transform_2(%arg0: i32) -> (i32, i32) {
    %c0_i32 = arith.constant 0 : i32
    %c0_i32_0 = arith.constant 0 : i32
    %c0_i32_1 = arith.constant 0 : i32
    return %c0_i32, %c0_i32_0 : i32, i32
  }
  func.func @transform_3(%arg0: i32) -> (i32, i32) {
    %c0_i32 = arith.constant 0 : i32
    %c0_i32_0 = arith.constant 0 : i32
    %c0_i32_1 = arith.constant 0 : i32
    return %c0_i32, %c0_i32_0 : i32, i32
  }
  func.func @transform_4(%arg0: i32) -> (i32, i32) {
    %c0_i32 = arith.constant 0 : i32
    %c0_i32_0 = arith.constant 0 : i32
    %c0_i32_1 = arith.constant 0 : i32
    return %c0_i32, %c0_i32_0 : i32, i32
  }
  func.func @transform_5(%arg0: i32) -> (i32, i32) {
    %c0_i32 = arith.constant 0 : i32
    %c0_i32_0 = arith.constant 0 : i32
    %c0_i32_1 = arith.constant 0 : i32
    return %c0_i32, %c0_i32_0 : i32, i32
  }
}

</mosaic_0001>

<bundles_post_ra>
// kernel: car_racing_net.3
= control target key start
LH: loop header
LB: loop body
LE: loop exit
PB: predicated region body
PF: predicated region fallthrough
CT: control target
= control target key end

     0   :  { %v8290_v36 = vmov 1983009808   ;;  %v40_v38 = vlaneseq  ;;  %vm4921_vm0 = vcmask 523264   ;;  %s11139_s0 = inlined_call_operand.vmem [shape: f32[2,3136], index: 0, kind: input, shape index: {}]   ;;  %s11140_s1 = inlined_call_operand.vmem [shape: bf16[3136,512], index: 1, kind: input, shape index: {}]   ;;  %s11141_s2 = inlined_call_operand.vmem [shape: f32[1,512], index: 2, kind: input, shape index: {}]   ;;  %s11142_s3 = inlined_call_operand.vmem [shape: f32[512,128], index: 3, kind: input, shape index: {}]   ;;  %s11143_s4 = inlined_call_operand.vmem [shape: f32[1,128], index: 4, kind: input, shape index: {}]   ;;  %s11144_s5 = inlined_call_operand.hbm [shape: f32[2,128], index: 5, kind: output, shape index: {}]  }
   0x1   :  { %v7083_v0 = vld [vmem:[%s11140_s1 + $0xe4] ss:$16 sps:$4 sm:$0xff]   ;;  %v7087_v2 = vld [vmem:[%s11140_s1 + $0xe0] ss:$16 sps:$4 sm:$0xff]   ;;  %v38_v37 = vunpack.c.l.s4 %v8290_v36 }
   0x2   :  { %v7085_v1 = vld [vmem:[%s11140_s1 + $0x2e4] ss:$16 sps:$4 sm:$0xff]   ;;  %4925 = vmatprep.subr.bf16.mxu0 %v7083_v0  ;;  %v7088_v3 = vld [vmem:[%s11140_s1 + $0x2e0] ss:$16 sps:$4 sm:$0xff]   ;;  %v8440_v43 = vshrl.u32 %v40_v38, 7 }
   0x3   :  { %4966 = vmatprep.subr.bf16.mxu1 %v7085_v1  ;;  %v7089_v4 = vld [vmem:[%s11140_s1 + $0xc4] ss:$16 sps:$4 sm:$0xff]   ;;  %4926 = vmatpush1.bf16.msra.mxu0 %v7087_v2  ;;  %v7093_v6 = vld [vmem:[%s11140_s1 + $0xc0] ss:$16 sps:$4 sm:$0xff]   ;;  %v39_v42 = vunpack.c.0.s8 %v38_v37 }
   0x4   :  { %4967 = vmatpush1.bf16.msra.mxu1 %v7088_v3  ;;  %v7091_v5 = vld [vmem:[%s11140_s1 + $0x2c4] ss:$16 sps:$4 sm:$0xff]   ;;  %4927 = vmatprep.subr.bf16.mxu0 %v7089_v4  ;;  %v7094_v7 = vld [vmem:[%s11140_s1 + $0x2c0] ss:$16 sps:$4 sm:$0xff]  }
   0x5   :  { %4968 = vmatprep.subr.bf16.mxu1 %v7091_v5  ;;  %v7095_v8 = vld [vmem:[%s11140_s1 + $0xa4] ss:$16 sps:$4 sm:$0xff]   ;;  %v7099_v10 = vld [vmem:[%s11140_s1 + $0xa0] ss:$16 sps:$4 sm:$0xff]   ;;  %v8458_v49 = vsub.s32 %v39_v42, %v8440_v43  ;;  %v23_v42 = vld [vmem:[%s11139_s0 + $0x8] sm:$0xff] }
   0x6   :  { %v7097_v9 = vld [vmem:[%s11140_s1 + $0x2a4] ss:$16 sps:$4 sm:$0xff]   ;;  %v7100_v11 = vld [vmem:[%s11140_s1 + $0x2a0] ss:$16 sps:$4 sm:$0xff]  }
   0x7   :  { %4928 = vmatpush1.bf16.msra.mxu0 %v7093_v6  ;;  %v7101_v12 = vld [vmem:[%s11140_s1 + $0x84] ss:$16 sps:$4 sm:$0xff]   ;;  %v7105_v14 = vld [vmem:[%s11140_s1 + $0x80] ss:$16 sps:$4 sm:$0xff]  }
   0x8   :  { %4969 = vmatpush1.bf16.msra.mxu1 %v7094_v7  ;;  %4929 = vmatprep.subr.bf16.mxu0 %v7095_v8  ;;  %v7103_v13 = vld [vmem:[%s11140_s1 + $0x284] ss:$16 sps:$4 sm:$0xff]   ;;  %v7106_v15 = vld [vmem:[%s11140_s1 + $0x280] ss:$16 sps:$4 sm:$0xff]  }
   0x9   :  { %4970 = vmatprep.subr.bf16.mxu1 %v7097_v9  ;;  %v7107_v16 = vld [vmem:[%s11140_s1 + $0x64] ss:$16 sps:$4 sm:$0xff]   ;;  %v7111_v18 = vld [vmem:[%s11140_s1 + $0x60] ss:$16 sps:$4 sm:$0xff]  }
   0xa   :  { %v7109_v17 = vld [vmem:[%s11140_s1 + $0x264] ss:$16 sps:$4 sm:$0xff]   ;;  %v7112_v19 = vld [vmem:[%s11140_s1 + $0x260] ss:$16 sps:$4 sm:$0xff]  }
   0xb   :  { %4930 = vmatpush1.bf16.msra.mxu0 %v7099_v10  ;;  %v7113_v20 = vld [vmem:[%s11140_s1 + $0x44] ss:$16 sps:$4 sm:$0xff]   ;;  %v7117_v22 = vld [vmem:[%s11140_s1 + $0x40] ss:$16 sps:$4 sm:$0xff]  }
   0xc   :  { %4971 = vmatpush1.bf16.msra.mxu1 %v7100_v11  ;;  %4931 = vmatprep.subr.bf16.mxu0 %v7101_v12  ;;  %v7115_v21 = vld [vmem:[%s11140_s1 + $0x244] ss:$16 sps:$4 sm:$0xff]   ;;  %v7118_v23 = vld [vmem:[%s11140_s1 + $0x240] ss:$16 sps:$4 sm:$0xff]  }
   0xd   :  { %4972 = vmatprep.subr.bf16.mxu1 %v7103_v13  ;;  %v7119_v24 = vld [vmem:[%s11140_s1 + $0x24] ss:$16 sps:$4 sm:$0xff]   ;;  %v7123_v26 = vld [vmem:[%s11140_s1 + $0x20] ss:$16 sps:$4 sm:$0xff]  }
   0xe   :  { %v7121_v25 = vld [vmem:[%s11140_s1 + $0x224] ss:$16 sps:$4 sm:$0xff]   ;;  %v7124_v27 = vld [vmem:[%s11140_s1 + $0x220] ss:$16 sps:$4 sm:$0xff]  }
   0xf   :  { %4932 = vmatpush1.bf16.msra.mxu0 %v7105_v14  ;;  %v7125_v28 = vld [vmem:[%s11140_s1 + $0x4] ss:$16 sps:$4 sm:$0xff]   ;;  %v7129_v30 = vld [vmem:[%s11140_s1] ss:$16 sps:$4 sm:$0xff]  }
  0x10   :  { %4973 = vmatpush1.bf16.msra.mxu1 %v7106_v15  ;;  %4933 = vmatprep.subr.bf16.mxu0 %v7107_v16  ;;  %v7127_v29 = vld [vmem:[%s11140_s1 + $0x204] ss:$16 sps:$4 sm:$0xff]   ;;  %v7130_v31 = vld [vmem:[%s11140_s1 + $0x200] ss:$16 sps:$4 sm:$0xff]  }
  0x11   :  { %4974 = vmatprep.subr.bf16.mxu1 %v7109_v17  ;;  %v7131_v32 = vld [vmem:[%s11140_s1 + $0x1e4] ss:$16 sps:$4 sm:$0xff]   ;;  %v7135_v34 = vld [vmem:[%s11140_s1 + $0x1e0] ss:$16 sps:$4 sm:$0xff]  }
  0x12   :  { %v7133_v33 = vld [vmem:[%s11140_s1 + $0x3e4] ss:$16 sps:$4 sm:$0xff]   ;;  %v7136_v35 = vld [vmem:[%s11140_s1 + $0x3e0] ss:$16 sps:$4 sm:$0xff]  }
  0x13   :  { %4934 = vmatpush1.bf16.msra.mxu0 %v7111_v18  ;;  %v7137_v39 = vld [vmem:[%s11140_s1 + $0x1c4] ss:$16 sps:$4 sm:$0xff]   ;;  %v7141_v41 = vld [vmem:[%s11140_s1 + $0x1c0] ss:$16 sps:$4 sm:$0xff]  }
  0x14   :  { %4975 = vmatpush1.bf16.msra.mxu1 %v7112_v19  ;;  %4935 = vmatprep.subr.bf16.mxu0 %v7113_v20  ;;  %v7139_v40 = vld [vmem:[%s11140_s1 + $0x3c4] ss:$16 sps:$4 sm:$0xff]   ;;  %v7142_v44 = vld [vmem:[%s11140_s1 + $0x3c0] ss:$16 sps:$4 sm:$0xff]  }
  0x15   :  { %4976 = vmatprep.subr.bf16.mxu1 %v7115_v21  ;;  %v7143_v45 = vld [vmem:[%s11140_s1 + $0x1a4] ss:$16 sps:$4 sm:$0xff]   ;;  %v7147_v47 = vld [vmem:[%s11140_s1 + $0x1a0] ss:$16 sps:$4 sm:$0xff]  }
  0x16   :  { %v7145_v46 = vld [vmem:[%s11140_s1 + $0x3a4] ss:$16 sps:$4 sm:$0xff]   ;;  %v7148_v48 = vld [vmem:[%s11140_s1 + $0x3a0] ss:$16 sps:$4 sm:$0xff]  }
  0x17   :  { %4936 = vmatpush1.bf16.msra.mxu0 %v7117_v22  ;;  %v7149_v50 = vld [vmem:[%s11140_s1 + $0x184] ss:$16 sps:$4 sm:$0xff]   ;;  %v7153_v53 = vld [vmem:[%s11140_s1 + $0x180] ss:$16 sps:$4 sm:$0xff]  }
  0x18   :  { %4977 = vmatpush1.bf16.msra.mxu1 %v7118_v23  ;;  %4937 = vmatprep.subr.bf16.mxu0 %v7119_v24  ;;  %v7151_v51 = vld [vmem:[%s11140_s1 + $0x384] ss:$16 sps:$4 sm:$0xff]   ;;  %v7154_v56 = vld [vmem:[%s11140_s1 + $0x380] ss:$16 sps:$4 sm:$0xff]  }
  0x19   :  { %4978 = vmatprep.subr.bf16.mxu1 %v7121_v25  ;;  %v22_v52 = vld [vmem:[%s11139_s0] sm:$0xff] }
  0x1a   :  { %v43_v54 = vrot.slane %v22_v52, %v8458_v49  ;;  %v36_v55 = vcombine.high %v22_v52, %v22_v52  ;;  %v7155_v57 = vld [vmem:[%s11140_s1 + $0x164] ss:$16 sps:$4 sm:$0xff]   ;;  %v7159_v61 = vld [vmem:[%s11140_s1 + $0x160] ss:$16 sps:$4 sm:$0xff]  }
  0x1b   :  { %4938 = vmatpush1.bf16.msra.mxu0 %v7123_v26  ;;  %v7157_v58 = vld [vmem:[%s11140_s1 + $0x364] ss:$16 sps:$4 sm:$0xff]   ;;  %v7160_v0 = vld [vmem:[%s11140_s1 + $0x360] ss:$16 sps:$4 sm:$0xff]  }
  0x1c   :  { %4979 = vmatpush1.bf16.msra.mxu1 %v7124_v27  ;;  %4939 = vmatprep.subr.bf16.mxu0 %v7125_v28  ;;  %v51_v59 = vcombine.high %v43_v54, %v43_v54  ;;  %v50_v60 = vrot.slane %v36_v55, %v8458_v49  ;;  %v7161_v1 = vld [vmem:[%s11140_s1 + $0x144] ss:$16 sps:$4 sm:$0xff]   ;;  %v7165_v4 = vld [vmem:[%s11140_s1 + $0x140] ss:$16 sps:$4 sm:$0xff]   ;;  %v8537_v16 = vpack.c.bf16 %v43_v54, %v43_v54 }
  0x1d   :  { %4980 = vmatprep.subr.bf16.mxu1 %v7127_v29  ;;  %v7163_v2 = vld [vmem:[%s11140_s1 + $0x344] ss:$16 sps:$4 sm:$0xff]   ;;  %v7166_v5 = vld [vmem:[%s11140_s1 + $0x340] ss:$16 sps:$4 sm:$0xff]  }
  0x1e   :  { %v8486_v62 = vpack.c.bf16 %v51_v59, %v51_v59  ;;  %v52_v63 = vcombine.high %v50_v60, %v50_v60  ;;  %v7167_v6 = vld [vmem:[%s11140_s1 + $0x124] ss:$16 sps:$4 sm:$0xff]   ;;  %v7171_v8 = vld [vmem:[%s11140_s1 + $0x120] ss:$16 sps:$4 sm:$0xff]   ;;  %v8539_v17 = vpack.c.bf16 %v50_v60, %v50_v60 }
  0x1f   :  { %4940 = vmatpush1.bf16.msra.mxu0 %v7129_v30  ;;  %v7169_v7 = vld [vmem:[%s11140_s1 + $0x324] ss:$16 sps:$4 sm:$0xff]   ;;  %v7172_v9 = vld [vmem:[%s11140_s1 + $0x320] ss:$16 sps:$4 sm:$0xff]  }
  0x20   :  { %4981 = vmatpush1.bf16.msra.mxu1 %v7130_v31  ;;  %4941 = vmatprep.subr.bf16.mxu0 %v7131_v32  ;;  %v8497_v3 = vpack.c.bf16 %v52_v63, %v52_v63  ;;  %v7173_v10 = vld [vmem:[%s11140_s1 + $0x104] ss:$16 sps:$4 sm:$0xff]   ;;  %v7177_v12 = vld [vmem:[%s11140_s1 + $0x100] ss:$16 sps:$4 sm:$0xff]  }
  0x21   :  { %4982 = vmatprep.subr.bf16.mxu1 %v7133_v33  ;;  %4957 = vmatprep.mubr.bf16.mxu0 %v8486_v62  ;;  %v7175_v11 = vld [vmem:[%s11140_s1 + $0x304] ss:$16 sps:$4 sm:$0xff]   ;;  %v7178_v13 = vld [vmem:[%s11140_s1 + $0x300] ss:$16 sps:$4 sm:$0xff]  }
  0x22   :  { %4998 = vmatprep.mubr.bf16.mxu1 %v8497_v3  ;;  %v7182_v14 = vld [vmem:[%s11140_s1 + $0x4e4] ss:$16 sps:$4 sm:$0xff]   ;;  %v7180_v18 = vld [vmem:[%s11140_s1 + $0x4e0] ss:$16 sps:$4 sm:$0xff]  }
  0x23   :  { %4942 = vmatpush2.bf16.msra.mxu0 %v7135_v34  ;;  %v7185_v15 = vld [vmem:[%s11140_s1 + $0x6e4] ss:$16 sps:$4 sm:$0xff]   ;;  %v7183_v19 = vld [vmem:[%s11140_s1 + $0x6e0] ss:$16 sps:$4 sm:$0xff]  }
  0x24   :  { %4983 = vmatpush2.bf16.msra.mxu1 %v7136_v35  ;;  %4943 = vmatprep.subr.bf16.mxu0 %v7137_v39  ;;  %v7188_v20 = vld [vmem:[%s11140_s1 + $0x4c4] ss:$16 sps:$4 sm:$0xff]   ;;  %v7186_v22 = vld [vmem:[%s11140_s1 + $0x4c0] ss:$16 sps:$4 sm:$0xff]  }
  0x25   :  { %4984 = vmatprep.subr.bf16.mxu1 %v7139_v40  ;;  %v7191_v21 = vld [vmem:[%s11140_s1 + $0x6c4] ss:$16 sps:$4 sm:$0xff]   ;;  %v7189_v23 = vld [vmem:[%s11140_s1 + $0x6c0] ss:$16 sps:$4 sm:$0xff]  }
  0x26   :  { %v7194_v24 = vld [vmem:[%s11140_s1 + $0x4a4] ss:$16 sps:$4 sm:$0xff]   ;;  %v7192_v26 = vld [vmem:[%s11140_s1 + $0x4a0] ss:$16 sps:$4 sm:$0xff]  }
  0x27   :  { %4944 = vmatpush2.bf16.msra.mxu0 %v7141_v41  ;;  %v7197_v25 = vld [vmem:[%s11140_s1 + $0x6a4] ss:$16 sps:$4 sm:$0xff]   ;;  %v7195_v27 = vld [vmem:[%s11140_s1 + $0x6a0] ss:$16 sps:$4 sm:$0xff]  }
  0x28   :  { %4985 = vmatpush2.bf16.msra.mxu1 %v7142_v44  ;;  %4945 = vmatprep.subr.bf16.mxu0 %v7143_v45  ;;  %v7200_v28 = vld [vmem:[%s11140_s1 + $0x484] ss:$16 sps:$4 sm:$0xff]   ;;  %v7198_v30 = vld [vmem:[%s11140_s1 + $0x480] ss:$16 sps:$4 sm:$0xff]   ;;  %v8619_v44 = vrot.slane %v23_v42, %v8458_v49  ;;  %v53_v45 = vcombine.high %v23_v42, %v23_v42 }
  0x29   :  { %4986 = vmatprep.subr.bf16.mxu1 %v7145_v46  ;;  %v7203_v29 = vld [vmem:[%s11140_s1 + $0x684] ss:$16 sps:$4 sm:$0xff]   ;;  %v7201_v31 = vld [vmem:[%s11140_s1 + $0x680] ss:$16 sps:$4 sm:$0xff]  }
  0x2a   :  { %v7206_v32 = vld [vmem:[%s11140_s1 + $0x464] ss:$16 sps:$4 sm:$0xff]   ;;  %v7204_v34 = vld [vmem:[%s11140_s1 + $0x460] ss:$16 sps:$4 sm:$0xff]  }
  0x2b   :  { %4946 = vmatpush2.bf16.msra.mxu0 %v7147_v47  ;;  %v7209_v33 = vld [vmem:[%s11140_s1 + $0x664] ss:$16 sps:$4 sm:$0xff]   ;;  %v7207_v35 = vld [vmem:[%s11140_s1 + $0x660] ss:$16 sps:$4 sm:$0xff]  }
  0x2c   :  { %4987 = vmatpush2.bf16.msra.mxu1 %v7148_v48  ;;  %4947 = vmatprep.subr.bf16.mxu0 %v7149_v50  ;;  %v7212_v36 = vld [vmem:[%s11140_s1 + $0x444] ss:$16 sps:$4 sm:$0xff]   ;;  %v7210_v38 = vld [vmem:[%s11140_s1 + $0x440] ss:$16 sps:$4 sm:$0xff]   ;;  %v68_v48 = vcombine.high %v8619_v44, %v8619_v44  ;;  %v8630_v50 = vrot.slane %v53_v45, %v8458_v49 }
  0x2d   :  { %4988 = vmatprep.subr.bf16.mxu1 %v7151_v51  ;;  %v7215_v37 = vld [vmem:[%s11140_s1 + $0x644] ss:$16 sps:$4 sm:$0xff]   ;;  %v7213_v39 = vld [vmem:[%s11140_s1 + $0x640] ss:$16 sps:$4 sm:$0xff]  }
  0x2e   :  { %v7218_v40 = vld [vmem:[%s11140_s1 + $0x424] ss:$16 sps:$4 sm:$0xff]   ;;  %v7216_v46 = vld [vmem:[%s11140_s1 + $0x420] ss:$16 sps:$4 sm:$0xff]   ;;  %v69_v54 = vcombine.high %v8630_v50, %v8630_v50 }
  0x2f   :  { %4948 = vmatpush2.bf16.msra.mxu0 %v7153_v53  ;;  %v7221_v41 = vld [vmem:[%s11140_s1 + $0x624] ss:$16 sps:$4 sm:$0xff]   ;;  %v7219_v47 = vld [vmem:[%s11140_s1 + $0x620] ss:$16 sps:$4 sm:$0xff]   ;;  %v8638_v53 = vpack.c.bf16 %v68_v48, %v68_v48 }
  0x30   :  { %4989 = vmatpush2.bf16.msra.mxu1 %v7154_v56  ;;  %4949 = vmatprep.subr.bf16.mxu0 %v7155_v57  ;;  %v7224_v51 = vld [vmem:[%s11140_s1 + $0x404] ss:$16 sps:$4 sm:$0xff]   ;;  %v7222_v55 = vld [vmem:[%s11140_s1 + $0x400] ss:$16 sps:$4 sm:$0xff]   ;;  %v8648_v57 = vpack.c.bf16 %v69_v54, %v69_v54 }
  0x31   :  { %4990 = vmatprep.subr.bf16.mxu1 %v7157_v58  ;;  %v7227_v52 = vld [vmem:[%s11140_s1 + $0x604] ss:$16 sps:$4 sm:$0xff]   ;;  %v7225_v56 = vld [vmem:[%s11140_s1 + $0x600] ss:$16 sps:$4 sm:$0xff]  }
  0x32   :  { %v7230_v58 = vld [vmem:[%s11140_s1 + $0x5e4] ss:$16 sps:$4 sm:$0xff]   ;;  %v7228_v60 = vld [vmem:[%s11140_s1 + $0x5e0] ss:$16 sps:$4 sm:$0xff]  }
  0x33   :  { %4950 = vmatpush2.bf16.msra.mxu0 %v7159_v61  ;;  %v7233_v59 = vld [vmem:[%s11140_s1 + $0x7e4] ss:$16 sps:$4 sm:$0xff]   ;;  %v7231_v61 = vld [vmem:[%s11140_s1 + $0x7e0] ss:$16 sps:$4 sm:$0xff]  }
  0x34   :  { %4991 = vmatpush2.bf16.msra.mxu1 %v7160_v0  ;;  %4951 = vmatprep.subr.bf16.mxu0 %v7161_v1  ;;  %v7236_v63 = vld [vmem:[%s11140_s1 + $0x5c4] ss:$16 sps:$4 sm:$0xff]   ;;  %v7234_v1 = vld [vmem:[%s11140_s1 + $0x5c0] ss:$16 sps:$4 sm:$0xff]  }
  0x35   :  { %4992 = vmatprep.subr.bf16.mxu1 %v7163_v2  ;;  %v7239_v0 = vld [vmem:[%s11140_s1 + $0x7c4] ss:$16 sps:$4 sm:$0xff]   ;;  %v7237_v2 = vld [vmem:[%s11140_s1 + $0x7c0] ss:$16 sps:$4 sm:$0xff]  }
  0x36   :  { %v7286_v45 = vld [vmem:[%s11140_s1 + $0xac0] ss:$16 sps:$4 sm:$0xff]  }
  0x37   :  { %4952 = vmatpush2.bf16.msra.mxu0 %v7165_v4  ;;  %v7242_v4 = vld [vmem:[%s11140_s1 + $0x5a4] ss:$16 sps:$4 sm:$0xff]   ;;  %v7292_v54 = vld [vmem:[%s11140_s1 + $0xaa0] ss:$16 sps:$4 sm:$0xff]  }
  0x38   :  { %4993 = vmatpush2.bf16.msra.mxu1 %v7166_v5  ;;  %4953 = vmatprep.subr.bf16.mxu0 %v7167_v6  ;;  %v7245_v5 = vld [vmem:[%s11140_s1 + $0x7a4] ss:$16 sps:$4 sm:$0xff]   ;;  %v7240_v6 = vld [vmem:[%s11140_s1 + $0x5a0] ss:$16 sps:$4 sm:$0xff]  }
  0x39   :  { %4994 = vmatprep.subr.bf16.mxu1 %v7169_v7  ;;  %v7243_v7 = vld [vmem:[%s11140_s1 + $0x7a0] ss:$16 sps:$4 sm:$0xff]  }
  0x3b   :  { %4954 = vmatpush2.bf16.msra.mxu0 %v7171_v8  ;;  %v7248_v8 = vld [vmem:[%s11140_s1 + $0x584] ss:$16 sps:$4 sm:$0xff]  }
  0x3c   :  { %4995 = vmatpush2.bf16.msra.mxu1 %v7172_v9  ;;  %4955 = vmatprep.subr.bf16.mxu0 %v7173_v10  ;;  %v7251_v9 = vld [vmem:[%s11140_s1 + $0x784] ss:$16 sps:$4 sm:$0xff]   ;;  %v7246_v10 = vld [vmem:[%s11140_s1 + $0x580] ss:$16 sps:$4 sm:$0xff]  }
  0x3d   :  { %4996 = vmatprep.subr.bf16.mxu1 %v7175_v11  ;;  %v7249_v11 = vld [vmem:[%s11140_s1 + $0x780] ss:$16 sps:$4 sm:$0xff]  }
  0x3f   :  { %4956 = vmatpush2.bf16.msra.mxu0 %v7177_v12  ;;  %v7254_v12 = vld [vmem:[%s11140_s1 + $0x564] ss:$16 sps:$4 sm:$0xff]  }
  0x40   :  { %4997 = vmatpush2.bf16.msra.mxu1 %v7178_v13  ;;  %5007 = vmatprep.subr.bf16.mxu0 %v7182_v14  ;;  %v7257_v13 = vld [vmem:[%s11140_s1 + $0x764] ss:$16 sps:$4 sm:$0xff]   ;;  %v7252_v14 = vld [vmem:[%s11140_s1 + $0x560] ss:$16 sps:$4 sm:$0xff]  }
  0x41   :  { %5048 = vmatprep.subr.bf16.mxu1 %v7185_v15  ;;  %v7255_v15 = vld [vmem:[%s11140_s1 + $0x760] ss:$16 sps:$4 sm:$0xff]  }
  0x42   :  { %4958 = vmatmul.mubr.bf16.vlgmr.msra.gmra.mxu0 %v8537_v16 }
  0x43   :  { %4999 = vmatmul.mubr.bf16.vlgmr.msra.gmra.mxu1 %v8539_v17  ;;  %5008 = vmatpush1.bf16.msra.mxu0 %v7180_v18  ;;  %v7260_v18 = vld [vmem:[%s11140_s1 + $0x544] ss:$16 sps:$4 sm:$0xff]  }
  0x44   :  { %5049 = vmatpush1.bf16.msra.mxu1 %v7183_v19  ;;  %5009 = vmatprep.subr.bf16.mxu0 %v7188_v20  ;;  %v7263_v19 = vld [vmem:[%s11140_s1 + $0x744] ss:$16 sps:$4 sm:$0xff]   ;;  %v7258_v20 = vld [vmem:[%s11140_s1 + $0x540] ss:$16 sps:$4 sm:$0xff]  }
  0x45   :  { %5050 = vmatprep.subr.bf16.mxu1 %v7191_v21  ;;  %5039 = vmatprep.mubr.bf16.mxu0 %v8638_v53  ;;  %v7261_v21 = vld [vmem:[%s11140_s1 + $0x740] ss:$16 sps:$4 sm:$0xff]  }
  0x46   :  { %5080 = vmatprep.mubr.bf16.mxu1 %v8648_v57 }
  0x47   :  { %5010 = vmatpush1.bf16.msra.mxu0 %v7186_v22  ;;  %v7266_v22 = vld [vmem:[%s11140_s1 + $0x524] ss:$16 sps:$4 sm:$0xff]  }
  0x48   :  { %5051 = vmatpush1.bf16.msra.mxu1 %v7189_v23  ;;  %5011 = vmatprep.subr.bf16.mxu0 %v7194_v24  ;;  %v7269_v23 = vld [vmem:[%s11140_s1 + $0x724] ss:$16 sps:$4 sm:$0xff]   ;;  %v7264_v24 = vld [vmem:[%s11140_s1 + $0x520] ss:$16 sps:$4 sm:$0xff]  }
  0x49   :  { %5052 = vmatprep.subr.bf16.mxu1 %v7197_v25  ;;  %v7267_v25 = vld [vmem:[%s11140_s1 + $0x720] ss:$16 sps:$4 sm:$0xff]  }
  0x4b   :  { %5012 = vmatpush1.bf16.msra.mxu0 %v7192_v26  ;;  %v7272_v26 = vld [vmem:[%s11140_s1 + $0x504] ss:$16 sps:$4 sm:$0xff]  }
  0x4c   :  { %5053 = vmatpush1.bf16.msra.mxu1 %v7195_v27  ;;  %5013 = vmatprep.subr.bf16.mxu0 %v7200_v28  ;;  %v7275_v27 = vld [vmem:[%s11140_s1 + $0x704] ss:$16 sps:$4 sm:$0xff]   ;;  %v7270_v28 = vld [vmem:[%s11140_s1 + $0x500] ss:$16 sps:$4 sm:$0xff]  }
  0x4d   :  { %5054 = vmatprep.subr.bf16.mxu1 %v7203_v29  ;;  %v7273_v29 = vld [vmem:[%s11140_s1 + $0x700] ss:$16 sps:$4 sm:$0xff]  }
  0x4f   :  { %5014 = vmatpush1.bf16.msra.mxu0 %v7198_v30  ;;  %v7279_v30 = vld [vmem:[%s11140_s1 + $0x8e4] ss:$16 sps:$4 sm:$0xff]  }
  0x50   :  { %5055 = vmatpush1.bf16.msra.mxu1 %v7201_v31  ;;  %5015 = vmatprep.subr.bf16.mxu0 %v7206_v32  ;;  %v7282_v31 = vld [vmem:[%s11140_s1 + $0xae4] ss:$16 sps:$4 sm:$0xff]   ;;  %v8756_v32 = vpack.c.bf16 %v8619_v44, %v8619_v44 }
  0x51   :  { %5056 = vmatprep.subr.bf16.mxu1 %v7209_v33  ;;  %v8760_v33 = vpack.c.bf16 %v8630_v50, %v8630_v50 }
  0x53   :  { %5016 = vmatpush1.bf16.msra.mxu0 %v7204_v34  ;;  %v7277_v34 = vld [vmem:[%s11140_s1 + $0x8e0] ss:$16 sps:$4 sm:$0xff]  }
  0x54   :  { %5057 = vmatpush1.bf16.msra.mxu1 %v7207_v35  ;;  %5017 = vmatprep.subr.bf16.mxu0 %v7212_v36  ;;  %v7280_v35 = vld [vmem:[%s11140_s1 + $0xae0] ss:$16 sps:$4 sm:$0xff]   ;;  %v7285_v36 = vld [vmem:[%s11140_s1 + $0x8c4] ss:$16 sps:$4 sm:$0xff]  }
  0x55   :  { %5058 = vmatprep.subr.bf16.mxu1 %v7215_v37  ;;  %v24_v37 = vld [vmem:[%s11139_s0 + $0x10] sm:$0xff] }
  0x57   :  { %5018 = vmatpush1.bf16.msra.mxu0 %v7210_v38  ;;  %v7288_v38 = vld [vmem:[%s11140_s1 + $0xac4] ss:$16 sps:$4 sm:$0xff]  }
  0x58   :  { %5059 = vmatpush1.bf16.msra.mxu1 %v7213_v39  ;;  %5019 = vmatprep.subr.bf16.mxu0 %v7218_v40  ;;  %v8778_v39 = vrot.slane %v24_v37, %v8458_v49  ;;  %v70_v40 = vcombine.high %v24_v37, %v24_v37  ;;  %v7352_v37 = vld [vmem:[%s11140_s1 + $0xb60] ss:$16 sps:$4 sm:$0xff]  }
  0x59   :  { %5060 = vmatprep.subr.bf16.mxu1 %v7221_v41  ;;  %v7283_v41 = vld [vmem:[%s11140_s1 + $0x8c0] ss:$16 sps:$4 sm:$0xff]  }
  0x5a   :  { %v85_v42 = vcombine.high %v8778_v39, %v8778_v39  ;;  %v8788_v44 = vrot.slane %v70_v40, %v8458_v49  ;;  %v7360_v40 = vld [vmem:[%s11140_s1 + $0xb44] ss:$16 sps:$4 sm:$0xff]  }
  0x5b   :  { %5020 = vmatpush1.bf16.msra.mxu0 %v7216_v46  ;;  %v7291_v46 = vld [vmem:[%s11140_s1 + $0x8a4] ss:$16 sps:$4 sm:$0xff]  }
  0x5c   :  { %5061 = vmatpush1.bf16.msra.mxu1 %v7219_v47  ;;  %5021 = vmatprep.subr.bf16.mxu0 %v7224_v51  ;;  %v7294_v47 = vld [vmem:[%s11140_s1 + $0xaa4] ss:$16 sps:$4 sm:$0xff]   ;;  %v8799_v48 = vpack.c.bf16 %v85_v42, %v85_v42  ;;  %v86_v50 = vcombine.high %v8788_v44, %v8788_v44  ;;  %v7289_v51 = vld [vmem:[%s11140_s1 + $0x8a0] ss:$16 sps:$4 sm:$0xff]   ;;  %v25_v42 = vld [vmem:[%s11139_s0 + $0x18] sm:$0xff] }
  0x5d   :  { %5062 = vmatprep.subr.bf16.mxu1 %v7227_v52 }
  0x5e   :  { %v8807_v52 = vpack.c.bf16 %v86_v50, %v86_v50  ;;  %v87_v50 = vcombine.high %v25_v42, %v25_v42 }
  0x5f   :  { %5022 = vmatpush1.bf16.msra.mxu0 %v7222_v55  ;;  %v7297_v55 = vld [vmem:[%s11140_s1 + $0x884] ss:$16 sps:$4 sm:$0xff]  }
  0x60   :  { %5063 = vmatpush1.bf16.msra.mxu1 %v7225_v56  ;;  %5023 = vmatprep.subr.bf16.mxu0 %v7230_v58  ;;  %v7300_v56 = vld [vmem:[%s11140_s1 + $0xa84] ss:$16 sps:$4 sm:$0xff]   ;;  %v7295_v58 = vld [vmem:[%s11140_s1 + $0x880] ss:$16 sps:$4 sm:$0xff]  }
  0x61   :  { %5064 = vmatprep.subr.bf16.mxu1 %v7233_v59  ;;  %v7298_v59 = vld [vmem:[%s11140_s1 + $0xa80] ss:$16 sps:$4 sm:$0xff]  }
  0x63   :  { %5024 = vmatpush2.bf16.msra.mxu0 %v7228_v60  ;;  %v7303_v60 = vld [vmem:[%s11140_s1 + $0x864] ss:$16 sps:$4 sm:$0xff]  }
  0x64   :  { %5065 = vmatpush2.bf16.msra.mxu1 %v7231_v61  ;;  %5025 = vmatprep.subr.bf16.mxu0 %v7236_v63  ;;  %v7306_v61 = vld [vmem:[%s11140_s1 + $0xa64] ss:$16 sps:$4 sm:$0xff]   ;;  %v7301_v63 = vld [vmem:[%s11140_s1 + $0x860] ss:$16 sps:$4 sm:$0xff]  }
  0x65   :  { %5066 = vmatprep.subr.bf16.mxu1 %v7239_v0  ;;  %v7304_v0 = vld [vmem:[%s11140_s1 + $0xa60] ss:$16 sps:$4 sm:$0xff]  }
  0x67   :  { %5026 = vmatpush2.bf16.msra.mxu0 %v7234_v1  ;;  %v7309_v1 = vld [vmem:[%s11140_s1 + $0x844] ss:$16 sps:$4 sm:$0xff]  }
  0x68   :  { %5067 = vmatpush2.bf16.msra.mxu1 %v7237_v2  ;;  %5027 = vmatprep.subr.bf16.mxu0 %v7242_v4  ;;  %v7312_v2 = vld [vmem:[%s11140_s1 + $0xa44] ss:$16 sps:$4 sm:$0xff]   ;;  %v7307_v4 = vld [vmem:[%s11140_s1 + $0x840] ss:$16 sps:$4 sm:$0xff]  }
  0x69   :  { %5068 = vmatprep.subr.bf16.mxu1 %v7245_v5  ;;  %v7310_v5 = vld [vmem:[%s11140_s1 + $0xa40] ss:$16 sps:$4 sm:$0xff]  }
  0x6b   :  { %5028 = vmatpush2.bf16.msra.mxu0 %v7240_v6  ;;  %v7315_v6 = vld [vmem:[%s11140_s1 + $0x824] ss:$16 sps:$4 sm:$0xff]  }
  0x6c   :  { %5069 = vmatpush2.bf16.msra.mxu1 %v7243_v7  ;;  %5029 = vmatprep.subr.bf16.mxu0 %v7248_v8  ;;  %v7318_v7 = vld [vmem:[%s11140_s1 + $0xa24] ss:$16 sps:$4 sm:$0xff]   ;;  %v7313_v8 = vld [vmem:[%s11140_s1 + $0x820] ss:$16 sps:$4 sm:$0xff]  }
  0x6d   :  { %5070 = vmatprep.subr.bf16.mxu1 %v7251_v9  ;;  %v7316_v9 = vld [vmem:[%s11140_s1 + $0xa20] ss:$16 sps:$4 sm:$0xff]  }
  0x6f   :  { %5030 = vmatpush2.bf16.msra.mxu0 %v7246_v10  ;;  %v7321_v10 = vld [vmem:[%s11140_s1 + $0x804] ss:$16 sps:$4 sm:$0xff]  }
  0x70   :  { %5071 = vmatpush2.bf16.msra.mxu1 %v7249_v11  ;;  %5031 = vmatprep.subr.bf16.mxu0 %v7254_v12  ;;  %v7324_v11 = vld [vmem:[%s11140_s1 + $0xa04] ss:$16 sps:$4 sm:$0xff]   ;;  %v7319_v12 = vld [vmem:[%s11140_s1 + $0x800] ss:$16 sps:$4 sm:$0xff]  }
  0x71   :  { %5072 = vmatprep.subr.bf16.mxu1 %v7257_v13  ;;  %v7322_v13 = vld [vmem:[%s11140_s1 + $0xa00] ss:$16 sps:$4 sm:$0xff]  }
  0x73   :  { %5032 = vmatpush2.bf16.msra.mxu0 %v7252_v14  ;;  %v7327_v14 = vld [vmem:[%s11140_s1 + $0x9e4] ss:$16 sps:$4 sm:$0xff]  }
  0x74   :  { %5073 = vmatpush2.bf16.msra.mxu1 %v7255_v15  ;;  %5033 = vmatprep.subr.bf16.mxu0 %v7260_v18  ;;  %v7330_v15 = vld [vmem:[%s11140_s1 + $0xbe4] ss:$16 sps:$4 sm:$0xff]   ;;  %v7325_v18 = vld [vmem:[%s11140_s1 + $0x9e0] ss:$16 sps:$4 sm:$0xff]  }
  0x75   :  { %5074 = vmatprep.subr.bf16.mxu1 %v7263_v19  ;;  %v7328_v19 = vld [vmem:[%s11140_s1 + $0xbe0] ss:$16 sps:$4 sm:$0xff]  }
  0x77   :  { %5034 = vmatpush2.bf16.msra.mxu0 %v7258_v20  ;;  %v7333_v20 = vld [vmem:[%s11140_s1 + $0x9c4] ss:$16 sps:$4 sm:$0xff]  }
  0x78   :  { %5075 = vmatpush2.bf16.msra.mxu1 %v7261_v21  ;;  %5035 = vmatprep.subr.bf16.mxu0 %v7266_v22  ;;  %v7336_v21 = vld [vmem:[%s11140_s1 + $0xbc4] ss:$16 sps:$4 sm:$0xff]   ;;  %v7331_v22 = vld [vmem:[%s11140_s1 + $0x9c0] ss:$16 sps:$4 sm:$0xff]  }
  0x79   :  { %5076 = vmatprep.subr.bf16.mxu1 %v7269_v23  ;;  %v7334_v23 = vld [vmem:[%s11140_s1 + $0xbc0] ss:$16 sps:$4 sm:$0xff]  }
  0x7b   :  { %5036 = vmatpush2.bf16.msra.mxu0 %v7264_v24  ;;  %v7339_v24 = vld [vmem:[%s11140_s1 + $0x9a4] ss:$16 sps:$4 sm:$0xff]  }
  0x7c   :  { %5077 = vmatpush2.bf16.msra.mxu1 %v7267_v25  ;;  %5037 = vmatprep.subr.bf16.mxu0 %v7272_v26  ;;  %v7342_v25 = vld [vmem:[%s11140_s1 + $0xba4] ss:$16 sps:$4 sm:$0xff]   ;;  %v7337_v26 = vld [vmem:[%s11140_s1 + $0x9a0] ss:$16 sps:$4 sm:$0xff]  }
  0x7d   :  { %5078 = vmatprep.subr.bf16.mxu1 %v7275_v27  ;;  %v7340_v27 = vld [vmem:[%s11140_s1 + $0xba0] ss:$16 sps:$4 sm:$0xff]  }
  0x7f   :  { %5038 = vmatpush2.bf16.msra.mxu0 %v7270_v28  ;;  %v7345_v28 = vld [vmem:[%s11140_s1 + $0x984] ss:$16 sps:$4 sm:$0xff]  }
  0x80   :  { %5079 = vmatpush2.bf16.msra.mxu1 %v7273_v29  ;;  %5089 = vmatprep.subr.bf16.mxu0 %v7279_v30  ;;  %v7348_v29 = vld [vmem:[%s11140_s1 + $0xb84] ss:$16 sps:$4 sm:$0xff]   ;;  %v7343_v30 = vld [vmem:[%s11140_s1 + $0x980] ss:$16 sps:$4 sm:$0xff]  }
  0x81   :  { %5130 = vmatprep.subr.bf16.mxu1 %v7282_v31  ;;  %v7346_v31 = vld [vmem:[%s11140_s1 + $0xb80] ss:$16 sps:$4 sm:$0xff]  }
  0x82   :  { %5040 = vmatmul.mubr.bf16.vlgmr.msra.gmra.mxu0 %v8756_v32 }
  0x83   :  { %5081 = vmatmul.mubr.bf16.vlgmr.msra.gmra.mxu1 %v8760_v33  ;;  %5090 = vmatpush1.bf16.msra.mxu0 %v7277_v34  ;;  %v7351_v34 = vld [vmem:[%s11140_s1 + $0x964] ss:$16 sps:$4 sm:$0xff]  }
  0x84   :  { %5131 = vmatpush1.bf16.msra.mxu1 %v7280_v35  ;;  %5091 = vmatprep.subr.bf16.mxu0 %v7285_v36  ;;  %v7354_v35 = vld [vmem:[%s11140_s1 + $0xb64] ss:$16 sps:$4 sm:$0xff]   ;;  %v7349_v36 = vld [vmem:[%s11140_s1 + $0x960] ss:$16 sps:$4 sm:$0xff]  }
  0x85   :  { %5132 = vmatprep.subr.bf16.mxu1 %v7288_v38  ;;  %5121 = vmatprep.mubr.bf16.mxu0 %v8799_v48  ;;  %v7357_v38 = vld [vmem:[%s11140_s1 + $0x944] ss:$16 sps:$4 sm:$0xff]  }
  0x86   :  { %5162 = vmatprep.mubr.bf16.mxu1 %v8807_v52 }
  0x87   :  { %5092 = vmatpush1.bf16.msra.mxu0 %v7283_v41  ;;  %v7355_v41 = vld [vmem:[%s11140_s1 + $0x940] ss:$16 sps:$4 sm:$0xff]  }
  0x88   :  { %5133 = vmatpush1.bf16.msra.mxu1 %v7286_v45  ;;  %5093 = vmatprep.subr.bf16.mxu0 %v7291_v46  ;;  %v7358_v45 = vld [vmem:[%s11140_s1 + $0xb40] ss:$16 sps:$4 sm:$0xff]   ;;  %v7363_v46 = vld [vmem:[%s11140_s1 + $0x924] ss:$16 sps:$4 sm:$0xff]  }
  0x89   :  { %5134 = vmatprep.subr.bf16.mxu1 %v7294_v47  ;;  %v7366_v47 = vld [vmem:[%s11140_s1 + $0xb24] ss:$16 sps:$4 sm:$0xff]  }
  0x8b   :  { %5094 = vmatpush1.bf16.msra.mxu0 %v7289_v51  ;;  %v7361_v51 = vld [vmem:[%s11140_s1 + $0x920] ss:$16 sps:$4 sm:$0xff]  }
  0x8c   :  { %5135 = vmatpush1.bf16.msra.mxu1 %v7292_v54  ;;  %5095 = vmatprep.subr.bf16.mxu0 %v7297_v55  ;;  %v7364_v54 = vld [vmem:[%s11140_s1 + $0xb20] ss:$16 sps:$4 sm:$0xff]   ;;  %v7369_v55 = vld [vmem:[%s11140_s1 + $0x904] ss:$16 sps:$4 sm:$0xff]  }
  0x8d   :  { %5136 = vmatprep.subr.bf16.mxu1 %v7300_v56  ;;  %v7372_v56 = vld [vmem:[%s11140_s1 + $0xb04] ss:$16 sps:$4 sm:$0xff]  }
  0x8f   :  { %5096 = vmatpush1.bf16.msra.mxu0 %v7295_v58  ;;  %v8967_v58 = vrot.slane %v25_v42, %v8458_v49  ;;  %v7427_v42 = vld [vmem:[%s11140_s1 + $0xfe4] ss:$16 sps:$4 sm:$0xff]  }
  0x90   :  { %5137 = vmatpush1.bf16.msra.mxu1 %v7298_v59  ;;  %5097 = vmatprep.subr.bf16.mxu0 %v7303_v60  ;;  %v8970_v59 = vrot.slane %v87_v50, %v8458_v49  ;;  %v7367_v60 = vld [vmem:[%s11140_s1 + $0x900] ss:$16 sps:$4 sm:$0xff]   ;;  %v7433_v50 = vld [vmem:[%s11140_s1 + $0xfc4] ss:$16 sps:$4 sm:$0xff]  }
  0x91   :  { %5138 = vmatprep.subr.bf16.mxu1 %v7306_v61  ;;  %v7370_v61 = vld [vmem:[%s11140_s1 + $0xb00] ss:$16 sps:$4 sm:$0xff]  }
  0x93   :  { %5098 = vmatpush1.bf16.msra.mxu0 %v7301_v63  ;;  %v7376_v63 = vld [vmem:[%s11140_s1 + $0xce4] ss:$16 sps:$4 sm:$0xff]  }
  0x94   :  { %5139 = vmatpush1.bf16.msra.mxu1 %v7304_v0  ;;  %5099 = vmatprep.subr.bf16.mxu0 %v7309_v1  ;;  %v7379_v0 = vld [vmem:[%s11140_s1 + $0xee4] ss:$16 sps:$4 sm:$0xff]   ;;  %v102_v1 = vcombine.high %v8967_v58, %v8967_v58 }
  0x95   :  { %5140 = vmatprep.subr.bf16.mxu1 %v7312_v2  ;;  %v103_v2 = vcombine.high %v8970_v59, %v8970_v59 }
  0x97   :  { %5100 = vmatpush1.bf16.msra.mxu0 %v7307_v4  ;;  %v8990_v4 = vpack.c.bf16 %v8778_v39, %v8778_v39  ;;  %v7382_v39 = vld [vmem:[%s11140_s1 + $0xcc4] ss:$16 sps:$4 sm:$0xff]  }
  0x98   :  { %5141 = vmatpush1.bf16.msra.mxu1 %v7310_v5  ;;  %5101 = vmatprep.subr.bf16.mxu0 %v7315_v6  ;;  %v8994_v5 = vpack.c.bf16 %v8788_v44, %v8788_v44  ;;  %v7374_v6 = vld [vmem:[%s11140_s1 + $0xce0] ss:$16 sps:$4 sm:$0xff]   ;;  %v7385_v44 = vld [vmem:[%s11140_s1 + $0xec4] ss:$16 sps:$4 sm:$0xff]  }
  0x99   :  { %5142 = vmatprep.subr.bf16.mxu1 %v7318_v7  ;;  %v7377_v7 = vld [vmem:[%s11140_s1 + $0xee0] ss:$16 sps:$4 sm:$0xff]  }
  0x9b   :  { %5102 = vmatpush1.bf16.msra.mxu0 %v7313_v8  ;;  %v9008_v8 = vpack.c.bf16 %v102_v1, %v102_v1  ;;  %v7440_v1 = vld [vmem:[%s11140_s1 + $0xd80] ss:$16 sps:$4 sm:$0xff]  }
  0x9c   :  { %5143 = vmatpush1.bf16.msra.mxu1 %v7316_v9  ;;  %5103 = vmatprep.subr.bf16.mxu0 %v7321_v10  ;;  %v9010_v9 = vpack.c.bf16 %v103_v2, %v103_v2  ;;  %v7380_v10 = vld [vmem:[%s11140_s1 + $0xcc0] ss:$16 sps:$4 sm:$0xff]  }
  0x9d   :  { %5144 = vmatprep.subr.bf16.mxu1 %v7324_v11  ;;  %v7383_v11 = vld [vmem:[%s11140_s1 + $0xec0] ss:$16 sps:$4 sm:$0xff]  }
  0x9e   :  { %v7443_v2 = vld [vmem:[%s11140_s1 + $0xf80] ss:$16 sps:$4 sm:$0xff]  }
  0x9f   :  { %5104 = vmatpush1.bf16.msra.mxu0 %v7319_v12  ;;  %v7388_v12 = vld [vmem:[%s11140_s1 + $0xca4] ss:$16 sps:$4 sm:$0xff]  }
  0xa0   :  { %5145 = vmatpush1.bf16.msra.mxu1 %v7322_v13  ;;  %5105 = vmatprep.subr.bf16.mxu0 %v7327_v14  ;;  %v7391_v13 = vld [vmem:[%s11140_s1 + $0xea4] ss:$16 sps:$4 sm:$0xff]   ;;  %v7386_v14 = vld [vmem:[%s11140_s1 + $0xca0] ss:$16 sps:$4 sm:$0xff]  }
  0xa1   :  { %5146 = vmatprep.subr.bf16.mxu1 %v7330_v15  ;;  %v7389_v15 = vld [vmem:[%s11140_s1 + $0xea0] ss:$16 sps:$4 sm:$0xff]  }
  0xa3   :  { %5106 = vmatpush2.bf16.msra.mxu0 %v7325_v18  ;;  %v7394_v18 = vld [vmem:[%s11140_s1 + $0xc84] ss:$16 sps:$4 sm:$0xff]  }
  0xa4   :  { %5147 = vmatpush2.bf16.msra.mxu1 %v7328_v19  ;;  %5107 = vmatprep.subr.bf16.mxu0 %v7333_v20  ;;  %v7397_v19 = vld [vmem:[%s11140_s1 + $0xe84] ss:$16 sps:$4 sm:$0xff]   ;;  %v7392_v20 = vld [vmem:[%s11140_s1 + $0xc80] ss:$16 sps:$4 sm:$0xff]  }
  0xa5   :  { %5148 = vmatprep.subr.bf16.mxu1 %v7336_v21  ;;  %v7395_v21 = vld [vmem:[%s11140_s1 + $0xe80] ss:$16 sps:$4 sm:$0xff]  }
  0xa7   :  { %5108 = vmatpush2.bf16.msra.mxu0 %v7331_v22  ;;  %v7400_v22 = vld [vmem:[%s11140_s1 + $0xc64] ss:$16 sps:$4 sm:$0xff]  }
  0xa8   :  { %5149 = vmatpush2.bf16.msra.mxu1 %v7334_v23  ;;  %5109 = vmatprep.subr.bf16.mxu0 %v7339_v24  ;;  %v7403_v23 = vld [vmem:[%s11140_s1 + $0xe64] ss:$16 sps:$4 sm:$0xff]   ;;  %v7398_v24 = vld [vmem:[%s11140_s1 + $0xc60] ss:$16 sps:$4 sm:$0xff]  }
  0xa9   :  { %5150 = vmatprep.subr.bf16.mxu1 %v7342_v25  ;;  %v7401_v25 = vld [vmem:[%s11140_s1 + $0xe60] ss:$16 sps:$4 sm:$0xff]  }
  0xab   :  { %5110 = vmatpush2.bf16.msra.mxu0 %v7337_v26  ;;  %v7406_v26 = vld [vmem:[%s11140_s1 + $0xc44] ss:$16 sps:$4 sm:$0xff]  }
  0xac   :  { %5151 = vmatpush2.bf16.msra.mxu1 %v7340_v27  ;;  %5111 = vmatprep.subr.bf16.mxu0 %v7345_v28  ;;  %v7409_v27 = vld [vmem:[%s11140_s1 + $0xe44] ss:$16 sps:$4 sm:$0xff]   ;;  %v7404_v28 = vld [vmem:[%s11140_s1 + $0xc40] ss:$16 sps:$4 sm:$0xff]  }
  0xad   :  { %5152 = vmatprep.subr.bf16.mxu1 %v7348_v29  ;;  %v7407_v29 = vld [vmem:[%s11140_s1 + $0xe40] ss:$16 sps:$4 sm:$0xff]  }
  0xaf   :  { %5112 = vmatpush2.bf16.msra.mxu0 %v7343_v30  ;;  %v7412_v30 = vld [vmem:[%s11140_s1 + $0xc24] ss:$16 sps:$4 sm:$0xff]  }
  0xb0   :  { %5153 = vmatpush2.bf16.msra.mxu1 %v7346_v31  ;;  %5113 = vmatprep.subr.bf16.mxu0 %v7351_v34  ;;  %v7415_v31 = vld [vmem:[%s11140_s1 + $0xe24] ss:$16 sps:$4 sm:$0xff]   ;;  %v7410_v34 = vld [vmem:[%s11140_s1 + $0xc20] ss:$16 sps:$4 sm:$0xff]  }
  0xb1   :  { %5154 = vmatprep.subr.bf16.mxu1 %v7354_v35  ;;  %v7413_v35 = vld [vmem:[%s11140_s1 + $0xe20] ss:$16 sps:$4 sm:$0xff]  }
  0xb3   :  { %5114 = vmatpush2.bf16.msra.mxu0 %v7349_v36  ;;  %v7418_v36 = vld [vmem:[%s11140_s1 + $0xc04] ss:$16 sps:$4 sm:$0xff]  }
  0xb4   :  { %5155 = vmatpush2.bf16.msra.mxu1 %v7352_v37  ;;  %5115 = vmatprep.subr.bf16.mxu0 %v7357_v38  ;;  %v7421_v37 = vld [vmem:[%s11140_s1 + $0xe04] ss:$16 sps:$4 sm:$0xff]   ;;  %v7416_v38 = vld [vmem:[%s11140_s1 + $0xc00] ss:$16 sps:$4 sm:$0xff]  }
  0xb5   :  { %5156 = vmatprep.subr.bf16.mxu1 %v7360_v40  ;;  %v7419_v40 = vld [vmem:[%s11140_s1 + $0xe00] ss:$16 sps:$4 sm:$0xff]  }
  0xb7   :  { %5116 = vmatpush2.bf16.msra.mxu0 %v7355_v41  ;;  %v7424_v41 = vld [vmem:[%s11140_s1 + $0xde4] ss:$16 sps:$4 sm:$0xff]  }
  0xb8   :  { %5157 = vmatpush2.bf16.msra.mxu1 %v7358_v45  ;;  %5117 = vmatprep.subr.bf16.mxu0 %v7363_v46  ;;  %v7422_v45 = vld [vmem:[%s11140_s1 + $0xde0] ss:$16 sps:$4 sm:$0xff]  }
  0xb9   :  { %5158 = vmatprep.subr.bf16.mxu1 %v7366_v47  ;;  %v7425_v46 = vld [vmem:[%s11140_s1 + $0xfe0] ss:$16 sps:$4 sm:$0xff]   ;;  %v7430_v47 = vld [vmem:[%s11140_s1 + $0xdc4] ss:$16 sps:$4 sm:$0xff]  }
  0xbb   :  { %5118 = vmatpush2.bf16.msra.mxu0 %v7361_v51  ;;  %v7428_v51 = vld [vmem:[%s11140_s1 + $0xdc0] ss:$16 sps:$4 sm:$0xff]  }
  0xbc   :  { %5159 = vmatpush2.bf16.msra.mxu1 %v7364_v54  ;;  %5119 = vmatprep.subr.bf16.mxu0 %v7369_v55  ;;  %v7431_v54 = vld [vmem:[%s11140_s1 + $0xfc0] ss:$16 sps:$4 sm:$0xff]   ;;  %v7436_v55 = vld [vmem:[%s11140_s1 + $0xda4] ss:$16 sps:$4 sm:$0xff]  }
  0xbd   :  { %5160 = vmatprep.subr.bf16.mxu1 %v7372_v56  ;;  %v7439_v56 = vld [vmem:[%s11140_s1 + $0xfa4] ss:$16 sps:$4 sm:$0xff]  }
  0xbf   :  { %5120 = vmatpush2.bf16.msra.mxu0 %v7367_v60  ;;  %v7434_v60 = vld [vmem:[%s11140_s1 + $0xda0] ss:$16 sps:$4 sm:$0xff]  }
  0xc0   :  { %5161 = vmatpush2.bf16.msra.mxu1 %v7370_v61  ;;  %5171 = vmatprep.subr.bf16.mxu0 %v7376_v63  ;;  %v7437_v61 = vld [vmem:[%s11140_s1 + $0xfa0] ss:$16 sps:$4 sm:$0xff]   ;;  %v7442_v63 = vld [vmem:[%s11140_s1 + $0xd84] ss:$16 sps:$4 sm:$0xff]  }
  0xc1   :  { %5212 = vmatprep.subr.bf16.mxu1 %v7379_v0  ;;  %v7445_v0 = vld [vmem:[%s11140_s1 + $0xf84] ss:$16 sps:$4 sm:$0xff]  }
  0xc2   :  { %5122 = vmatmul.mubr.bf16.vlgmr.msra.gmra.mxu0 %v8990_v4 }
  0xc3   :  { %5163 = vmatmul.mubr.bf16.vlgmr.msra.gmra.mxu1 %v8994_v5  ;;  %5172 = vmatpush1.bf16.msra.mxu0 %v7374_v6  ;;  %v7448_v6 = vld [vmem:[%s11140_s1 + $0xd64] ss:$16 sps:$4 sm:$0xff]  }
  0xc4   :  { %5213 = vmatpush1.bf16.msra.mxu1 %v7377_v7  ;;  %5173 = vmatprep.subr.bf16.mxu0 %v7382_v39  ;;  %v7451_v7 = vld [vmem:[%s11140_s1 + $0xf64] ss:$16 sps:$4 sm:$0xff]   ;;  %v7446_v39 = vld [vmem:[%s11140_s1 + $0xd60] ss:$16 sps:$4 sm:$0xff]  }
  0xc5   :  { %5214 = vmatprep.subr.bf16.mxu1 %v7385_v44  ;;  %5203 = vmatprep.mubr.bf16.mxu0 %v9008_v8  ;;  %v7449_v44 = vld [vmem:[%s11140_s1 + $0xf60] ss:$16 sps:$4 sm:$0xff]  }
  0xc6   :  { %5244 = vmatprep.mubr.bf16.mxu1 %v9010_v9 }
  0xc7   :  { %5174 = vmatpush1.bf16.msra.mxu0 %v7380_v10  ;;  %v7454_v10 = vld [vmem:[%s11140_s1 + $0xd44] ss:$16 sps:$4 sm:$0xff]  }
  0xc8   :  { %5215 = vmatpush1.bf16.msra.mxu1 %v7383_v11  ;;  %5175 = vmatprep.subr.bf16.mxu0 %v7388_v12  ;;  %v7457_v11 = vld [vmem:[%s11140_s1 + $0xf44] ss:$16 sps:$4 sm:$0xff]  }
  0xc9   :  { %5216 = vmatprep.subr.bf16.mxu1 %v7391_v13  ;;  %v26_v12 = vld [vmem:[%s11139_s0 + $0x20] sm:$0xff] }
  0xca   :  { %v7452_v13 = vld [vmem:[%s11140_s1 + $0xd40] ss:$16 sps:$4 sm:$0xff]  }
  0xcb   :  { %5176 = vmatpush1.bf16.msra.mxu0 %v7386_v14  ;;  %v7455_v14 = vld [vmem:[%s11140_s1 + $0xf40] ss:$16 sps:$4 sm:$0xff]  }
  0xcc   :  { %5217 = vmatpush1.bf16.msra.mxu1 %v7389_v15  ;;  %5177 = vmatprep.subr.bf16.mxu0 %v7394_v18  ;;  %v7460_v15 = vld [vmem:[%s11140_s1 + $0xd24] ss:$16 sps:$4 sm:$0xff]  }
  0xcd   :  { %5218 = vmatprep.subr.bf16.mxu1 %v7397_v19  ;;  %v7463_v18 = vld [vmem:[%s11140_s1 + $0xf24] ss:$16 sps:$4 sm:$0xff]   ;;  %v104_v19 = vcombine.high %v26_v12, %v26_v12 }
  0xcf   :  { %5178 = vmatpush1.bf16.msra.mxu0 %v7392_v20  ;;  %v7458_v20 = vld [vmem:[%s11140_s1 + $0xd20] ss:$16 sps:$4 sm:$0xff]  }
  0xd0   :  { %5219 = vmatpush1.bf16.msra.mxu1 %v7395_v21  ;;  %5179 = vmatprep.subr.bf16.mxu0 %v7400_v22  ;;  %v7461_v21 = vld [vmem:[%s11140_s1 + $0xf20] ss:$16 sps:$4 sm:$0xff]   ;;  %v7466_v22 = vld [vmem:[%s11140_s1 + $0xd04] ss:$16 sps:$4 sm:$0xff]  }
  0xd1   :  { %5220 = vmatprep.subr.bf16.mxu1 %v7403_v23  ;;  %v7469_v23 = vld [vmem:[%s11140_s1 + $0xf04] ss:$16 sps:$4 sm:$0xff]  }
  0xd3   :  { %5180 = vmatpush1.bf16.msra.mxu0 %v7398_v24  ;;  %v9188_v24 = vrot.slane %v26_v12, %v8458_v49 }
  0xd4   :  { %5221 = vmatpush1.bf16.msra.mxu1 %v7401_v25  ;;  %5181 = vmatprep.subr.bf16.mxu0 %v7406_v26  ;;  %v9191_v25 = vrot.slane %v104_v19, %v8458_v49  ;;  %v7464_v26 = vld [vmem:[%s11140_s1 + $0xd00] ss:$16 sps:$4 sm:$0xff]   ;;  %v7497_v19 = vld [vmem:[%s11140_s1 + $0x1064] ss:$16 sps:$4 sm:$0xff]  }
  0xd5   :  { %5222 = vmatprep.subr.bf16.mxu1 %v7409_v27  ;;  %v7467_v27 = vld [vmem:[%s11140_s1 + $0xf00] ss:$16 sps:$4 sm:$0xff]  }
  0xd7   :  { %5182 = vmatpush1.bf16.msra.mxu0 %v7404_v28  ;;  %v979_v28 = vld [vmem:[%s11141_s2] sm:$0xf] }
  0xd8   :  { %5223 = vmatpush1.bf16.msra.mxu1 %v7407_v29  ;;  %5183 = vmatprep.subr.bf16.mxu0 %v7412_v30  ;;  %v983_v29 = vsub.s32 0, %v8440_v43  ;;  %v7473_v30 = vld [vmem:[%s11140_s1 + $0x10e4] ss:$16 sps:$4 sm:$0xff]  }
  0xd9   :  { %5224 = vmatprep.subr.bf16.mxu1 %v7415_v31  ;;  %v7476_v31 = vld [vmem:[%s11140_s1 + $0x12e4] ss:$16 sps:$4 sm:$0xff]  }
  0xdb   :  { %5184 = vmatpush1.bf16.msra.mxu0 %v7410_v34  ;;  %v987_v34 = vsub.s32 1, %v8440_v43 }
  0xdc   :  { %5225 = vmatpush1.bf16.msra.mxu1 %v7413_v35  ;;  %5185 = vmatprep.subr.bf16.mxu0 %v7418_v36  ;;  %v119_v35 = vcombine.high %v9188_v24, %v9188_v24  ;;  %v120_v36 = vcombine.high %v9191_v25, %v9191_v25 }
  0xdd   :  { %5226 = vmatprep.subr.bf16.mxu1 %v7421_v37  ;;  %v9216_v37 = vpack.c.bf16 %v8967_v58, %v8967_v58  ;;  %v7479_v58 = vld [vmem:[%s11140_s1 + $0x10c4] ss:$16 sps:$4 sm:$0xff]  }
  0xdf   :  { %5186 = vmatpush1.bf16.msra.mxu0 %v7416_v38  ;;  %v9220_v38 = vpack.c.bf16 %v8970_v59, %v8970_v59  ;;  %v7482_v59 = vld [vmem:[%s11140_s1 + $0x12c4] ss:$16 sps:$4 sm:$0xff]  }
  0xe0   :  { %5227 = vmatpush1.bf16.msra.mxu1 %v7419_v40  ;;  %5187 = vmatprep.subr.bf16.mxu0 %v7424_v41  ;;  %v984_v40 = vrot.slane %v979_v28, %v983_v29  ;;  %v7471_v41 = vld [vmem:[%s11140_s1 + $0x10e0] ss:$16 sps:$4 sm:$0xff]   ;;  %v7509_v29 = vld [vmem:[%s11140_s1 + $0x1024] ss:$16 sps:$4 sm:$0xff]  }
  0xe1   :  { %5228 = vmatprep.subr.bf16.mxu1 %v7427_v42  ;;  %v7474_v42 = vld [vmem:[%s11140_s1 + $0x12e0] ss:$16 sps:$4 sm:$0xff]  }
  0xe3   :  { %5188 = vmatpush2.bf16.msra.mxu0 %v7422_v45  ;;  %v988_v45 = vrot.slane %v979_v28, %v987_v34  ;;  %v7504_v28 = vld [vmem:[%s11140_s1 + $0x1240] ss:$16 sps:$4 sm:$0xff]  }
  0xe4   :  { %5229 = vmatpush2.bf16.msra.mxu1 %v7425_v46  ;;  %5189 = vmatprep.subr.bf16.mxu0 %v7430_v47  ;;  %v9234_v46 = vpack.c.bf16 %v119_v35, %v119_v35  ;;  %v9236_v47 = vpack.c.bf16 %v120_v36, %v120_v36  ;;  %v7510_v34 = vld [vmem:[%s11140_s1 + $0x1220] ss:$16 sps:$4 sm:$0xff]   ;;  %v7515_v35 = vld [vmem:[%s11140_s1 + $0x1004] ss:$16 sps:$4 sm:$0xff]  }
  0xe5   :  { %5230 = vmatprep.subr.bf16.mxu1 %v7433_v50  ;;  %v7518_v36 = vld [vmem:[%s11140_s1 + $0x1204] ss:$16 sps:$4 sm:$0xff]  }
  0xe7   :  { %5190 = vmatpush2.bf16.msra.mxu0 %v7428_v51 }
  0xe8   :  { %5231 = vmatpush2.bf16.msra.mxu1 %v7431_v54  ;;  %5191 = vmatprep.subr.bf16.mxu0 %v7436_v55  ;;  %v7477_v54 = vld [vmem:[%s11140_s1 + $0x10c0] ss:$16 sps:$4 sm:$0xff]  }
  0xe9   :  { %5232 = vmatprep.subr.bf16.mxu1 %v7439_v56  ;;  %v7480_v56 = vld [vmem:[%s11140_s1 + $0x12c0] ss:$16 sps:$4 sm:$0xff]  }
  0xeb   :  { %5192 = vmatpush2.bf16.msra.mxu0 %v7434_v60  ;;  %v7485_v60 = vld [vmem:[%s11140_s1 + $0x10a4] ss:$16 sps:$4 sm:$0xff]  }
  0xec   :  { %5233 = vmatpush2.bf16.msra.mxu1 %v7437_v61  ;;  %5193 = vmatprep.subr.bf16.mxu0 %v7442_v63 }
  0xed   :  { %5234 = vmatprep.subr.bf16.mxu1 %v7445_v0  ;;  %v7488_v0 = vld [vmem:[%s11140_s1 + $0x12a4] ss:$16 sps:$4 sm:$0xff]  }
  0xef   :  { %5194 = vmatpush2.bf16.msra.mxu0 %v7440_v1 }
  0xf0   :  { %5235 = vmatpush2.bf16.msra.mxu1 %v7443_v2  ;;  %5195 = vmatprep.subr.bf16.mxu0 %v7448_v6 }
  0xf1   :  { %5236 = vmatprep.subr.bf16.mxu1 %v7451_v7 }
  0xf3   :  { %5196 = vmatpush2.bf16.msra.mxu0 %v7446_v39  ;;  %v7483_v39 = vld [vmem:[%s11140_s1 + $0x10a0] ss:$16 sps:$4 sm:$0xff]  }
  0xf4   :  { %5237 = vmatpush2.bf16.msra.mxu1 %v7449_v44  ;;  %5197 = vmatprep.subr.bf16.mxu0 %v7454_v10  ;;  %v7486_v44 = vld [vmem:[%s11140_s1 + $0x12a0] ss:$16 sps:$4 sm:$0xff]  }
  0xf5   :  { %5238 = vmatprep.subr.bf16.mxu1 %v7457_v11 }
  0xf7   :  { %5198 = vmatpush2.bf16.msra.mxu0 %v7452_v13  ;;  %v7491_v13 = vld [vmem:[%s11140_s1 + $0x1084] ss:$16 sps:$4 sm:$0xff]  }
  0xf8   :  { %5239 = vmatpush2.bf16.msra.mxu1 %v7455_v14  ;;  %5199 = vmatprep.subr.bf16.mxu0 %v7460_v15  ;;  %v7494_v14 = vld [vmem:[%s11140_s1 + $0x1284] ss:$16 sps:$4 sm:$0xff]   ;;  %v7489_v15 = vld [vmem:[%s11140_s1 + $0x1080] ss:$16 sps:$4 sm:$0xff]  }
  0xf9   :  { %5240 = vmatprep.subr.bf16.mxu1 %v7463_v18  ;;  %v7492_v18 = vld [vmem:[%s11140_s1 + $0x1280] ss:$16 sps:$4 sm:$0xff]  }
  0xfb   :  { %5200 = vmatpush2.bf16.msra.mxu0 %v7458_v20  ;;  %v7500_v20 = vld [vmem:[%s11140_s1 + $0x1264] ss:$16 sps:$4 sm:$0xff]  }
  0xfc   :  { %5241 = vmatpush2.bf16.msra.mxu1 %v7461_v21  ;;  %5201 = vmatprep.subr.bf16.mxu0 %v7466_v22  ;;  %v7495_v21 = vld [vmem:[%s11140_s1 + $0x1060] ss:$16 sps:$4 sm:$0xff]  }
  0xfd   :  { %5242 = vmatprep.subr.bf16.mxu1 %v7469_v23  ;;  %v7498_v22 = vld [vmem:[%s11140_s1 + $0x1260] ss:$16 sps:$4 sm:$0xff]   ;;  %v7503_v23 = vld [vmem:[%s11140_s1 + $0x1044] ss:$16 sps:$4 sm:$0xff]  }
  0xff   :  { %5202 = vmatpush2.bf16.msra.mxu0 %v7464_v26  ;;  %v7506_v26 = vld [vmem:[%s11140_s1 + $0x1244] ss:$16 sps:$4 sm:$0xff]  }
 0x100   :  { %5243 = vmatpush2.bf16.msra.mxu1 %v7467_v27  ;;  %5253 = vmatprep.subr.bf16.mxu0 %v7473_v30  ;;  %v7501_v27 = vld [vmem:[%s11140_s1 + $0x1040] ss:$16 sps:$4 sm:$0xff]   ;;  %v7512_v30 = vld [vmem:[%s11140_s1 + $0x1224] ss:$16 sps:$4 sm:$0xff]  }
 0x101   :  { %5294 = vmatprep.subr.bf16.mxu1 %v7476_v31  ;;  %v7507_v31 = vld [vmem:[%s11140_s1 + $0x1020] ss:$16 sps:$4 sm:$0xff]  }
 0x102   :  { %v4959_v50 = vpop.f32.mrf.mxu0  ;;  %5204 = vmatmul.mubr.bf16.vlgmr.msra.gmra.mxu0 %v9216_v37 }
 0x103   :  { %v5000_v51 = vpop.f32.mrf.mxu1  ;;  %5245 = vmatmul.mubr.bf16.vlgmr.msra.gmra.mxu1 %v9220_v38  ;;  %v4960_v55 = vadd.f32 %v4959_v50, %v984_v40  ;;  %5254 = vmatpush1.bf16.msra.mxu0 %v7471_v41  ;;  %v7513_v40 = vld [vmem:[%s11140_s1 + $0x1000] ss:$16 sps:$4 sm:$0xff]   ;;  %v7527_v50 = vld [vmem:[%s11140_s1 + $0x11c4] ss:$16 sps:$4 sm:$0xff]  }
 0x104   :  { %5295 = vmatpush1.bf16.msra.mxu1 %v7474_v42  ;;  %v4961_v61 = vpop.f32.mrf.mxu0  ;;  %5255 = vmatprep.subr.bf16.mxu0 %v7479_v58  ;;  %v7516_v41 = vld [vmem:[%s11140_s1 + $0x1200] ss:$16 sps:$4 sm:$0xff]   ;;  %v7521_v42 = vld [vmem:[%s11140_s1 + $0x11e4] ss:$16 sps:$4 sm:$0xff]  }
 0x105   :  { %v5002_v63 = vpop.f32.mrf.mxu1  ;;  %5296 = vmatprep.subr.bf16.mxu1 %v7482_v59  ;;  %v9252_v1 = vadd.f32 %v5000_v51, %v4960_v55  ;;  %v4962_v2 = vadd.f32 %v4961_v61, %v988_v45  ;;  %5285 = vmatprep.mubr.bf16.mxu0 %v9234_v46  ;;  %v7524_v58 = vld [vmem:[%s11140_s1 + $0x13e4] ss:$16 sps:$4 sm:$0xff]   ;;  %v7519_v59 = vld [vmem:[%s11140_s1 + $0x11e0] ss:$16 sps:$4 sm:$0xff]  }
 0x106   :  { %5326 = vmatprep.mubr.bf16.mxu1 %v9236_v47  ;;  %v4963_v6 = vpop.f32.mrf.mxu0  ;;  %v7522_v45 = vld [vmem:[%s11140_s1 + $0x13e0] ss:$16 sps:$4 sm:$0xff]   ;;  %v7530_v51 = vld [vmem:[%s11140_s1 + $0x13c4] ss:$16 sps:$4 sm:$0xff]  }
 0x107   :  { %v5004_v7 = vpop.f32.mrf.mxu1  ;;  %v9262_v10 = vadd.f32 %v5002_v63, %v4962_v2  ;;  %5256 = vmatpush1.bf16.msra.mxu0 %v7477_v54  ;;  %v7525_v54 = vld [vmem:[%s11140_s1 + $0x11c0] ss:$16 sps:$4 sm:$0xff]   ;;  %v7542_v2 = vld [vmem:[%s11140_s1 + $0x1384] ss:$16 sps:$4 sm:$0xff]  }
 0x108   :  { %5297 = vmatpush1.bf16.msra.mxu1 %v7480_v56  ;;  %v4964_v11 = vpop.f32.mrf.mxu0  ;;  %5257 = vmatprep.subr.bf16.mxu0 %v7485_v60  ;;  %v7528_v55 = vld [vmem:[%s11140_s1 + $0x13c0] ss:$16 sps:$4 sm:$0xff]   ;;  %v7533_v56 = vld [vmem:[%s11140_s1 + $0x11a4] ss:$16 sps:$4 sm:$0xff]  }
 0x109   :  { %v5005_v12 = vpop.f32.mrf.mxu1  ;;  %5298 = vmatprep.subr.bf16.mxu1 %v7488_v0  ;;  %v7536_v60 = vld [vmem:[%s11140_s1 + $0x13a4] ss:$16 sps:$4 sm:$0xff]   ;;  %v7531_v61 = vld [vmem:[%s11140_s1 + $0x11a0] ss:$16 sps:$4 sm:$0xff]  }
 0x10a   :  { %v7534_v63 = vld [vmem:[%s11140_s1 + $0x13a0] ss:$16 sps:$4 sm:$0xff]   ;;  %v7539_v0 = vld [vmem:[%s11140_s1 + $0x1184] ss:$16 sps:$4 sm:$0xff]  }
 0x10b   :  { %5258 = vmatpush1.bf16.msra.mxu0 %v7483_v39  ;;  %v7537_v6 = vld [vmem:[%s11140_s1 + $0x1180] ss:$16 sps:$4 sm:$0xff]   ;;  %v7545_v39 = vld [vmem:[%s11140_s1 + $0x1164] ss:$16 sps:$4 sm:$0xff]  }
 0x10c   :  { %5299 = vmatpush1.bf16.msra.mxu1 %v7486_v44  ;;  %5259 = vmatprep.subr.bf16.mxu0 %v7491_v13  ;;  %v7540_v7 = vld [vmem:[%s11140_s1 + $0x1380] ss:$16 sps:$4 sm:$0xff]   ;;  %v7548_v44 = vld [vmem:[%s11140_s1 + $0x1364] ss:$16 sps:$4 sm:$0xff]  }
 0x10d   :  { %5300 = vmatprep.subr.bf16.mxu1 %v7494_v14  ;;  %v7543_v11 = vld [vmem:[%s11140_s1 + $0x1160] ss:$16 sps:$4 sm:$0xff]   ;;  %v7551_v13 = vld [vmem:[%s11140_s1 + $0x1144] ss:$16 sps:$4 sm:$0xff]  }
 0x10e   :  { %v7546_v12 = vld [vmem:[%s11140_s1 + $0x1360] ss:$16 sps:$4 sm:$0xff]   ;;  %v7554_v14 = vld [vmem:[%s11140_s1 + $0x1344] ss:$16 sps:$4 sm:$0xff]  }
 0x10f   :  { %5260 = vmatpush1.bf16.msra.mxu0 %v7489_v15  ;;  %v27_v15 = vld [vmem:[%s11139_s0 + $0x28] sm:$0xff] }
 0x110   :  { %5301 = vmatpush1.bf16.msra.mxu1 %v7492_v18  ;;  %5261 = vmatprep.subr.bf16.mxu0 %v7497_v19  ;;  %v7549_v18 = vld [vmem:[%s11140_s1 + $0x1140] ss:$16 sps:$4 sm:$0xff]  }
 0x111   :  { %5302 = vmatprep.subr.bf16.mxu1 %v7500_v20  ;;  %v7552_v19 = vld [vmem:[%s11140_s1 + $0x1340] ss:$16 sps:$4 sm:$0xff]   ;;  %v7557_v20 = vld [vmem:[%s11140_s1 + $0x1124] ss:$16 sps:$4 sm:$0xff]  }
 0x113   :  { %5262 = vmatpush1.bf16.msra.mxu0 %v7495_v21  ;;  %v7560_v21 = vld [vmem:[%s11140_s1 + $0x1324] ss:$16 sps:$4 sm:$0xff]  }
 0x114   :  { %5303 = vmatpush1.bf16.msra.mxu1 %v7498_v22  ;;  %5263 = vmatprep.subr.bf16.mxu0 %v7503_v23  ;;  %v121_v22 = vcombine.high %v27_v15, %v27_v15  ;;  %v7555_v23 = vld [vmem:[%s11140_s1 + $0x1120] ss:$16 sps:$4 sm:$0xff]  }
 0x115   :  { %5304 = vmatprep.subr.bf16.mxu1 %v7506_v26  ;;  %v7558_v26 = vld [vmem:[%s11140_s1 + $0x1320] ss:$16 sps:$4 sm:$0xff]  }
 0x117   :  { %5264 = vmatpush1.bf16.msra.mxu0 %v7501_v27  ;;  %v7563_v27 = vld [vmem:[%s11140_s1 + $0x1104] ss:$16 sps:$4 sm:$0xff]  }
 0x118   :  { %5305 = vmatpush1.bf16.msra.mxu1 %v7504_v28  ;;  %5265 = vmatprep.subr.bf16.mxu0 %v7509_v29  ;;  %v7566_v28 = vld [vmem:[%s11140_s1 + $0x1304] ss:$16 sps:$4 sm:$0xff]   ;;  %v9418_v29 = vrot.slane %v27_v15, %v8458_v49 }
 0x119   :  { %5306 = vmatprep.subr.bf16.mxu1 %v7512_v30  ;;  %v9421_v30 = vrot.slane %v121_v22, %v8458_v49  ;;  %v7573_v49 = vld [vmem:[%s11140_s1 + $0x16e4] ss:$16 sps:$4 sm:$0xff]   ;;  %v7592_v22 = vld [vmem:[%s11140_s1 + $0x1460] ss:$16 sps:$4 sm:$0xff]  }
 0x11a   :  { %v7591_v15 = vld [vmem:[%s11140_s1 + $0x1684] ss:$16 sps:$4 sm:$0xff]  }
 0x11b   :  { %5266 = vmatpush1.bf16.msra.mxu0 %v7507_v31  ;;  %v7561_v31 = vld [vmem:[%s11140_s1 + $0x1100] ss:$16 sps:$4 sm:$0xff]  }
 0x11c   :  { %5307 = vmatpush1.bf16.msra.mxu1 %v7510_v34  ;;  %5267 = vmatprep.subr.bf16.mxu0 %v7515_v35  ;;  %v7564_v34 = vld [vmem:[%s11140_s1 + $0x1300] ss:$16 sps:$4 sm:$0xff]   ;;  %v7570_v35 = vld [vmem:[%s11140_s1 + $0x14e4] ss:$16 sps:$4 sm:$0xff]  }
 0x11d   :  { %5308 = vmatprep.subr.bf16.mxu1 %v7518_v36  ;;  %v7568_v36 = vld [vmem:[%s11140_s1 + $0x14e0] ss:$16 sps:$4 sm:$0xff]  }
 0x11f   :  { %5268 = vmatpush1.bf16.msra.mxu0 %v7513_v40  ;;  %v7571_v40 = vld [vmem:[%s11140_s1 + $0x16e0] ss:$16 sps:$4 sm:$0xff]  }
 0x120   :  { %5309 = vmatpush1.bf16.msra.mxu1 %v7516_v41  ;;  %5269 = vmatprep.subr.bf16.mxu0 %v7521_v42  ;;  %v136_v41 = vcombine.high %v9418_v29, %v9418_v29  ;;  %v137_v42 = vcombine.high %v9421_v30, %v9421_v30 }
 0x121   :  { %5310 = vmatprep.subr.bf16.mxu1 %v7524_v58  ;;  %v9447_v58 = vpack.c.bf16 %v9188_v24, %v9188_v24  ;;  %v7574_v24 = vld [vmem:[%s11140_s1 + $0x14c0] ss:$16 sps:$4 sm:$0xff]  }
 0x123   :  { %5270 = vmatpush2.bf16.msra.mxu0 %v7519_v59  ;;  %v9451_v59 = vpack.c.bf16 %v9191_v25, %v9191_v25  ;;  %v7577_v25 = vld [vmem:[%s11140_s1 + $0x16c0] ss:$16 sps:$4 sm:$0xff]  }
 0x124   :  { %5311 = vmatpush2.bf16.msra.mxu1 %v7522_v45  ;;  %5271 = vmatprep.subr.bf16.mxu0 %v7527_v50  ;;  %v7576_v45 = vld [vmem:[%s11140_s1 + $0x14c4] ss:$16 sps:$4 sm:$0xff]  }
 0x125   :  { %5312 = vmatprep.subr.bf16.mxu1 %v7530_v51  ;;  %v7579_v50 = vld [vmem:[%s11140_s1 + $0x16c4] ss:$16 sps:$4 sm:$0xff]   ;;  %v9465_v51 = vpack.c.bf16 %v136_v41, %v136_v41 }
 0x126   :  { %v7615_v41 = vld [vmem:[%s11140_s1 + $0x1604] ss:$16 sps:$4 sm:$0xff]  }
 0x127   :  { %5272 = vmatpush2.bf16.msra.mxu0 %v7525_v54  ;;  %v9467_v54 = vpack.c.bf16 %v137_v42, %v137_v42  ;;  %v7610_v42 = vld [vmem:[%s11140_s1 + $0x1400] ss:$16 sps:$4 sm:$0xff]  }
 0x128   :  { %5313 = vmatpush2.bf16.msra.mxu1 %v7528_v55  ;;  %5273 = vmatprep.subr.bf16.mxu0 %v7533_v56 }
 0x129   :  { %5314 = vmatprep.subr.bf16.mxu1 %v7536_v60 }
 0x12b   :  { %5274 = vmatpush2.bf16.msra.mxu0 %v7531_v61 }
 0x12c   :  { %5315 = vmatpush2.bf16.msra.mxu1 %v7534_v63  ;;  %5275 = vmatprep.subr.bf16.mxu0 %v7539_v0  ;;  %v7582_v0 = vld [vmem:[%s11140_s1 + $0x14a4] ss:$16 sps:$4 sm:$0xff]  }
 0x12d   :  { %5316 = vmatprep.subr.bf16.mxu1 %v7542_v2  ;;  %v7585_v2 = vld [vmem:[%s11140_s1 + $0x16a4] ss:$16 sps:$4 sm:$0xff]  }
 0x12f   :  { %5276 = vmatpush2.bf16.msra.mxu0 %v7537_v6 }
 0x130   :  { %5317 = vmatpush2.bf16.msra.mxu1 %v7540_v7  ;;  %5277 = vmatprep.subr.bf16.mxu0 %v7545_v39  ;;  %v7583_v39 = vld [vmem:[%s11140_s1 + $0x16a0] ss:$16 sps:$4 sm:$0xff]  }
 0x131   :  { %5318 = vmatprep.subr.bf16.mxu1 %v7548_v44 }
 0x133   :  { %5278 = vmatpush2.bf16.msra.mxu0 %v7543_v11 }
 0x134   :  { %5319 = vmatpush2.bf16.msra.mxu1 %v7546_v12  ;;  %5279 = vmatprep.subr.bf16.mxu0 %v7551_v13 }
 0x135   :  { %5320 = vmatprep.subr.bf16.mxu1 %v7554_v14  ;;  %v7588_v14 = vld [vmem:[%s11140_s1 + $0x1484] ss:$16 sps:$4 sm:$0xff]  }
 0x137   :  { %5280 = vmatpush2.bf16.msra.mxu0 %v7549_v18  ;;  %v7586_v18 = vld [vmem:[%s11140_s1 + $0x1480] ss:$16 sps:$4 sm:$0xff]  }
 0x138   :  { %5321 = vmatpush2.bf16.msra.mxu1 %v7552_v19  ;;  %5281 = vmatprep.subr.bf16.mxu0 %v7557_v20  ;;  %v7589_v19 = vld [vmem:[%s11140_s1 + $0x1680] ss:$16 sps:$4 sm:$0xff]   ;;  %v7594_v20 = vld [vmem:[%s11140_s1 + $0x1464] ss:$16 sps:$4 sm:$0xff]  }
 0x139   :  { %5322 = vmatprep.subr.bf16.mxu1 %v7560_v21  ;;  %v7597_v21 = vld [vmem:[%s11140_s1 + $0x1664] ss:$16 sps:$4 sm:$0xff]  }
 0x13b   :  { %5282 = vmatpush2.bf16.msra.mxu0 %v7555_v23  ;;  %v7595_v23 = vld [vmem:[%s11140_s1 + $0x1660] ss:$16 sps:$4 sm:$0xff]  }
 0x13c   :  { %5323 = vmatpush2.bf16.msra.mxu1 %v7558_v26  ;;  %5283 = vmatprep.subr.bf16.mxu0 %v7563_v27  ;;  %v7600_v26 = vld [vmem:[%s11140_s1 + $0x1444] ss:$16 sps:$4 sm:$0xff]  }
 0x13d   :  { %5324 = vmatprep.subr.bf16.mxu1 %v7566_v28  ;;  %v7603_v27 = vld [vmem:[%s11140_s1 + $0x1644] ss:$16 sps:$4 sm:$0xff]   ;;  %v7598_v28 = vld [vmem:[%s11140_s1 + $0x1440] ss:$16 sps:$4 sm:$0xff]  }
 0x13f   :  { %5284 = vmatpush2.bf16.msra.mxu0 %v7561_v31  ;;  %v7601_v31 = vld [vmem:[%s11140_s1 + $0x1640] ss:$16 sps:$4 sm:$0xff]  }
 0x140   :  { %5325 = vmatpush2.bf16.msra.mxu1 %v7564_v34  ;;  %5335 = vmatprep.subr.bf16.mxu0 %v7570_v35  ;;  %v7606_v34 = vld [vmem:[%s11140_s1 + $0x1424] ss:$16 sps:$4 sm:$0xff]  }
 0x141   :  { %5376 = vmatprep.subr.bf16.mxu1 %v7573_v49  ;;  %v7609_v35 = vld [vmem:[%s11140_s1 + $0x1624] ss:$16 sps:$4 sm:$0xff]   ;;  %v7604_v49 = vld [vmem:[%s11140_s1 + $0x1420] ss:$16 sps:$4 sm:$0xff]  }
 0x142   :  { %v5041_v55 = vpop.f32.mrf.mxu0  ;;  %5286 = vmatmul.mubr.bf16.vlgmr.msra.gmra.mxu0 %v9447_v58 }
 0x143   :  { %v5082_v56 = vpop.f32.mrf.mxu1  ;;  %5327 = vmatmul.mubr.bf16.vlgmr.msra.gmra.mxu1 %v9451_v59  ;;  %v5042_v60 = vadd.f32 %v5041_v55, %v9252_v1  ;;  %5336 = vmatpush1.bf16.msra.mxu0 %v7568_v36  ;;  %v7580_v1 = vld [vmem:[%s11140_s1 + $0x14a0] ss:$16 sps:$4 sm:$0xff]  }
 0x144   :  { %5377 = vmatpush1.bf16.msra.mxu1 %v7571_v40  ;;  %v5043_v61 = vpop.f32.mrf.mxu0  ;;  %5337 = vmatprep.subr.bf16.mxu0 %v7576_v45  ;;  %v7607_v36 = vld [vmem:[%s11140_s1 + $0x1620] ss:$16 sps:$4 sm:$0xff]   ;;  %v7612_v40 = vld [vmem:[%s11140_s1 + $0x1404] ss:$16 sps:$4 sm:$0xff]  }
 0x145   :  { %v5084_v63 = vpop.f32.mrf.mxu1  ;;  %5378 = vmatprep.subr.bf16.mxu1 %v7579_v50  ;;  %v9478_v6 = vadd.f32 %v5082_v56, %v5042_v60  ;;  %v5044_v7 = vadd.f32 %v5043_v61, %v9262_v10  ;;  %5367 = vmatprep.mubr.bf16.mxu0 %v9465_v51  ;;  %v7613_v45 = vld [vmem:[%s11140_s1 + $0x1600] ss:$16 sps:$4 sm:$0xff]   ;;  %v7618_v50 = vld [vmem:[%s11140_s1 + $0x15e4] ss:$16 sps:$4 sm:$0xff]  }
 0x146   :  { %5408 = vmatprep.mubr.bf16.mxu1 %v9467_v54  ;;  %v5045_v44 = vpop.f32.mrf.mxu0  ;;  %v7619_v55 = vld [vmem:[%s11140_s1 + $0x17e0] ss:$16 sps:$4 sm:$0xff]   ;;  %v7624_v56 = vld [vmem:[%s11140_s1 + $0x15c4] ss:$16 sps:$4 sm:$0xff]  }
 0x147   :  { %v5086_v11 = vpop.f32.mrf.mxu1  ;;  %v9489_v12 = vadd.f32 %v5084_v63, %v5044_v7  ;;  %5338 = vmatpush1.bf16.msra.mxu0 %v7574_v24  ;;  %v7621_v24 = vld [vmem:[%s11140_s1 + $0x17e4] ss:$16 sps:$4 sm:$0xff]   ;;  %v7622_v61 = vld [vmem:[%s11140_s1 + $0x15c0] ss:$16 sps:$4 sm:$0xff]  }
 0x148   :  { %5379 = vmatpush1.bf16.msra.mxu1 %v7577_v25  ;;  %v5046_v13 = vpop.f32.mrf.mxu0  ;;  %5339 = vmatprep.subr.bf16.mxu0 %v7582_v0  ;;  %v7616_v25 = vld [vmem:[%s11140_s1 + $0x15e0] ss:$16 sps:$4 sm:$0xff]   ;;  %v7627_v60 = vld [vmem:[%s11140_s1 + $0x17c4] ss:$16 sps:$4 sm:$0xff]  }
 0x149   :  { %v5087_v10 = vpop.f32.mrf.mxu1  ;;  %5380 = vmatprep.subr.bf16.mxu1 %v7585_v2  ;;  %v7625_v63 = vld [vmem:[%s11140_s1 + $0x17c0] ss:$16 sps:$4 sm:$0xff]   ;;  %v7630_v0 = vld [vmem:[%s11140_s1 + $0x15a4] ss:$16 sps:$4 sm:$0xff]  }
 0x14a   :  { %v7633_v2 = vld [vmem:[%s11140_s1 + $0x17a4] ss:$16 sps:$4 sm:$0xff]   ;;  %v7628_v7 = vld [vmem:[%s11140_s1 + $0x15a0] ss:$16 sps:$4 sm:$0xff]  }
 0x14b   :  { %5340 = vmatpush1.bf16.msra.mxu0 %v7580_v1  ;;  %v7631_v1 = vld [vmem:[%s11140_s1 + $0x17a0] ss:$16 sps:$4 sm:$0xff]   ;;  %v7639_v44 = vld [vmem:[%s11140_s1 + $0x1784] ss:$16 sps:$4 sm:$0xff]  }
 0x14c   :  { %5381 = vmatpush1.bf16.msra.mxu1 %v7583_v39  ;;  %5341 = vmatprep.subr.bf16.mxu0 %v7588_v14  ;;  %v7636_v39 = vld [vmem:[%s11140_s1 + $0x1584] ss:$16 sps:$4 sm:$0xff]   ;;  %v7634_v11 = vld [vmem:[%s11140_s1 + $0x1580] ss:$16 sps:$4 sm:$0xff]  }
 0x14d   :  { %5382 = vmatprep.subr.bf16.mxu1 %v7591_v15  ;;  %v7637_v13 = vld [vmem:[%s11140_s1 + $0x1780] ss:$16 sps:$4 sm:$0xff]   ;;  %v7642_v10 = vld [vmem:[%s11140_s1 + $0x1564] ss:$16 sps:$4 sm:$0xff]  }
 0x14e   :  { %v7645_v14 = vld [vmem:[%s11140_s1 + $0x1764] ss:$16 sps:$4 sm:$0xff]   ;;  %v7640_v15 = vld [vmem:[%s11140_s1 + $0x1560] ss:$16 sps:$4 sm:$0xff]  }
 0x14f   :  { %5342 = vmatpush1.bf16.msra.mxu0 %v7586_v18  ;;  %v7643_v18 = vld [vmem:[%s11140_s1 + $0x1760] ss:$16 sps:$4 sm:$0xff]  }
 0x150   :  { %5383 = vmatpush1.bf16.msra.mxu1 %v7589_v19  ;;  %5343 = vmatprep.subr.bf16.mxu0 %v7594_v20  ;;  %v7648_v19 = vld [vmem:[%s11140_s1 + $0x1544] ss:$16 sps:$4 sm:$0xff]  }
 0x151   :  { %5384 = vmatprep.subr.bf16.mxu1 %v7597_v21  ;;  %v7651_v20 = vld [vmem:[%s11140_s1 + $0x1744] ss:$16 sps:$4 sm:$0xff]   ;;  %v7646_v21 = vld [vmem:[%s11140_s1 + $0x1540] ss:$16 sps:$4 sm:$0xff]  }
 0x153   :  { %5344 = vmatpush1.bf16.msra.mxu0 %v7592_v22  ;;  %v7649_v22 = vld [vmem:[%s11140_s1 + $0x1740] ss:$16 sps:$4 sm:$0xff]  }
 0x154   :  { %5385 = vmatpush1.bf16.msra.mxu1 %v7595_v23  ;;  %5345 = vmatprep.subr.bf16.mxu0 %v7600_v26  ;;  %v7654_v23 = vld [vmem:[%s11140_s1 + $0x1524] ss:$16 sps:$4 sm:$0xff]  }
 0x155   :  { %5386 = vmatprep.subr.bf16.mxu1 %v7603_v27  ;;  %v7657_v26 = vld [vmem:[%s11140_s1 + $0x1724] ss:$16 sps:$4 sm:$0xff]   ;;  %v7652_v27 = vld [vmem:[%s11140_s1 + $0x1520] ss:$16 sps:$4 sm:$0xff]  }
 0x157   :  { %5346 = vmatpush1.bf16.msra.mxu0 %v7598_v28  ;;  %v7655_v28 = vld [vmem:[%s11140_s1 + $0x1720] ss:$16 sps:$4 sm:$0xff]  }
 0x158   :  { %5387 = vmatpush1.bf16.msra.mxu1 %v7601_v31  ;;  %5347 = vmatprep.subr.bf16.mxu0 %v7606_v34  ;;  %v7660_v31 = vld [vmem:[%s11140_s1 + $0x1504] ss:$16 sps:$4 sm:$0xff]  }
 0x159   :  { %5388 = vmatprep.subr.bf16.mxu1 %v7609_v35  ;;  %v7663_v34 = vld [vmem:[%s11140_s1 + $0x1704] ss:$16 sps:$4 sm:$0xff]   ;;  %v7658_v35 = vld [vmem:[%s11140_s1 + $0x1500] ss:$16 sps:$4 sm:$0xff]  }
 0x15b   :  { %5348 = vmatpush1.bf16.msra.mxu0 %v7604_v49  ;;  %v7661_v49 = vld [vmem:[%s11140_s1 + $0x1700] ss:$16 sps:$4 sm:$0xff]  }
 0x15c   :  { %5389 = vmatpush1.bf16.msra.mxu1 %v7607_v36  ;;  %5349 = vmatprep.subr.bf16.mxu0 %v7612_v40  ;;  %v7667_v36 = vld [vmem:[%s11140_s1 + $0x1864] ss:$16 sps:$4 sm:$0xff]   ;;  %v7670_v40 = vld [vmem:[%s11140_s1 + $0xec] ss:$16 sps:$4 sm:$0xff]  }
 0x15d   :  { %5390 = vmatprep.subr.bf16.mxu1 %v7615_v41  ;;  %v7665_v41 = vld [vmem:[%s11140_s1 + $0x1860] ss:$16 sps:$4 sm:$0xff]  }
 0x15f   :  { %5350 = vmatpush1.bf16.msra.mxu0 %v7610_v42  ;;  %v7668_v42 = vld [vmem:[%s11140_s1 + $0xe8] ss:$16 sps:$4 sm:$0xff]  }
 0x160   :  { %5391 = vmatpush1.bf16.msra.mxu1 %v7613_v45  ;;  %5351 = vmatprep.subr.bf16.mxu0 %v7618_v50  ;;  %v9661_v45 = vpack.c.bf16 %v9418_v29, %v9418_v29  ;;  %v9665_v50 = vpack.c.bf16 %v9421_v30, %v9421_v30  ;;  %v7671_v29 = vld [vmem:[%s11140_s1 + $0x1840] ss:$16 sps:$4 sm:$0xff]   ;;  %v7674_v30 = vld [vmem:[%s11140_s1 + $0xc8] ss:$16 sps:$4 sm:$0xff]  }
 0x161   :  { %5392 = vmatprep.subr.bf16.mxu1 %v7621_v24  ;;  %v7673_v24 = vld [vmem:[%s11140_s1 + $0x1844] ss:$16 sps:$4 sm:$0xff]  }
 0x163   :  { %5352 = vmatpush2.bf16.msra.mxu0 %v7616_v25  ;;  %v7676_v25 = vld [vmem:[%s11140_s1 + $0xcc] ss:$16 sps:$4 sm:$0xff]  }
 0x164   :  { %5393 = vmatpush2.bf16.msra.mxu1 %v7619_v55  ;;  %5353 = vmatprep.subr.bf16.mxu0 %v7624_v56 }
 0x165   :  { %5394 = vmatprep.subr.bf16.mxu1 %v7627_v60 }
 0x167   :  { %5354 = vmatpush2.bf16.msra.mxu0 %v7622_v61 }
 0x168   :  { %5395 = vmatpush2.bf16.msra.mxu1 %v7625_v63  ;;  %5355 = vmatprep.subr.bf16.mxu0 %v7630_v0  ;;  %v7679_v0 = vld [vmem:[%s11140_s1 + $0x1824] ss:$16 sps:$4 sm:$0xff]  }
 0x169   :  { %5396 = vmatprep.subr.bf16.mxu1 %v7633_v2  ;;  %v7682_v2 = vld [vmem:[%s11140_s1 + $0xac] ss:$16 sps:$4 sm:$0xff]  }
 0x16b   :  { %5356 = vmatpush2.bf16.msra.mxu0 %v7628_v7 }
 0x16c   :  { %5397 = vmatpush2.bf16.msra.mxu1 %v7631_v1  ;;  %5357 = vmatprep.subr.bf16.mxu0 %v7636_v39  ;;  %v7680_v39 = vld [vmem:[%s11140_s1 + $0xa8] ss:$16 sps:$4 sm:$0xff]  }
 0x16d   :  { %5398 = vmatprep.subr.bf16.mxu1 %v7639_v44  ;;  %v8291_v44 = vmov 0  }
 0x16f   :  { %5358 = vmatpush2.bf16.msra.mxu0 %v7634_v11 }
 0x170   :  { %5399 = vmatpush2.bf16.msra.mxu1 %v7637_v13  ;;  %5359 = vmatprep.subr.bf16.mxu0 %v7642_v10 }
 0x171   :  { %5400 = vmatprep.subr.bf16.mxu1 %v7645_v14 }
 0x173   :  { %5360 = vmatpush2.bf16.msra.mxu0 %v7640_v15  ;;  %v7685_v15 = vld [vmem:[%s11140_s1 + $0x1804] ss:$16 sps:$4 sm:$0xff]  }
 0x174   :  { %5401 = vmatpush2.bf16.msra.mxu1 %v7643_v18  ;;  %5361 = vmatprep.subr.bf16.mxu0 %v7648_v19  ;;  %v7688_v18 = vld [vmem:[%s11140_s1 + $0x8c] ss:$16 sps:$4 sm:$0xff]   ;;  %v7686_v19 = vld [vmem:[%s11140_s1 + $0x88] ss:$16 sps:$4 sm:$0xff]  }
 0x175   :  { %5402 = vmatprep.subr.bf16.mxu1 %v7651_v20  ;;  %v6222_v20 = vld.sshfl [vmem:[%s11139_s0 + $0x30] sm:$0x3 pattern:$0x76325410] }
 0x177   :  { %5362 = vmatpush2.bf16.msra.mxu0 %v7646_v21  ;;  %v7691_v21 = vld [vmem:[%s11140_s1 + $0x6c] ss:$16 sps:$4 sm:$0xff]  }
 0x178   :  { %5403 = vmatpush2.bf16.msra.mxu1 %v7649_v22  ;;  %5363 = vmatprep.subr.bf16.mxu0 %v7654_v23  ;;  %v7694_v22 = vld [vmem:[%s11140_s1 + $0x2ec] ss:$16 sps:$4 sm:$0xff]   ;;  %v7689_v23 = vld [vmem:[%s11140_s1 + $0x68] ss:$16 sps:$4 sm:$0xff]  }
 0x179   :  { %5404 = vmatprep.subr.bf16.mxu1 %v7657_v26  ;;  %v7692_v26 = vld [vmem:[%s11140_s1 + $0x2e8] ss:$16 sps:$4 sm:$0xff]  }
 0x17b   :  { %5364 = vmatpush2.bf16.msra.mxu0 %v7652_v27  ;;  %v9728_v27 = vpack.c.bf16 %v6222_v20, %v6222_v20  ;;  %v7745_v20 = vld [vmem:[%s11140_s1 + $0x14c] ss:$16 sps:$4 sm:$0xff]  }
 0x17c   :  { %5405 = vmatpush2.bf16.msra.mxu1 %v7655_v28  ;;  %5365 = vmatprep.subr.bf16.mxu0 %v7660_v31  ;;  %v7697_v28 = vld [vmem:[%s11140_s1 + $0x4c] ss:$16 sps:$4 sm:$0xff]  }
 0x17d   :  { %5406 = vmatprep.subr.bf16.mxu1 %v7663_v34  ;;  %v7700_v31 = vld [vmem:[%s11140_s1 + $0x2cc] ss:$16 sps:$4 sm:$0xff]   ;;  %v7695_v34 = vld [vmem:[%s11140_s1 + $0x48] ss:$16 sps:$4 sm:$0xff]  }
 0x17f   :  { %5366 = vmatpush2.bf16.msra.mxu0 %v7658_v35  ;;  %v7698_v35 = vld [vmem:[%s11140_s1 + $0x2c8] ss:$16 sps:$4 sm:$0xff]  }
 0x180   :  { %5407 = vmatpush2.bf16.msra.mxu1 %v7661_v49  ;;  %5425 = vmatprep.subr.bf16.mxu0 %v7667_v36  ;;  %v7703_v49 = vld [vmem:[%s11140_s1 + $0x2c] ss:$16 sps:$4 sm:$0xff]  }
 0x181   :  { %5458 = vmatprep.subr.bf16.mxu1 %v7670_v40  ;;  %v7706_v36 = vld [vmem:[%s11140_s1 + $0x2ac] ss:$16 sps:$4 sm:$0xff]   ;;  %v7701_v40 = vld [vmem:[%s11140_s1 + $0x28] ss:$16 sps:$4 sm:$0xff]  }
 0x182   :  { %v5123_v55 = vpop.f32.mrf.mxu0  ;;  %5368 = vmatmul.mubr.bf16.vlgmr.msra.gmra.mxu0 %v9661_v45 }
 0x183   :  { %v5164_v56 = vpop.f32.mrf.mxu1  ;;  %5409 = vmatmul.mubr.bf16.vlgmr.msra.gmra.mxu1 %v9665_v50  ;;  %v5124_v60 = vadd.f32 %v5123_v55, %v9478_v6  ;;  %5426 = vmatpush1.bf16.msra.mxu0 %v7665_v41  ;;  %v7677_v6 = vld [vmem:[%s11140_s1 + $0x1820] ss:$16 sps:$4 sm:$0xff]   ;;  %v7704_v41 = vld [vmem:[%s11140_s1 + $0x2a8] ss:$16 sps:$4 sm:$0xff]  }
 0x184   :  { %5459 = vmatpush1.bf16.msra.mxu1 %v7668_v42  ;;  %v5125_v61 = vpop.f32.mrf.mxu0  ;;  %5427 = vmatprep.subr.bf16.mxu0 %v7673_v24  ;;  %v7709_v42 = vld [vmem:[%s11140_s1 + $0xc] ss:$16 sps:$4 sm:$0xff]   ;;  %v7707_v24 = vld [vmem:[%s11140_s1 + $0x8] ss:$16 sps:$4 sm:$0xff]  }
 0x185   :  { %v5166_v63 = vpop.f32.mrf.mxu1  ;;  %5460 = vmatprep.subr.bf16.mxu1 %v7676_v25  ;;  %v9688_v7 = vadd.f32 %v5164_v56, %v5124_v60  ;;  %v5126_v1 = vadd.f32 %v5125_v61, %v9489_v12  ;;  %5449 = vmatprep.mubr.bf16.mxu0 %v8291_v44  ;;  %v7710_v25 = vld [vmem:[%s11140_s1 + $0x288] ss:$16 sps:$4 sm:$0xff]   ;;  %v7721_v60 = vld [vmem:[%s11140_s1 + $0x1cc] ss:$16 sps:$4 sm:$0xff]  }
 0x186   :  { %5490 = vmatprep.mubr.bf16.mxu1 %v8486_v62  ;;  %v5127_v11 = vpop.f32.mrf.mxu0  ;;  %v7683_v62 = vld [vmem:[%s11140_s1 + $0x1800] ss:$16 sps:$4 sm:$0xff]   ;;  %v7713_v55 = vld [vmem:[%s11140_s1 + $0x1e8] ss:$16 sps:$4 sm:$0xff]   ;;  %v7724_v61 = vld [vmem:[%s11140_s1 + $0x24c] ss:$16 sps:$4 sm:$0xff]  }
 0x187   :  { %v5168_v13 = vpop.f32.mrf.mxu1  ;;  %v9699_v10 = vadd.f32 %v5166_v63, %v5126_v1  ;;  %5428 = vmatpush1.bf16.msra.mxu0 %v7671_v29  ;;  %v7715_v29 = vld [vmem:[%s11140_s1 + $0x1ec] ss:$16 sps:$4 sm:$0xff]   ;;  %v7716_v56 = vld [vmem:[%s11140_s1 + $0x268] ss:$16 sps:$4 sm:$0xff]  }
 0x188   :  { %5461 = vmatpush1.bf16.msra.mxu1 %v7674_v30  ;;  %v5128_v12 = vpop.f32.mrf.mxu0  ;;  %5429 = vmatprep.subr.bf16.mxu0 %v7679_v0  ;;  %v7718_v30 = vld [vmem:[%s11140_s1 + $0x26c] ss:$16 sps:$4 sm:$0xff]   ;;  %v7719_v63 = vld [vmem:[%s11140_s1 + $0x1c8] ss:$16 sps:$4 sm:$0xff]  }
 0x189   :  { %v5169_v14 = vpop.f32.mrf.mxu1  ;;  %5462 = vmatprep.subr.bf16.mxu1 %v7682_v2  ;;  %v7722_v0 = vld [vmem:[%s11140_s1 + $0x248] ss:$16 sps:$4 sm:$0xff]   ;;  %v7727_v2 = vld [vmem:[%s11140_s1 + $0x1ac] ss:$16 sps:$4 sm:$0xff]  }
 0x18a   :  { %v7730_v1 = vld [vmem:[%s11140_s1 + $0x22c] ss:$16 sps:$4 sm:$0xff]   ;;  %v7731_v12 = vld [vmem:[%s11140_s1 + $0x188] ss:$16 sps:$4 sm:$0xff]  }
 0x18b   :  { %5430 = vmatpush1.bf16.msra.mxu0 %v7677_v6  ;;  %v7725_v6 = vld [vmem:[%s11140_s1 + $0x1a8] ss:$16 sps:$4 sm:$0xff]   ;;  %v7733_v11 = vld [vmem:[%s11140_s1 + $0x18c] ss:$16 sps:$4 sm:$0xff]  }
 0x18c   :  { %5463 = vmatpush1.bf16.msra.mxu1 %v7680_v39  ;;  %5431 = vmatprep.subr.bf16.mxu0 %v7685_v15  ;;  %v7728_v39 = vld [vmem:[%s11140_s1 + $0x228] ss:$16 sps:$4 sm:$0xff]   ;;  %v7736_v13 = vld [vmem:[%s11140_s1 + $0x20c] ss:$16 sps:$4 sm:$0xff]  }
 0x18d   :  { %5464 = vmatprep.subr.bf16.mxu1 %v7688_v18  ;;  %v7734_v14 = vld [vmem:[%s11140_s1 + $0x208] ss:$16 sps:$4 sm:$0xff]   ;;  %v7739_v15 = vld [vmem:[%s11140_s1 + $0x16c] ss:$16 sps:$4 sm:$0xff]  }
 0x18e   :  { %v7742_v18 = vld [vmem:[%s11140_s1 + $0x3ec] ss:$16 sps:$4 sm:$0xff]  }
 0x18f   :  { %5432 = vmatpush1.bf16.msra.mxu0 %v7683_v62  ;;  %v7737_v62 = vld [vmem:[%s11140_s1 + $0x168] ss:$16 sps:$4 sm:$0xff]  }
 0x190   :  { %5465 = vmatpush1.bf16.msra.mxu1 %v7686_v19  ;;  %5499 = vmatprep.subr.bf16.mxu0 %v7694_v22  ;;  %v7740_v19 = vld [vmem:[%s11140_s1 + $0x3e8] ss:$16 sps:$4 sm:$0xff]  }
 0x191   :  { %5466 = vmatprep.subr.bf16.mxu1 %v7691_v21  ;;  %v7748_v21 = vld [vmem:[%s11140_s1 + $0x3cc] ss:$16 sps:$4 sm:$0xff]   ;;  %v7743_v22 = vld [vmem:[%s11140_s1 + $0x148] ss:$16 sps:$4 sm:$0xff]  }
 0x192   :  { %7007 = vmatmul.mubr.msk.bf16.vlgmr.msra.gmra.mxu0 %vm4921_vm0, %v9728_v27 }
 0x193   :  { %5500 = vmatpush1.bf16.msra.mxu0 %v7692_v26  ;;  %5531 = vmatprep.mubr.bf16.mxu0 %v8497_v3  ;;  %v7712_v3 = vld [vmem:[%s11140_s1 + $0x28c] ss:$16 sps:$4 sm:$0xff]  }
 0x194   :  { %5467 = vmatpush1.bf16.msra.mxu1 %v7689_v23  ;;  %5501 = vmatprep.subr.bf16.mxu0 %v7700_v31  ;;  %v7746_v23 = vld [vmem:[%s11140_s1 + $0x3c8] ss:$16 sps:$4 sm:$0xff]   ;;  %v7751_v26 = vld [vmem:[%s11140_s1 + $0x12c] ss:$16 sps:$4 sm:$0xff]  }
 0x195   :  { %5468 = vmatprep.subr.bf16.mxu1 %v7697_v28  ;;  %v7754_v28 = vld [vmem:[%s11140_s1 + $0x3ac] ss:$16 sps:$4 sm:$0xff]   ;;  %v7749_v31 = vld [vmem:[%s11140_s1 + $0x128] ss:$16 sps:$4 sm:$0xff]  }
 0x197   :  { %5502 = vmatpush1.bf16.msra.mxu0 %v7698_v35  ;;  %v7757_v35 = vld [vmem:[%s11140_s1 + $0x10c] ss:$16 sps:$4 sm:$0xff]  }
 0x198   :  { %5469 = vmatpush1.bf16.msra.mxu1 %v7695_v34  ;;  %5503 = vmatprep.subr.bf16.mxu0 %v7706_v36  ;;  %v7752_v34 = vld [vmem:[%s11140_s1 + $0x3a8] ss:$16 sps:$4 sm:$0xff]  }
 0x199   :  { %5470 = vmatprep.subr.bf16.mxu1 %v7703_v49  ;;  %v7760_v49 = vld [vmem:[%s11140_s1 + $0x38c] ss:$16 sps:$4 sm:$0xff]   ;;  %v7755_v36 = vld [vmem:[%s11140_s1 + $0x108] ss:$16 sps:$4 sm:$0xff]  }
 0x19b   :  { %5504 = vmatpush1.bf16.msra.mxu0 %v7704_v41  ;;  %v7763_v41 = vld [vmem:[%s11140_s1 + $0x36c] ss:$16 sps:$4 sm:$0xff]  }
 0x19c   :  { %5471 = vmatpush1.bf16.msra.mxu1 %v7701_v40  ;;  %5505 = vmatprep.subr.bf16.mxu0 %v7712_v3  ;;  %v7758_v40 = vld [vmem:[%s11140_s1 + $0x388] ss:$16 sps:$4 sm:$0xff]  }
 0x19d   :  { %5472 = vmatprep.subr.bf16.mxu1 %v7709_v42  ;;  %v7766_v42 = vld [vmem:[%s11140_s1 + $0x4ec] ss:$16 sps:$4 sm:$0xff]   ;;  %v7761_v3 = vld [vmem:[%s11140_s1 + $0x368] ss:$16 sps:$4 sm:$0xff]  }
 0x19f   :  { %5506 = vmatpush1.bf16.msra.mxu0 %v7710_v25  ;;  %v7769_v25 = vld [vmem:[%s11140_s1 + $0x34c] ss:$16 sps:$4 sm:$0xff]  }
 0x1a0   :  { %5473 = vmatpush1.bf16.msra.mxu1 %v7707_v24  ;;  %5507 = vmatprep.subr.bf16.mxu0 %v7718_v30  ;;  %v7764_v24 = vld [vmem:[%s11140_s1 + $0x4e8] ss:$16 sps:$4 sm:$0xff]  }
 0x1a1   :  { %5474 = vmatprep.subr.bf16.mxu1 %v7715_v29  ;;  %v7772_v29 = vld [vmem:[%s11140_s1 + $0x4cc] ss:$16 sps:$4 sm:$0xff]   ;;  %v7767_v30 = vld [vmem:[%s11140_s1 + $0x348] ss:$16 sps:$4 sm:$0xff]  }
 0x1a3   :  { %5508 = vmatpush1.bf16.msra.mxu0 %v7716_v56 }
 0x1a4   :  { %5475 = vmatpush2.bf16.msra.mxu1 %v7713_v55  ;;  %5509 = vmatprep.subr.bf16.mxu0 %v7724_v61  ;;  %v7770_v55 = vld [vmem:[%s11140_s1 + $0x4c8] ss:$16 sps:$4 sm:$0xff]  }
 0x1a5   :  { %5476 = vmatprep.subr.bf16.mxu1 %v7721_v60 }
 0x1a7   :  { %5510 = vmatpush1.bf16.msra.mxu0 %v7722_v0 }
 0x1a8   :  { %5477 = vmatpush2.bf16.msra.mxu1 %v7719_v63  ;;  %5511 = vmatprep.subr.bf16.mxu0 %v7730_v1  ;;  %v7778_v1 = vld [vmem:[%s11140_s1 + $0x4ac] ss:$16 sps:$4 sm:$0xff]  }
 0x1a9   :  { %5478 = vmatprep.subr.bf16.mxu1 %v7727_v2  ;;  %v7775_v2 = vld [vmem:[%s11140_s1 + $0x32c] ss:$16 sps:$4 sm:$0xff]  }
 0x1ab   :  { %5512 = vmatpush1.bf16.msra.mxu0 %v7728_v39  ;;  %v7776_v39 = vld [vmem:[%s11140_s1 + $0x4a8] ss:$16 sps:$4 sm:$0xff]  }
 0x1ac   :  { %5479 = vmatpush2.bf16.msra.mxu1 %v7725_v6  ;;  %5513 = vmatprep.subr.bf16.mxu0 %v7736_v13 }
 0x1ad   :  { %5480 = vmatprep.subr.bf16.mxu1 %v7733_v11 }
 0x1af   :  { %5514 = vmatpush1.bf16.msra.mxu0 %v7734_v14 }
 0x1b0   :  { %5481 = vmatpush2.bf16.msra.mxu1 %v7731_v12  ;;  %5515 = vmatprep.subr.bf16.mxu0 %v7742_v18  ;;  %v7784_v18 = vld [vmem:[%s11140_s1 + $0x48c] ss:$16 sps:$4 sm:$0xff]  }
 0x1b1   :  { %5482 = vmatprep.subr.bf16.mxu1 %v7739_v15 }
 0x1b3   :  { %5516 = vmatpush2.bf16.msra.mxu0 %v7740_v19  ;;  %v7787_v19 = vld [vmem:[%s11140_s1 + $0x46c] ss:$16 sps:$4 sm:$0xff]  }
 0x1b4   :  { %5483 = vmatpush2.bf16.msra.mxu1 %v7737_v62  ;;  %5517 = vmatprep.subr.bf16.mxu0 %v7748_v21  ;;  %v7782_v62 = vld [vmem:[%s11140_s1 + $0x488] ss:$16 sps:$4 sm:$0xff]  }
 0x1b5   :  { %5484 = vmatprep.subr.bf16.mxu1 %v7745_v20  ;;  %v7790_v20 = vld [vmem:[%s11140_s1 + $0x6ec] ss:$16 sps:$4 sm:$0xff]  }
 0x1b7   :  { %5518 = vmatpush2.bf16.msra.mxu0 %v7746_v23 }
 0x1b8   :  { %5485 = vmatpush2.bf16.msra.mxu1 %v7743_v22  ;;  %5519 = vmatprep.subr.bf16.mxu0 %v7754_v28 }
 0x1b9   :  { %5486 = vmatprep.subr.bf16.mxu1 %v7751_v26 }
 0x1bb   :  { %5520 = vmatpush2.bf16.msra.mxu0 %v7752_v34 }
 0x1bc   :  { %5487 = vmatpush2.bf16.msra.mxu1 %v7749_v31  ;;  %5521 = vmatprep.subr.bf16.mxu0 %v7760_v49 }
 0x1bd   :  { %5488 = vmatprep.subr.bf16.mxu1 %v7757_v35 }
 0x1bf   :  { %5522 = vmatpush2.bf16.msra.mxu0 %v7758_v40 }
 0x1c0   :  { %5489 = vmatpush2.bf16.msra.mxu1 %v7755_v36  ;;  %5523 = vmatprep.subr.bf16.mxu0 %v7763_v41 }
 0x1c1   :  { %5540 = vmatprep.subr.bf16.mxu1 %v7766_v42 }
 0x1c2   :  { %v5205_v56 = vpop.f32.mrf.mxu0 }
 0x1c3   :  { %v5246_v60 = vpop.f32.mrf.mxu1  ;;  %5491 = vmatmul.mubr.bf16.vlgmr.msra.gmra.mxu1 %v8537_v16  ;;  %v5206_v61 = vadd.f32 %v5205_v56, %v9688_v7  ;;  %5524 = vmatpush2.bf16.msra.mxu0 %v7761_v3  ;;  %v7773_v7 = vld [vmem:[%s11140_s1 + $0x328] ss:$16 sps:$4 sm:$0xff]  }
 0x1c4   :  { %5541 = vmatpush1.bf16.msra.mxu1 %v7764_v24  ;;  %v5207_v63 = vpop.f32.mrf.mxu0  ;;  %5525 = vmatprep.subr.bf16.mxu0 %v7769_v25 }
 0x1c5   :  { %v5248_v0 = vpop.f32.mrf.mxu1  ;;  %5542 = vmatprep.subr.bf16.mxu1 %v7772_v29  ;;  %v9897_v6 = vadd.f32 %v5246_v60, %v5206_v61  ;;  %v5208_v16 = vadd.f32 %v5207_v63, %v9699_v10  ;;  %5572 = vmatprep.mubr.bf16.mxu1 %v8638_v53  ;;  %v7781_v10 = vld [vmem:[%s11140_s1 + $0x30c] ss:$16 sps:$4 sm:$0xff]   ;;  %v7779_v53 = vld [vmem:[%s11140_s1 + $0x308] ss:$16 sps:$4 sm:$0xff]  }
 0x1c6   :  { %v5209_v11 = vpop.f32.mrf.mxu0 }
 0x1c7   :  { %v5250_v13 = vpop.f32.mrf.mxu1  ;;  %v9907_v12 = vadd.f32 %v5248_v0, %v5208_v16  ;;  %5526 = vmatpush2.bf16.msra.mxu0 %v7767_v30 }
 0x1c8   :  { %5543 = vmatpush1.bf16.msra.mxu1 %v7770_v55  ;;  %v5210_v14 = vpop.f32.mrf.mxu0  ;;  %5527 = vmatprep.subr.bf16.mxu0 %v7775_v2 }
 0x1c9   :  { %v5251_v15 = vpop.f32.mrf.mxu1  ;;  %5544 = vmatprep.subr.bf16.mxu1 %v7778_v1 }
 0x1cb   :  { %5528 = vmatpush2.bf16.msra.mxu0 %v7773_v7 }
 0x1cc   :  { %5545 = vmatpush1.bf16.msra.mxu1 %v7776_v39  ;;  %5529 = vmatprep.subr.bf16.mxu0 %v7781_v10 }
 0x1cd   :  { %5546 = vmatprep.subr.bf16.mxu1 %v7784_v18 }
 0x1ce   :  { %10 = vsyncpa [#allocation3], 0  ;;  %v7785_v21 = vld [vmem:[%s11140_s1 + $0x468] ss:$16 sps:$4 sm:$0xff]   ;;  %v7793_v23 = vld [vmem:[%s11140_s1 + $0x44c] ss:$16 sps:$4 sm:$0xff]  }
 0x1cf   :  { %5530 = vmatpush2.bf16.msra.mxu0 %v7779_v53  ;;  %v7788_v22 = vld [vmem:[%s11140_s1 + $0x6e8] ss:$16 sps:$4 sm:$0xff]   ;;  %v7796_v26 = vld [vmem:[%s11140_s1 + $0x6cc] ss:$16 sps:$4 sm:$0xff]   ;;  %s8292_s30 = smov [#allocation2]  }
 0x1d0   :  { %5547 = vmatpush1.bf16.msra.mxu1 %v7782_v62  ;;  %5581 = vmatprep.subr.bf16.mxu0 %v7790_v20  ;;  %v7791_v28 = vld [vmem:[%s11140_s1 + $0x448] ss:$16 sps:$4 sm:$0xff]   ;;  %v7799_v34 = vld [vmem:[%s11140_s1 + $0x42c] ss:$16 sps:$4 sm:$0xff]   ;;  %s6214_s6 = sshll.u32 %s8292_s30, 4  ;;  %s6215_s6 = int_to_ptr.vmem [resolvable:$true] %s6214_s6 }
 0x1d1   :  { %5548 = vmatprep.subr.bf16.mxu1 %v7787_v19  ;;  %v7794_v31 = vld [vmem:[%s11140_s1 + $0x6c8] ss:$16 sps:$4 sm:$0xff]   ;;  %v7805_v36 = vld [vmem:[%s11140_s1 + $0x40c] ss:$16 sps:$4 sm:$0xff]   ;;  %s8268_s7 = scalar_lea.vmem %s6215_s6, 32  ;;  %p8273_p1 = scmp.lt.s32.totalorder %s6215_s6, %s6215_s6 }
 0x1d2   :  { %5532 = vmatmul.mubr.bf16.vlgmr.msra.gmra.mxu0 %v8539_v17  ;;  %v7802_v17 = vld [vmem:[%s11140_s1 + $0x6ac] ss:$16 sps:$4 sm:$0xff]   ;;  %v7797_v35 = vld [vmem:[%s11140_s1 + $0x428] ss:$16 sps:$4 sm:$0xff]   ;;  %p8269_p0 = scmp.ne.s32.totalorder %s6215_s6, %s8268_s7  ;;  %p8274_p2 = scmp.lt.s32.totalorder %s8268_s7, %s8268_s7 }
 0x1d3   :  { %5582 = vmatpush1.bf16.msra.mxu0 %v7788_v22  ;;  %5613 = vmatprep.mubr.bf16.mxu0 %v8648_v57  ;;  %v7800_v49 = vld [vmem:[%s11140_s1 + $0x6a8] ss:$16 sps:$4 sm:$0xff]   ;;  %v7808_v57 = vld [vmem:[%s11140_s1 + $0x68c] ss:$16 sps:$4 sm:$0xff]  }
 0x1d4   :  { %5549 = vmatpush1.bf16.msra.mxu1 %v7785_v21  ;;  %5583 = vmatprep.subr.bf16.mxu0 %v7796_v26  ;;  %v7803_v40 = vld [vmem:[%s11140_s1 + $0x408] ss:$16 sps:$4 sm:$0xff]   ;;  %v7811_v42 = vld [vmem:[%s11140_s1 + $0x5ec] ss:$16 sps:$4 sm:$0xff]   ;;  %p8275_p3 = por %p8274_p2, %p8273_p1 }
 0x1d5   :  { %5550 = vmatprep.subr.bf16.mxu1 %v7793_v23  ;;  %v7806_v41 = vld [vmem:[%s11140_s1 + $0x688] ss:$16 sps:$4 sm:$0xff]   ;;  %v7814_v3 = vld [vmem:[%s11140_s1 + $0x66c] ss:$16 sps:$4 sm:$0xff]  }
 0x1d6   :  { %v7809_v24 = vld [vmem:[%s11140_s1 + $0x5e8] ss:$16 sps:$4 sm:$0xff]   ;;  %v7817_v29 = vld [vmem:[%s11140_s1 + $0x5cc] ss:$16 sps:$4 sm:$0xff]   ;;  %p8276_p4 = pnand %p8275_p3, %p8269_p0 }
 0x1d7   :  { %5584 = vmatpush1.bf16.msra.mxu0 %v7794_v31  ;;  %v7812_v25 = vld [vmem:[%s11140_s1 + $0x668] ss:$16 sps:$4 sm:$0xff]   ;;  %v7820_v30 = vld [vmem:[%s11140_s1 + $0x64c] ss:$16 sps:$4 sm:$0xff]  }
 0x1d8   :  { %5551 = vmatpush1.bf16.msra.mxu1 %v7791_v28  ;;  %5585 = vmatprep.subr.bf16.mxu0 %v7802_v17  ;;  %v7815_v55 = vld [vmem:[%s11140_s1 + $0x5c8] ss:$16 sps:$4 sm:$0xff]   ;;  %v7823_v60 = vld [vmem:[%s11140_s1 + $0x5ac] ss:$16 sps:$4 sm:$0xff]  }
 0x1d9   :  { %5552 = vmatprep.subr.bf16.mxu1 %v7799_v34  ;;  %v7818_v56 = vld [vmem:[%s11140_s1 + $0x648] ss:$16 sps:$4 sm:$0xff]   ;;  %v7826_v61 = vld [vmem:[%s11140_s1 + $0x62c] ss:$16 sps:$4 sm:$0xff]  }
 0x1da   :  { %v7821_v63 = vld [vmem:[%s11140_s1 + $0x5a8] ss:$16 sps:$4 sm:$0xff]   ;;  %v7829_v2 = vld [vmem:[%s11140_s1 + $0x58c] ss:$16 sps:$4 sm:$0xff]  }
 0x1db   :  { %5586 = vmatpush1.bf16.msra.mxu0 %v7800_v49  ;;  %v7824_v0 = vld [vmem:[%s11140_s1 + $0x628] ss:$16 sps:$4 sm:$0xff]   ;;  %v7832_v1 = vld [vmem:[%s11140_s1 + $0x60c] ss:$16 sps:$4 sm:$0xff]  }
 0x1dc   :  { %5553 = vmatpush1.bf16.msra.mxu1 %v7797_v35  ;;  %5587 = vmatprep.subr.bf16.mxu0 %v7808_v57  ;;  %v7827_v16 = vld [vmem:[%s11140_s1 + $0x588] ss:$16 sps:$4 sm:$0xff]   ;;  %v7835_v39 = vld [vmem:[%s11140_s1 + $0x56c] ss:$16 sps:$4 sm:$0xff]  }
 0x1dd   :  { %5554 = vmatprep.subr.bf16.mxu1 %v7805_v36  ;;  %v7830_v7 = vld [vmem:[%s11140_s1 + $0x608] ss:$16 sps:$4 sm:$0xff]   ;;  %v7838_v11 = vld [vmem:[%s11140_s1 + $0x7ec] ss:$16 sps:$4 sm:$0xff]  }
 0x1de   :  { %v7833_v13 = vld [vmem:[%s11140_s1 + $0x568] ss:$16 sps:$4 sm:$0xff]   ;;  %v7841_v15 = vld [vmem:[%s11140_s1 + $0x54c] ss:$16 sps:$4 sm:$0xff]  }
 0x1df   :  { %5588 = vmatpush1.bf16.msra.mxu0 %v7806_v41  ;;  %v7836_v14 = vld [vmem:[%s11140_s1 + $0x7e8] ss:$16 sps:$4 sm:$0xff]   ;;  %v7844_v10 = vld [vmem:[%s11140_s1 + $0x7cc] ss:$16 sps:$4 sm:$0xff]  }
 0x1e0   :  { %5555 = vmatpush1.bf16.msra.mxu1 %v7803_v40  ;;  %5589 = vmatprep.subr.bf16.mxu0 %v7814_v3  ;;  %v7839_v18 = vld [vmem:[%s11140_s1 + $0x548] ss:$16 sps:$4 sm:$0xff]   ;;  %v7847_v62 = vld [vmem:[%s11140_s1 + $0x52c] ss:$16 sps:$4 sm:$0xff]  }
 0x1e1   :  { %5556 = vmatprep.subr.bf16.mxu1 %v7811_v42  ;;  %v7842_v53 = vld [vmem:[%s11140_s1 + $0x7c8] ss:$16 sps:$4 sm:$0xff]   ;;  %v7850_v19 = vld [vmem:[%s11140_s1 + $0x7ac] ss:$16 sps:$4 sm:$0xff]  }
 0x1e2   :  { %v7845_v20 = vld [vmem:[%s11140_s1 + $0x528] ss:$16 sps:$4 sm:$0xff]   ;;  %v7853_v22 = vld [vmem:[%s11140_s1 + $0x50c] ss:$16 sps:$4 sm:$0xff]  }
 0x1e3   :  { %5590 = vmatpush1.bf16.msra.mxu0 %v7812_v25  ;;  %v7848_v21 = vld [vmem:[%s11140_s1 + $0x7a8] ss:$16 sps:$4 sm:$0xff]   ;;  %v7856_v23 = vld [vmem:[%s11140_s1 + $0x78c] ss:$16 sps:$4 sm:$0xff]  }
 0x1e4   :  { %5557 = vmatpush2.bf16.msra.mxu1 %v7809_v24  ;;  %5591 = vmatprep.subr.bf16.mxu0 %v7820_v30  ;;  %v7851_v26 = vld [vmem:[%s11140_s1 + $0x508] ss:$16 sps:$4 sm:$0xff]   ;;  %v7859_v31 = vld [vmem:[%s11140_s1 + $0x76c] ss:$16 sps:$4 sm:$0xff]  }
 0x1e5   :  { %5558 = vmatprep.subr.bf16.mxu1 %v7817_v29  ;;  %v7854_v28 = vld [vmem:[%s11140_s1 + $0x788] ss:$16 sps:$4 sm:$0xff]   ;;  %v7862_v34 = vld [vmem:[%s11140_s1 + $0x8ec] ss:$16 sps:$4 sm:$0xff]  }
 0x1e6   :  { %v7857_v17 = vld [vmem:[%s11140_s1 + $0x768] ss:$16 sps:$4 sm:$0xff]   ;;  %v7865_v49 = vld [vmem:[%s11140_s1 + $0x74c] ss:$16 sps:$4 sm:$0xff]  }
 0x1e7   :  { %5592 = vmatpush1.bf16.msra.mxu0 %v7818_v56  ;;  %v7860_v35 = vld [vmem:[%s11140_s1 + $0x8e8] ss:$16 sps:$4 sm:$0xff]   ;;  %v7868_v36 = vld [vmem:[%s11140_s1 + $0x8cc] ss:$16 sps:$4 sm:$0xff]  }
 0x1e8   :  { %5559 = vmatpush2.bf16.msra.mxu1 %v7815_v55  ;;  %5593 = vmatprep.subr.bf16.mxu0 %v7826_v61  ;;  %v7863_v42 = vld [vmem:[%s11140_s1 + $0x748] ss:$16 sps:$4 sm:$0xff]  }
 0x1e9   :  { %5560 = vmatprep.subr.bf16.mxu1 %v7823_v60  ;;  %v7866_v3 = vld [vmem:[%s11140_s1 + $0x8c8] ss:$16 sps:$4 sm:$0xff]  }
 0x1ea   :  { %v7869_v61 = vld [vmem:[%s11140_s1 + $0x728] ss:$16 sps:$4 sm:$0xff]  }
 0x1eb   :  { %5594 = vmatpush1.bf16.msra.mxu0 %v7824_v0 }
 0x1ec   :  { %5561 = vmatpush2.bf16.msra.mxu1 %v7821_v63  ;;  %5595 = vmatprep.subr.bf16.mxu0 %v7832_v1  ;;  %v7872_v63 = vld [vmem:[%s11140_s1 + $0x8a8] ss:$16 sps:$4 sm:$0xff]  }
 0x1ed   :  { %5562 = vmatprep.subr.bf16.mxu1 %v7829_v2  ;;  %v7875_v1 = vld [vmem:[%s11140_s1 + $0x708] ss:$16 sps:$4 sm:$0xff]  }
 0x1ef   :  { %5596 = vmatpush1.bf16.msra.mxu0 %v7830_v7  ;;  %v7883_v7 = vld [vmem:[%s11140_s1 + $0x86c] ss:$16 sps:$4 sm:$0xff]  }
 0x1f0   :  { %5563 = vmatpush2.bf16.msra.mxu1 %v7827_v16  ;;  %5597 = vmatprep.subr.bf16.mxu0 %v7838_v11  ;;  %v7878_v16 = vld [vmem:[%s11140_s1 + $0x888] ss:$16 sps:$4 sm:$0xff]  }
 0x1f1   :  { %5564 = vmatprep.subr.bf16.mxu1 %v7835_v39  ;;  %v7886_v39 = vld [vmem:[%s11140_s1 + $0xaec] ss:$16 sps:$4 sm:$0xff]   ;;  %v7881_v11 = vld [vmem:[%s11140_s1 + $0x868] ss:$16 sps:$4 sm:$0xff]  }
 0x1f3   :  { %5598 = vmatpush2.bf16.msra.mxu0 %v7836_v14  ;;  %v7889_v14 = vld [vmem:[%s11140_s1 + $0x84c] ss:$16 sps:$4 sm:$0xff]  }
 0x1f4   :  { %5565 = vmatpush2.bf16.msra.mxu1 %v7833_v13  ;;  %5599 = vmatprep.subr.bf16.mxu0 %v7844_v10  ;;  %v7884_v13 = vld [vmem:[%s11140_s1 + $0xae8] ss:$16 sps:$4 sm:$0xff]  }
 0x1f5   :  { %5566 = vmatprep.subr.bf16.mxu1 %v7841_v15  ;;  %v7892_v15 = vld [vmem:[%s11140_s1 + $0xacc] ss:$16 sps:$4 sm:$0xff]   ;;  %v7887_v10 = vld [vmem:[%s11140_s1 + $0x848] ss:$16 sps:$4 sm:$0xff]  }
 0x1f7   :  { %5600 = vmatpush2.bf16.msra.mxu0 %v7842_v53  ;;  %v7895_v53 = vld [vmem:[%s11140_s1 + $0x82c] ss:$16 sps:$4 sm:$0xff]  }
 0x1f8   :  { %5567 = vmatpush2.bf16.msra.mxu1 %v7839_v18  ;;  %5601 = vmatprep.subr.bf16.mxu0 %v7850_v19  ;;  %v7890_v18 = vld [vmem:[%s11140_s1 + $0xac8] ss:$16 sps:$4 sm:$0xff]  }
 0x1f9   :  { %5568 = vmatprep.subr.bf16.mxu1 %v7847_v62  ;;  %v7893_v62 = vld [vmem:[%s11140_s1 + $0x828] ss:$16 sps:$4 sm:$0xff]  }
 0x1fa   :  { %v7896_v19 = vld [vmem:[%s11140_s1 + $0xaa8] ss:$16 sps:$4 sm:$0xff]  }
 0x1fb   :  { %5602 = vmatpush2.bf16.msra.mxu0 %v7848_v21  ;;  %v7899_v21 = vld [vmem:[%s11140_s1 + $0x808] ss:$16 sps:$4 sm:$0xff]  }
 0x1fc   :  { %5569 = vmatpush2.bf16.msra.mxu1 %v7845_v20  ;;  %5603 = vmatprep.subr.bf16.mxu0 %v7856_v23  ;;  %v7901_v20 = vld [vmem:[%s11140_s1 + $0x80c] ss:$16 sps:$4 sm:$0xff]  }
 0x1fd   :  { %5570 = vmatprep.subr.bf16.mxu1 %v7853_v22  ;;  %v7902_v22 = vld [vmem:[%s11140_s1 + $0xa88] ss:$16 sps:$4 sm:$0xff]   ;;  %v7907_v23 = vld [vmem:[%s11140_s1 + $0x9ec] ss:$16 sps:$4 sm:$0xff]  }
 0x1ff   :  { %5604 = vmatpush2.bf16.msra.mxu0 %v7854_v28  ;;  %v7905_v28 = vld [vmem:[%s11140_s1 + $0x9e8] ss:$16 sps:$4 sm:$0xff]  }
 0x200   :  { %5571 = vmatpush2.bf16.msra.mxu1 %v7851_v26  ;;  %5605 = vmatprep.subr.bf16.mxu0 %v7859_v31  ;;  %v7910_v26 = vld [vmem:[%s11140_s1 + $0xa6c] ss:$16 sps:$4 sm:$0xff]   ;;  %v7908_v31 = vld [vmem:[%s11140_s1 + $0xa68] ss:$16 sps:$4 sm:$0xff]  }
 0x201   :  { %5622 = vmatprep.subr.bf16.mxu1 %v7862_v34  ;;  %v7913_v34 = vld [vmem:[%s11140_s1 + $0x9cc] ss:$16 sps:$4 sm:$0xff]  }
 0x202   :  { %v5287_v57 = vpop.f32.mrf.mxu0 }
 0x203   :  { %v5328_v40 = vpop.f32.mrf.mxu1  ;;  %5573 = vmatmul.mubr.bf16.vlgmr.msra.gmra.mxu1 %v8756_v32  ;;  %v5288_v41 = vadd.f32 %v5287_v57, %v9897_v6  ;;  %5606 = vmatpush2.bf16.msra.mxu0 %v7857_v17  ;;  %v7871_v32 = vld [vmem:[%s11140_s1 + $0x72c] ss:$16 sps:$4 sm:$0xff]  }
 0x204   :  { %5623 = vmatpush1.bf16.msra.mxu1 %v7860_v35  ;;  %v5289_v24 = vpop.f32.mrf.mxu0  ;;  %5607 = vmatprep.subr.bf16.mxu0 %v7865_v49  ;;  %v7874_v6 = vld [vmem:[%s11140_s1 + $0x8ac] ss:$16 sps:$4 sm:$0xff]   ;;  %v7911_v35 = vld [vmem:[%s11140_s1 + $0x9c8] ss:$16 sps:$4 sm:$0xff]  }
 0x205   :  { %v5330_v25 = vpop.f32.mrf.mxu1  ;;  %5624 = vmatprep.subr.bf16.mxu1 %v7868_v36  ;;  %v10099_v29 = vadd.f32 %v5328_v40, %v5288_v41  ;;  %v5290_v30 = vadd.f32 %v5289_v24, %v9907_v12  ;;  %5654 = vmatprep.mubr.bf16.mxu1 %v8799_v48  ;;  %v7877_v48 = vld [vmem:[%s11140_s1 + $0x70c] ss:$16 sps:$4 sm:$0xff]   ;;  %v7914_v49 = vld [vmem:[%s11140_s1 + $0xa48] ss:$16 sps:$4 sm:$0xff]  }
 0x206   :  { %v5291_v55 = vpop.f32.mrf.mxu0  ;;  %v7880_v12 = vld [vmem:[%s11140_s1 + $0x88c] ss:$16 sps:$4 sm:$0xff]   ;;  %v7917_v40 = vld [vmem:[%s11140_s1 + $0x9a8] ss:$16 sps:$4 sm:$0xff]  }
 0x207   :  { %v5332_v56 = vpop.f32.mrf.mxu1  ;;  %v10103_v60 = vadd.f32 %v5330_v25, %v5290_v30  ;;  %5608 = vmatpush2.bf16.msra.mxu0 %v7863_v42  ;;  %v7916_v17 = vld [vmem:[%s11140_s1 + $0xa4c] ss:$16 sps:$4 sm:$0xff]   ;;  %v7920_v41 = vld [vmem:[%s11140_s1 + $0xa28] ss:$16 sps:$4 sm:$0xff]  }
 0x208   :  { %5625 = vmatpush1.bf16.msra.mxu1 %v7866_v3  ;;  %v5292_v0 = vpop.f32.mrf.mxu0  ;;  %5609 = vmatprep.subr.bf16.mxu0 %v7871_v32  ;;  %v7919_v36 = vld [vmem:[%s11140_s1 + $0x9ac] ss:$16 sps:$4 sm:$0xff]   ;;  %v7923_v24 = vld [vmem:[%s11140_s1 + $0x988] ss:$16 sps:$4 sm:$0xff]  }
 0x209   :  { %v5333_v2 = vpop.f32.mrf.mxu1  ;;  %5626 = vmatprep.subr.bf16.mxu1 %v7874_v6  ;;  %v7922_v57 = vld [vmem:[%s11140_s1 + $0xa2c] ss:$16 sps:$4 sm:$0xff]   ;;  %v7926_v25 = vld [vmem:[%s11140_s1 + $0xa08] ss:$16 sps:$4 sm:$0xff]  }
 0x20a   :  { %v7925_v42 = vld [vmem:[%s11140_s1 + $0x98c] ss:$16 sps:$4 sm:$0xff]   ;;  %v7929_v30 = vld [vmem:[%s11140_s1 + $0x968] ss:$16 sps:$4 sm:$0xff]  }
 0x20b   :  { %5610 = vmatpush2.bf16.msra.mxu0 %v7869_v61  ;;  %v7928_v3 = vld [vmem:[%s11140_s1 + $0xa0c] ss:$16 sps:$4 sm:$0xff]   ;;  %v7932_v55 = vld [vmem:[%s11140_s1 + $0xbe8] ss:$16 sps:$4 sm:$0xff]  }
 0x20c   :  { %5627 = vmatpush1.bf16.msra.mxu1 %v7872_v63  ;;  %5611 = vmatprep.subr.bf16.mxu0 %v7877_v48  ;;  %v7931_v32 = vld [vmem:[%s11140_s1 + $0x96c] ss:$16 sps:$4 sm:$0xff]   ;;  %v7935_v63 = vld [vmem:[%s11140_s1 + $0x948] ss:$16 sps:$4 sm:$0xff]  }
 0x20d   :  { %5628 = vmatprep.subr.bf16.mxu1 %v7880_v12  ;;  %v7934_v6 = vld [vmem:[%s11140_s1 + $0xbec] ss:$16 sps:$4 sm:$0xff]   ;;  %v7938_v0 = vld [vmem:[%s11140_s1 + $0xbc8] ss:$16 sps:$4 sm:$0xff]  }
 0x20e   :  { %v7937_v56 = vld [vmem:[%s11140_s1 + $0x94c] ss:$16 sps:$4 sm:$0xff]   ;;  %v7941_v12 = vld [vmem:[%s11140_s1 + $0x928] ss:$16 sps:$4 sm:$0xff]  }
 0x20f   :  { %5612 = vmatpush2.bf16.msra.mxu0 %v7875_v1  ;;  %v7940_v61 = vld [vmem:[%s11140_s1 + $0xbcc] ss:$16 sps:$4 sm:$0xff]   ;;  %v7944_v1 = vld [vmem:[%s11140_s1 + $0xba8] ss:$16 sps:$4 sm:$0xff]  }
 0x210   :  { %5629 = vmatpush1.bf16.msra.mxu1 %v7878_v16  ;;  %5663 = vmatprep.subr.bf16.mxu0 %v7886_v39  ;;  %v7943_v2 = vld [vmem:[%s11140_s1 + $0x92c] ss:$16 sps:$4 sm:$0xff]   ;;  %v7947_v39 = vld [vmem:[%s11140_s1 + $0x908] ss:$16 sps:$4 sm:$0xff]  }
 0x211   :  { %5630 = vmatprep.subr.bf16.mxu1 %v7883_v7  ;;  %v7946_v48 = vld [vmem:[%s11140_s1 + $0xbac] ss:$16 sps:$4 sm:$0xff]  }
 0x212   :  { %5614 = vmatmul.mubr.bf16.vlgmr.msra.gmra.mxu0 %v8760_v33  ;;  %v7898_v33 = vld [vmem:[%s11140_s1 + $0xaac] ss:$16 sps:$4 sm:$0xff]  }
 0x213   :  { %5664 = vmatpush1.bf16.msra.mxu0 %v7884_v13  ;;  %5695 = vmatprep.mubr.bf16.mxu0 %v8807_v52  ;;  %v7904_v52 = vld [vmem:[%s11140_s1 + $0xa8c] ss:$16 sps:$4 sm:$0xff]  }
 0x214   :  { %5631 = vmatpush1.bf16.msra.mxu1 %v7881_v11  ;;  %5665 = vmatprep.subr.bf16.mxu0 %v7892_v15  ;;  %v7949_v16 = vld [vmem:[%s11140_s1 + $0x90c] ss:$16 sps:$4 sm:$0xff]   ;;  %v7950_v11 = vld [vmem:[%s11140_s1 + $0xb88] ss:$16 sps:$4 sm:$0xff]  }
 0x215   :  { %5632 = vmatprep.subr.bf16.mxu1 %v7889_v14  ;;  %v7952_v7 = vld [vmem:[%s11140_s1 + $0xb8c] ss:$16 sps:$4 sm:$0xff]   ;;  %v7953_v15 = vld [vmem:[%s11140_s1 + $0xb68] ss:$16 sps:$4 sm:$0xff]  }
 0x216   :  { %v7955_v13 = vld [vmem:[%s11140_s1 + $0xb6c] ss:$16 sps:$4 sm:$0xff]  }
 0x217   :  { %5666 = vmatpush1.bf16.msra.mxu0 %v7890_v18  ;;  %v7958_v14 = vld [vmem:[%s11140_s1 + $0xcec] ss:$16 sps:$4 sm:$0xff]  }
 0x218   :  { %5633 = vmatpush1.bf16.msra.mxu1 %v7887_v10  ;;  %5667 = vmatprep.subr.bf16.mxu0 %v7898_v33  ;;  %v7956_v10 = vld [vmem:[%s11140_s1 + $0xce8] ss:$16 sps:$4 sm:$0xff]   ;;  %v7961_v18 = vld [vmem:[%s11140_s1 + $0xb4c] ss:$16 sps:$4 sm:$0xff]  }
 0x219   :  { %5634 = vmatprep.subr.bf16.mxu1 %v7895_v53  ;;  %v7964_v53 = vld [vmem:[%s11140_s1 + $0xccc] ss:$16 sps:$4 sm:$0xff]  }
 0x21b   :  { %5668 = vmatpush1.bf16.msra.mxu0 %v7896_v19 }
 0x21c   :  { %5635 = vmatpush1.bf16.msra.mxu1 %v7893_v62  ;;  %5669 = vmatprep.subr.bf16.mxu0 %v7904_v52  ;;  %v7962_v52 = vld [vmem:[%s11140_s1 + $0xcc8] ss:$16 sps:$4 sm:$0xff]  }
 0x21d   :  { %5636 = vmatprep.subr.bf16.mxu1 %v7901_v20  ;;  %v7959_v20 = vld [vmem:[%s11140_s1 + $0xb48] ss:$16 sps:$4 sm:$0xff]  }
 0x21f   :  { %5670 = vmatpush1.bf16.msra.mxu0 %v7902_v22 }
 0x220   :  { %5637 = vmatpush1.bf16.msra.mxu1 %v7899_v21  ;;  %5671 = vmatprep.subr.bf16.mxu0 %v7910_v26 }
 0x221   :  { %5638 = vmatprep.subr.bf16.mxu1 %v7907_v23 }
 0x223   :  { %5672 = vmatpush1.bf16.msra.mxu0 %v7908_v31 }
 0x224   :  { %5639 = vmatpush2.bf16.msra.mxu1 %v7905_v28  ;;  %5673 = vmatprep.subr.bf16.mxu0 %v7916_v17  ;;  %v7965_v17 = vld [vmem:[%s11140_s1 + $0xb28] ss:$16 sps:$4 sm:$0xff]  }
 0x225   :  { %5640 = vmatprep.subr.bf16.mxu1 %v7913_v34 }
 0x227   :  { %5674 = vmatpush1.bf16.msra.mxu0 %v7914_v49 }
 0x228   :  { %5641 = vmatpush2.bf16.msra.mxu1 %v7911_v35  ;;  %5675 = vmatprep.subr.bf16.mxu0 %v7922_v57  ;;  %v7968_v35 = vld [vmem:[%s11140_s1 + $0xca8] ss:$16 sps:$4 sm:$0xff]  }
 0x229   :  { %5642 = vmatprep.subr.bf16.mxu1 %v7919_v36  ;;  %v7971_v57 = vld [vmem:[%s11140_s1 + $0xb08] ss:$16 sps:$4 sm:$0xff]  }
 0x22b   :  { %5676 = vmatpush1.bf16.msra.mxu0 %v7920_v41  ;;  %v7979_v41 = vld [vmem:[%s11140_s1 + $0xc6c] ss:$16 sps:$4 sm:$0xff]  }
 0x22c   :  { %5643 = vmatpush2.bf16.msra.mxu1 %v7917_v40  ;;  %5677 = vmatprep.subr.bf16.mxu0 %v7928_v3  ;;  %v7974_v40 = vld [vmem:[%s11140_s1 + $0xc88] ss:$16 sps:$4 sm:$0xff]  }
 0x22d   :  { %5644 = vmatprep.subr.bf16.mxu1 %v7925_v42  ;;  %v7982_v42 = vld [vmem:[%s11140_s1 + $0xeec] ss:$16 sps:$4 sm:$0xff]   ;;  %v7977_v3 = vld [vmem:[%s11140_s1 + $0xc68] ss:$16 sps:$4 sm:$0xff]  }
 0x22f   :  { %5678 = vmatpush1.bf16.msra.mxu0 %v7926_v25  ;;  %v7985_v25 = vld [vmem:[%s11140_s1 + $0xc4c] ss:$16 sps:$4 sm:$0xff]  }
 0x230   :  { %5645 = vmatpush2.bf16.msra.mxu1 %v7923_v24  ;;  %5679 = vmatprep.subr.bf16.mxu0 %v7934_v6  ;;  %v7980_v24 = vld [vmem:[%s11140_s1 + $0xee8] ss:$16 sps:$4 sm:$0xff]  }
 0x231   :  { %5646 = vmatprep.subr.bf16.mxu1 %v7931_v32  ;;  %v7988_v32 = vld [vmem:[%s11140_s1 + $0xecc] ss:$16 sps:$4 sm:$0xff]  }
 0x233   :  { %5680 = vmatpush2.bf16.msra.mxu0 %v7932_v55  ;;  %v7983_v55 = vld [vmem:[%s11140_s1 + $0xc48] ss:$16 sps:$4 sm:$0xff]  }
 0x234   :  { %5647 = vmatpush2.bf16.msra.mxu1 %v7929_v30  ;;  %5681 = vmatprep.subr.bf16.mxu0 %v7940_v61 }
 0x235   :  { %5648 = vmatprep.subr.bf16.mxu1 %v7937_v56  ;;  %v7986_v56 = vld [vmem:[%s11140_s1 + $0xec8] ss:$16 sps:$4 sm:$0xff]  }
 0x237   :  { %5682 = vmatpush2.bf16.msra.mxu0 %v7938_v0 }
 0x238   :  { %5649 = vmatpush2.bf16.msra.mxu1 %v7935_v63  ;;  %5683 = vmatprep.subr.bf16.mxu0 %v7946_v48  ;;  %v7991_v63 = vld [vmem:[%s11140_s1 + $0xc2c] ss:$16 sps:$4 sm:$0xff]   ;;  %v7989_v48 = vld [vmem:[%s11140_s1 + $0xc28] ss:$16 sps:$4 sm:$0xff]  }
 0x239   :  { %5650 = vmatprep.subr.bf16.mxu1 %v7943_v2 }
 0x23b   :  { %5684 = vmatpush2.bf16.msra.mxu0 %v7944_v1 }
 0x23c   :  { %5651 = vmatpush2.bf16.msra.mxu1 %v7941_v12  ;;  %5685 = vmatprep.subr.bf16.mxu0 %v7952_v7  ;;  %v7992_v12 = vld [vmem:[%s11140_s1 + $0xea8] ss:$16 sps:$4 sm:$0xff]  }
 0x23d   :  { %5652 = vmatprep.subr.bf16.mxu1 %v7949_v16  ;;  %v7997_v16 = vld [vmem:[%s11140_s1 + $0xc0c] ss:$16 sps:$4 sm:$0xff]   ;;  %v7995_v7 = vld [vmem:[%s11140_s1 + $0xc08] ss:$16 sps:$4 sm:$0xff]  }
 0x23f   :  { %5686 = vmatpush2.bf16.msra.mxu0 %v7950_v11  ;;  %v8003_v11 = vld [vmem:[%s11140_s1 + $0xdec] ss:$16 sps:$4 sm:$0xff]  }
 0x240   :  { %5653 = vmatpush2.bf16.msra.mxu1 %v7947_v39  ;;  %5687 = vmatprep.subr.bf16.mxu0 %v7955_v13  ;;  %v7998_v39 = vld [vmem:[%s11140_s1 + $0xe88] ss:$16 sps:$4 sm:$0xff]   ;;  %v8006_v13 = vld [vmem:[%s11140_s1 + $0xe6c] ss:$16 sps:$4 sm:$0xff]  }
 0x241   :  { %5704 = vmatprep.subr.bf16.mxu1 %v7958_v14  ;;  %v8001_v14 = vld [vmem:[%s11140_s1 + $0xde8] ss:$16 sps:$4 sm:$0xff]  }
 0x242   :  { %v5369_v33 = vpop.f32.mrf.mxu0 }
 0x243   :  { %v5410_v62 = vpop.f32.mrf.mxu1  ;;  %5655 = vmatmul.mubr.bf16.vlgmr.msra.gmra.mxu1 %v8990_v4  ;;  %v5370_v19 = vadd.f32 %v5369_v33, %v10099_v29  ;;  %5688 = vmatpush2.bf16.msra.mxu0 %v7953_v15  ;;  %v7967_v4 = vld [vmem:[%s11140_s1 + $0xb2c] ss:$16 sps:$4 sm:$0xff]   ;;  %v8004_v15 = vld [vmem:[%s11140_s1 + $0xe68] ss:$16 sps:$4 sm:$0xff]  }
 0x244   :  { %5705 = vmatpush1.bf16.msra.mxu1 %v7956_v10  ;;  %v5371_v21 = vpop.f32.mrf.mxu0  ;;  %5689 = vmatprep.subr.bf16.mxu0 %v7961_v18  ;;  %v7970_v29 = vld [vmem:[%s11140_s1 + $0xcac] ss:$16 sps:$4 sm:$0xff]   ;;  %v8010_v33 = vld [vmem:[%s11140_s1 + $0xe48] ss:$16 sps:$4 sm:$0xff]  }
 0x245   :  { %v5412_v22 = vpop.f32.mrf.mxu1  ;;  %5706 = vmatprep.subr.bf16.mxu1 %v7964_v53  ;;  %v5411_v23 = vadd.f32 %v5410_v62, %v5370_v19  ;;  %v5372_v26 = vadd.f32 %v5371_v21, %v10103_v60  ;;  %5736 = vmatprep.mubr.bf16.mxu1 %v9008_v8  ;;  %v7973_v8 = vld [vmem:[%s11140_s1 + $0xb0c] ss:$16 sps:$4 sm:$0xff]   ;;  %v8007_v53 = vld [vmem:[%s11140_s1 + $0xdc8] ss:$16 sps:$4 sm:$0xff]  }
 0x246   :  { %v5373_v28 = vpop.f32.mrf.mxu0  ;;  %v7976_v60 = vld [vmem:[%s11140_s1 + $0xc8c] ss:$16 sps:$4 sm:$0xff]  }
 0x247   :  { %v5414_v31 = vpop.f32.mrf.mxu1  ;;  %v5413_v34 = vadd.f32 %v5412_v22, %v5372_v26  ;;  %5690 = vmatpush2.bf16.msra.mxu0 %v7959_v20  ;;  %v8009_v10 = vld [vmem:[%s11140_s1 + $0xdcc] ss:$16 sps:$4 sm:$0xff]   ;;  %v8013_v20 = vld [vmem:[%s11140_s1 + $0xda8] ss:$16 sps:$4 sm:$0xff]  }
 0x248   :  { %5707 = vmatpush1.bf16.msra.mxu1 %v7962_v52  ;;  %v5374_v49 = vpop.f32.mrf.mxu0  ;;  %5691 = vmatprep.subr.bf16.mxu0 %v7967_v4  ;;  %v8012_v18 = vld [vmem:[%s11140_s1 + $0xe4c] ss:$16 sps:$4 sm:$0xff]   ;;  %v8016_v52 = vld [vmem:[%s11140_s1 + $0xe28] ss:$16 sps:$4 sm:$0xff]  }
 0x249   :  { %v5415_v36 = vpop.f32.mrf.mxu1  ;;  %5708 = vmatprep.subr.bf16.mxu1 %v7970_v29  ;;  %v8015_v62 = vld [vmem:[%s11140_s1 + $0xdac] ss:$16 sps:$4 sm:$0xff]   ;;  %v8019_v4 = vld [vmem:[%s11140_s1 + $0xd88] ss:$16 sps:$4 sm:$0xff]  }
 0x24a   :  { %v8018_v19 = vld [vmem:[%s11140_s1 + $0xe2c] ss:$16 sps:$4 sm:$0xff]   ;;  %v8022_v29 = vld [vmem:[%s11140_s1 + $0xe08] ss:$16 sps:$4 sm:$0xff]  }
 0x24b   :  { %5692 = vmatpush2.bf16.msra.mxu0 %v7965_v17  ;;  %v8021_v21 = vld [vmem:[%s11140_s1 + $0xd8c] ss:$16 sps:$4 sm:$0xff]   ;;  %v8025_v28 = vld [vmem:[%s11140_s1 + $0xd68] ss:$16 sps:$4 sm:$0xff]  }
 0x24c   :  { %5709 = vmatpush1.bf16.msra.mxu1 %v7968_v35  ;;  %5693 = vmatprep.subr.bf16.mxu0 %v7973_v8  ;;  %v8024_v22 = vld [vmem:[%s11140_s1 + $0xe0c] ss:$16 sps:$4 sm:$0xff]   ;;  %v8028_v31 = vld [vmem:[%s11140_s1 + $0xfe8] ss:$16 sps:$4 sm:$0xff]  }
 0x24d   :  { %5710 = vmatprep.subr.bf16.mxu1 %v7976_v60  ;;  %v8030_v26 = vld [vmem:[%s11140_s1 + $0xfec] ss:$16 sps:$4 sm:$0xff]   ;;  %v8031_v35 = vld [vmem:[%s11140_s1 + $0xd48] ss:$16 sps:$4 sm:$0xff]  }
 0x24e   :  { %v8036_v17 = vld [vmem:[%s11140_s1 + $0xfcc] ss:$16 sps:$4 sm:$0xff]   ;;  %v8034_v49 = vld [vmem:[%s11140_s1 + $0xfc8] ss:$16 sps:$4 sm:$0xff]  }
 0x24f   :  { %5694 = vmatpush2.bf16.msra.mxu0 %v7971_v57  ;;  %v8039_v36 = vld [vmem:[%s11140_s1 + $0xd2c] ss:$16 sps:$4 sm:$0xff]   ;;  %v8037_v60 = vld [vmem:[%s11140_s1 + $0xd28] ss:$16 sps:$4 sm:$0xff]  }
 0x250   :  { %5711 = vmatpush1.bf16.msra.mxu1 %v7974_v40  ;;  %5745 = vmatprep.subr.bf16.mxu0 %v7982_v42  ;;  %v8042_v8 = vld [vmem:[%s11140_s1 + $0xfac] ss:$16 sps:$4 sm:$0xff]   ;;  %v8040_v57 = vld [vmem:[%s11140_s1 + $0xfa8] ss:$16 sps:$4 sm:$0xff]  }
 0x251   :  { %5712 = vmatprep.subr.bf16.mxu1 %v7979_v41  ;;  %v8045_v40 = vld [vmem:[%s11140_s1 + $0xd0c] ss:$16 sps:$4 sm:$0xff]   ;;  %v8043_v42 = vld [vmem:[%s11140_s1 + $0xd08] ss:$16 sps:$4 sm:$0xff]  }
 0x252   :  { %v5451_v6 = vpop.f32.mrf.mxu0  ;;  %5696 = vmatmul.mubr.bf16.vlgmr.msra.gmra.mxu0 %v8994_v5  ;;  %v7994_v5 = vld [vmem:[%s11140_s1 + $0xeac] ss:$16 sps:$4 sm:$0xff]  }
 0x253   :  { %v10340_v30 = vadd.f32 %v5451_v6, %v5411_v23  ;;  %5746 = vmatpush1.bf16.msra.mxu0 %v7980_v24  ;;  %5777 = vmatprep.mubr.bf16.mxu0 %v9010_v9  ;;  %v8000_v9 = vld [vmem:[%s11140_s1 + $0xe8c] ss:$16 sps:$4 sm:$0xff]   ;;  %v8052_v6 = vld [vmem:[%s11140_s1 + $0x10e8] ss:$16 sps:$4 sm:$0xff]  }
 0x254   :  { %5713 = vmatpush1.bf16.msra.mxu1 %v7977_v3  ;;  %v5453_v61 = vpop.f32.mrf.mxu0  ;;  %5747 = vmatprep.subr.bf16.mxu0 %v7988_v32  ;;  %v8027_v23 = vld [vmem:[%s11140_s1 + $0xd6c] ss:$16 sps:$4 sm:$0xff]   ;;  %v8046_v3 = vld [vmem:[%s11140_s1 + $0xf88] ss:$16 sps:$4 sm:$0xff]  }
 0x255   :  { %5714 = vmatprep.subr.bf16.mxu1 %v7985_v25  ;;  %v10354_v0 = vadd.f32 %v5453_v61, %v5413_v34  ;;  %v8033_v34 = vld [vmem:[%s11140_s1 + $0xd4c] ss:$16 sps:$4 sm:$0xff]   ;;  %v8049_v32 = vld [vmem:[%s11140_s1 + $0xf68] ss:$16 sps:$4 sm:$0xff]  }
 0x256   :  { %v5455_v2 = vpop.f32.mrf.mxu0  ;;  %v8048_v41 = vld [vmem:[%s11140_s1 + $0xf8c] ss:$16 sps:$4 sm:$0xff]  }
 0x257   :  { %5748 = vmatpush1.bf16.msra.mxu0 %v7986_v56  ;;  %v8051_v24 = vld [vmem:[%s11140_s1 + $0xf6c] ss:$16 sps:$4 sm:$0xff]  }
 0x258   :  { %5715 = vmatpush1.bf16.msra.mxu1 %v7983_v55  ;;  %v5456_v1 = vpop.f32.mrf.mxu0  ;;  %5749 = vmatprep.subr.bf16.mxu0 %v7994_v5  ;;  %v8054_v25 = vld [vmem:[%s11140_s1 + $0x10ec] ss:$16 sps:$4 sm:$0xff]   ;;  %v8058_v5 = vld [vmem:[%s11140_s1 + $0x10c8] ss:$16 sps:$4 sm:$0xff]  }
 0x259   :  { %5716 = vmatprep.subr.bf16.mxu1 %v7991_v63  ;;  %v8057_v55 = vld [vmem:[%s11140_s1 + $0xf4c] ss:$16 sps:$4 sm:$0xff]   ;;  %v8055_v63 = vld [vmem:[%s11140_s1 + $0xf48] ss:$16 sps:$4 sm:$0xff]  }
 0x25a   :  { %v8060_v56 = vld [vmem:[%s11140_s1 + $0x10cc] ss:$16 sps:$4 sm:$0xff]   ;;  %v8061_v1 = vld [vmem:[%s11140_s1 + $0xf28] ss:$16 sps:$4 sm:$0xff]  }
 0x25b   :  { %5750 = vmatpush1.bf16.msra.mxu0 %v7992_v12 }
 0x25c   :  { %5717 = vmatpush1.bf16.msra.mxu1 %v7989_v48  ;;  %5751 = vmatprep.subr.bf16.mxu0 %v8000_v9  ;;  %v8063_v48 = vld [vmem:[%s11140_s1 + $0xf2c] ss:$16 sps:$4 sm:$0xff]  }
 0x25d   :  { %5718 = vmatprep.subr.bf16.mxu1 %v7997_v16  ;;  %v8064_v16 = vld [vmem:[%s11140_s1 + $0x10a8] ss:$16 sps:$4 sm:$0xff]  }
 0x25f   :  { %5752 = vmatpush1.bf16.msra.mxu0 %v7998_v39  ;;  %v991_v39 = vsub.s32 2, %v8440_v43 }
 0x260   :  { %5719 = vmatpush1.bf16.msra.mxu1 %v7995_v7  ;;  %5753 = vmatprep.subr.bf16.mxu0 %v8006_v13  ;;  %v8069_v7 = vld [vmem:[%s11140_s1 + $0xf0c] ss:$16 sps:$4 sm:$0xff]   ;;  %v8067_v13 = vld [vmem:[%s11140_s1 + $0xf08] ss:$16 sps:$4 sm:$0xff]  }
 0x261   :  { %5720 = vmatprep.subr.bf16.mxu1 %v8003_v11  ;;  %v995_v11 = vsub.s32 3, %v8440_v43  ;;  %v8078_v43 = vld [vmem:[%s11140_s1 + $0x12ec] ss:$16 sps:$4 sm:$0xff]  }
 0x263   :  { %5754 = vmatpush1.bf16.msra.mxu0 %v8004_v15  ;;  %v8075_v15 = vld [vmem:[%s11140_s1 + $0x106c] ss:$16 sps:$4 sm:$0xff]  }
 0x264   :  { %5721 = vmatpush2.bf16.msra.mxu1 %v8001_v14  ;;  %5755 = vmatprep.subr.bf16.mxu0 %v8012_v18  ;;  %v8070_v14 = vld [vmem:[%s11140_s1 + $0x1088] ss:$16 sps:$4 sm:$0xff]  }
 0x265   :  { %5722 = vmatprep.subr.bf16.mxu1 %v8009_v10  ;;  %v8267_v10 = vld [vmem:[%s11141_s2] sm:$0xf] }
 0x266   :  { %v992_v18 = vrot.slane %v8267_v10, %v991_v39  ;;  %v8130_v39 = vld [vmem:[%s11140_s1 + $0x13c8] ss:$16 sps:$4 sm:$0xff]  }
 0x267   :  { %5756 = vmatpush1.bf16.msra.mxu0 %v8010_v33  ;;  %v8073_v33 = vld [vmem:[%s11140_s1 + $0x1068] ss:$16 sps:$4 sm:$0xff]  }
 0x268   :  { %5723 = vmatpush2.bf16.msra.mxu1 %v8007_v53  ;;  %5757 = vmatprep.subr.bf16.mxu0 %v8018_v19  ;;  %v996_v53 = vrot.slane %v8267_v10, %v995_v11  ;;  %v8081_v19 = vld [vmem:[%s11140_s1 + $0x104c] ss:$16 sps:$4 sm:$0xff]  }
 0x269   :  { %5724 = vmatprep.subr.bf16.mxu1 %v8015_v62  ;;  %v8076_v62 = vld [vmem:[%s11140_s1 + $0x12e8] ss:$16 sps:$4 sm:$0xff]   ;;  %v8135_v11 = vld [vmem:[%s11140_s1 + $0x112c] ss:$16 sps:$4 sm:$0xff]  }
 0x26a   :  { %v8144_v10 = vld [vmem:[%s11140_s1 + $0x138c] ss:$16 sps:$4 sm:$0xff]  }
 0x26b   :  { %5758 = vmatpush1.bf16.msra.mxu0 %v8016_v52 }
 0x26c   :  { %5725 = vmatpush2.bf16.msra.mxu1 %v8013_v20  ;;  %5759 = vmatprep.subr.bf16.mxu0 %v8024_v22  ;;  %v8084_v20 = vld [vmem:[%s11140_s1 + $0x12cc] ss:$16 sps:$4 sm:$0xff]  }
 0x26d   :  { %5726 = vmatprep.subr.bf16.mxu1 %v8021_v21 }
 0x26f   :  { %5760 = vmatpush1.bf16.msra.mxu0 %v8022_v29  ;;  %v8079_v29 = vld [vmem:[%s11140_s1 + $0x1048] ss:$16 sps:$4 sm:$0xff]  }
 0x270   :  { %5727 = vmatpush2.bf16.msra.mxu1 %v8019_v4  ;;  %5761 = vmatprep.subr.bf16.mxu0 %v8030_v26 }
 0x271   :  { %5728 = vmatprep.subr.bf16.mxu1 %v8027_v23  ;;  %v8082_v23 = vld [vmem:[%s11140_s1 + $0x12c8] ss:$16 sps:$4 sm:$0xff]  }
 0x273   :  { %5762 = vmatpush2.bf16.msra.mxu0 %v8028_v31 }
 0x274   :  { %5729 = vmatpush2.bf16.msra.mxu1 %v8025_v28  ;;  %5763 = vmatprep.subr.bf16.mxu0 %v8036_v17  ;;  %v8090_v28 = vld [vmem:[%s11140_s1 + $0x12ac] ss:$16 sps:$4 sm:$0xff]   ;;  %v8085_v17 = vld [vmem:[%s11140_s1 + $0x1028] ss:$16 sps:$4 sm:$0xff]  }
 0x275   :  { %5730 = vmatprep.subr.bf16.mxu1 %v8033_v34 }
 0x277   :  { %5764 = vmatpush2.bf16.msra.mxu0 %v8034_v49 }
 0x278   :  { %5731 = vmatpush2.bf16.msra.mxu1 %v8031_v35  ;;  %5765 = vmatprep.subr.bf16.mxu0 %v8042_v8  ;;  %v8088_v35 = vld [vmem:[%s11140_s1 + $0x12a8] ss:$16 sps:$4 sm:$0xff]  }
 0x279   :  { %5732 = vmatprep.subr.bf16.mxu1 %v8039_v36  ;;  %v8093_v36 = vld [vmem:[%s11140_s1 + $0x100c] ss:$16 sps:$4 sm:$0xff]   ;;  %v8091_v8 = vld [vmem:[%s11140_s1 + $0x1008] ss:$16 sps:$4 sm:$0xff]  }
 0x27b   :  { %5766 = vmatpush2.bf16.msra.mxu0 %v8040_v57  ;;  %v8099_v57 = vld [vmem:[%s11140_s1 + $0x11ec] ss:$16 sps:$4 sm:$0xff]  }
 0x27c   :  { %5733 = vmatpush2.bf16.msra.mxu1 %v8037_v60  ;;  %5767 = vmatprep.subr.bf16.mxu0 %v8048_v41  ;;  %v8094_v60 = vld [vmem:[%s11140_s1 + $0x1288] ss:$16 sps:$4 sm:$0xff]  }
 0x27d   :  { %5734 = vmatprep.subr.bf16.mxu1 %v8045_v40  ;;  %v8102_v40 = vld [vmem:[%s11140_s1 + $0x126c] ss:$16 sps:$4 sm:$0xff]   ;;  %v8097_v41 = vld [vmem:[%s11140_s1 + $0x11e8] ss:$16 sps:$4 sm:$0xff]  }
 0x27f   :  { %5768 = vmatpush2.bf16.msra.mxu0 %v8046_v3  ;;  %v8105_v3 = vld [vmem:[%s11140_s1 + $0x11cc] ss:$16 sps:$4 sm:$0xff]  }
 0x280   :  { %5735 = vmatpush2.bf16.msra.mxu1 %v8043_v42  ;;  %5769 = vmatprep.subr.bf16.mxu0 %v8051_v24  ;;  %v8100_v42 = vld [vmem:[%s11140_s1 + $0x1268] ss:$16 sps:$4 sm:$0xff]   ;;  %v8108_v24 = vld [vmem:[%s11140_s1 + $0x124c] ss:$16 sps:$4 sm:$0xff]  }
 0x281   :  { %5786 = vmatprep.subr.bf16.mxu1 %v8054_v25  ;;  %v8103_v25 = vld [vmem:[%s11140_s1 + $0x11c8] ss:$16 sps:$4 sm:$0xff]  }
 0x283   :  { %v5492_v61 = vpop.f32.mrf.mxu1  ;;  %5737 = vmatmul.mubr.bf16.vlgmr.msra.gmra.mxu1 %v9216_v37  ;;  %5770 = vmatpush2.bf16.msra.mxu0 %v8049_v32  ;;  %v8066_v37 = vld [vmem:[%s11140_s1 + $0x10ac] ss:$16 sps:$4 sm:$0xff]   ;;  %v8106_v32 = vld [vmem:[%s11140_s1 + $0x1248] ss:$16 sps:$4 sm:$0xff]  }
 0x284   :  { %5787 = vmatpush1.bf16.msra.mxu1 %v8052_v6  ;;  %5771 = vmatprep.subr.bf16.mxu0 %v8057_v55  ;;  %v5493_v52 = vadd.f32 %v5492_v61, %v992_v18  ;;  %v8111_v6 = vld [vmem:[%s11140_s1 + $0x11ac] ss:$16 sps:$4 sm:$0xff]   ;;  %v8112_v61 = vld [vmem:[%s11140_s1 + $0x1228] ss:$16 sps:$4 sm:$0xff]  }
 0x285   :  { %v5494_v2 = vpop.f32.mrf.mxu1  ;;  %5788 = vmatprep.subr.bf16.mxu1 %v8060_v56  ;;  %5818 = vmatprep.mubr.bf16.mxu1 %v9234_v46  ;;  %v8072_v46 = vld [vmem:[%s11140_s1 + $0x108c] ss:$16 sps:$4 sm:$0xff]   ;;  %v8109_v56 = vld [vmem:[%s11140_s1 + $0x11a8] ss:$16 sps:$4 sm:$0xff]  }
 0x286   :  { %v5495_v22 = vadd.f32 %v5494_v2, %v996_v53  ;;  %v8114_v55 = vld [vmem:[%s11140_s1 + $0x122c] ss:$16 sps:$4 sm:$0xff]   ;;  %v8115_v2 = vld [vmem:[%s11140_s1 + $0x1188] ss:$16 sps:$4 sm:$0xff]  }
 0x287   :  { %v5496_v12 = vpop.f32.mrf.mxu1  ;;  %5772 = vmatpush2.bf16.msra.mxu0 %v8055_v63  ;;  %v8117_v63 = vld [vmem:[%s11140_s1 + $0x118c] ss:$16 sps:$4 sm:$0xff]   ;;  %v8139_v18 = vld [vmem:[%s11140_s1 + $0x1108] ss:$16 sps:$4 sm:$0xff]  }
 0x288   :  { %5789 = vmatpush1.bf16.msra.mxu1 %v8058_v5  ;;  %5773 = vmatprep.subr.bf16.mxu0 %v8063_v48  ;;  %v8120_v5 = vld [vmem:[%s11140_s1 + $0x120c] ss:$16 sps:$4 sm:$0xff]   ;;  %v8118_v48 = vld [vmem:[%s11140_s1 + $0x1208] ss:$16 sps:$4 sm:$0xff]  }
 0x289   :  { %v5497_v9 = vpop.f32.mrf.mxu1  ;;  %5790 = vmatprep.subr.bf16.mxu1 %v8066_v37  ;;  %v8123_v37 = vld [vmem:[%s11140_s1 + $0x116c] ss:$16 sps:$4 sm:$0xff]   ;;  %v8142_v53 = vld [vmem:[%s11140_s1 + $0x1388] ss:$16 sps:$4 sm:$0xff]  }
 0x28a   :  { %v8126_v12 = vld [vmem:[%s11140_s1 + $0x13ec] ss:$16 sps:$4 sm:$0xff]  }
 0x28b   :  { %5774 = vmatpush2.bf16.msra.mxu0 %v8061_v1  ;;  %v8121_v1 = vld [vmem:[%s11140_s1 + $0x1168] ss:$16 sps:$4 sm:$0xff]   ;;  %v8129_v9 = vld [vmem:[%s11140_s1 + $0x114c] ss:$16 sps:$4 sm:$0xff]  }
 0x28c   :  { %5791 = vmatpush1.bf16.msra.mxu1 %v8064_v16  ;;  %5775 = vmatprep.subr.bf16.mxu0 %v8069_v7  ;;  %v8124_v16 = vld [vmem:[%s11140_s1 + $0x13e8] ss:$16 sps:$4 sm:$0xff]   ;;  %v8132_v7 = vld [vmem:[%s11140_s1 + $0x13cc] ss:$16 sps:$4 sm:$0xff]  }
 0x28d   :  { %5792 = vmatprep.subr.bf16.mxu1 %v8072_v46  ;;  %v8127_v46 = vld [vmem:[%s11140_s1 + $0x1148] ss:$16 sps:$4 sm:$0xff]  }
 0x28f   :  { %5776 = vmatpush2.bf16.msra.mxu0 %v8067_v13  ;;  %v8138_v13 = vld [vmem:[%s11140_s1 + $0x13ac] ss:$16 sps:$4 sm:$0xff]  }
 0x290   :  { %5793 = vmatpush1.bf16.msra.mxu1 %v8070_v14  ;;  %5827 = vmatprep.subr.bf16.mxu0 %v8078_v43  ;;  %v8133_v14 = vld [vmem:[%s11140_s1 + $0x1128] ss:$16 sps:$4 sm:$0xff]   ;;  %v8141_v43 = vld [vmem:[%s11140_s1 + $0x110c] ss:$16 sps:$4 sm:$0xff]  }
 0x291   :  { %5794 = vmatprep.subr.bf16.mxu1 %v8075_v15  ;;  %v8136_v15 = vld [vmem:[%s11140_s1 + $0x13a8] ss:$16 sps:$4 sm:$0xff]  }
 0x292   :  { %v5533_v21 = vpop.f32.mrf.mxu0  ;;  %5778 = vmatmul.mubr.bf16.vlgmr.msra.gmra.mxu0 %v9220_v38  ;;  %v8087_v38 = vld [vmem:[%s11140_s1 + $0x102c] ss:$16 sps:$4 sm:$0xff]  }
 0x293   :  { %v10545_v4 = vadd.f32 %v5533_v21, %v5493_v52  ;;  %5828 = vmatpush1.bf16.msra.mxu0 %v8076_v62  ;;  %5859 = vmatprep.mubr.bf16.mxu0 %v9236_v47  ;;  %v8096_v47 = vld [vmem:[%s11140_s1 + $0x128c] ss:$16 sps:$4 sm:$0xff]  }
 0x294   :  { %5795 = vmatpush1.bf16.msra.mxu1 %v8073_v33  ;;  %v5535_v26 = vpop.f32.mrf.mxu0  ;;  %5829 = vmatprep.subr.bf16.mxu0 %v8084_v20  ;;  %v8147_v33 = vld [vmem:[%s11140_s1 + $0x136c] ss:$16 sps:$4 sm:$0xff]   ;;  %v8148_v20 = vld [vmem:[%s11140_s1 + $0x14e8] ss:$16 sps:$4 sm:$0xff]  }
 0x295   :  { %5796 = vmatprep.subr.bf16.mxu1 %v8081_v19  ;;  %v10559_v31 = vadd.f32 %v5535_v26, %v5495_v22  ;;  %v8150_v62 = vld [vmem:[%s11140_s1 + $0x14ec] ss:$16 sps:$4 sm:$0xff]   ;;  %v8145_v19 = vld [vmem:[%s11140_s1 + $0x1368] ss:$16 sps:$4 sm:$0xff]  }
 0x296   :  { %v5537_v34 = vpop.f32.mrf.mxu0  ;;  %v8153_v52 = vld [vmem:[%s11140_s1 + $0x134c] ss:$16 sps:$4 sm:$0xff]   ;;  %v8154_v26 = vld [vmem:[%s11140_s1 + $0x14c8] ss:$16 sps:$4 sm:$0xff]  }
 0x297   :  { %5830 = vmatpush1.bf16.msra.mxu0 %v8082_v23  ;;  %v8156_v21 = vld [vmem:[%s11140_s1 + $0x14cc] ss:$16 sps:$4 sm:$0xff]   ;;  %v8151_v23 = vld [vmem:[%s11140_s1 + $0x1348] ss:$16 sps:$4 sm:$0xff]  }
 0x298   :  { %5797 = vmatpush1.bf16.msra.mxu1 %v8079_v29  ;;  %v5538_v49 = vpop.f32.mrf.mxu0  ;;  %5831 = vmatprep.subr.bf16.mxu0 %v8090_v28  ;;  %v8159_v28 = vld [vmem:[%s11140_s1 + $0x132c] ss:$16 sps:$4 sm:$0xff]  }
 0x299   :  { %5798 = vmatprep.subr.bf16.mxu1 %v8087_v38 }
 0x29b   :  { %5832 = vmatpush1.bf16.msra.mxu0 %v8088_v35  ;;  %v8160_v35 = vld [vmem:[%s11140_s1 + $0x14a8] ss:$16 sps:$4 sm:$0xff]  }
 0x29c   :  { %5799 = vmatpush1.bf16.msra.mxu1 %v8085_v17  ;;  %5833 = vmatprep.subr.bf16.mxu0 %v8096_v47  ;;  %v8157_v17 = vld [vmem:[%s11140_s1 + $0x1328] ss:$16 sps:$4 sm:$0xff]  }
 0x29d   :  { %5800 = vmatprep.subr.bf16.mxu1 %v8093_v36  ;;  %v8163_v36 = vld [vmem:[%s11140_s1 + $0x1308] ss:$16 sps:$4 sm:$0xff]  }
 0x29e   :  { %v8166_v47 = vld [vmem:[%s11140_s1 + $0x1488] ss:$16 sps:$4 sm:$0xff]  }
 0x29f   :  { %5834 = vmatpush1.bf16.msra.mxu0 %v8094_v60  ;;  %v8174_v60 = vld [vmem:[%s11140_s1 + $0x16ec] ss:$16 sps:$4 sm:$0xff]  }
 0x2a0   :  { %5801 = vmatpush1.bf16.msra.mxu1 %v8091_v8  ;;  %5835 = vmatprep.subr.bf16.mxu0 %v8102_v40  ;;  %v8171_v8 = vld [vmem:[%s11140_s1 + $0x146c] ss:$16 sps:$4 sm:$0xff]   ;;  %v8172_v40 = vld [vmem:[%s11140_s1 + $0x16e8] ss:$16 sps:$4 sm:$0xff]  }
 0x2a1   :  { %5802 = vmatprep.subr.bf16.mxu1 %v8099_v57  ;;  %v8169_v57 = vld [vmem:[%s11140_s1 + $0x1468] ss:$16 sps:$4 sm:$0xff]  }
 0x2a3   :  { %5836 = vmatpush1.bf16.msra.mxu0 %v8100_v42  ;;  %v8180_v42 = vld [vmem:[%s11140_s1 + $0x16cc] ss:$16 sps:$4 sm:$0xff]  }
 0x2a4   :  { %5803 = vmatpush2.bf16.msra.mxu1 %v8097_v41  ;;  %5837 = vmatprep.subr.bf16.mxu0 %v8108_v24  ;;  %v8177_v41 = vld [vmem:[%s11140_s1 + $0x144c] ss:$16 sps:$4 sm:$0xff]  }
 0x2a5   :  { %5804 = vmatprep.subr.bf16.mxu1 %v8105_v3 }
 0x2a7   :  { %5838 = vmatpush1.bf16.msra.mxu0 %v8106_v32  ;;  %v8178_v32 = vld [vmem:[%s11140_s1 + $0x16c8] ss:$16 sps:$4 sm:$0xff]  }
 0x2a8   :  { %5805 = vmatpush2.bf16.msra.mxu1 %v8103_v25  ;;  %5839 = vmatprep.subr.bf16.mxu0 %v8114_v55  ;;  %v8175_v25 = vld [vmem:[%s11140_s1 + $0x1448] ss:$16 sps:$4 sm:$0xff]   ;;  %v8183_v55 = vld [vmem:[%s11140_s1 + $0x142c] ss:$16 sps:$4 sm:$0xff]  }
 0x2a9   :  { %5806 = vmatprep.subr.bf16.mxu1 %v8111_v6 }
 0x2ab   :  { %5840 = vmatpush1.bf16.msra.mxu0 %v8112_v61 }
 0x2ac   :  { %5807 = vmatpush2.bf16.msra.mxu1 %v8109_v56  ;;  %5841 = vmatprep.subr.bf16.mxu0 %v8120_v5  ;;  %v8184_v5 = vld [vmem:[%s11140_s1 + $0x16a8] ss:$16 sps:$4 sm:$0xff]  }
 0x2ad   :  { %5808 = vmatprep.subr.bf16.mxu1 %v8117_v63  ;;  %v8181_v63 = vld [vmem:[%s11140_s1 + $0x1428] ss:$16 sps:$4 sm:$0xff]  }
 0x2af   :  { %5842 = vmatpush1.bf16.msra.mxu0 %v8118_v48  ;;  %v8189_v48 = vld [vmem:[%s11140_s1 + $0x140c] ss:$16 sps:$4 sm:$0xff]  }
 0x2b0   :  { %5809 = vmatpush2.bf16.msra.mxu1 %v8115_v2  ;;  %5843 = vmatprep.subr.bf16.mxu0 %v8126_v12  ;;  %v8190_v12 = vld [vmem:[%s11140_s1 + $0x1688] ss:$16 sps:$4 sm:$0xff]  }
 0x2b1   :  { %5810 = vmatprep.subr.bf16.mxu1 %v8123_v37  ;;  %v8187_v37 = vld [vmem:[%s11140_s1 + $0x1408] ss:$16 sps:$4 sm:$0xff]  }
 0x2b3   :  { %5844 = vmatpush2.bf16.msra.mxu0 %v8124_v16  ;;  %v8198_v16 = vld [vmem:[%s11140_s1 + $0x166c] ss:$16 sps:$4 sm:$0xff]  }
 0x2b4   :  { %5811 = vmatpush2.bf16.msra.mxu1 %v8121_v1  ;;  %5845 = vmatprep.subr.bf16.mxu0 %v8132_v7  ;;  %v8195_v1 = vld [vmem:[%s11140_s1 + $0x15ec] ss:$16 sps:$4 sm:$0xff]   ;;  %v8196_v7 = vld [vmem:[%s11140_s1 + $0x1668] ss:$16 sps:$4 sm:$0xff]  }
 0x2b5   :  { %5812 = vmatprep.subr.bf16.mxu1 %v8129_v9  ;;  %v8193_v9 = vld [vmem:[%s11140_s1 + $0x15e8] ss:$16 sps:$4 sm:$0xff]  }
 0x2b7   :  { %5846 = vmatpush2.bf16.msra.mxu0 %v8130_v39  ;;  %v8204_v39 = vld [vmem:[%s11140_s1 + $0x164c] ss:$16 sps:$4 sm:$0xff]  }
 0x2b8   :  { %5813 = vmatpush2.bf16.msra.mxu1 %v8127_v46  ;;  %5847 = vmatprep.subr.bf16.mxu0 %v8138_v13  ;;  %v8201_v46 = vld [vmem:[%s11140_s1 + $0x15cc] ss:$16 sps:$4 sm:$0xff]   ;;  %v8202_v13 = vld [vmem:[%s11140_s1 + $0x1648] ss:$16 sps:$4 sm:$0xff]  }
 0x2b9   :  { %5814 = vmatprep.subr.bf16.mxu1 %v8135_v11  ;;  %v8199_v11 = vld [vmem:[%s11140_s1 + $0x15c8] ss:$16 sps:$4 sm:$0xff]  }
 0x2bb   :  { %5848 = vmatpush2.bf16.msra.mxu0 %v8136_v15  ;;  %v8210_v15 = vld [vmem:[%s11140_s1 + $0x162c] ss:$16 sps:$4 sm:$0xff]  }
 0x2bc   :  { %5815 = vmatpush2.bf16.msra.mxu1 %v8133_v14  ;;  %5849 = vmatprep.subr.bf16.mxu0 %v8144_v10  ;;  %v8207_v14 = vld [vmem:[%s11140_s1 + $0x15ac] ss:$16 sps:$4 sm:$0xff]   ;;  %v8208_v10 = vld [vmem:[%s11140_s1 + $0x1628] ss:$16 sps:$4 sm:$0xff]  }
 0x2bd   :  { %5816 = vmatprep.subr.bf16.mxu1 %v8141_v43  ;;  %v8205_v43 = vld [vmem:[%s11140_s1 + $0x15a8] ss:$16 sps:$4 sm:$0xff]  }
 0x2bf   :  { %5850 = vmatpush2.bf16.msra.mxu0 %v8142_v53  ;;  %v8216_v53 = vld [vmem:[%s11140_s1 + $0x160c] ss:$16 sps:$4 sm:$0xff]  }
 0x2c0   :  { %5817 = vmatpush2.bf16.msra.mxu1 %v8139_v18  ;;  %5851 = vmatprep.subr.bf16.mxu0 %v8147_v33  ;;  %v8213_v18 = vld [vmem:[%s11140_s1 + $0x158c] ss:$16 sps:$4 sm:$0xff]   ;;  %v8211_v33 = vld [vmem:[%s11140_s1 + $0x1588] ss:$16 sps:$4 sm:$0xff]  }
 0x2c1   :  { %5868 = vmatprep.subr.bf16.mxu1 %v8150_v62  ;;  %v8214_v62 = vld [vmem:[%s11140_s1 + $0x1608] ss:$16 sps:$4 sm:$0xff]  }
 0x2c3   :  { %v5574_v22 = vpop.f32.mrf.mxu1  ;;  %5819 = vmatmul.mubr.bf16.vlgmr.msra.gmra.mxu1 %v9447_v58  ;;  %5852 = vmatpush2.bf16.msra.mxu0 %v8145_v19  ;;  %v8162_v58 = vld [vmem:[%s11140_s1 + $0x14ac] ss:$16 sps:$4 sm:$0xff]  }
 0x2c4   :  { %v5575_v29 = vadd.f32 %v5574_v22, %v10545_v4  ;;  %5869 = vmatpush1.bf16.msra.mxu1 %v8148_v20  ;;  %5853 = vmatprep.subr.bf16.mxu0 %v8153_v52  ;;  %v8219_v19 = vld [vmem:[%s11140_s1 + $0x156c] ss:$16 sps:$4 sm:$0xff]   ;;  %v8217_v52 = vld [vmem:[%s11140_s1 + $0x1568] ss:$16 sps:$4 sm:$0xff]  }
 0x2c5   :  { %v5576_v38 = vpop.f32.mrf.mxu1  ;;  %5870 = vmatprep.subr.bf16.mxu1 %v8156_v21  ;;  %5900 = vmatprep.mubr.bf16.mxu1 %v9465_v51  ;;  %v8168_v51 = vld [vmem:[%s11140_s1 + $0x148c] ss:$16 sps:$4 sm:$0xff]   ;;  %v8220_v21 = vld [vmem:[%s11140_s1 + $0x17e8] ss:$16 sps:$4 sm:$0xff]  }
 0x2c6   :  { %v5577_v4 = vadd.f32 %v5576_v38, %v10559_v31  ;;  %v8165_v31 = vld [vmem:[%s11140_s1 + $0x130c] ss:$16 sps:$4 sm:$0xff]  }
 0x2c7   :  { %v5578_v34 = vpop.f32.mrf.mxu1  ;;  %5854 = vmatpush2.bf16.msra.mxu0 %v8151_v23  ;;  %v8222_v20 = vld [vmem:[%s11140_s1 + $0x17ec] ss:$16 sps:$4 sm:$0xff]   ;;  %v8223_v23 = vld [vmem:[%s11140_s1 + $0x1548] ss:$16 sps:$4 sm:$0xff]  }
 0x2c8   :  { %5871 = vmatpush1.bf16.msra.mxu1 %v8154_v26  ;;  %5855 = vmatprep.subr.bf16.mxu0 %v8159_v28  ;;  %v8225_v22 = vld [vmem:[%s11140_s1 + $0x154c] ss:$16 sps:$4 sm:$0xff]   ;;  %v8226_v26 = vld [vmem:[%s11140_s1 + $0x17c8] ss:$16 sps:$4 sm:$0xff]  }
 0x2c9   :  { %v5579_v49 = vpop.f32.mrf.mxu1  ;;  %5872 = vmatprep.subr.bf16.mxu1 %v8162_v58  ;;  %v8231_v38 = vld [vmem:[%s11140_s1 + $0x152c] ss:$16 sps:$4 sm:$0xff]   ;;  %v8229_v58 = vld [vmem:[%s11140_s1 + $0x1528] ss:$16 sps:$4 sm:$0xff]  }
 0x2ca   :  { %v8234_v28 = vld [vmem:[%s11140_s1 + $0x17ac] ss:$16 sps:$4 sm:$0xff]   ;;  %v8238_v49 = vld [vmem:[%s11140_s1 + $0x1788] ss:$16 sps:$4 sm:$0xff]  }
 0x2cb   :  { %5856 = vmatpush2.bf16.msra.mxu0 %v8157_v17  ;;  %v8237_v34 = vld [vmem:[%s11140_s1 + $0x150c] ss:$16 sps:$4 sm:$0xff]  }
 0x2cc   :  { %5873 = vmatpush1.bf16.msra.mxu1 %v8160_v35  ;;  %5857 = vmatprep.subr.bf16.mxu0 %v8165_v31  ;;  %v8240_v17 = vld [vmem:[%s11140_s1 + $0x178c] ss:$16 sps:$4 sm:$0xff]   ;;  %v8235_v35 = vld [vmem:[%s11140_s1 + $0x1508] ss:$16 sps:$4 sm:$0xff]  }
 0x2cd   :  { %5874 = vmatprep.subr.bf16.mxu1 %v8168_v51  ;;  %v8243_v31 = vld [vmem:[%s11140_s1 + $0x176c] ss:$16 sps:$4 sm:$0xff]  }
 0x2ce   :  { %v8246_v51 = vld [vmem:[%s11140_s1 + $0x186c] ss:$16 sps:$4 sm:$0xff]  }
 0x2cf   :  { %5858 = vmatpush2.bf16.msra.mxu0 %v8163_v36  ;;  %v8241_v36 = vld [vmem:[%s11140_s1 + $0x1768] ss:$16 sps:$4 sm:$0xff]  }
 0x2d0   :  { %5875 = vmatpush1.bf16.msra.mxu1 %v8166_v47  ;;  %5909 = vmatprep.subr.bf16.mxu0 %v8174_v60  ;;  %v8244_v47 = vld [vmem:[%s11140_s1 + $0x1868] ss:$16 sps:$4 sm:$0xff]   ;;  %v8252_v60 = vld [vmem:[%s11140_s1 + $0x184c] ss:$16 sps:$4 sm:$0xff]  }
 0x2d1   :  { %5876 = vmatprep.subr.bf16.mxu1 %v8171_v8  ;;  %v8249_v8 = vld [vmem:[%s11140_s1 + $0x174c] ss:$16 sps:$4 sm:$0xff]  }
 0x2d2   :  { %v5615_v3 = vpop.f32.mrf.mxu0  ;;  %5860 = vmatmul.mubr.bf16.vlgmr.msra.gmra.mxu0 %v9451_v59  ;;  %v8186_v59 = vld [vmem:[%s11140_s1 + $0x16ac] ss:$16 sps:$4 sm:$0xff]  }
 0x2d3   :  { %v10747_v24 = vadd.f32 %v5615_v3, %v5575_v29  ;;  %5910 = vmatpush1.bf16.msra.mxu0 %v8172_v40  ;;  %5941 = vmatprep.mubr.bf16.mxu0 %v9467_v54  ;;  %v8192_v54 = vld [vmem:[%s11140_s1 + $0x168c] ss:$16 sps:$4 sm:$0xff]  }
 0x2d4   :  { %5877 = vmatpush1.bf16.msra.mxu1 %v8169_v57  ;;  %v5617_v6 = vpop.f32.mrf.mxu0  ;;  %5911 = vmatprep.subr.bf16.mxu0 %v8180_v42  ;;  %v8228_v29 = vld [vmem:[%s11140_s1 + $0x17cc] ss:$16 sps:$4 sm:$0xff]   ;;  %v8250_v42 = vld [vmem:[%s11140_s1 + $0x1848] ss:$16 sps:$4 sm:$0xff]  }
 0x2d5   :  { %5878 = vmatprep.subr.bf16.mxu1 %v8177_v41  ;;  %v10761_v56 = vadd.f32 %v5617_v6, %v5577_v4  ;;  %v8232_v4 = vld [vmem:[%s11140_s1 + $0x17a8] ss:$16 sps:$4 sm:$0xff]  }
 0x2d6   :  { %v5619_v61 = vpop.f32.mrf.mxu0  ;;  %v8247_v41 = vld [vmem:[%s11140_s1 + $0x1748] ss:$16 sps:$4 sm:$0xff]  }
 0x2d7   :  { %5912 = vmatpush1.bf16.msra.mxu0 %v8178_v32  ;;  %v8253_v6 = vld [vmem:[%s11140_s1 + $0x1728] ss:$16 sps:$4 sm:$0xff]  }
 0x2d8   :  { %5879 = vmatpush1.bf16.msra.mxu1 %v8175_v25  ;;  %v5620_v2 = vpop.f32.mrf.mxu0  ;;  %5913 = vmatprep.subr.bf16.mxu0 %v8186_v59  ;;  %v8255_v25 = vld [vmem:[%s11140_s1 + $0x172c] ss:$16 sps:$4 sm:$0xff]   ;;  %v8259_v61 = vld [vmem:[%s11140_s1 + $0x1708] ss:$16 sps:$4 sm:$0xff]  }
 0x2d9   :  { %5880 = vmatprep.subr.bf16.mxu1 %v8183_v55  ;;  %v8256_v55 = vld [vmem:[%s11140_s1 + $0x1828] ss:$16 sps:$4 sm:$0xff]  }
 0x2da   :  { %v6010_v2 = vld [vmem:[%s11142_s3 + $0x78] sm:$0xff] }
 0x2db   :  { %5914 = vmatpush1.bf16.msra.mxu0 %v8184_v5  ;;  %v6026_v5 = vld [vmem:[%s11142_s3 + $0xf8] sm:$0xff] }
 0x2dc   :  { %5881 = vmatpush1.bf16.msra.mxu1 %v8181_v63  ;;  %5915 = vmatprep.subr.bf16.mxu0 %v8192_v54  ;;  %v8262_v63 = vld [vmem:[%s11140_s1 + $0x1808] ss:$16 sps:$4 sm:$0xff]   ;;  %v6025_v54 = vld [vmem:[%s11142_s3 + $0xf0] sm:$0xff] }
 0x2dd   :  { %5882 = vmatprep.subr.bf16.mxu1 %v8189_v48  ;;  %v5992_v48 = vmax.f32 %v10354_v0, 0.0  ;;  %v6024_v0 = vld [vmem:[%s11142_s3 + $0xe8] sm:$0xff] }
 0x2df   :  { %5916 = vmatpush1.bf16.msra.mxu0 %v8190_v12  ;;  %v6009_v12 = vld [vmem:[%s11142_s3 + $0x70] sm:$0xff] }
 0x2e0   :  { %5883 = vmatpush1.bf16.msra.mxu1 %v8187_v37  ;;  %5917 = vmatprep.subr.bf16.mxu0 %v8198_v16 }
 0x2e1   :  { %5884 = vmatprep.subr.bf16.mxu1 %v8195_v1 }
 0x2e3   :  { %5918 = vmatpush1.bf16.msra.mxu0 %v8196_v7 }
 0x2e4   :  { %5885 = vmatpush2.bf16.msra.mxu1 %v8193_v9  ;;  %5919 = vmatprep.subr.bf16.mxu0 %v8204_v39  ;;  %v6022_v39 = vld [vmem:[%s11142_s3 + $0xd8] sm:$0xff] }
 0x2e5   :  { %5886 = vmatprep.subr.bf16.mxu1 %v8201_v46  ;;  %v6007_v46 = vld [vmem:[%s11142_s3 + $0x60] sm:$0xff] }
 0x2e7   :  { %5920 = vmatpush1.bf16.msra.mxu0 %v8202_v13 }
 0x2e8   :  { %5887 = vmatpush2.bf16.msra.mxu1 %v8199_v11  ;;  %5921 = vmatprep.subr.bf16.mxu0 %v8210_v15  ;;  %v6006_v11 = vld [vmem:[%s11142_s3 + $0x58] sm:$0xff] }
 0x2e9   :  { %5888 = vmatprep.subr.bf16.mxu1 %v8207_v14  ;;  %v6058_v14 = vld [vmem:[%s11142_s3 + $0x1f8] sm:$0xff] }
 0x2ea   :  { %v6042_v15 = vld [vmem:[%s11142_s3 + $0x178] sm:$0xff] }
 0x2eb   :  { %5922 = vmatpush1.bf16.msra.mxu0 %v8208_v10  ;;  %v6021_v10 = vld [vmem:[%s11142_s3 + $0xd0] sm:$0xff] }
 0x2ec   :  { %5889 = vmatpush2.bf16.msra.mxu1 %v8205_v43  ;;  %5923 = vmatprep.subr.bf16.mxu0 %v8216_v53  ;;  %v6057_v43 = vld [vmem:[%s11142_s3 + $0x1f0] sm:$0xff] }
 0x2ed   :  { %5890 = vmatprep.subr.bf16.mxu1 %v8213_v18  ;;  %v6041_v18 = vld [vmem:[%s11142_s3 + $0x170] sm:$0xff] }
 0x2ee   :  { %v6005_v53 = vld [vmem:[%s11142_s3 + $0x50] sm:$0xff] }
 0x2ef   :  { %5924 = vmatpush1.bf16.msra.mxu0 %v8214_v62  ;;  %v6020_v62 = vld [vmem:[%s11142_s3 + $0xc8] sm:$0xff] }
 0x2f0   :  { %5891 = vmatpush2.bf16.msra.mxu1 %v8211_v33  ;;  %5925 = vmatprep.subr.bf16.mxu0 %v8222_v20  ;;  %v6056_v33 = vld [vmem:[%s11142_s3 + $0x1e8] sm:$0xff] }
 0x2f1   :  { %5892 = vmatprep.subr.bf16.mxu1 %v8219_v19  ;;  %v6040_v19 = vld [vmem:[%s11142_s3 + $0x168] sm:$0xff] }
 0x2f2   :  { %v6004_v20 = vld [vmem:[%s11142_s3 + $0x48] sm:$0xff] }
 0x2f3   :  { %5926 = vmatpush2.bf16.msra.mxu0 %v8220_v21  ;;  %v6003_v21 = vld [vmem:[%s11142_s3 + $0x40] sm:$0xff] }
 0x2f4   :  { %5893 = vmatpush2.bf16.msra.mxu1 %v8217_v52  ;;  %5927 = vmatprep.subr.bf16.mxu0 %v8228_v29  ;;  %v6019_v52 = vld [vmem:[%s11142_s3 + $0xc0] sm:$0xff]  ;;  %v6002_v29 = vld [vmem:[%s11142_s3 + $0x38] sm:$0xff] }
 0x2f5   :  { %5894 = vmatprep.subr.bf16.mxu1 %v8225_v22  ;;  %v6018_v22 = vld [vmem:[%s11142_s3 + $0xb8] sm:$0xff] }
 0x2f7   :  { %5928 = vmatpush2.bf16.msra.mxu0 %v8226_v26  ;;  %v6001_v26 = vld [vmem:[%s11142_s3 + $0x30] sm:$0xff] }
 0x2f8   :  { %5895 = vmatpush2.bf16.msra.mxu1 %v8223_v23  ;;  %5929 = vmatprep.subr.bf16.mxu0 %v8234_v28  ;;  %v6017_v23 = vld [vmem:[%s11142_s3 + $0xb0] sm:$0xff]  ;;  %v6000_v28 = vld [vmem:[%s11142_s3 + $0x28] sm:$0xff] }
 0x2f9   :  { %5896 = vmatprep.subr.bf16.mxu1 %v8231_v38  ;;  %v6016_v38 = vld [vmem:[%s11142_s3 + $0xa8] sm:$0xff] }
 0x2fb   :  { %5930 = vmatpush2.bf16.msra.mxu0 %v8232_v4  ;;  %v5999_v4 = vld [vmem:[%s11142_s3 + $0x20] sm:$0xff] }
 0x2fc   :  { %5897 = vmatpush2.bf16.msra.mxu1 %v8229_v58  ;;  %5931 = vmatprep.subr.bf16.mxu0 %v8240_v17  ;;  %v6015_v58 = vld [vmem:[%s11142_s3 + $0xa0] sm:$0xff]  ;;  %v5998_v17 = vld [vmem:[%s11142_s3 + $0x18] sm:$0xff] }
 0x2fd   :  { %5898 = vmatprep.subr.bf16.mxu1 %v8237_v34  ;;  %v6014_v34 = vld [vmem:[%s11142_s3 + $0x98] sm:$0xff] }
 0x2ff   :  { %5932 = vmatpush2.bf16.msra.mxu0 %v8238_v49  ;;  %v5997_v49 = vld [vmem:[%s11142_s3 + $0x10] sm:$0xff] }
 0x300   :  { %5899 = vmatpush2.bf16.msra.mxu1 %v8235_v35  ;;  %5933 = vmatprep.subr.bf16.mxu0 %v8243_v31  ;;  %v6013_v35 = vld [vmem:[%s11142_s3 + $0x90] sm:$0xff]  ;;  %v6012_v31 = vld [vmem:[%s11142_s3 + $0x88] sm:$0xff] }
 0x301   :  { %5958 = vmatprep.subr.bf16.mxu1 %v8246_v51  ;;  %v5996_v51 = vld [vmem:[%s11142_s3 + $0x8] sm:$0xff] }
 0x303   :  { %v5656_v57 = vpop.f32.mrf.mxu1  ;;  %5901 = vmatmul.mubr.bf16.vlgmr.msra.gmra.mxu1 %v9661_v45  ;;  %5934 = vmatpush2.bf16.msra.mxu0 %v8241_v36  ;;  %v8258_v45 = vld [vmem:[%s11140_s1 + $0x182c] ss:$16 sps:$4 sm:$0xff]   ;;  %v6011_v36 = vld [vmem:[%s11142_s3 + $0x80] sm:$0xff] }
 0x304   :  { %v5657_v40 = vadd.f32 %v5656_v57, %v10747_v24  ;;  %5959 = vmatpush1.bf16.msra.mxu1 %v8244_v47  ;;  %5935 = vmatprep.subr.bf16.mxu0 %v8249_v8  ;;  %v5995_v47 = vld [vmem:[%s11142_s3] sm:$0xff]  ;;  %v5991_v8 = vmax.f32 %v10340_v30, 0.0  ;;  %v6054_v30 = vld [vmem:[%s11142_s3 + $0x1d8] sm:$0xff] }
 0x305   :  { %v5658_v3 = vpop.f32.mrf.mxu1  ;;  %5960 = vmatprep.subr.bf16.mxu1 %v8252_v60  ;;  %5982 = vmatprep.mubr.bf16.mxu1 %v8291_v44  ;;  %v8264_v44 = vld [vmem:[%s11140_s1 + $0x180c] ss:$16 sps:$4 sm:$0xff]   ;;  %v6055_v60 = vld [vmem:[%s11142_s3 + $0x1e0] sm:$0xff] }
 0x306   :  { %v5659_v24 = vadd.f32 %v5658_v3, %v10761_v56  ;;  %v8261_v56 = vld [vmem:[%s11140_s1 + $0x170c] ss:$16 sps:$4 sm:$0xff]  }
 0x307   :  { %v5660_v32 = vpop.f32.mrf.mxu1  ;;  %5936 = vmatpush2.bf16.msra.mxu0 %v8247_v41  ;;  %v6038_v3 = vld [vmem:[%s11142_s3 + $0x158] sm:$0xff] }
 0x308   :  { %5961 = vmatpush1.bf16.msra.mxu1 %v8250_v42  ;;  %5937 = vmatprep.subr.bf16.mxu0 %v8255_v25  ;;  %v6037_v32 = vld [vmem:[%s11142_s3 + $0x150] sm:$0xff] }
 0x309   :  { %v5661_v59 = vpop.f32.mrf.mxu1  ;;  %5962 = vmatprep.subr.bf16.mxu1 %v8258_v45  ;;  %v6053_v45 = vld [vmem:[%s11142_s3 + $0x1d0] sm:$0xff] }
 0x30a   :  { %v6036_v59 = vld [vmem:[%s11142_s3 + $0x148] sm:$0xff] }
 0x30b   :  { %5938 = vmatpush2.bf16.msra.mxu0 %v8253_v6  ;;  %v6052_v6 = vld [vmem:[%s11142_s3 + $0x1c8] sm:$0xff] }
 0x30c   :  { %5963 = vmatpush1.bf16.msra.mxu1 %v8256_v55  ;;  %5939 = vmatprep.subr.bf16.mxu0 %v8261_v56  ;;  %v6051_v56 = vld [vmem:[%s11142_s3 + $0x1c0] sm:$0xff] }
 0x30d   :  { %5964 = vmatprep.subr.bf16.mxu1 %v8264_v44  ;;  %v6035_v44 = vld [vmem:[%s11142_s3 + $0x140] sm:$0xff] }
 0x30f   :  { %5940 = vmatpush2.bf16.msra.mxu0 %v8259_v61  ;;  %v6050_v61 = vld [vmem:[%s11142_s3 + $0x1b8] sm:$0xff] }
 0x310   :  { %5965 = vmatpush1.bf16.msra.mxu1 %v8262_v63  ;;  %7010 = vmatprep.subr.mxu0 %v6026_v5  ;;  %v6034_v63 = vld [vmem:[%s11142_s3 + $0x138] sm:$0xff]  ;;  %v6049_v5 = vld [vmem:[%s11142_s3 + $0x1b0] sm:$0xff] }
 0x311   :  { %7045 = vmatprep.subr.mxu1 %v6058_v14  ;;  %v6028_v14 = vld [vmem:[%s11142_s3 + $0x108] sm:$0xff] }
 0x312   :  { %v5697_v37 = vpop.f32.mrf.mxu0  ;;  %5942 = vmatmul.mubr.bf16.vlgmr.msra.gmra.mxu0 %v9665_v50  ;;  %v6008_v50 = vld [vmem:[%s11142_s3 + $0x68] sm:$0xff] }
 0x313   :  { %7008 = vmatmul.mubr.msk.bf16.vlgmr.msra.gmra.mxu1 %vm4921_vm0, %v9728_v27  ;;  %v10946_v1 = vadd.f32 %v5697_v37, %v5657_v40  ;;  %7011 = vmatpush3.msra.mxu0 %v6010_v2  ;;  %v6023_v27 = vld [vmem:[%s11142_s3 + $0xe0] sm:$0xff]  ;;  %v6033_v2 = vld [vmem:[%s11142_s3 + $0x130] sm:$0xff] }
 0x314   :  { %6130 = vmatprep.mubr.f32.mxu0 %v5992_v48  ;;  %v5699_v16 = vpop.f32.mrf.mxu0  ;;  %7012 = vmatprep.subr.mxu0 %v6025_v54  ;;  %v6039_v40 = vld [vmem:[%s11142_s3 + $0x160] sm:$0xff]  ;;  %v6048_v48 = vld [vmem:[%s11142_s3 + $0x1a8] sm:$0xff] }
 0x315   :  { %v10954_v9 = vadd.f32 %v5699_v16, %v5659_v24  ;;  %7013 = vmatpush3.msra.mxu0 %v6009_v12  ;;  %7046 = vmatpush3.msra.mxu1 %v6042_v15  ;;  %v6032_v54 = vld [vmem:[%s11142_s3 + $0x128] sm:$0xff]  ;;  %v6047_v37 = vld [vmem:[%s11142_s3 + $0x1a0] sm:$0xff]  ;;  %v6046_v16 = vld [vmem:[%s11142_s3 + $0x198] sm:$0xff] }
 0x316   :  { %v5701_v7 = vpop.f32.mrf.mxu0  ;;  %7014 = vmatprep.subr.mxu0 %v6024_v0  ;;  %7047 = vmatprep.subr.mxu1 %v6057_v43  ;;  %v6043_v15 = vld [vmem:[%s11142_s3 + $0x180] sm:$0xff] }
 0x317   :  { %7015 = vmatpush3.msra.mxu0 %v6008_v50  ;;  %7048 = vmatpush3.msra.mxu1 %v6041_v18  ;;  %v6045_v7 = vld [vmem:[%s11142_s3 + $0x190] sm:$0xff]  ;;  %v6027_v43 = vld [vmem:[%s11142_s3 + $0x100] sm:$0xff] }
 0x318   :  { %v5702_v13 = vpop.f32.mrf.mxu0  ;;  %7016 = vmatprep.subr.mxu0 %v6023_v27  ;;  %7049 = vmatprep.subr.mxu1 %v6056_v33 }
 0x319   :  { %7017 = vmatpush3.msra.mxu0 %v6007_v46  ;;  %7050 = vmatpush3.msra.mxu1 %v6040_v19 }
 0x31a   :  { %7018 = vmatprep.subr.mxu0 %v6022_v39  ;;  %7051 = vmatprep.subr.mxu1 %v6055_v60  ;;  %v6029_v39 = vld [vmem:[%s11142_s3 + $0x110] sm:$0xff] }
 0x31b   :  { %7019 = vmatpush3.msra.mxu0 %v6006_v11  ;;  %7052 = vmatpush3.msra.mxu1 %v6039_v40  ;;  %v6044_v11 = vld [vmem:[%s11142_s3 + $0x188] sm:$0xff] }
 0x31c   :  { %7020 = vmatprep.subr.mxu0 %v6021_v10  ;;  %7053 = vmatprep.subr.mxu1 %v6054_v30 }
 0x31d   :  { %7021 = vmatpush3.msra.mxu0 %v6005_v53  ;;  %7054 = vmatpush3.msra.mxu1 %v6038_v3 }
 0x31e   :  { %7022 = vmatprep.subr.mxu0 %v6020_v62  ;;  %7055 = vmatprep.subr.mxu1 %v6053_v45 }
 0x31f   :  { %7023 = vmatpush3.msra.mxu0 %v6004_v20  ;;  %7056 = vmatpush3.msra.mxu1 %v6037_v32 }
 0x320   :  { %7024 = vmatprep.subr.mxu0 %v6019_v52  ;;  %7057 = vmatprep.subr.mxu1 %v6052_v6 }
 0x321   :  { %7025 = vmatpush3.msra.mxu0 %v6003_v21  ;;  %7058 = vmatpush3.msra.mxu1 %v6036_v59 }
 0x322   :  { %7026 = vmatprep.subr.mxu0 %v6018_v22  ;;  %7059 = vmatprep.subr.mxu1 %v6051_v56 }
 0x323   :  { %7027 = vmatpush3.msra.mxu0 %v6002_v29  ;;  %7060 = vmatpush3.msra.mxu1 %v6035_v44 }
 0x324   :  { %7028 = vmatprep.subr.mxu0 %v6017_v23  ;;  %7061 = vmatprep.subr.mxu1 %v6050_v61 }
 0x325   :  { %7029 = vmatpush3.msra.mxu0 %v6001_v26  ;;  %7062 = vmatpush3.msra.mxu1 %v6034_v63 }
 0x326   :  { %7030 = vmatprep.subr.mxu0 %v6016_v38  ;;  %7063 = vmatprep.subr.mxu1 %v6049_v5 }
 0x327   :  { %7031 = vmatpush3.msra.mxu0 %v6000_v28  ;;  %7064 = vmatpush3.msra.mxu1 %v6033_v2 }
 0x328   :  { %7032 = vmatprep.subr.mxu0 %v6015_v58  ;;  %7065 = vmatprep.subr.mxu1 %v6048_v48 }
 0x329   :  { %7033 = vmatpush3.msra.mxu0 %v5999_v4  ;;  %7066 = vmatpush3.msra.mxu1 %v6032_v54 }
 0x32a   :  { %7034 = vmatprep.subr.mxu0 %v6014_v34  ;;  %7067 = vmatprep.subr.mxu1 %v6047_v37 }
 0x32b   :  { %7035 = vmatpush3.msra.mxu0 %v5998_v17 }
 0x32c   :  { %7036 = vmatprep.subr.mxu0 %v6013_v35 }
 0x32d   :  { %7037 = vmatpush3.msra.mxu0 %v5997_v49 }
 0x32e   :  { %7038 = vmatprep.subr.mxu0 %v6012_v31 }
 0x32f   :  { %7039 = vmatpush3.msra.mxu0 %v5996_v51 }
 0x330   :  { %7040 = vmatprep.subr.mxu0 %v6011_v36 }
 0x331   :  { %7041 = vmatpush3.msra.mxu0 %v5995_v47 }
 0x332   :  { %6131 = vmatmul.mubr.f32.vlgmr.msra.gmra.mxu0 %v5991_v8 }
 0x343   :  { %v5738_v57 = vpop.f32.mrf.mxu1 }
 0x344   :  { %v5739_v41 = vadd.f32 %v5738_v57, %v10946_v1  ;;  %v6031_v1 = vld [vmem:[%s11142_s3 + $0x120] sm:$0xff] }
 0x345   :  { %v5740_v42 = vpop.f32.mrf.mxu1  ;;  %7068 = vmatpush3.msra.mxu1 %v6031_v1 }
 0x346   :  { %v5741_v25 = vadd.f32 %v5740_v42, %v10954_v9  ;;  %7069 = vmatprep.subr.mxu1 %v6046_v16  ;;  %v6030_v9 = vld [vmem:[%s11142_s3 + $0x118] sm:$0xff] }
 0x347   :  { %v5742_v24 = vpop.f32.mrf.mxu1  ;;  %7070 = vmatpush3.msra.mxu1 %v6030_v9 }
 0x348   :  { %7071 = vmatprep.subr.mxu1 %v6045_v7  ;;  %v7009_v24 = vld [vmem:[%s11143_s4] ss:$0 sm:$0xff] }
 0x349   :  { %v5743_v55 = vpop.f32.mrf.mxu1  ;;  %7072 = vmatpush3.msra.mxu1 %v6029_v39 }
 0x34a   :  { %7073 = vmatprep.subr.mxu1 %v6044_v11 }
 0x34b   :  { %7074 = vmatpush3.msra.mxu1 %v6028_v14 }
 0x34c   :  { %7075 = vmatprep.subr.mxu1 %v6043_v15 }
 0x34d   :  { %7076 = vmatpush3.msra.mxu1 %v6027_v43 }
 0x352   :  { %v5779_v12 = vpop.f32.mrf.mxu0 }
 0x353   :  { %v5780_v0 = vadd.f32 %v5779_v12, %v5739_v41 }
 0x354   :  { %v5781_v50 = vpop.f32.mrf.mxu0 }
 0x355   :  { %v5782_v27 = vadd.f32 %v5781_v50, %v5741_v25 }
 0x356   :  { %v5783_v46 = vpop.f32.mrf.mxu0 }
 0x358   :  { %v5784_v13 = vpop.f32.mrf.mxu0 }
 0x383   :  { %v5820_v10 = vpop.f32.mrf.mxu1 }
 0x384   :  { %v5821_v18 = vadd.f32 %v5820_v10, %v5780_v0 }
 0x385   :  { %v5822_v53 = vpop.f32.mrf.mxu1 }
 0x386   :  { %v5823_v33 = vadd.f32 %v5822_v53, %v5782_v27 }
 0x387   :  { %v5824_v62 = vpop.f32.mrf.mxu1 }
 0x389   :  { %v5825_v19 = vpop.f32.mrf.mxu1 }
 0x392   :  { %v5861_v20 = vpop.f32.mrf.mxu0 }
 0x393   :  { %v5862_v28 = vadd.f32 %v5861_v20, %v5821_v18 }
 0x394   :  { %v5863_v52 = vpop.f32.mrf.mxu0 }
 0x395   :  { %v5864_v58 = vadd.f32 %v5863_v52, %v5823_v33 }
 0x396   :  { %v5865_v21 = vpop.f32.mrf.mxu0 }
 0x398   :  { %v5866_v22 = vpop.f32.mrf.mxu0 }
 0x3c3   :  { %v5902_v29 = vpop.f32.mrf.mxu1 }
 0x3c4   :  { %v5903_v4 = vadd.f32 %v5902_v29, %v5862_v28 }
 0x3c5   :  { %v5904_v23 = vpop.f32.mrf.mxu1 }
 0x3c6   :  { %v5905_v35 = vadd.f32 %v5904_v23, %v5864_v58 }
 0x3c7   :  { %v5906_v26 = vpop.f32.mrf.mxu1 }
 0x3c9   :  { %v5907_v38 = vpop.f32.mrf.mxu1 }
 0x3d2   :  { %v5943_v34 = vpop.f32.mrf.mxu0 }
 0x3d3   :  { %v5984_v17 = vpop.f32.mrf.mxu1  ;;  %v5944_v49 = vadd.f32 %v5943_v34, %v5903_v4 }
 0x3d4   :  { %v5945_v31 = vpop.f32.mrf.mxu0 }
 0x3d5   :  { %v5986_v51 = vpop.f32.mrf.mxu1  ;;  %v5946_v36 = vadd.f32 %v5945_v31, %v5905_v35  ;;  %v5985_v47 = vadd.f32 %v5984_v17, %v5944_v49 }
 0x3d6   :  { %v5947_v8 = vpop.f32.mrf.mxu0 }
 0x3d7   :  { %v5988_v60 = vpop.f32.mrf.mxu1  ;;  %v5987_v57 = vadd.f32 %v5986_v51, %v5946_v36  ;;  %v5993_v42 = vmax.f32 %v5985_v47, 0.0 }
 0x3d8   :  { %v5948_v40 = vpop.f32.mrf.mxu0 }
 0x3d9   :  { %v5989_v41 = vpop.f32.mrf.mxu1  ;;  %v5994_v30 = vmax.f32 %v5987_v57, 0.0 }
 0x3db   :  { %6200 = vmatprep.mubr.f32.mxu1 %v5994_v30 }
 0x3dc   :  { %6201 = vmatmul.mubr.f32.vlgmr.msra.gmra.mxu1 %v5993_v42 }
 0x3f2   :  { %v7042_v3 = vpop.f32.mrf.mxu0 }
 0x3f4   :  { %v7043_v25 = vpop.f32.mrf.mxu0 }
 0x3f5   :  { %v7044_v45 = vadd.f32 %v7043_v25, %v7042_v3 }
 0x3f7   :  { %v6133_v55 = vadd.f32 %v7044_v45, %v7009_v24 }
 0x49c   :  { %v7077_v32 = vpop.f32.mrf.mxu1 }
 0x49e   :  { %v7078_v6 = vpop.f32.mrf.mxu1 }
 0x49f   :  { %v7079_v59 = vadd.f32 %v7078_v6, %v7077_v32 }
 0x4a1   :  { %v6203_v56 = vadd.f32 %v7079_v59, %v6133_v55 }
 0x4a3   :  { %8265 = vtanh.f32 %v6203_v56 }
 0x4b0   :  { %v8266_v44 = vpop.eup %8265 }
 0x4b1   :  { %6207 = vst [vmem:[#allocation2] sm:$0x3] %v8266_v44 }
 0x4b2   :  { %8279 = shalt.err (!%p8276_p4)
}
 0x4b3   :  { %6217 = dma.vmem_to_hbm [thread:$0]  %s6215_s6, 32, %s11144_s5, [#allocation3]  }
 0x4b4   :  { %8288 = dma.done.wait [#allocation3], 32  }
 0x4b5   :  { %8289 = vsyncadd [#allocation3], 4294967264 }
 0x4b6   :  { %6221 = vsyncpa [#allocation3], 1 }

// kernel: car_racing_net.2
= control target key start
LH: loop header
LB: loop body
LE: loop exit
PB: predicated region body
PF: predicated region fallthrough
CT: control target
= control target key end

     0   :  { %s4778_s24 = smov 0   ;;  %s6689_s0 = inlined_call_operand.vmem [shape: f32[2,400,192], index: 0, kind: input, shape index: {}]   ;;  %s6690_s1 = inlined_call_operand.vmem [shape: f32[192,32], index: 1, kind: input, shape index: {}]   ;;  %s6691_s2 = inlined_call_operand.vmem [shape: f32[1,32], index: 2, kind: input, shape index: {}]   ;;  %s6692_s3 = inlined_call_operand.vmem [shape: f32[512,64], index: 3, kind: input, shape index: {}]   ;;  %s6693_s4 = inlined_call_operand.vmem [shape: f32[1,64], index: 4, kind: input, shape index: {}]   ;;  %s6694_s5 = inlined_call_operand.vmem [shape: f32[576,64], index: 5, kind: input, shape index: {}]   ;;  %s6695_s6 = inlined_call_operand.vmem [shape: f32[1,64], index: 6, kind: input, shape index: {}]   ;;  %s6696_s7 = inlined_call_operand.vmem [shape: f32[2,49,64], index: 7, kind: output, shape index: {}]  }
   0x1 LB: > { %s4352_s25 = sadd.s32 4294967295, %s4731_s24   ;;  %p4356_p0 = scmp.ge.s32.totalorder %s4731_s24, 1  ;;  %s4731_s24 = sphi %s4778_s24, %s17_s24  }
   0x2   : > { %p237_p1 = scmp.lt.s32.totalorder %s4731_s24, 3 }
   0x4   : > { %p238_p2 = pnand %p4356_p0, %p237_p1 }
   0x5   : > { %p269_p3 = scmp.lt.s32.totalorder (!%p238_p2), %s4352_s25, 1  ;;  %s4734_s17 = smov (!%p238_p2), 64  }
   0x6   : > { %241 = sbr.rel (%p238_p2) target bundleno = 1436 (0x59c), region = 48  ;;  %s4736_s18 = smov (!%p238_p2), 96  }
   0xb   : > { %v394_v0 = vld [vmem:[%s6690_s1 + $0x78] sm:$0xff]  ;;  %v4733_v1 = vmov 0.0   ;;  %v393_v2 = vld [vmem:[%s6690_s1 + $0x70] sm:$0xff]  ;;  %s6698_s25 = smov (!%p269_p3, %s4352_s25), 1  ;;  %v392_v3 = vld [vmem:[%s6690_s1 + $0x68] sm:$0xff]  ;;  %vm410_vm0 = vcmask 523264  }
   0xc   : > { %561 = vmatprep.subr.mxu0 %v4733_v1  ;;  %s4709_s9 = smul.u32 800, %s6698_s25  ;;  %v391_v4 = vld [vmem:[%s6690_s1 + $0x60] sm:$0xff]  ;;  %v390_v5 = vld [vmem:[%s6690_s1 + $0x58] sm:$0xff]  ;;  %v389_v7 = vld [vmem:[%s6690_s1 + $0x50] sm:$0xff]  ;;  %vm926_vm1 = vcmask 261120   ;;  %vm980_vm2 = vcmask 254976  }
   0xd   : > { %562 = vmatpush1.msra.mxu0 %v394_v0  ;;  %v388_v8 = vld [vmem:[%s6690_s1 + $0x48] sm:$0xff]  ;;  %v387_v9 = vld [vmem:[%s6690_s1 + $0x40] sm:$0xff]  ;;  %v386_v10 = vld [vmem:[%s6690_s1 + $0x38] sm:$0xff]  ;;  %vm1196_vm3 = vcmask 253952   ;;  %vm1304_vm4 = vcmask 523520   ;;  %vm1414_vm5 = vcmask 785920  }
   0xe   : > { %563 = vmatprep.subr.mxu0 %v4733_v1  ;;  %s4807_s14 = scalar_lea.vmem %s6689_s0, %s4709_s9  ;;  %v385_v11 = vld [vmem:[%s6690_s1 + $0x30] sm:$0xff]  ;;  %v384_v12 = vld [vmem:[%s6690_s1 + $0x28] sm:$0xff]  ;;  %v383_v13 = vld [vmem:[%s6690_s1 + $0x20] sm:$0xff]  ;;  %vm1306_vm6 = vcmask 516352   ;;  %vm1416_vm7 = vcmask 778752   ;;  %vm1524_vm8 = vcmask 1048320  }
   0xf   : > { %564 = vmatpush1.msra.mxu0 %v393_v2  ;;  %v280_v6 = vld [vmem:[%s4807_s14 + $0x8] sm:$0xff]  ;;  %v382_v14 = vld [vmem:[%s6690_s1 + $0x18] sm:$0xff]  ;;  %v381_v15 = vld [vmem:[%s6690_s1 + $0x10] sm:$0xff]  ;;  %vm1526_vm9 = vcmask 1041152   ;;  %vm2657_vm10 = vcmask 1040384   ;;  %vm2703_vm11 = vcmask 1041408  }
  0x10   : > { %565 = vmatprep.subr.mxu0 %v4733_v1  ;;  %4360 = vmatprep.mubr.msk.f32.mxu0 %vm410_vm0, %v280_v6  ;;  %v380_v16 = vld [vmem:[%s6690_s1 + $0x8] sm:$0xff]  ;;  %v379_v17 = vld [vmem:[%s6690_s1] sm:$0xff]  ;;  %v402_v18 = vld [vmem:[%s6690_s1 + $0xb8] sm:$0xff]  ;;  %vm2749_vm12 = vcmask 1042432   ;;  %vm2795_vm13 = vcmask 1043456   ;;  %vm2841_vm14 = vcmask 1044480  }
  0x11   : > { %566 = vmatpush1.msra.mxu0 %v392_v3  ;;  %v401_v19 = vld [vmem:[%s6690_s1 + $0xb0] sm:$0xff]  ;;  %v400_v20 = vld [vmem:[%s6690_s1 + $0xa8] sm:$0xff]  ;;  %v399_v21 = vld [vmem:[%s6690_s1 + $0xa0] sm:$0xff]  ;;  %vm2887_vm15 = vcmask 1045504  }
  0x12   : > { %567 = vmatprep.subr.mxu0 %v4733_v1  ;;  %v398_v22 = vld [vmem:[%s6690_s1 + $0x98] sm:$0xff]  ;;  %v397_v23 = vld [vmem:[%s6690_s1 + $0x90] sm:$0xff]  ;;  %v396_v24 = vld [vmem:[%s6690_s1 + $0x88] sm:$0xff] }
  0x13   : > { %568 = vmatpush1.msra.mxu0 %v391_v4  ;;  %v395_v25 = vld [vmem:[%s6690_s1 + $0x80] sm:$0xff]  ;;  %v282_v27 = vld [vmem:[%s4807_s14 + $0x18] sm:$0xff]  ;;  %v281_v28 = vld [vmem:[%s4807_s14 + $0x10] sm:$0xff] }
  0x14   : > { %569 = vmatprep.subr.mxu0 %v4733_v1  ;;  %v279_v26 = vld [vmem:[%s4807_s14] sm:$0xff]  ;;  %v284_v29 = vld [vmem:[%s4807_s14 + $0x28] sm:$0xff]  ;;  %v286_v31 = vld [vmem:[%s4807_s14 + $0x38] sm:$0xff] }
  0x15   : > { %570 = vmatpush1.msra.mxu0 %v390_v5  ;;  %v283_v30 = vld [vmem:[%s4807_s14 + $0x20] sm:$0xff]  ;;  %v285_v32 = vld [vmem:[%s4807_s14 + $0x30] sm:$0xff]  ;;  %v288_v33 = vld [vmem:[%s4807_s14 + $0x48] sm:$0xff] }
  0x16   : > { %571 = vmatprep.subr.mxu0 %v4733_v1  ;;  %v287_v34 = vld [vmem:[%s4807_s14 + $0x40] sm:$0xff]  ;;  %v290_v35 = vld [vmem:[%s4807_s14 + $0x58] sm:$0xff]  ;;  %v289_v36 = vld [vmem:[%s4807_s14 + $0x50] sm:$0xff] }
  0x17   : > { %572 = vmatpush1.msra.mxu0 %v389_v7  ;;  %v292_v37 = vld [vmem:[%s4807_s14 + $0x68] sm:$0xff]  ;;  %v291_v38 = vld [vmem:[%s4807_s14 + $0x60] sm:$0xff]  ;;  %v294_v39 = vld [vmem:[%s4807_s14 + $0x78] sm:$0xff] }
  0x18   : > { %573 = vmatprep.subr.mxu0 %v4733_v1  ;;  %v293_v40 = vld [vmem:[%s4807_s14 + $0x70] sm:$0xff]  ;;  %v296_v41 = vld [vmem:[%s4807_s14 + $0x88] sm:$0xff]  ;;  %v295_v42 = vld [vmem:[%s4807_s14 + $0x80] sm:$0xff] }
  0x19   : > { %574 = vmatpush1.msra.mxu0 %v388_v8  ;;  %v298_v43 = vld [vmem:[%s4807_s14 + $0x98] sm:$0xff]  ;;  %v297_v44 = vld [vmem:[%s4807_s14 + $0x90] sm:$0xff]  ;;  %v300_v45 = vld [vmem:[%s4807_s14 + $0xa8] sm:$0xff] }
  0x1a   : > { %575 = vmatprep.subr.mxu0 %v4733_v1  ;;  %v299_v46 = vld [vmem:[%s4807_s14 + $0xa0] sm:$0xff]  ;;  %v302_v47 = vld [vmem:[%s4807_s14 + $0xb8] sm:$0xff]  ;;  %v301_v48 = vld [vmem:[%s4807_s14 + $0xb0] sm:$0xff] }
  0x1b   : > { %576 = vmatpush1.msra.mxu0 %v387_v9  ;;  %v304_v49 = vld [vmem:[%s4807_s14 + $0xc8] sm:$0xff]  ;;  %v303_v50 = vld [vmem:[%s4807_s14 + $0xc0] sm:$0xff]  ;;  %v306_v51 = vld [vmem:[%s4807_s14 + $0xd8] sm:$0xff] }
  0x1c   : > { %577 = vmatprep.subr.mxu0 %v4733_v1  ;;  %v305_v52 = vld [vmem:[%s4807_s14 + $0xd0] sm:$0xff]  ;;  %v308_v53 = vld [vmem:[%s4807_s14 + $0xe8] sm:$0xff]  ;;  %v307_v54 = vld [vmem:[%s4807_s14 + $0xe0] sm:$0xff] }
  0x1d   : > { %578 = vmatpush1.msra.mxu0 %v386_v10  ;;  %v310_v55 = vld [vmem:[%s4807_s14 + $0xf8] sm:$0xff]  ;;  %v309_v56 = vld [vmem:[%s4807_s14 + $0xf0] sm:$0xff]  ;;  %v312_v57 = vld [vmem:[%s4807_s14 + $0x108] sm:$0xff] }
  0x1e   : > { %579 = vmatprep.subr.mxu0 %v4733_v1  ;;  %v311_v58 = vld [vmem:[%s4807_s14 + $0x100] sm:$0xff]  ;;  %v314_v59 = vld [vmem:[%s4807_s14 + $0x118] sm:$0xff]  ;;  %v313_v60 = vld [vmem:[%s4807_s14 + $0x110] sm:$0xff] }
  0x1f   : > { %580 = vmatpush1.msra.mxu0 %v385_v11  ;;  %v316_v61 = vld [vmem:[%s4807_s14 + $0x128] sm:$0xff]  ;;  %v315_v62 = vld [vmem:[%s4807_s14 + $0x120] sm:$0xff]  ;;  %v318_v63 = vld [vmem:[%s4807_s14 + $0x138] sm:$0xff] }
  0x20   : > { %581 = vmatprep.subr.mxu0 %v4733_v1  ;;  %v317_v0 = vld [vmem:[%s4807_s14 + $0x130] sm:$0xff]  ;;  %v320_v2 = vld [vmem:[%s4807_s14 + $0x148] sm:$0xff]  ;;  %v319_v3 = vld [vmem:[%s4807_s14 + $0x140] sm:$0xff] }
  0x21   : > { %582 = vmatpush1.msra.mxu0 %v384_v12  ;;  %v322_v4 = vld [vmem:[%s4807_s14 + $0x158] sm:$0xff]  ;;  %v321_v5 = vld [vmem:[%s4807_s14 + $0x150] sm:$0xff]  ;;  %v324_v6 = vld [vmem:[%s4807_s14 + $0x168] sm:$0xff] }
  0x22   : > { %583 = vmatprep.subr.mxu0 %v4733_v1  ;;  %v323_v7 = vld [vmem:[%s4807_s14 + $0x160] sm:$0xff]  ;;  %v326_v8 = vld [vmem:[%s4807_s14 + $0x178] sm:$0xff]  ;;  %v325_v9 = vld [vmem:[%s4807_s14 + $0x170] sm:$0xff] }
  0x23   : > { %584 = vmatpush1.msra.mxu0 %v383_v13  ;;  %v328_v10 = vld [vmem:[%s4807_s14 + $0x188] sm:$0xff]  ;;  %v327_v11 = vld [vmem:[%s4807_s14 + $0x180] sm:$0xff]  ;;  %v330_v12 = vld [vmem:[%s4807_s14 + $0x198] sm:$0xff] }
  0x24   : > { %585 = vmatprep.subr.mxu0 %v4733_v1  ;;  %v329_v13 = vld [vmem:[%s4807_s14 + $0x190] sm:$0xff] }
  0x25   : > { %586 = vmatpush1.msra.mxu0 %v382_v14  ;;  %v332_v14 = vld [vmem:[%s4807_s14 + $0x1a8] sm:$0xff] }
  0x26   : > { %587 = vmatprep.subr.mxu0 %v4733_v1 }
  0x27   : > { %588 = vmatpush1.msra.mxu0 %v381_v15  ;;  %v331_v15 = vld [vmem:[%s4807_s14 + $0x1a0] sm:$0xff] }
  0x28   : > { %589 = vmatprep.subr.mxu0 %v4733_v1 }
  0x29   : > { %590 = vmatpush1.msra.mxu0 %v380_v16  ;;  %v334_v16 = vld [vmem:[%s4807_s14 + $0x1b8] sm:$0xff] }
  0x2a   : > { %591 = vmatprep.subr.mxu0 %v4733_v1 }
  0x2b   : > { %592 = vmatpush1.msra.mxu0 %v379_v17  ;;  %v333_v17 = vld [vmem:[%s4807_s14 + $0x1b0] sm:$0xff] }
  0x2c   : > { %609 = vmatprep.subr.mxu0 %v4733_v1 }
  0x2d   : > { %610 = vmatpush2.msra.mxu0 %v402_v18  ;;  %v336_v18 = vld [vmem:[%s4807_s14 + $0x1c8] sm:$0xff] }
  0x2e   : > { %611 = vmatprep.subr.mxu0 %v4733_v1 }
  0x2f   : > { %612 = vmatpush2.msra.mxu0 %v401_v19  ;;  %v335_v19 = vld [vmem:[%s4807_s14 + $0x1c0] sm:$0xff] }
  0x30   : > { %613 = vmatprep.subr.mxu0 %v4733_v1 }
  0x31   : > { %614 = vmatpush2.msra.mxu0 %v400_v20  ;;  %v338_v20 = vld [vmem:[%s4807_s14 + $0x1d8] sm:$0xff] }
  0x32   : > { %615 = vmatprep.subr.mxu0 %v4733_v1 }
  0x33   : > { %616 = vmatpush2.msra.mxu0 %v399_v21  ;;  %v337_v21 = vld [vmem:[%s4807_s14 + $0x1d0] sm:$0xff] }
  0x34   : > { %617 = vmatprep.subr.mxu0 %v4733_v1 }
  0x35   : > { %618 = vmatpush2.msra.mxu0 %v398_v22  ;;  %v340_v22 = vld [vmem:[%s4807_s14 + $0x1e8] sm:$0xff] }
  0x36   : > { %619 = vmatprep.subr.mxu0 %v4733_v1 }
  0x37   : > { %620 = vmatpush2.msra.mxu0 %v397_v23  ;;  %v339_v23 = vld [vmem:[%s4807_s14 + $0x1e0] sm:$0xff] }
  0x38   : > { %621 = vmatprep.subr.mxu0 %v4733_v1 }
  0x39   : > { %622 = vmatpush2.msra.mxu0 %v396_v24  ;;  %v342_v24 = vld [vmem:[%s4807_s14 + $0x1f8] sm:$0xff] }
  0x3a   : > { %623 = vmatprep.subr.mxu0 %v4733_v1 }
  0x3b   : > { %624 = vmatpush2.msra.mxu0 %v395_v25  ;;  %v341_v25 = vld [vmem:[%s4807_s14 + $0x1f0] sm:$0xff] }
  0x3c   : > { %626 = vmatmul.mubr.f32.vlgmr.msra.gmra.mxu0 %v279_v26  ;;  %v344_v26 = vld [vmem:[%s4807_s14 + $0x208] sm:$0xff] }
  0x3d   : > { %4361 = vmatprep.mubr.msk.f32.mxu0 %vm410_vm0, %v282_v27  ;;  %v343_v27 = vld [vmem:[%s4807_s14 + $0x200] sm:$0xff] }
  0x40   : > { %631 = vmatmul.mubr.f32.gmra.mxu0 %v281_v28  ;;  %v346_v28 = vld [vmem:[%s4807_s14 + $0x218] sm:$0xff] }
  0x41   : > { %4362 = vmatprep.mubr.msk.f32.mxu0 %vm410_vm0, %v284_v29  ;;  %v345_v29 = vld [vmem:[%s4807_s14 + $0x210] sm:$0xff] }
  0x44   : > { %636 = vmatmul.mubr.f32.gmra.mxu0 %v283_v30  ;;  %v348_v30 = vld [vmem:[%s4807_s14 + $0x228] sm:$0xff] }
  0x45   : > { %4363 = vmatprep.mubr.msk.f32.mxu0 %vm410_vm0, %v286_v31  ;;  %v347_v31 = vld [vmem:[%s4807_s14 + $0x220] sm:$0xff] }
  0x48   : > { %641 = vmatmul.mubr.f32.gmra.mxu0 %v285_v32  ;;  %v350_v32 = vld [vmem:[%s4807_s14 + $0x238] sm:$0xff] }
  0x49   : > { %4364 = vmatprep.mubr.msk.f32.mxu0 %vm410_vm0, %v288_v33  ;;  %v349_v33 = vld [vmem:[%s4807_s14 + $0x230] sm:$0xff] }
  0x4c   : > { %646 = vmatmul.mubr.f32.gmra.mxu0 %v287_v34  ;;  %v352_v34 = vld [vmem:[%s4807_s14 + $0x248] sm:$0xff] }
  0x4d   : > { %4365 = vmatprep.mubr.msk.f32.mxu0 %vm410_vm0, %v290_v35  ;;  %v351_v35 = vld [vmem:[%s4807_s14 + $0x240] sm:$0xff] }
  0x50   : > { %651 = vmatmul.mubr.f32.gmra.mxu0 %v289_v36  ;;  %v354_v36 = vld [vmem:[%s4807_s14 + $0x258] sm:$0xff] }
  0x51   : > { %4366 = vmatprep.mubr.msk.f32.mxu0 %vm410_vm0, %v292_v37  ;;  %v353_v37 = vld [vmem:[%s4807_s14 + $0x250] sm:$0xff] }
  0x54   : > { %656 = vmatmul.mubr.f32.gmra.mxu0 %v291_v38  ;;  %v356_v38 = vld [vmem:[%s4807_s14 + $0x268] sm:$0xff] }
  0x55   : > { %4367 = vmatprep.mubr.msk.f32.mxu0 %vm410_vm0, %v294_v39  ;;  %v355_v39 = vld [vmem:[%s4807_s14 + $0x260] sm:$0xff] }
  0x58   : > { %661 = vmatmul.mubr.f32.gmra.mxu0 %v293_v40  ;;  %v358_v40 = vld [vmem:[%s4807_s14 + $0x278] sm:$0xff] }
  0x59   : > { %4368 = vmatprep.mubr.msk.f32.mxu0 %vm410_vm0, %v296_v41  ;;  %v357_v41 = vld [vmem:[%s4807_s14 + $0x270] sm:$0xff] }
  0x5c   : > { %666 = vmatmul.mubr.f32.gmra.mxu0 %v295_v42  ;;  %v360_v42 = vld [vmem:[%s4807_s14 + $0x288] sm:$0xff] }
  0x5d   : > { %4369 = vmatprep.mubr.msk.f32.mxu0 %vm410_vm0, %v298_v43  ;;  %v359_v43 = vld [vmem:[%s4807_s14 + $0x280] sm:$0xff] }
  0x60   : > { %671 = vmatmul.mubr.f32.gmra.mxu0 %v297_v44  ;;  %v362_v44 = vld [vmem:[%s4807_s14 + $0x298] sm:$0xff] }
  0x61   : > { %4370 = vmatprep.mubr.msk.f32.mxu0 %vm410_vm0, %v300_v45  ;;  %v361_v45 = vld [vmem:[%s4807_s14 + $0x290] sm:$0xff] }
  0x64   : > { %676 = vmatmul.mubr.f32.gmra.mxu0 %v299_v46  ;;  %v364_v46 = vld [vmem:[%s4807_s14 + $0x2a8] sm:$0xff] }
  0x65   : > { %4371 = vmatprep.mubr.msk.f32.mxu0 %vm410_vm0, %v302_v47  ;;  %v363_v47 = vld [vmem:[%s4807_s14 + $0x2a0] sm:$0xff] }
  0x68   : > { %681 = vmatmul.mubr.f32.gmra.mxu0 %v301_v48  ;;  %v366_v48 = vld [vmem:[%s4807_s14 + $0x2b8] sm:$0xff] }
  0x69   : > { %4372 = vmatprep.mubr.msk.f32.mxu0 %vm410_vm0, %v304_v49  ;;  %v365_v49 = vld [vmem:[%s4807_s14 + $0x2b0] sm:$0xff] }
  0x6c   : > { %686 = vmatmul.mubr.f32.gmra.mxu0 %v303_v50  ;;  %v368_v50 = vld [vmem:[%s4807_s14 + $0x2c8] sm:$0xff] }
  0x6d   : > { %4373 = vmatprep.mubr.msk.f32.mxu0 %vm410_vm0, %v306_v51  ;;  %v367_v51 = vld [vmem:[%s4807_s14 + $0x2c0] sm:$0xff] }
  0x70   : > { %691 = vmatmul.mubr.f32.gmra.mxu0 %v305_v52  ;;  %v370_v52 = vld [vmem:[%s4807_s14 + $0x2d8] sm:$0xff] }
  0x71   : > { %4374 = vmatprep.mubr.msk.f32.mxu0 %vm410_vm0, %v308_v53  ;;  %v369_v53 = vld [vmem:[%s4807_s14 + $0x2d0] sm:$0xff] }
  0x74   : > { %696 = vmatmul.mubr.f32.gmra.mxu0 %v307_v54  ;;  %v372_v54 = vld [vmem:[%s4807_s14 + $0x2e8] sm:$0xff] }
  0x75   : > { %4375 = vmatprep.mubr.msk.f32.mxu0 %vm410_vm0, %v310_v55  ;;  %v371_v55 = vld [vmem:[%s4807_s14 + $0x2e0] sm:$0xff] }
  0x78   : > { %701 = vmatmul.mubr.f32.gmra.mxu0 %v309_v56  ;;  %v374_v56 = vld [vmem:[%s4807_s14 + $0x2f8] sm:$0xff] }
  0x79   : > { %4376 = vmatprep.mubr.msk.f32.mxu0 %vm410_vm0, %v312_v57  ;;  %v373_v57 = vld [vmem:[%s4807_s14 + $0x2f0] sm:$0xff] }
  0x7c   : > { %706 = vmatmul.mubr.f32.gmra.mxu0 %v311_v58  ;;  %v5037_v58 = vld [vmem:[%s6691_s2] ss:$0 sm:$0xff] }
  0x7d   : > { %4377 = vmatprep.mubr.msk.f32.mxu0 %vm410_vm0, %v314_v59 }
  0x80   : > { %711 = vmatmul.mubr.f32.gmra.mxu0 %v313_v60 }
  0x81   : > { %4378 = vmatprep.mubr.msk.f32.mxu0 %vm410_vm0, %v316_v61 }
  0x84   : > { %716 = vmatmul.mubr.f32.gmra.mxu0 %v315_v62 }
  0x85   : > { %4379 = vmatprep.mubr.msk.f32.mxu0 %vm410_vm0, %v318_v63 }
  0x88   : > { %721 = vmatmul.mubr.f32.gmra.mxu0 %v317_v0 }
  0x89   : > { %4380 = vmatprep.mubr.msk.f32.mxu0 %vm410_vm0, %v320_v2 }
  0x8c   : > { %726 = vmatmul.mubr.f32.gmra.mxu0 %v319_v3 }
  0x8d   : > { %4381 = vmatprep.mubr.msk.f32.mxu0 %vm410_vm0, %v322_v4 }
  0x90   : > { %731 = vmatmul.mubr.f32.gmra.mxu0 %v321_v5 }
  0x91   : > { %4382 = vmatprep.mubr.msk.f32.mxu0 %vm410_vm0, %v324_v6 }
  0x94   : > { %736 = vmatmul.mubr.f32.gmra.mxu0 %v323_v7 }
  0x95   : > { %4383 = vmatprep.mubr.msk.f32.mxu0 %vm410_vm0, %v326_v8 }
  0x98   : > { %741 = vmatmul.mubr.f32.gmra.mxu0 %v325_v9 }
  0x99   : > { %4384 = vmatprep.mubr.msk.f32.mxu0 %vm410_vm0, %v328_v10 }
  0x9c   : > { %746 = vmatmul.mubr.f32.gmra.mxu0 %v327_v11 }
  0x9d   : > { %4385 = vmatprep.mubr.msk.f32.mxu0 %vm410_vm0, %v330_v12 }
  0xa0   : > { %751 = vmatmul.mubr.f32.gmra.mxu0 %v329_v13 }
  0xa1   : > { %4386 = vmatprep.mubr.msk.f32.mxu0 %vm410_vm0, %v332_v14 }
  0xa4   : > { %756 = vmatmul.mubr.f32.gmra.mxu0 %v331_v15 }
  0xa5   : > { %4387 = vmatprep.mubr.msk.f32.mxu0 %vm410_vm0, %v334_v16 }
  0xa8   : > { %761 = vmatmul.mubr.f32.gmra.mxu0 %v333_v17  ;;  %v376_v17 = vld [vmem:[%s4807_s14 + $0x308] sm:$0xff] }
  0xa9   : > { %4388 = vmatprep.mubr.msk.f32.mxu0 %vm410_vm0, %v336_v18 }
  0xac   : > { %766 = vmatmul.mubr.f32.gmra.mxu0 %v335_v19 }
  0xad   : > { %4389 = vmatprep.mubr.msk.f32.mxu0 %vm410_vm0, %v338_v20 }
  0xb0   : > { %771 = vmatmul.mubr.f32.gmra.mxu0 %v337_v21 }
  0xb1   : > { %4390 = vmatprep.mubr.msk.f32.mxu0 %vm410_vm0, %v340_v22  ;;  %v375_v22 = vld [vmem:[%s4807_s14 + $0x300] sm:$0xff] }
  0xb4   : > { %776 = vmatmul.mubr.f32.gmra.mxu0 %v339_v23 }
  0xb5   : > { %4391 = vmatprep.mubr.msk.f32.mxu0 %vm410_vm0, %v342_v24 }
  0xb8   : > { %781 = vmatmul.mubr.f32.gmra.mxu0 %v341_v25 }
  0xb9   : > { %4392 = vmatprep.mubr.msk.f32.mxu0 %vm410_vm0, %v344_v26 }
  0xbc   : > { %786 = vmatmul.mubr.f32.gmra.mxu0 %v343_v27 }
  0xbd   : > { %4393 = vmatprep.mubr.msk.f32.mxu0 %vm410_vm0, %v346_v28 }
  0xc0   : > { %791 = vmatmul.mubr.f32.gmra.mxu0 %v345_v29 }
  0xc1   : > { %4394 = vmatprep.mubr.msk.f32.mxu0 %vm410_vm0, %v348_v30 }
  0xc4   : > { %796 = vmatmul.mubr.f32.gmra.mxu0 %v347_v31 }
  0xc5   : > { %4395 = vmatprep.mubr.msk.f32.mxu0 %vm410_vm0, %v350_v32 }
  0xc8   : > { %801 = vmatmul.mubr.f32.gmra.mxu0 %v349_v33 }
  0xc9   : > { %4396 = vmatprep.mubr.msk.f32.mxu0 %vm410_vm0, %v352_v34 }
  0xcc   : > { %806 = vmatmul.mubr.f32.gmra.mxu0 %v351_v35 }
  0xcd   : > { %4397 = vmatprep.mubr.msk.f32.mxu0 %vm410_vm0, %v354_v36 }
  0xd0   : > { %811 = vmatmul.mubr.f32.gmra.mxu0 %v353_v37 }
  0xd1   : > { %4398 = vmatprep.mubr.msk.f32.mxu0 %vm410_vm0, %v356_v38 }
  0xd4   : > { %816 = vmatmul.mubr.f32.gmra.mxu0 %v355_v39 }
  0xd5   : > { %4399 = vmatprep.mubr.msk.f32.mxu0 %vm410_vm0, %v358_v40 }
  0xd8   : > { %821 = vmatmul.mubr.f32.gmra.mxu0 %v357_v41 }
  0xd9   : > { %4400 = vmatprep.mubr.msk.f32.mxu0 %vm410_vm0, %v360_v42 }
  0xdc   : > { %826 = vmatmul.mubr.f32.gmra.mxu0 %v359_v43 }
  0xdd   : > { %4401 = vmatprep.mubr.msk.f32.mxu0 %vm410_vm0, %v362_v44 }
  0xe0   : > { %831 = vmatmul.mubr.f32.gmra.mxu0 %v361_v45 }
  0xe1   : > { %4402 = vmatprep.mubr.msk.f32.mxu0 %vm410_vm0, %v364_v46 }
  0xe4   : > { %836 = vmatmul.mubr.f32.gmra.mxu0 %v363_v47 }
  0xe5   : > { %4403 = vmatprep.mubr.msk.f32.mxu0 %vm410_vm0, %v366_v48 }
  0xe8   : > { %841 = vmatmul.mubr.f32.gmra.mxu0 %v365_v49 }
  0xe9   : > { %4404 = vmatprep.mubr.msk.f32.mxu0 %vm410_vm0, %v368_v50 }
  0xec   : > { %846 = vmatmul.mubr.f32.gmra.mxu0 %v367_v51 }
  0xed   : > { %4405 = vmatprep.mubr.msk.f32.mxu0 %vm410_vm0, %v370_v52 }
  0xf0   : > { %851 = vmatmul.mubr.f32.gmra.mxu0 %v369_v53 }
  0xf1   : > { %4406 = vmatprep.mubr.msk.f32.mxu0 %vm410_vm0, %v372_v54 }
  0xf4   : > { %856 = vmatmul.mubr.f32.gmra.mxu0 %v371_v55 }
  0xf5   : > { %4407 = vmatprep.mubr.msk.f32.mxu0 %vm410_vm0, %v374_v56 }
  0xf8   : > { %861 = vmatmul.mubr.f32.gmra.mxu0 %v373_v57 }
  0xf9   : > { %4408 = vmatprep.mubr.msk.f32.mxu0 %vm410_vm0, %v376_v17 }
  0xfc   : > { %v627_v59 = vpop.f32.mrf.mxu0  ;;  %866 = vmatmul.mubr.f32.gmra.mxu0 %v375_v22 }
  0xfd   : > { %v628_v60 = vadd.f32 %v5037_v58, %v627_v59 }
  0xfe   : > { %v629_v61 = vpop.f32.mrf.mxu0 }
  0xff   : > { %v876_v62 = vmax.f32 %v628_v60, 0.0 }
 0x100   : > { %v632_v63 = vpop.f32.mrf.mxu0 }
 0x101   : > { %927 = vst.msk [vmem:[#allocation2] sm:$0xff] %vm926_vm1, %v876_v62  ;;  %v633_v0 = vadd.f32 %v5037_v58, %v632_v63 }
 0x102   : > { %v634_v2 = vpop.f32.mrf.mxu0 }
 0x103   : > { %v877_v3 = vmax.f32 %v633_v0, 0.0 }
 0x104   : > { %v637_v4 = vpop.f32.mrf.mxu0 }
 0x105   : > { %928 = vst.msk [vmem:[#allocation2 + $0x8] sm:$0xff] %vm926_vm1, %v877_v3  ;;  %v638_v5 = vadd.f32 %v5037_v58, %v637_v4 }
 0x106   : > { %v639_v6 = vpop.f32.mrf.mxu0 }
 0x107   : > { %v878_v7 = vmax.f32 %v638_v5, 0.0 }
 0x108   : > { %v642_v8 = vpop.f32.mrf.mxu0  ;;  %v977_v9 = vld [vmem:[#allocation2] sm:$0xff] }
 0x109   : > { %929 = vst.msk [vmem:[#allocation2 + $0x10] sm:$0xff] %vm926_vm1, %v878_v7  ;;  %v643_v10 = vadd.f32 %v5037_v58, %v642_v8  ;;  %979 = vst.msk [vmem:[#allocation3] sm:$0xff] %vm926_vm1, %v977_v9 }
 0x10a   : > { %v644_v11 = vpop.f32.mrf.mxu0 }
 0x10b   : > { %v879_v12 = vmax.f32 %v643_v10, 0.0  ;;  %v378_v11 = vld [vmem:[%s4807_s14 + $0x318] sm:$0xff] }
 0x10c   : > { %v647_v13 = vpop.f32.mrf.mxu0  ;;  %v978_v14 = vld [vmem:[#allocation2 + $0x8] sm:$0x3]  ;;  %4409 = vmatprep.mubr.msk.f32.mxu0 %vm410_vm0, %v378_v11 }
 0x10d   : > { %930 = vst.msk [vmem:[#allocation2 + $0x18] sm:$0xff] %vm926_vm1, %v879_v12  ;;  %v648_v15 = vadd.f32 %v5037_v58, %v647_v13 }
 0x10e   : > { %981 = vst.msk [vmem:[#allocation3 + $0x8] sm:$0x3] %vm980_vm2, %v978_v14  ;;  %v649_v16 = vpop.f32.mrf.mxu0 }
 0x10f   : > { %v880_v18 = vmax.f32 %v648_v15, 0.0 }
 0x110   : > { %v652_v19 = vpop.f32.mrf.mxu0  ;;  %v983_v20 = vld [vmem:[#allocation2 + $0x12] sm:$0x3]  ;;  %v982_v21 = vld [vmem:[#allocation2 + $0xa] sm:$0xff] }
 0x111   : > { %931 = vst.msk [vmem:[#allocation2 + $0x20] sm:$0xff] %vm926_vm1, %v880_v18  ;;  %v653_v23 = vadd.f32 %v5037_v58, %v652_v19  ;;  %985 = vst.msk [vmem:[#allocation3 + $0x10] sm:$0xff] %vm926_vm1, %v982_v21  ;;  %v1177_v24 = vld [vmem:[#allocation3] sm:$0xff] }
 0x112   : > { %986 = vst.msk [vmem:[#allocation3 + $0x18] sm:$0x3] %vm980_vm2, %v983_v20  ;;  %v654_v25 = vpop.f32.mrf.mxu0  ;;  %v377_v18 = vld [vmem:[%s4807_s14 + $0x310] sm:$0xff]  ;;  %s4735_s14 = smov 32  }
 0x113   : > { %1195 = vst.msk [vmem:[#allocation4] sm:$0xff] %vm926_vm1, %v1177_v24  ;;  %v881_v26 = vmax.f32 %v653_v23, 0.0  ;;  %871 = vmatmul.mubr.f32.gmra.mxu0 %v377_v18 }
 0x114   : > { %v657_v27 = vpop.f32.mrf.mxu0  ;;  %v987_v29 = vld [vmem:[#allocation2 + $0x14] sm:$0xff]  ;;  %v988_v31 = vld [vmem:[#allocation2 + $0x1c] sm:$0x3] }
 0x115   : > { %v1324_v28 = vld [vmem:[#allocation3 + $0x1] sm:$0xff]  ;;  %932 = vst.msk [vmem:[#allocation2 + $0x28] sm:$0xff] %vm926_vm1, %v881_v26  ;;  %v658_v30 = vadd.f32 %v5037_v58, %v657_v27  ;;  %990 = vst.msk [vmem:[#allocation3 + $0x20] sm:$0xff] %vm926_vm1, %v987_v29  ;;  %v1325_v37 = vld [vmem:[#allocation3 + $0x9] sm:$0x1] }
 0x116   : > { %1360 = vrot.lane.b32.xlu1 %v1324_v28, %s4734_s17  ;;  %v1178_v32 = vld [vmem:[#allocation3 + $0x8] sm:$0x1]  ;;  %v659_v33 = vpop.f32.mrf.mxu0  ;;  %991 = vst.msk [vmem:[#allocation3 + $0x28] sm:$0x3] %vm980_vm2, %v988_v31 }
 0x117   : > { %1197 = vst.msk [vmem:[#allocation4 + $0x20] sm:$0x1] %vm1196_vm3, %v1178_v32  ;;  %v882_v34 = vmax.f32 %v658_v30, 0.0 }
 0x118   : > { %v662_v35 = vpop.f32.mrf.mxu0  ;;  %v992_v38 = vld [vmem:[#allocation2 + $0x1e] sm:$0xff]  ;;  %v993_v40 = vld [vmem:[#allocation2 + $0x26] sm:$0x3] }
 0x119   : > { %v1327_v36 = vld [vmem:[#allocation3 + $0x19] sm:$0x1]  ;;  %933 = vst.msk [vmem:[#allocation2 + $0x30] sm:$0xff] %vm926_vm1, %v882_v34  ;;  %v663_v39 = vadd.f32 %v5037_v58, %v662_v35  ;;  %995 = vst.msk [vmem:[#allocation3 + $0x30] sm:$0xff] %vm926_vm1, %v992_v38  ;;  %v1179_v41 = vld [vmem:[#allocation3 + $0x10] sm:$0xff] }
 0x11a   : > { %1366 = vrot.lane.b32.xlu0 %v1327_v36, %s4734_s17  ;;  %1362 = vrot.lane.b32.xlu1 %v1325_v37, %s4734_s17  ;;  %v664_v42 = vpop.f32.mrf.mxu0  ;;  %996 = vst.msk [vmem:[#allocation3 + $0x38] sm:$0x3] %vm980_vm2, %v993_v40  ;;  %v1180_v43 = vld [vmem:[#allocation3 + $0x18] sm:$0x1]  ;;  %v2049_v3 = vld [vmem:[#allocation3 + $0x19] sm:$0x1] }
 0x11b   : > { %1198 = vst.msk [vmem:[#allocation4 + $0x40] sm:$0xff] %vm926_vm1, %v1179_v41  ;;  %v1905_v44 = vld [vmem:[#allocation3 + $0x18] sm:$0x1]  ;;  %1922 = vst.msk [vmem:[#allocation4 + $0x10] sm:$0xff] %vm926_vm1, %v1179_v41  ;;  %v883_v45 = vmax.f32 %v663_v39, 0.0 }
 0x11c   : > { %1199 = vst.msk [vmem:[#allocation4 + $0x60] sm:$0x1] %vm1196_vm3, %v1180_v43  ;;  %1923 = vst.msk [vmem:[#allocation4 + $0x30] sm:$0x1] %vm1196_vm3, %v1905_v44  ;;  %v667_v46 = vpop.f32.mrf.mxu0  ;;  %v1326_v47 = vld [vmem:[#allocation3 + $0x11] sm:$0xff]  ;;  %v1906_v49 = vld [vmem:[#allocation3 + $0x20] sm:$0xff] }
 0x11d   : > { %v997_v48 = vld [vmem:[#allocation2 + $0x28] sm:$0xff]  ;;  %934 = vst.msk [vmem:[#allocation2 + $0x38] sm:$0xff] %vm926_vm1, %v883_v45  ;;  %v668_v50 = vadd.f32 %v5037_v58, %v667_v46  ;;  %v5076_v51 = vld [vmem:[#allocation3 + $0x21] sm:$0xff]  ;;  %1924 = vst.msk [vmem:[#allocation4 + $0x50] sm:$0xff] %vm926_vm1, %v1906_v49 }
 0x11e   : > { %1364 = vrot.lane.b32.xlu1 %v1326_v47, %s4734_s17  ;;  %1000 = vst.msk [vmem:[#allocation3 + $0x40] sm:$0xff] %vm926_vm1, %v997_v48  ;;  %1200 = vst.msk [vmem:[#allocation4 + $0x80] sm:$0xff] %vm926_vm1, %v1906_v49  ;;  %1368 = vrot.lane.b32.xlu0 %v5076_v51, %s4734_s17  ;;  %v669_v52 = vpop.f32.mrf.mxu0  ;;  %v1907_v53 = vld [vmem:[#allocation3 + $0x28] sm:$0x1]  ;;  %v2051_v61 = vld [vmem:[#allocation3 + $0x29] sm:$0x1] }
 0x11f   : > { %v1182_v54 = vld [vmem:[#allocation3 + $0x28] sm:$0x1]  ;;  %v884_v55 = vmax.f32 %v668_v50, 0.0  ;;  %1925 = vst.msk [vmem:[#allocation4 + $0x70] sm:$0x1] %vm1196_vm3, %v1907_v53 }
 0x120   : > { %1201 = vst.msk [vmem:[#allocation4 + $0xa0] sm:$0x1] %vm1196_vm3, %v1182_v54  ;;  %v672_v56 = vpop.f32.mrf.mxu0  ;;  %v998_v57 = vld [vmem:[#allocation2 + $0x30] sm:$0x3]  ;;  %v1183_v59 = vld [vmem:[#allocation3 + $0x30] sm:$0xff] }
 0x121   : > { %935 = vst.msk [vmem:[#allocation2 + $0x40] sm:$0xff] %vm926_vm1, %v884_v55  ;;  %v673_v60 = vadd.f32 %v5037_v58, %v672_v56  ;;  %1202 = vst.msk [vmem:[#allocation4 + $0xc0] sm:$0xff] %vm926_vm1, %v1183_v59  ;;  %v1184_v63 = vld [vmem:[#allocation3 + $0x38] sm:$0x1]  ;;  %v1329_v14 = vld [vmem:[#allocation3 + $0x29] sm:$0x1] }
 0x122   : > { %2084 = vrot.lane.b32.xlu1 %v1326_v47, %s4734_s17  ;;  %1001 = vst.msk [vmem:[#allocation3 + $0x48] sm:$0x3] %vm980_vm2, %v998_v57  ;;  %2090 = vrot.lane.b32.xlu0 %v2051_v61, %s4734_s17  ;;  %v674_v62 = vpop.f32.mrf.mxu0  ;;  %v1909_v0 = vld [vmem:[#allocation3 + $0x38] sm:$0x1]  ;;  %v1331_v34 = vld [vmem:[#allocation3 + $0x39] sm:$0x1] }
 0x123   : > { %1926 = vst.msk [vmem:[#allocation4 + $0x90] sm:$0xff] %vm926_vm1, %v1183_v59  ;;  %v885_v2 = vmax.f32 %v673_v60, 0.0  ;;  %v1330_v9 = vld [vmem:[#allocation3 + $0x31] sm:$0xff]  ;;  %v2053_v43 = vld [vmem:[#allocation3 + $0x39] sm:$0x1] }
 0x124   : > { %1203 = vst.msk [vmem:[#allocation4 + $0xe0] sm:$0x1] %vm1196_vm3, %v1184_v63  ;;  %1927 = vst.msk [vmem:[#allocation4 + $0xb0] sm:$0x1] %vm1196_vm3, %v1909_v0  ;;  %v677_v4 = vpop.f32.mrf.mxu0  ;;  %v1002_v5 = vld [vmem:[#allocation2 + $0x32] sm:$0xff] }
 0x125   : > { %v1003_v6 = vld [vmem:[#allocation2 + $0x3a] sm:$0x3]  ;;  %v1185_v7 = vld [vmem:[#allocation3 + $0x40] sm:$0xff]  ;;  %936 = vst.msk [vmem:[#allocation2 + $0x48] sm:$0xff] %vm926_vm1, %v885_v2  ;;  %v678_v8 = vadd.f32 %v5037_v58, %v677_v4  ;;  %1005 = vst.msk [vmem:[#allocation3 + $0x50] sm:$0xff] %vm926_vm1, %v1002_v5 }
 0x126   : > { %2086 = vrot.lane.b32.xlu1 %v2049_v3, %s4734_s17  ;;  %1006 = vst.msk [vmem:[#allocation3 + $0x58] sm:$0x3] %vm980_vm2, %v1003_v6  ;;  %1372 = vrot.lane.b32.xlu0 %v1330_v9, %s4734_s17  ;;  %v679_v10 = vpop.f32.mrf.mxu0 }
 0x127   : > { %1204 = vst.msk [vmem:[#allocation4 + $0x100] sm:$0xff] %vm926_vm1, %v1185_v7  ;;  %1928 = vst.msk [vmem:[#allocation4 + $0xd0] sm:$0xff] %vm926_vm1, %v1185_v7  ;;  %v886_v12 = vmax.f32 %v678_v8, 0.0 }
 0x128   : > { %v682_v13 = vpop.f32.mrf.mxu0  ;;  %v1007_v15 = vld [vmem:[#allocation2 + $0x3c] sm:$0xff]  ;;  %v1008_v17 = vld [vmem:[#allocation2 + $0x44] sm:$0x3] }
 0x129   : > { %937 = vst.msk [vmem:[#allocation2 + $0x50] sm:$0xff] %vm926_vm1, %v886_v12  ;;  %v683_v16 = vadd.f32 %v5037_v58, %v682_v13  ;;  %1010 = vst.msk [vmem:[#allocation3 + $0x60] sm:$0xff] %vm926_vm1, %v1007_v15  ;;  %v1186_v20 = vld [vmem:[#allocation3 + $0x48] sm:$0x1]  ;;  %v1333_v52 = vld [vmem:[#allocation3 + $0x49] sm:$0x1] }
 0x12a   : > { %1370 = vrot.lane.b32.xlu1 %v1329_v14, %s4734_s17  ;;  %2092 = vrot.lane.b32.xlu0 %v1330_v9, %s4734_s17  ;;  %v684_v19 = vpop.f32.mrf.mxu0  ;;  %1011 = vst.msk [vmem:[#allocation3 + $0x68] sm:$0x3] %vm980_vm2, %v1008_v17  ;;  %v1911_v21 = vld [vmem:[#allocation3 + $0x48] sm:$0x1]  ;;  %v2055_v62 = vld [vmem:[#allocation3 + $0x49] sm:$0x1] }
 0x12b   : > { %v887_v22 = vmax.f32 %v683_v16, 0.0  ;;  %1205 = vst.msk [vmem:[#allocation4 + $0x120] sm:$0x1] %vm1196_vm3, %v1186_v20  ;;  %1929 = vst.msk [vmem:[#allocation4 + $0xf0] sm:$0x1] %vm1196_vm3, %v1911_v21  ;;  %v1332_v26 = vld [vmem:[#allocation3 + $0x41] sm:$0xff] }
 0x12c   : > { %v687_v23 = vpop.f32.mrf.mxu0  ;;  %v1012_v24 = vld [vmem:[#allocation2 + $0x46] sm:$0xff]  ;;  %v1013_v27 = vld [vmem:[#allocation2 + $0x4e] sm:$0x3] }
 0x12d   : > { %938 = vst.msk [vmem:[#allocation2 + $0x58] sm:$0xff] %vm926_vm1, %v887_v22  ;;  %v688_v25 = vadd.f32 %v5037_v58, %v687_v23  ;;  %1015 = vst.msk [vmem:[#allocation3 + $0x70] sm:$0xff] %vm926_vm1, %v1012_v24  ;;  %v1187_v28 = vld [vmem:[#allocation3 + $0x50] sm:$0xff]  ;;  %v1188_v30 = vld [vmem:[#allocation3 + $0x58] sm:$0x1] }
 0x12e   : > { %2088 = vrot.lane.b32.xlu1 %v5076_v51, %s4734_s17  ;;  %1376 = vrot.lane.b32.xlu0 %v1332_v26, %s4734_s17  ;;  %v689_v29 = vpop.f32.mrf.mxu0  ;;  %1016 = vst.msk [vmem:[#allocation3 + $0x78] sm:$0x3] %vm980_vm2, %v1013_v27  ;;  %v1913_v31 = vld [vmem:[#allocation3 + $0x58] sm:$0x1]  ;;  %v1335_v9 = vld [vmem:[#allocation3 + $0x59] sm:$0x1] }
 0x12f   : > { %1206 = vst.msk [vmem:[#allocation4 + $0x140] sm:$0xff] %vm926_vm1, %v1187_v28  ;;  %1930 = vst.msk [vmem:[#allocation4 + $0x110] sm:$0xff] %vm926_vm1, %v1187_v28  ;;  %v888_v32 = vmax.f32 %v688_v25, 0.0  ;;  %v1334_v47 = vld [vmem:[#allocation3 + $0x51] sm:$0xff]  ;;  %v2057_v18 = vld [vmem:[#allocation3 + $0x59] sm:$0x1] }
 0x130   : > { %1207 = vst.msk [vmem:[#allocation4 + $0x160] sm:$0x1] %vm1196_vm3, %v1188_v30  ;;  %1931 = vst.msk [vmem:[#allocation4 + $0x130] sm:$0x1] %vm1196_vm3, %v1913_v31  ;;  %v692_v33 = vpop.f32.mrf.mxu0  ;;  %v1017_v35 = vld [vmem:[#allocation2 + $0x50] sm:$0xff] }
 0x131   : > { %v1189_v36 = vld [vmem:[#allocation3 + $0x60] sm:$0xff]  ;;  %939 = vst.msk [vmem:[#allocation2 + $0x60] sm:$0xff] %vm926_vm1, %v888_v32  ;;  %v693_v37 = vadd.f32 %v5037_v58, %v692_v33  ;;  %1020 = vst.msk [vmem:[#allocation3 + $0x80] sm:$0xff] %vm926_vm1, %v1017_v35  ;;  %v1190_v38 = vld [vmem:[#allocation3 + $0x68] sm:$0x1] }
 0x132   : > { %1374 = vrot.lane.b32.xlu1 %v1331_v34, %s4734_s17  ;;  %1208 = vst.msk [vmem:[#allocation4 + $0x180] sm:$0xff] %vm926_vm1, %v1189_v36  ;;  %1932 = vst.msk [vmem:[#allocation4 + $0x150] sm:$0xff] %vm926_vm1, %v1189_v36  ;;  %2096 = vrot.lane.b32.xlu0 %v1332_v26, %s4734_s17  ;;  %v694_v39 = vpop.f32.mrf.mxu0  ;;  %v1915_v40 = vld [vmem:[#allocation3 + $0x68] sm:$0x1]  ;;  %v1337_v25 = vld [vmem:[#allocation3 + $0x69] sm:$0x1] }
 0x133   : > { %1209 = vst.msk [vmem:[#allocation4 + $0x1a0] sm:$0x1] %vm1196_vm3, %v1190_v38  ;;  %v889_v41 = vmax.f32 %v693_v37, 0.0  ;;  %1933 = vst.msk [vmem:[#allocation4 + $0x170] sm:$0x1] %vm1196_vm3, %v1915_v40  ;;  %v1336_v3 = vld [vmem:[#allocation3 + $0x61] sm:$0xff] }
 0x134   : > { %v697_v42 = vpop.f32.mrf.mxu0  ;;  %v1018_v44 = vld [vmem:[#allocation2 + $0x58] sm:$0x3]  ;;  %v1191_v45 = vld [vmem:[#allocation3 + $0x70] sm:$0xff] }
 0x135   : > { %940 = vst.msk [vmem:[#allocation2 + $0x68] sm:$0xff] %vm926_vm1, %v889_v41  ;;  %v698_v46 = vadd.f32 %v5037_v58, %v697_v42  ;;  %1210 = vst.msk [vmem:[#allocation4 + $0x1c0] sm:$0xff] %vm926_vm1, %v1191_v45  ;;  %v1192_v49 = vld [vmem:[#allocation3 + $0x78] sm:$0x1]  ;;  %v1339_v32 = vld [vmem:[#allocation3 + $0x79] sm:$0x1] }
 0x136   : > { %2094 = vrot.lane.b32.xlu1 %v2053_v43, %s4734_s17  ;;  %1021 = vst.msk [vmem:[#allocation3 + $0x88] sm:$0x3] %vm980_vm2, %v1018_v44  ;;  %1380 = vrot.lane.b32.xlu0 %v1334_v47, %s4734_s17  ;;  %v699_v48 = vpop.f32.mrf.mxu0  ;;  %v1917_v50 = vld [vmem:[#allocation3 + $0x78] sm:$0x1] }
 0x137   : > { %1934 = vst.msk [vmem:[#allocation4 + $0x190] sm:$0xff] %vm926_vm1, %v1191_v45  ;;  %v890_v51 = vmax.f32 %v698_v46, 0.0  ;;  %v1338_v20 = vld [vmem:[#allocation3 + $0x71] sm:$0xff] }
 0x138   : > { %1211 = vst.msk [vmem:[#allocation4 + $0x1e0] sm:$0x1] %vm1196_vm3, %v1192_v49  ;;  %1935 = vst.msk [vmem:[#allocation4 + $0x1b0] sm:$0x1] %vm1196_vm3, %v1917_v50  ;;  %v1022_v53 = vld [vmem:[#allocation2 + $0x5a] sm:$0xff]  ;;  %v702_v55 = vpop.f32.mrf.mxu0  ;;  %v1193_v56 = vld [vmem:[#allocation3 + $0x80] sm:$0xff] }
 0x139   : > { %v1023_v54 = vld [vmem:[#allocation2 + $0x62] sm:$0x3]  ;;  %1025 = vst.msk [vmem:[#allocation3 + $0x90] sm:$0xff] %vm926_vm1, %v1022_v53  ;;  %941 = vst.msk [vmem:[#allocation2 + $0x70] sm:$0xff] %vm926_vm1, %v890_v51  ;;  %v703_v57 = vadd.f32 %v5037_v58, %v702_v55  ;;  %v1918_v59 = vld [vmem:[#allocation3 + $0x80] sm:$0xff] }
 0x13a   : > { %1026 = vst.msk [vmem:[#allocation3 + $0x98] sm:$0x3] %vm980_vm2, %v1023_v54  ;;  %1378 = vrot.lane.b32.xlu1 %v1333_v52, %s4734_s17  ;;  %2100 = vrot.lane.b32.xlu0 %v1334_v47, %s4734_s17  ;;  %v704_v60 = vpop.f32.mrf.mxu0 }
 0x13b   : > { %1212 = vst.msk [vmem:[#allocation4 + $0x200] sm:$0xff] %vm926_vm1, %v1193_v56  ;;  %1936 = vst.msk [vmem:[#allocation4 + $0x1d0] sm:$0xff] %vm926_vm1, %v1918_v59  ;;  %v891_v61 = vmax.f32 %v703_v57, 0.0 }
 0x13c   : > { %v707_v63 = vpop.f32.mrf.mxu0  ;;  %v1027_v0 = vld [vmem:[#allocation2 + $0x64] sm:$0xff]  ;;  %v1028_v2 = vld [vmem:[#allocation2 + $0x6c] sm:$0x3] }
 0x13d   : > { %942 = vst.msk [vmem:[#allocation2 + $0x78] sm:$0xff] %vm926_vm1, %v891_v61  ;;  %v708_v4 = vadd.f32 %v5037_v58, %v707_v63  ;;  %1030 = vst.msk [vmem:[#allocation3 + $0xa0] sm:$0xff] %vm926_vm1, %v1027_v0  ;;  %v1194_v5 = vld [vmem:[#allocation3 + $0x88] sm:$0x1]  ;;  %v1341_v48 = vld [vmem:[#allocation3 + $0x89] sm:$0x1] }
 0x13e   : > { %2098 = vrot.lane.b32.xlu1 %v2055_v62, %s4734_s17  ;;  %1031 = vst.msk [vmem:[#allocation3 + $0xa8] sm:$0x3] %vm980_vm2, %v1028_v2  ;;  %1384 = vrot.lane.b32.xlu0 %v1336_v3, %s4734_s17  ;;  %v709_v6 = vpop.f32.mrf.mxu0  ;;  %v1919_v7 = vld [vmem:[#allocation3 + $0x88] sm:$0x1] }
 0x13f   : > { %1213 = vst.msk [vmem:[#allocation4 + $0x220] sm:$0x1] %vm1196_vm3, %v1194_v5  ;;  %v892_v8 = vmax.f32 %v708_v4, 0.0  ;;  %1937 = vst.msk [vmem:[#allocation4 + $0x1f0] sm:$0x1] %vm1196_vm3, %v1919_v7  ;;  %v1340_v40 = vld [vmem:[#allocation3 + $0x81] sm:$0xff] }
 0x140   : > { %v712_v10 = vpop.f32.mrf.mxu0  ;;  %v1032_v11 = vld [vmem:[#allocation2 + $0x6e] sm:$0xff]  ;;  %v1033_v12 = vld [vmem:[#allocation2 + $0x76] sm:$0x3]  ;;  %v1920_v14 = vld [vmem:[#allocation3 + $0x90] sm:$0xff] }
 0x141   : > { %943 = vst.msk [vmem:[#allocation2 + $0x80] sm:$0xff] %vm926_vm1, %v892_v8  ;;  %v713_v13 = vadd.f32 %v5037_v58, %v712_v10  ;;  %1035 = vst.msk [vmem:[#allocation3 + $0xb0] sm:$0xff] %vm926_vm1, %v1032_v11  ;;  %v1921_v15 = vld [vmem:[#allocation3 + $0x98] sm:$0x1] }
 0x142   : > { %1382 = vrot.lane.b32.xlu1 %v1335_v9, %s4734_s17  ;;  %1036 = vst.msk [vmem:[#allocation3 + $0xb8] sm:$0x3] %vm980_vm2, %v1033_v12  ;;  %2104 = vrot.lane.b32.xlu0 %v1336_v3, %s4734_s17  ;;  %v714_v16 = vpop.f32.mrf.mxu0 }
 0x143   : > { %1938 = vst.msk [vmem:[#allocation4 + $0x210] sm:$0xff] %vm926_vm1, %v1920_v14  ;;  %v893_v17 = vmax.f32 %v713_v13, 0.0 }
 0x144   : > { %1939 = vst.msk [vmem:[#allocation4 + $0x230] sm:$0x1] %vm1196_vm3, %v1921_v15  ;;  %v717_v19 = vpop.f32.mrf.mxu0  ;;  %v1037_v22 = vld [vmem:[#allocation2 + $0x78] sm:$0xff]  ;;  %v1214_v27 = vld [vmem:[#allocation3 + $0xa0] sm:$0xff] }
 0x145   : > { %944 = vst.msk [vmem:[#allocation2 + $0x88] sm:$0xff] %vm926_vm1, %v893_v17  ;;  %v718_v21 = vadd.f32 %v5037_v58, %v717_v19  ;;  %1040 = vst.msk [vmem:[#allocation3 + $0xc0] sm:$0xff] %vm926_vm1, %v1037_v22  ;;  %v1215_v36 = vld [vmem:[#allocation3 + $0xa8] sm:$0x1]  ;;  %v1435_v2 = vld [vmem:[#allocation3 + $0xa9] sm:$0x1] }
 0x146   : > { %2102 = vrot.lane.b32.xlu1 %v2057_v18, %s4734_s17  ;;  %1388 = vrot.lane.b32.xlu0 %v1338_v20, %s4734_s17  ;;  %v719_v23 = vpop.f32.mrf.mxu0  ;;  %v1434_v56 = vld [vmem:[#allocation3 + $0xa1] sm:$0xff] }
 0x147   : > { %v894_v24 = vmax.f32 %v718_v21, 0.0 }
 0x148   : > { %v722_v26 = vpop.f32.mrf.mxu0  ;;  %v1038_v29 = vld [vmem:[#allocation2 + $0x80] sm:$0x3] }
 0x149   : > { %945 = vst.msk [vmem:[#allocation2 + $0x90] sm:$0xff] %vm926_vm1, %v894_v24  ;;  %v723_v28 = vadd.f32 %v5037_v58, %v722_v26  ;;  %v5183_v44 = vld [vmem:[#allocation3 + $0xb0] sm:$0xff]  ;;  %v1217_v51 = vld [vmem:[#allocation3 + $0xb8] sm:$0x1]  ;;  %v1437_v18 = vld [vmem:[#allocation3 + $0xb9] sm:$0x1] }
 0x14a   : > { %1386 = vrot.lane.b32.xlu1 %v1337_v25, %s4734_s17  ;;  %1250 = vrot.lane.b32.xlu0 %v1214_v27, %s4735_s14  ;;  %v724_v30 = vpop.f32.mrf.mxu0  ;;  %1041 = vst.msk [vmem:[#allocation3 + $0xc8] sm:$0x3] %vm980_vm2, %v1038_v29  ;;  %v1941_v60 = vld [vmem:[#allocation3 + $0xb8] sm:$0x1] }
 0x14b   : > { %v895_v31 = vmax.f32 %v723_v28, 0.0  ;;  %v1436_v9 = vld [vmem:[#allocation3 + $0xb1] sm:$0xff] }
 0x14c   : > { %v727_v33 = vpop.f32.mrf.mxu0  ;;  %v1042_v34 = vld [vmem:[#allocation2 + $0x82] sm:$0xff]  ;;  %v1043_v35 = vld [vmem:[#allocation2 + $0x8a] sm:$0x3]  ;;  %v5204_v4 = vld [vmem:[#allocation3 + $0xc0] sm:$0xff] }
 0x14d   : > { %946 = vst.msk [vmem:[#allocation2 + $0x98] sm:$0xff] %vm926_vm1, %v895_v31  ;;  %v728_v37 = vadd.f32 %v5037_v58, %v727_v33  ;;  %1045 = vst.msk [vmem:[#allocation3 + $0xd0] sm:$0xff] %vm926_vm1, %v1042_v34 }
 0x14e   : > { %1390 = vrot.lane.b32.xlu1 %v1339_v32, %s4734_s17  ;;  %1046 = vst.msk [vmem:[#allocation3 + $0xd8] sm:$0x3] %vm980_vm2, %v1043_v35  ;;  %1252 = vrot.lane.b32.xlu0 %v1215_v36, %s4735_s14  ;;  %v729_v38 = vpop.f32.mrf.mxu0 }
 0x14f   : > { %v896_v39 = vmax.f32 %v728_v37, 0.0  ;;  %v2157_v37 = vld [vmem:[#allocation3 + $0xb9] sm:$0x1] }
 0x150   : > { %v732_v41 = vpop.f32.mrf.mxu0  ;;  %v1047_v42 = vld [vmem:[#allocation2 + $0x8c] sm:$0xff]  ;;  %v1048_v43 = vld [vmem:[#allocation2 + $0x94] sm:$0x3] }
 0x151   : > { %947 = vst.msk [vmem:[#allocation2 + $0xa0] sm:$0xff] %vm926_vm1, %v896_v39  ;;  %v733_v45 = vadd.f32 %v5037_v58, %v732_v41  ;;  %1050 = vst.msk [vmem:[#allocation3 + $0xe0] sm:$0xff] %vm926_vm1, %v1047_v42  ;;  %v1943_v12 = vld [vmem:[#allocation3 + $0xc8] sm:$0x1] }
 0x152   : > { %1392 = vrot.lane.b32.xlu1 %v1340_v40, %s4734_s17  ;;  %1051 = vst.msk [vmem:[#allocation3 + $0xe8] sm:$0x3] %vm980_vm2, %v1048_v43  ;;  %1254 = vrot.lane.b32.xlu0 %v5183_v44, %s4735_s14  ;;  %v734_v46 = vpop.f32.mrf.mxu0 }
 0x153   : > { %v897_v47 = vmax.f32 %v733_v45, 0.0 }
 0x154   : > { %v737_v49 = vpop.f32.mrf.mxu0  ;;  %v1052_v50 = vld [vmem:[#allocation2 + $0x96] sm:$0xff]  ;;  %v1053_v54 = vld [vmem:[#allocation2 + $0x9e] sm:$0x3]  ;;  %v5219_v20 = vld [vmem:[#allocation3 + $0xd0] sm:$0xff] }
 0x155   : > { %948 = vst.msk [vmem:[#allocation2 + $0xa8] sm:$0xff] %vm926_vm1, %v897_v47  ;;  %v738_v52 = vadd.f32 %v5037_v58, %v737_v49  ;;  %1055 = vst.msk [vmem:[#allocation3 + $0xf0] sm:$0xff] %vm926_vm1, %v1052_v50  ;;  %v1438_v50 = vld [vmem:[#allocation3 + $0xc1] sm:$0xff] }
 0x156   : > { %1394 = vrot.lane.b32.xlu1 %v1341_v48, %s4734_s17  ;;  %1256 = vrot.lane.b32.xlu0 %v1217_v51, %s4735_s14  ;;  %v739_v53 = vpop.f32.mrf.mxu0  ;;  %1056 = vst.msk [vmem:[#allocation3 + $0xf8] sm:$0x3] %vm980_vm2, %v1053_v54 }
 0x157   : > { %v898_v55 = vmax.f32 %v738_v52, 0.0 }
 0x158   : > { %v742_v57 = vpop.f32.mrf.mxu0  ;;  %v1057_v59 = vld [vmem:[#allocation2 + $0xa0] sm:$0xff]  ;;  %v1222_v27 = vld [vmem:[#allocation3 + $0xe0] sm:$0xff] }
 0x159   : > { %949 = vst.msk [vmem:[#allocation2 + $0xb0] sm:$0xff] %vm926_vm1, %v898_v55  ;;  %v743_v61 = vadd.f32 %v5037_v58, %v742_v57  ;;  %1060 = vst.msk [vmem:[#allocation3 + $0x100] sm:$0xff] %vm926_vm1, %v1057_v59 }
 0x15a   : > { %1470 = vrot.lane.b32.xlu1 %v1434_v56, %s4736_s18  ;;  %1978 = vrot.lane.b32.xlu0 %v1941_v60, %s4735_s14  ;;  %v744_v62 = vpop.f32.mrf.mxu0  ;;  %v1219_v60 = vld [vmem:[#allocation3 + $0xc8] sm:$0x1] }
 0x15b   : > { %v899_v63 = vmax.f32 %v743_v61, 0.0 }
 0x15c   : > { %v1058_v0 = vld [vmem:[#allocation2 + $0xa8] sm:$0x3]  ;;  %v747_v3 = vpop.f32.mrf.mxu0  ;;  %v1224_v39 = vld [vmem:[#allocation3 + $0xf0] sm:$0xff] }
 0x15d   : > { %1061 = vst.msk [vmem:[#allocation3 + $0x108] sm:$0x3] %vm980_vm2, %v1058_v0  ;;  %v748_v5 = vadd.f32 %v5037_v58, %v747_v3 }
 0x15e   : > { %1472 = vrot.lane.b32.xlu1 %v1435_v2, %s4736_s18  ;;  %950 = vst.msk [vmem:[#allocation2 + $0xb8] sm:$0xff] %vm926_vm1, %v899_v63  ;;  %1980 = vrot.lane.b32.xlu0 %v5204_v4, %s4735_s14  ;;  %v749_v6 = vpop.f32.mrf.mxu0 }
 0x15f   : > { %v900_v7 = vmax.f32 %v748_v5, 0.0 }
 0x160   : > { %v1063_v8 = vld [vmem:[#allocation2 + $0xb2] sm:$0x3]  ;;  %v752_v10 = vpop.f32.mrf.mxu0  ;;  %v1062_v11 = vld [vmem:[#allocation2 + $0xaa] sm:$0xff] }
 0x161   : > { %1066 = vst.msk [vmem:[#allocation3 + $0x118] sm:$0x3] %vm980_vm2, %v1063_v8  ;;  %v753_v13 = vadd.f32 %v5037_v58, %v752_v10  ;;  %v1226_v54 = vld [vmem:[#allocation3 + $0x100] sm:$0xff] }
 0x162   : > { %1474 = vrot.lane.b32.xlu1 %v1436_v9, %s4736_s18  ;;  %951 = vst.msk [vmem:[#allocation2 + $0xc0] sm:$0xff] %vm926_vm1, %v900_v7  ;;  %1065 = vst.msk [vmem:[#allocation3 + $0x110] sm:$0xff] %vm926_vm1, %v1062_v11  ;;  %1982 = vrot.lane.b32.xlu0 %v1943_v12, %s4735_s14  ;;  %v754_v14 = vpop.f32.mrf.mxu0  ;;  %v1439_v7 = vld [vmem:[#allocation3 + $0xc9] sm:$0x1] }
 0x163   : > { %v901_v15 = vmax.f32 %v753_v13, 0.0 }
 0x164   : > { %v757_v19 = vpop.f32.mrf.mxu0 }
 0x165   : > { %v1067_v16 = vld [vmem:[#allocation2 + $0xb4] sm:$0xff]  ;;  %v1068_v17 = vld [vmem:[#allocation2 + $0xbc] sm:$0x3]  ;;  %952 = vst.msk [vmem:[#allocation2 + $0xc8] sm:$0xff] %vm926_vm1, %v901_v15  ;;  %v758_v21 = vadd.f32 %v5037_v58, %v757_v19 }
 0x166   : > { %1070 = vst.msk [vmem:[#allocation3 + $0x120] sm:$0xff] %vm926_vm1, %v1067_v16  ;;  %1476 = vrot.lane.b32.xlu1 %v1437_v18, %s4736_s18  ;;  %1262 = vrot.lane.b32.xlu0 %v5219_v20, %s4735_s14  ;;  %v759_v22 = vpop.f32.mrf.mxu0 }
 0x167   : > { %1071 = vst.msk [vmem:[#allocation3 + $0x128] sm:$0x3] %vm980_vm2, %v1068_v17  ;;  %v902_v23 = vmax.f32 %v758_v21, 0.0 }
 0x168   : > { %v762_v26 = vpop.f32.mrf.mxu0 }
 0x169   : > { %v1072_v24 = vld [vmem:[#allocation2 + $0xbe] sm:$0xff]  ;;  %v1073_v25 = vld [vmem:[#allocation2 + $0xc6] sm:$0x3]  ;;  %953 = vst.msk [vmem:[#allocation2 + $0xd0] sm:$0xff] %vm926_vm1, %v902_v23  ;;  %v763_v28 = vadd.f32 %v5037_v58, %v762_v26  ;;  %v2159_v26 = vld [vmem:[#allocation3 + $0xc9] sm:$0x1] }
 0x16a   : > { %1075 = vst.msk [vmem:[#allocation3 + $0x130] sm:$0xff] %vm926_vm1, %v1072_v24  ;;  %1976 = vrot.lane.b32.xlu1 %v5183_v44, %s4735_s14  ;;  %1266 = vrot.lane.b32.xlu0 %v1222_v27, %s4735_s14  ;;  %v764_v29 = vpop.f32.mrf.mxu0  ;;  %v1228_v10 = vld [vmem:[#allocation3 + $0x110] sm:$0xff] }
 0x16b   : > { %1076 = vst.msk [vmem:[#allocation3 + $0x138] sm:$0x3] %vm980_vm2, %v1073_v25  ;;  %v903_v30 = vmax.f32 %v763_v28, 0.0 }
 0x16c   : > { %v1077_v31 = vld [vmem:[#allocation2 + $0xc8] sm:$0xff]  ;;  %v767_v32 = vpop.f32.mrf.mxu0 }
 0x16d   : > { %1080 = vst.msk [vmem:[#allocation3 + $0x140] sm:$0xff] %vm926_vm1, %v1077_v31  ;;  %954 = vst.msk [vmem:[#allocation2 + $0xd8] sm:$0xff] %vm926_vm1, %v903_v30  ;;  %v768_v33 = vadd.f32 %v5037_v58, %v767_v32 }
 0x16e   : > { %2192 = vrot.lane.b32.xlu1 %v1436_v9, %s4736_s18  ;;  %1988 = vrot.lane.b32.xlu0 %v1222_v27, %s4735_s14  ;;  %v769_v34 = vpop.f32.mrf.mxu0 }
 0x16f   : > { %v904_v35 = vmax.f32 %v768_v33, 0.0 }
 0x170   : > { %v1078_v36 = vld [vmem:[#allocation2 + $0xd0] sm:$0x3]  ;;  %v772_v38 = vpop.f32.mrf.mxu0 }
 0x171   : > { %1081 = vst.msk [vmem:[#allocation3 + $0x148] sm:$0x3] %vm980_vm2, %v1078_v36  ;;  %v773_v40 = vadd.f32 %v5037_v58, %v772_v38  ;;  %v5300_v38 = vld [vmem:[#allocation3 + $0xd1] sm:$0xff] }
 0x172   : > { %2194 = vrot.lane.b32.xlu1 %v2157_v37, %s4736_s18  ;;  %955 = vst.msk [vmem:[#allocation2 + $0xe0] sm:$0xff] %vm926_vm1, %v904_v35  ;;  %1270 = vrot.lane.b32.xlu0 %v1224_v39, %s4735_s14  ;;  %v774_v41 = vpop.f32.mrf.mxu0 }
 0x173   : > { %v905_v42 = vmax.f32 %v773_v40, 0.0 }
 0x174   : > { %v777_v43 = vpop.f32.mrf.mxu0  ;;  %v1082_v44 = vld [vmem:[#allocation2 + $0xd2] sm:$0xff]  ;;  %v1083_v45 = vld [vmem:[#allocation2 + $0xda] sm:$0x3] }
 0x175   : > { %v1544_v46 = vld [vmem:[#allocation3 + $0x140] sm:$0xff]  ;;  %956 = vst.msk [vmem:[#allocation2 + $0xe8] sm:$0xff] %vm926_vm1, %v905_v42  ;;  %v778_v47 = vadd.f32 %v5037_v58, %v777_v43  ;;  %1085 = vst.msk [vmem:[#allocation3 + $0x150] sm:$0xff] %vm926_vm1, %v1082_v44 }
 0x176   : > { %1258 = vrot.lane.b32.xlu1 %v5204_v4, %s4735_s14  ;;  %1086 = vst.msk [vmem:[#allocation3 + $0x158] sm:$0x3] %vm980_vm2, %v1083_v45  ;;  %1992 = vrot.lane.b32.xlu0 %v1224_v39, %s4735_s14  ;;  %v779_v48 = vpop.f32.mrf.mxu0 }
 0x177   : > { %1562 = vst.msk [vmem:[#allocation4 + $0x8] sm:$0xff] %vm926_vm1, %v1544_v46  ;;  %v906_v49 = vmax.f32 %v778_v47, 0.0 }
 0x178   : > { %v782_v51 = vpop.f32.mrf.mxu0  ;;  %v1545_v56 = vld [vmem:[#allocation3 + $0x148] sm:$0x1] }
 0x179   : > { %v1087_v52 = vld [vmem:[#allocation2 + $0xdc] sm:$0xff]  ;;  %v1088_v53 = vld [vmem:[#allocation2 + $0xe4] sm:$0x3]  ;;  %957 = vst.msk [vmem:[#allocation2 + $0xf0] sm:$0xff] %vm926_vm1, %v906_v49  ;;  %v783_v55 = vadd.f32 %v5037_v58, %v782_v51  ;;  %v1221_v49 = vld [vmem:[#allocation3 + $0xd8] sm:$0x1] }
 0x17a   : > { %1478 = vrot.lane.b32.xlu1 %v1438_v50, %s4736_s18  ;;  %1090 = vst.msk [vmem:[#allocation3 + $0x160] sm:$0xff] %vm926_vm1, %v1087_v52  ;;  %1274 = vrot.lane.b32.xlu0 %v1226_v54, %s4735_s14  ;;  %v784_v57 = vpop.f32.mrf.mxu0 }
 0x17b   : > { %1091 = vst.msk [vmem:[#allocation3 + $0x168] sm:$0x3] %vm980_vm2, %v1088_v53  ;;  %v907_v59 = vmax.f32 %v783_v55, 0.0  ;;  %v5320_v53 = vld [vmem:[%s6691_s2] ss:$0 sm:$0xff] }
 0x17c   : > { %1563 = vst.msk [vmem:[#allocation4 + $0x28] sm:$0x1] %vm1196_vm3, %v1545_v56  ;;  %v787_v61 = vpop.f32.mrf.mxu0  ;;  %v1092_v62 = vld [vmem:[#allocation2 + $0xe6] sm:$0xff]  ;;  %v1093_v63 = vld [vmem:[#allocation2 + $0xee] sm:$0x3] }
 0x17d   : > { %958 = vst.msk [vmem:[#allocation2 + $0xf8] sm:$0xff] %vm926_vm1, %v907_v59  ;;  %v788_v0 = vadd.f32 %v5037_v58, %v787_v61  ;;  %1095 = vst.msk [vmem:[#allocation3 + $0x170] sm:$0xff] %vm926_vm1, %v1092_v62  ;;  %v1546_v2 = vld [vmem:[#allocation3 + $0x150] sm:$0xff]  ;;  %v1547_v4 = vld [vmem:[#allocation3 + $0x158] sm:$0x1] }
 0x17e   : > { %1260 = vrot.lane.b32.xlu1 %v1219_v60, %s4735_s14  ;;  %1096 = vst.msk [vmem:[#allocation3 + $0x178] sm:$0x3] %vm980_vm2, %v1093_v63  ;;  %1996 = vrot.lane.b32.xlu0 %v1226_v54, %s4735_s14  ;;  %v789_v3 = vpop.f32.mrf.mxu0  ;;  %v2265_v5 = vld [vmem:[#allocation3 + $0x158] sm:$0x1]  ;;  %v1441_v63 = vld [vmem:[#allocation3 + $0xd9] sm:$0x1] }
 0x17f   : > { %1564 = vst.msk [vmem:[#allocation4 + $0x48] sm:$0xff] %vm926_vm1, %v1546_v2  ;;  %2282 = vst.msk [vmem:[#allocation4 + $0x18] sm:$0xff] %vm926_vm1, %v1546_v2  ;;  %v908_v6 = vmax.f32 %v788_v0, 0.0  ;;  %v1690_v32 = vld [vmem:[#allocation3 + $0x151] sm:$0xff] }
 0x180   : > { %1565 = vst.msk [vmem:[#allocation4 + $0x68] sm:$0x1] %vm1196_vm3, %v1547_v4  ;;  %2283 = vst.msk [vmem:[#allocation4 + $0x38] sm:$0x1] %vm1196_vm3, %v2265_v5  ;;  %v792_v8 = vpop.f32.mrf.mxu0  ;;  %v1097_v9 = vld [vmem:[#allocation2 + $0xf0] sm:$0xff] }
 0x181   : > { %959 = vst.msk [vmem:[#allocation2 + $0x100] sm:$0xff] %vm926_vm1, %v908_v6  ;;  %v793_v11 = vadd.f32 %v5037_v58, %v792_v8  ;;  %1100 = vst.msk [vmem:[#allocation3 + $0x180] sm:$0xff] %vm926_vm1, %v1097_v9  ;;  %v1548_v12 = vld [vmem:[#allocation3 + $0x160] sm:$0xff] }
 0x182   : > { %1480 = vrot.lane.b32.xlu1 %v1439_v7, %s4736_s18  ;;  %v1549_v13 = vld [vmem:[#allocation3 + $0x168] sm:$0x1]  ;;  %1278 = vrot.lane.b32.xlu0 %v1228_v10, %s4735_s14  ;;  %v794_v14 = vpop.f32.mrf.mxu0  ;;  %1566 = vst.msk [vmem:[#allocation4 + $0x88] sm:$0xff] %vm926_vm1, %v1548_v12  ;;  %2284 = vst.msk [vmem:[#allocation4 + $0x58] sm:$0xff] %vm926_vm1, %v1548_v12 }
 0x183   : > { %1567 = vst.msk [vmem:[#allocation4 + $0xa8] sm:$0x1] %vm1196_vm3, %v1549_v13  ;;  %v2267_v15 = vld [vmem:[#allocation3 + $0x168] sm:$0x1]  ;;  %v909_v16 = vmax.f32 %v793_v11, 0.0 }
 0x184   : > { %2285 = vst.msk [vmem:[#allocation4 + $0x78] sm:$0x1] %vm1196_vm3, %v2267_v15  ;;  %v797_v17 = vpop.f32.mrf.mxu0  ;;  %v1098_v18 = vld [vmem:[#allocation2 + $0xf8] sm:$0x3]  ;;  %v1550_v21 = vld [vmem:[#allocation3 + $0x170] sm:$0xff] }
 0x185   : > { %960 = vst.msk [vmem:[#allocation2 + $0x108] sm:$0xff] %vm926_vm1, %v909_v16  ;;  %v798_v19 = vadd.f32 %v5037_v58, %v797_v17  ;;  %v1551_v22 = vld [vmem:[#allocation3 + $0x178] sm:$0x1]  ;;  %1568 = vst.msk [vmem:[#allocation4 + $0xc8] sm:$0xff] %vm926_vm1, %v1550_v21  ;;  %v1692_v52 = vld [vmem:[#allocation3 + $0x161] sm:$0xff] }
 0x186   : > { %2196 = vrot.lane.b32.xlu1 %v1438_v50, %s4736_s18  ;;  %1101 = vst.msk [vmem:[#allocation3 + $0x188] sm:$0x3] %vm980_vm2, %v1098_v18  ;;  %2000 = vrot.lane.b32.xlu0 %v1228_v10, %s4735_s14  ;;  %v799_v23 = vpop.f32.mrf.mxu0  ;;  %v2269_v24 = vld [vmem:[#allocation3 + $0x178] sm:$0x1] }
 0x187   : > { %1569 = vst.msk [vmem:[#allocation4 + $0xe8] sm:$0x1] %vm1196_vm3, %v1551_v22  ;;  %v910_v27 = vmax.f32 %v798_v19, 0.0  ;;  %2287 = vst.msk [vmem:[#allocation4 + $0xb8] sm:$0x1] %vm1196_vm3, %v2269_v24  ;;  %v1694_v13 = vld [vmem:[#allocation3 + $0x171] sm:$0xff] }
 0x188   : > { %2286 = vst.msk [vmem:[#allocation4 + $0x98] sm:$0xff] %vm926_vm1, %v1550_v21  ;;  %v5285_v25 = vpop.permute.xlu1 %1360  ;;  %v802_v28 = vpop.f32.mrf.mxu0  ;;  %v1102_v29 = vld [vmem:[#allocation2 + $0xfa] sm:$0xff]  ;;  %v1103_v30 = vld [vmem:[#allocation2 + $0x102] sm:$0x3]  ;;  %v1552_v31 = vld [vmem:[#allocation3 + $0x180] sm:$0xff] }
 0x189   : > { %961 = vst.msk [vmem:[#allocation2 + $0x110] sm:$0xff] %vm926_vm1, %v910_v27  ;;  %v803_v33 = vadd.f32 %v5037_v58, %v802_v28  ;;  %1105 = vst.msk [vmem:[#allocation3 + $0x190] sm:$0xff] %vm926_vm1, %v1102_v29 }
 0x18a   : > { %2198 = vrot.lane.b32.xlu1 %v2159_v26, %s4736_s18  ;;  %1106 = vst.msk [vmem:[#allocation3 + $0x198] sm:$0x3] %vm980_vm2, %v1103_v30  ;;  %1728 = vrot.lane.b32.xlu0 %v1690_v32, %s4734_s17  ;;  %v804_v34 = vpop.f32.mrf.mxu0 }
 0x18b   : > { %1570 = vst.msk [vmem:[#allocation4 + $0x108] sm:$0xff] %vm926_vm1, %v1552_v31  ;;  %2288 = vst.msk [vmem:[#allocation4 + $0xd8] sm:$0xff] %vm926_vm1, %v1552_v31  ;;  %v911_v37 = vmax.f32 %v803_v33, 0.0 }
 0x18c   : > { %v5296_v35 = vpop.permute.xlu0 %1366  ;;  %v5298_v36 = vpop.permute.xlu1 %1362  ;;  %v1107_v40 = vld [vmem:[#allocation2 + $0x104] sm:$0xff]  ;;  %v1108_v41 = vld [vmem:[#allocation2 + $0x10c] sm:$0x3] }
 0x18d   : > { %v807_v39 = vpop.f32.mrf.mxu0  ;;  %962 = vst.msk [vmem:[#allocation2 + $0x118] sm:$0xff] %vm926_vm1, %v911_v37  ;;  %1110 = vst.msk [vmem:[#allocation3 + $0x1a0] sm:$0xff] %vm926_vm1, %v1107_v40  ;;  %v1553_v43 = vld [vmem:[#allocation3 + $0x188] sm:$0x1] }
 0x18e   : > { %1482 = vrot.lane.b32.xlu1 %v5300_v38, %s4736_s18  ;;  %v808_v42 = vadd.f32 %v5037_v58, %v807_v39  ;;  %1111 = vst.msk [vmem:[#allocation3 + $0x1a8] sm:$0x3] %vm980_vm2, %v1108_v41  ;;  %2444 = vrot.lane.b32.xlu0 %v1690_v32, %s4734_s17  ;;  %v2271_v45 = vld [vmem:[#allocation3 + $0x188] sm:$0x1]  ;;  %v1945_v32 = vld [vmem:[#allocation3 + $0xd8] sm:$0x1] }
 0x18f   : > { %v809_v44 = vpop.f32.mrf.mxu0  ;;  %1571 = vst.msk [vmem:[#allocation4 + $0x128] sm:$0x1] %vm1196_vm3, %v1553_v43  ;;  %2289 = vst.msk [vmem:[#allocation4 + $0xf8] sm:$0x1] %vm1196_vm3, %v2271_v45  ;;  %v1696_v37 = vld [vmem:[#allocation3 + $0x181] sm:$0xff] }
 0x190   : > { %v5310_v46 = vpop.permute.xlu1 %1364  ;;  %v912_v47 = vmax.f32 %v808_v42, 0.0  ;;  %v5313_v48 = vpop.permute.xlu0 %1368  ;;  %v1112_v50 = vld [vmem:[#allocation2 + $0x10e] sm:$0xff]  ;;  %v1113_v51 = vld [vmem:[#allocation2 + $0x116] sm:$0x3]  ;;  %v1554_v55 = vld [vmem:[#allocation3 + $0x190] sm:$0xff] }
 0x191   : > { %v812_v58 = vpop.f32.mrf.mxu0  ;;  %1115 = vst.msk [vmem:[#allocation3 + $0x1b0] sm:$0xff] %vm926_vm1, %v1112_v50  ;;  %1572 = vst.msk [vmem:[#allocation4 + $0x148] sm:$0xff] %vm926_vm1, %v1554_v55  ;;  %v1555_v57 = vld [vmem:[#allocation3 + $0x198] sm:$0x1] }
 0x192   : > { %1264 = vrot.lane.b32.xlu1 %v1221_v49, %s4735_s14  ;;  %963 = vst.msk [vmem:[#allocation2 + $0x120] sm:$0xff] %vm926_vm1, %v912_v47  ;;  %v813_v54 = vadd.f32 %v5320_v53, %v812_v58  ;;  %1732 = vrot.lane.b32.xlu0 %v1692_v52, %s4734_s17  ;;  %2290 = vst.msk [vmem:[#allocation4 + $0x118] sm:$0xff] %vm926_vm1, %v1554_v55  ;;  %v2273_v59 = vld [vmem:[#allocation3 + $0x198] sm:$0x1]  ;;  %v2161_v47 = vld [vmem:[#allocation3 + $0xd9] sm:$0x1] }
 0x193   : > { %1116 = vst.msk [vmem:[#allocation3 + $0x1b8] sm:$0x3] %vm980_vm2, %v1113_v51  ;;  %v814_v56 = vpop.f32.mrf.mxu0 }
 0x194   : > { %v5328_v60 = vpop.permute.xlu1 %2084  ;;  %v913_v61 = vmax.f32 %v813_v54, 0.0  ;;  %1573 = vst.msk [vmem:[#allocation4 + $0x168] sm:$0x1] %vm1196_vm3, %v1555_v57  ;;  %2291 = vst.msk [vmem:[#allocation4 + $0x138] sm:$0x1] %vm1196_vm3, %v2273_v59  ;;  %v5332_v62 = vpop.permute.xlu0 %2090  ;;  %v1117_v2 = vld [vmem:[#allocation2 + $0x118] sm:$0xff] }
 0x195   : > { %v817_v0 = vpop.f32.mrf.mxu0  ;;  %1120 = vst.msk [vmem:[#allocation3 + $0x1c0] sm:$0xff] %vm926_vm1, %v1117_v2  ;;  %v1556_v4 = vld [vmem:[#allocation3 + $0x1a0] sm:$0xff]  ;;  %v1557_v5 = vld [vmem:[#allocation3 + $0x1a8] sm:$0x1]  ;;  %v1698_v2 = vld [vmem:[#allocation3 + $0x191] sm:$0xff] }
 0x196   : > { %1484 = vrot.lane.b32.xlu1 %v1441_v63, %s4736_s18  ;;  %964 = vst.msk [vmem:[#allocation2 + $0x128] sm:$0xff] %vm926_vm1, %v913_v61  ;;  %v818_v3 = vadd.f32 %v5320_v53, %v817_v0  ;;  %2448 = vrot.lane.b32.xlu0 %v1692_v52, %s4734_s17  ;;  %1574 = vst.msk [vmem:[#allocation4 + $0x188] sm:$0xff] %vm926_vm1, %v1556_v4  ;;  %v2275_v7 = vld [vmem:[#allocation3 + $0x1a8] sm:$0x1] }
 0x197   : > { %v819_v6 = vpop.f32.mrf.mxu0  ;;  %2292 = vst.msk [vmem:[#allocation4 + $0x158] sm:$0xff] %vm926_vm1, %v1556_v4  ;;  %v1442_v61 = vld [vmem:[#allocation3 + $0xe1] sm:$0xff] }
 0x198   : > { %1575 = vst.msk [vmem:[#allocation4 + $0x1a8] sm:$0x1] %vm1196_vm3, %v1557_v5  ;;  %v5342_v8 = vpop.permute.xlu1 %2086  ;;  %v914_v9 = vmax.f32 %v818_v3, 0.0  ;;  %2293 = vst.msk [vmem:[#allocation4 + $0x178] sm:$0x1] %vm1196_vm3, %v2275_v7  ;;  %v5345_v10 = vpop.permute.xlu0 %1372  ;;  %v1558_v15 = vld [vmem:[#allocation3 + $0x1b0] sm:$0xff] }
 0x199   : > { %v822_v11 = vpop.f32.mrf.mxu0  ;;  %v1118_v12 = vld [vmem:[#allocation2 + $0x120] sm:$0x3]  ;;  %1576 = vst.msk [vmem:[#allocation4 + $0x1c8] sm:$0xff] %vm926_vm1, %v1558_v15  ;;  %2294 = vst.msk [vmem:[#allocation4 + $0x198] sm:$0xff] %vm926_vm1, %v1558_v15 }
 0x19a   : > { %1984 = vrot.lane.b32.xlu1 %v5219_v20, %s4735_s14  ;;  %965 = vst.msk [vmem:[#allocation2 + $0x130] sm:$0xff] %vm926_vm1, %v914_v9  ;;  %v823_v14 = vadd.f32 %v5320_v53, %v822_v11  ;;  %1736 = vrot.lane.b32.xlu0 %v1694_v13, %s4734_s17  ;;  %v1559_v17 = vld [vmem:[#allocation3 + $0x1b8] sm:$0x1]  ;;  %v1223_v9 = vld [vmem:[#allocation3 + $0xe8] sm:$0x1] }
 0x19b   : > { %1121 = vst.msk [vmem:[#allocation3 + $0x1c8] sm:$0x3] %vm980_vm2, %v1118_v12  ;;  %v824_v16 = vpop.f32.mrf.mxu0  ;;  %v2277_v18 = vld [vmem:[#allocation3 + $0x1b8] sm:$0x1] }
 0x19c   : > { %v5355_v19 = vpop.permute.xlu1 %1370  ;;  %v915_v21 = vmax.f32 %v823_v14, 0.0  ;;  %1577 = vst.msk [vmem:[#allocation4 + $0x1e8] sm:$0x1] %vm1196_vm3, %v1559_v17  ;;  %2295 = vst.msk [vmem:[#allocation4 + $0x1b8] sm:$0x1] %vm1196_vm3, %v2277_v18  ;;  %v5359_v20 = vpop.permute.xlu0 %2092  ;;  %v1560_v26 = vld [vmem:[#allocation3 + $0x1c0] sm:$0xff] }
 0x19d   : > { %v1122_v22 = vld [vmem:[#allocation2 + $0x122] sm:$0xff]  ;;  %v1123_v23 = vld [vmem:[#allocation2 + $0x12a] sm:$0x3]  ;;  %v827_v24 = vpop.f32.mrf.mxu0  ;;  %1578 = vst.msk [vmem:[#allocation4 + $0x208] sm:$0xff] %vm926_vm1, %v1560_v26  ;;  %2296 = vst.msk [vmem:[#allocation4 + $0x1d8] sm:$0xff] %vm926_vm1, %v1560_v26 }
 0x19e   : > { %2200 = vrot.lane.b32.xlu1 %v5300_v38, %s4736_s18  ;;  %1125 = vst.msk [vmem:[#allocation3 + $0x1d0] sm:$0xff] %vm926_vm1, %v1122_v22  ;;  %966 = vst.msk [vmem:[#allocation2 + $0x138] sm:$0xff] %vm926_vm1, %v915_v21  ;;  %v828_v27 = vadd.f32 %v5320_v53, %v827_v24  ;;  %2452 = vrot.lane.b32.xlu0 %v1694_v13, %s4734_s17  ;;  %v1443_v18 = vld [vmem:[#allocation3 + $0xe9] sm:$0x1]  ;;  %v1700_v24 = vld [vmem:[#allocation3 + $0x1a1] sm:$0xff] }
 0x19f   : > { %1126 = vst.msk [vmem:[#allocation3 + $0x1d8] sm:$0x3] %vm980_vm2, %v1123_v23  ;;  %v829_v28 = vpop.f32.mrf.mxu0 }
 0x1a0   : > { %v5370_v29 = vpop.permute.xlu1 %2088  ;;  %v916_v30 = vmax.f32 %v828_v27, 0.0  ;;  %v5372_v31 = vpop.permute.xlu0 %1376 }
 0x1a1   : > { %v1127_v33 = vld [vmem:[#allocation2 + $0x12c] sm:$0xff]  ;;  %v832_v34 = vpop.f32.mrf.mxu0  ;;  %v1128_v38 = vld [vmem:[#allocation2 + $0x134] sm:$0x3] }
 0x1a2   : > { %1986 = vrot.lane.b32.xlu1 %v1945_v32, %s4735_s14  ;;  %1130 = vst.msk [vmem:[#allocation3 + $0x1e0] sm:$0xff] %vm926_vm1, %v1127_v33  ;;  %967 = vst.msk [vmem:[#allocation2 + $0x140] sm:$0xff] %vm926_vm1, %v916_v30  ;;  %v833_v39 = vadd.f32 %v5320_v53, %v832_v34  ;;  %1740 = vrot.lane.b32.xlu0 %v1696_v37, %s4734_s17  ;;  %v1561_v41 = vld [vmem:[#allocation3 + $0x1c8] sm:$0x1] }
 0x1a3   : > { %1131 = vst.msk [vmem:[#allocation3 + $0x1e8] sm:$0x3] %vm980_vm2, %v1128_v38  ;;  %v834_v40 = vpop.f32.mrf.mxu0  ;;  %v2279_v42 = vld [vmem:[#allocation3 + $0x1c8] sm:$0x1] }
 0x1a4   : > { %v5380_v43 = vpop.permute.xlu1 %1374  ;;  %v917_v44 = vmax.f32 %v833_v39, 0.0  ;;  %1579 = vst.msk [vmem:[#allocation4 + $0x228] sm:$0x1] %vm1196_vm3, %v1561_v41  ;;  %2297 = vst.msk [vmem:[#allocation4 + $0x1f8] sm:$0x1] %vm1196_vm3, %v2279_v42  ;;  %v5384_v45 = vpop.permute.xlu0 %2096 }
 0x1a5   : > { %v1132_v49 = vld [vmem:[#allocation2 + $0x136] sm:$0xff]  ;;  %v1133_v58 = vld [vmem:[#allocation2 + $0x13e] sm:$0x3]  ;;  %v837_v50 = vpop.f32.mrf.mxu0  ;;  %v2280_v52 = vld [vmem:[#allocation3 + $0x1d0] sm:$0xff] }
 0x1a6   : > { %2202 = vrot.lane.b32.xlu1 %v2161_v47, %s4736_s18  ;;  %968 = vst.msk [vmem:[#allocation2 + $0x148] sm:$0xff] %vm926_vm1, %v917_v44  ;;  %1135 = vst.msk [vmem:[#allocation3 + $0x1f0] sm:$0xff] %vm926_vm1, %v1132_v49  ;;  %v838_v51 = vadd.f32 %v5320_v53, %v837_v50  ;;  %v2281_v54 = vld [vmem:[#allocation3 + $0x1d8] sm:$0x1]  ;;  %2456 = vrot.lane.b32.xlu0 %v1696_v37, %s4734_s17  ;;  %v1947_v44 = vld [vmem:[#allocation3 + $0xe8] sm:$0x1] }
 0x1a7   : > { %1136 = vst.msk [vmem:[#allocation3 + $0x1f8] sm:$0x3] %vm980_vm2, %v1133_v58  ;;  %v839_v55 = vpop.f32.mrf.mxu0  ;;  %v1702_v58 = vld [vmem:[#allocation3 + $0x1b1] sm:$0xff] }
 0x1a8   : > { %2298 = vst.msk [vmem:[#allocation4 + $0x218] sm:$0xff] %vm926_vm1, %v2280_v52  ;;  %v5394_v56 = vpop.permute.xlu1 %2094  ;;  %v918_v57 = vmax.f32 %v838_v51, 0.0  ;;  %v5396_v59 = vpop.permute.xlu0 %1380  ;;  %v2163_v55 = vld [vmem:[#allocation3 + $0xe9] sm:$0x1] }
 0x1a9   : > { %2299 = vst.msk [vmem:[#allocation4 + $0x238] sm:$0x1] %vm1196_vm3, %v2281_v54  ;;  %v1137_v63 = vld [vmem:[#allocation2 + $0x140] sm:$0xff]  ;;  %v842_v0 = vpop.f32.mrf.mxu0  ;;  %vm3408_vm3 = vcmask 522240  }
 0x1aa   : > { %1486 = vrot.lane.b32.xlu1 %v1442_v61, %s4736_s18  ;;  %1140 = vst.msk [vmem:[#allocation3 + $0x200] sm:$0xff] %vm926_vm1, %v1137_v63  ;;  %969 = vst.msk [vmem:[#allocation2 + $0x150] sm:$0xff] %vm926_vm1, %v918_v57  ;;  %v843_v3 = vadd.f32 %v5320_v53, %v842_v0  ;;  %1744 = vrot.lane.b32.xlu0 %v1698_v2, %s4734_s17 }
 0x1ab   : > { %v844_v4 = vpop.f32.mrf.mxu0 }
 0x1ac   : > { %v5403_v5 = vpop.permute.xlu1 %1378  ;;  %v919_v6 = vmax.f32 %v843_v3, 0.0  ;;  %v5405_v7 = vpop.permute.xlu0 %2100  ;;  %v1444_v4 = vld [vmem:[#allocation3 + $0xf1] sm:$0xff] }
 0x1ad   : > { %v1138_v11 = vld [vmem:[#allocation2 + $0x148] sm:$0x3]  ;;  %v847_v12 = vpop.f32.mrf.mxu0 }
 0x1ae   : > { %1268 = vrot.lane.b32.xlu1 %v1223_v9, %s4735_s14  ;;  %1141 = vst.msk [vmem:[#allocation3 + $0x208] sm:$0x3] %vm980_vm2, %v1138_v11  ;;  %v848_v13 = vadd.f32 %v5320_v53, %v847_v12  ;;  %2460 = vrot.lane.b32.xlu0 %v1698_v2, %s4734_s17  ;;  %v1704_v9 = vld [vmem:[#allocation3 + $0x1c1] sm:$0xff]  ;;  %v1225_v12 = vld [vmem:[#allocation3 + $0xf8] sm:$0x1] }
 0x1af   : > { %970 = vst.msk [vmem:[#allocation2 + $0x158] sm:$0xff] %vm926_vm1, %v919_v6  ;;  %v849_v14 = vpop.f32.mrf.mxu0 }
 0x1b0   : > { %v5412_v15 = vpop.permute.xlu1 %2098  ;;  %v920_v16 = vmax.f32 %v848_v13, 0.0  ;;  %v5414_v17 = vpop.permute.xlu0 %1384  ;;  %v1705_v13 = vld [vmem:[#allocation3 + $0x1c9] sm:$0x1] }
 0x1b1   : > { %v1142_v21 = vld [vmem:[#allocation2 + $0x14a] sm:$0xff]  ;;  %v1143_v22 = vld [vmem:[#allocation2 + $0x152] sm:$0x3]  ;;  %v852_v23 = vpop.f32.mrf.mxu0 }
 0x1b2   : > { %1488 = vrot.lane.b32.xlu1 %v1443_v18, %s4736_s18  ;;  %1145 = vst.msk [vmem:[#allocation3 + $0x210] sm:$0xff] %vm926_vm1, %v1142_v21  ;;  %971 = vst.msk [vmem:[#allocation2 + $0x160] sm:$0xff] %vm926_vm1, %v920_v16  ;;  %1748 = vrot.lane.b32.xlu0 %v1700_v24, %s4734_s17  ;;  %v853_v26 = vadd.f32 %v5320_v53, %v852_v23  ;;  %v1445_v21 = vld [vmem:[#allocation3 + $0xf9] sm:$0x1] }
 0x1b3   : > { %1146 = vst.msk [vmem:[#allocation3 + $0x218] sm:$0x3] %vm980_vm2, %v1143_v22  ;;  %v854_v27 = vpop.f32.mrf.mxu0  ;;  %v1580_v22 = vld [vmem:[#allocation3 + $0x1e0] sm:$0xff] }
 0x1b4   : > { %v5422_v28 = vpop.permute.xlu1 %1382  ;;  %v5424_v30 = vpop.permute.xlu0 %2104  ;;  %v921_v34 = vmax.f32 %v853_v26, 0.0 }
 0x1b5   : > { %v857_v37 = vpop.f32.mrf.mxu0 }
 0x1b6   : > { %v1147_v32 = vld [vmem:[#allocation2 + $0x154] sm:$0xff]  ;;  %v1148_v33 = vld [vmem:[#allocation2 + $0x15c] sm:$0x3]  ;;  %2204 = vrot.lane.b32.xlu1 %v1442_v61, %s4736_s18  ;;  %v858_v38 = vadd.f32 %v5320_v53, %v857_v37  ;;  %2464 = vrot.lane.b32.xlu0 %v1700_v24, %s4734_s17  ;;  %972 = vst.msk [vmem:[#allocation2 + $0x168] sm:$0xff] %vm926_vm1, %v921_v34  ;;  %v1703_v61 = vld [vmem:[#allocation3 + $0x1b9] sm:$0x1] }
 0x1b7   : > { %1150 = vst.msk [vmem:[#allocation3 + $0x220] sm:$0xff] %vm926_vm1, %v1147_v32  ;;  %v859_v39 = vpop.f32.mrf.mxu0  ;;  %v1581_v24 = vld [vmem:[#allocation3 + $0x1e8] sm:$0x1]  ;;  %v1797_v32 = vld [vmem:[#allocation3 + $0x1e9] sm:$0x1] }
 0x1b8   : > { %1151 = vst.msk [vmem:[#allocation3 + $0x228] sm:$0x3] %vm980_vm2, %v1148_v33  ;;  %v5432_v40 = vpop.permute.xlu1 %2102  ;;  %v922_v41 = vmax.f32 %v858_v38, 0.0  ;;  %v5434_v42 = vpop.permute.xlu0 %1388  ;;  %v2165_v39 = vld [vmem:[#allocation3 + $0xf9] sm:$0x1] }
 0x1b9   : > { %v1152_v47 = vld [vmem:[#allocation2 + $0x15e] sm:$0xff]  ;;  %v1153_v49 = vld [vmem:[#allocation2 + $0x166] sm:$0x3]  ;;  %v862_v50 = vpop.f32.mrf.mxu0 }
 0x1ba   : > { %1990 = vrot.lane.b32.xlu1 %v1947_v44, %s4735_s14  ;;  %1155 = vst.msk [vmem:[#allocation3 + $0x230] sm:$0xff] %vm926_vm1, %v1152_v47  ;;  %973 = vst.msk [vmem:[#allocation2 + $0x170] sm:$0xff] %vm926_vm1, %v922_v41  ;;  %1752 = vrot.lane.b32.xlu0 %v1702_v58, %s4734_s17  ;;  %v863_v52 = vadd.f32 %v5320_v53, %v862_v50  ;;  %v1582_v44 = vld [vmem:[#allocation3 + $0x1f0] sm:$0xff]  ;;  %v1446_v50 = vld [vmem:[#allocation3 + $0x101] sm:$0xff] }
 0x1bb   : > { %1156 = vst.msk [vmem:[#allocation3 + $0x238] sm:$0x3] %vm980_vm2, %v1153_v49  ;;  %v864_v57 = vpop.f32.mrf.mxu0 }
 0x1bc   : > { %v5441_v51 = vpop.permute.xlu1 %1386  ;;  %v1251_v54 = vpop.permute.xlu0 %1250  ;;  %v923_v0 = vmax.f32 %v863_v52, 0.0  ;;  %v1583_v52 = vld [vmem:[#allocation3 + $0x1f8] sm:$0x1] }
 0x1bd   : > { %1305 = vst.msk [vmem:[#allocation4] sm:$0xff] %vm1304_vm4, %v1251_v54  ;;  %v1157_v63 = vld [vmem:[#allocation2 + $0x168] sm:$0xff]  ;;  %v867_v33 = vpop.f32.mrf.mxu0 }
 0x1be   : > { %2206 = vrot.lane.b32.xlu1 %v2163_v55, %s4736_s18  ;;  %1754 = vrot.lane.b32.xlu0 %v1703_v61, %s4734_s17  ;;  %1415 = vst.msk [vmem:[#allocation4] sm:$0xff] %vm1414_vm5, %v5285_v25  ;;  %v1227_v61 = vld [vmem:[#allocation3 + $0x108] sm:$0x1] }
 0x1bf   : > { %1160 = vst.msk [vmem:[#allocation3 + $0x240] sm:$0xff] %vm926_vm1, %v1157_v63  ;;  %974 = vst.msk [vmem:[#allocation2 + $0x178] sm:$0xff] %vm926_vm1, %v923_v0  ;;  %v869_v41 = vpop.f32.mrf.mxu0 }
 0x1c0   : > { %v5450_v2 = vpop.permute.xlu1 %1390  ;;  %v1253_v3 = vpop.permute.xlu0 %1252 }
 0x1c1   : > { %v1158_v6 = vld [vmem:[#allocation2 + $0x170] sm:$0x3]  ;;  %1307 = vst.msk [vmem:[#allocation4 + $0x20] sm:$0x1] %vm1306_vm6, %v1253_v3 }
 0x1c2   : > { %1490 = vrot.lane.b32.xlu1 %v1444_v4, %s4736_s18  ;;  %1161 = vst.msk [vmem:[#allocation3 + $0x248] sm:$0x3] %vm980_vm2, %v1158_v6  ;;  %1756 = vrot.lane.b32.xlu0 %v1704_v9, %s4734_s17  ;;  %v2301_v9 = vld [vmem:[#allocation3 + $0x1f8] sm:$0x1] }
 0x1c3   : > { %1417 = vst.msk [vmem:[#allocation4 + $0x20] sm:$0x1] %vm1416_vm7, %v5298_v36 }
 0x1c4   : > { %v5459_v25 = vpop.permute.xlu1 %1392  ;;  %v1255_v11 = vpop.permute.xlu0 %1254 }
 0x1c5   : > { %1308 = vst.msk [vmem:[#allocation4 + $0x40] sm:$0xff] %vm1304_vm4, %v1255_v11 }
 0x1c6   : > { %1272 = vrot.lane.b32.xlu1 %v1225_v12, %s4735_s14  ;;  %1758 = vrot.lane.b32.xlu0 %v1705_v13, %s4734_s17  ;;  %1418 = vst.msk [vmem:[#allocation4 + $0x40] sm:$0xff] %vm1414_vm5, %v5310_v46  ;;  %v1162_v14 = vld [vmem:[#allocation2 + $0x172] sm:$0xff]  ;;  %v1163_v16 = vld [vmem:[#allocation2 + $0x17a] sm:$0x3]  ;;  %v2517_v13 = vld [vmem:[#allocation3 + $0x1f9] sm:$0x1] }
 0x1c7   : > { %1165 = vst.msk [vmem:[#allocation3 + $0x250] sm:$0xff] %vm926_vm1, %v1162_v14 }
 0x1c8   : > { %v5466_v18 = vpop.permute.xlu1 %1394  ;;  %1166 = vst.msk [vmem:[#allocation3 + $0x258] sm:$0x3] %vm980_vm2, %v1163_v16  ;;  %v1257_v36 = vpop.permute.xlu0 %1256  ;;  %v1584_v16 = vld [vmem:[#allocation3 + $0x200] sm:$0xff] }
 0x1c9   : > { %1309 = vst.msk [vmem:[#allocation4 + $0x60] sm:$0x1] %vm1306_vm6, %v1257_v36 }
 0x1ca   : > { %1492 = vrot.lane.b32.xlu1 %v1445_v21, %s4736_s18  ;;  %1616 = vrot.lane.b32.xlu0 %v1580_v22, %s4735_s14  ;;  %1419 = vst.msk [vmem:[#allocation4 + $0x60] sm:$0x1] %vm1416_vm7, %v5296_v35  ;;  %v1949_v35 = vld [vmem:[#allocation3 + $0xf8] sm:$0x1]  ;;  %v1951_v21 = vld [vmem:[#allocation3 + $0x108] sm:$0x1] }
 0x1cc   : > { %v1471_v46 = vpop.permute.xlu1 %1470  ;;  %v1979_v23 = vpop.permute.xlu0 %1978 }
 0x1cd   : > { %1525 = vst.msk [vmem:[#allocation4] sm:$0xff] %vm1524_vm8, %v1471_v46 }
 0x1ce   : > { %2031 = vst.msk [vmem:[#allocation4 + $0x30] sm:$0x1] %vm1306_vm6, %v1979_v23  ;;  %2208 = vrot.lane.b32.xlu1 %v1444_v4, %s4736_s18  ;;  %1618 = vrot.lane.b32.xlu0 %v1581_v24, %s4735_s14 }
 0x1cf   : > { %2139 = vst.msk [vmem:[#allocation4 + $0x30] sm:$0x1] %vm1416_vm7, %v5342_v8  ;;  %v868_v8 = vadd.f32 %v5320_v53, %v867_v33 }
 0x1d0   : > { %v1473_v26 = vpop.permute.xlu1 %1472  ;;  %v1981_v27 = vpop.permute.xlu0 %1980 }
 0x1d1   : > { %1527 = vst.msk [vmem:[#allocation4 + $0x20] sm:$0x1] %vm1526_vm9, %v1473_v26  ;;  %v924_v47 = vmax.f32 %v868_v8, 0.0  ;;  %v5534_v26 = vld [vmem:[#allocation3 + $0x111] sm:$0xff]  ;;  %v1449_v8 = vld [vmem:[#allocation3 + $0x119] sm:$0x1] }
 0x1d2   : > { %2032 = vst.msk [vmem:[#allocation4 + $0x50] sm:$0xff] %vm1304_vm4, %v1981_v27  ;;  %1994 = vrot.lane.b32.xlu1 %v1949_v35, %s4735_s14  ;;  %1834 = vrot.lane.b32.xlu0 %v1797_v32, %s4736_s18  ;;  %v1229_v35 = vld [vmem:[#allocation3 + $0x118] sm:$0x1]  ;;  %v5547_v32 = vld [vmem:[#allocation3 + $0x201] sm:$0xff] }
 0x1d3   : > { %2140 = vst.msk [vmem:[#allocation4 + $0x50] sm:$0xff] %vm1414_vm5, %v5370_v29 }
 0x1d4   : > { %v2624_v34 = vld [vmem:[#allocation4] sm:$0xff]  ;;  %v1475_v37 = vpop.permute.xlu1 %1474  ;;  %v1983_v38 = vpop.permute.xlu0 %1982  ;;  %975 = vst.msk [vmem:[#allocation2 + $0x180] sm:$0xff] %vm926_vm1, %v924_v47  ;;  %v2303_v47 = vld [vmem:[#allocation3 + $0x208] sm:$0x1] }
 0x1d5   : > { %2632 = vst [vmem:[#allocation5 + $0xb0] sm:$0xff] %v2624_v34  ;;  %1528 = vst.msk [vmem:[#allocation4 + $0x40] sm:$0xff] %vm1524_vm8, %v1475_v37 }
 0x1d6   : > { %2033 = vst.msk [vmem:[#allocation4 + $0x70] sm:$0x1] %vm1306_vm6, %v1983_v38  ;;  %2210 = vrot.lane.b32.xlu1 %v2165_v39, %s4736_s18  ;;  %1620 = vrot.lane.b32.xlu0 %v1582_v44, %s4735_s14 }
 0x1d7   : > { %2141 = vst.msk [vmem:[#allocation4 + $0x70] sm:$0x1] %vm1416_vm7, %v5332_v62 }
 0x1d8   : > { %v2628_v29 = vld [vmem:[#allocation4 + $0x20] sm:$0x1]  ;;  %v1477_v49 = vpop.permute.xlu1 %1476  ;;  %v1263_v58 = vpop.permute.xlu0 %1262 }
 0x1d9   : > { %2636 = vst [vmem:[#allocation5 + $0x120] sm:$0x1] %v2628_v29  ;;  %1529 = vst.msk [vmem:[#allocation4 + $0x60] sm:$0x1] %vm1526_vm9, %v1477_v49 }
 0x1da   : > { %1312 = vst.msk [vmem:[#allocation4 + $0xc0] sm:$0xff] %vm1304_vm4, %v1263_v58  ;;  %1494 = vrot.lane.b32.xlu1 %v1446_v50, %s4736_s18  ;;  %1622 = vrot.lane.b32.xlu0 %v1583_v52, %s4735_s14  ;;  %v1586_v52 = vld [vmem:[#allocation3 + $0x210] sm:$0xff] }
 0x1db   : > { %1422 = vst.msk [vmem:[#allocation4 + $0xc0] sm:$0xff] %vm1414_vm5, %v5345_v10  ;;  %v1167_v10 = vld [vmem:[#allocation2 + $0x17c] sm:$0xff]  ;;  %v1168_v63 = vld [vmem:[#allocation2 + $0x184] sm:$0x3] }
 0x1dc   : > { %v2641_v62 = vld [vmem:[#allocation4 + $0x40] sm:$0xff]  ;;  %v1977_v54 = vpop.permute.xlu1 %1976  ;;  %v1267_v57 = vpop.permute.xlu0 %1266  ;;  %1170 = vst.msk [vmem:[#allocation3 + $0x260] sm:$0xff] %vm926_vm1, %v1167_v10  ;;  %v1231_v10 = vld [vmem:[#allocation3 + $0x128] sm:$0x1] }
 0x1dd   : > { %v2658_v55 = vrot.slane %v2641_v62, 7  ;;  %2030 = vst.msk [vmem:[#allocation4 + $0x10] sm:$0xff] %vm1304_vm4, %v1977_v54  ;;  %1314 = vst.msk [vmem:[#allocation4 + $0x100] sm:$0xff] %vm1304_vm4, %v1267_v57 }
 0x1de   : > { %2138 = vst.msk [vmem:[#allocation4 + $0x10] sm:$0xff] %vm1414_vm5, %v5328_v60  ;;  %1276 = vrot.lane.b32.xlu1 %v1227_v61, %s4735_s14  ;;  %1424 = vst.msk [vmem:[#allocation4 + $0x100] sm:$0xff] %vm1414_vm5, %v5372_v31  ;;  %2336 = vrot.lane.b32.xlu0 %v1582_v44, %s4735_s14  ;;  %v1447_v60 = vld [vmem:[#allocation3 + $0x109] sm:$0x1]  ;;  %v5563_v44 = vld [vmem:[#allocation3 + $0x120] sm:$0xff] }
 0x1df   : > { %2678 = vst [vmem:[#allocation5 + $0x120] sm:$0xfe] %v2658_v55  ;;  %1171 = vst.msk [vmem:[#allocation3 + $0x268] sm:$0x3] %vm980_vm2, %v1168_v63  ;;  %v1802_v63 = vld [vmem:[#allocation3 + $0x211] sm:$0xff] }
 0x1e0   : > { %v2645_v0 = vld [vmem:[#allocation4 + $0x60] sm:$0x1]  ;;  %v2193_v3 = vpop.permute.xlu1 %2192  ;;  %v1989_v6 = vpop.permute.xlu0 %1988 }
 0x1e1   : > { %v2662_v4 = vrot.slane %v2645_v0, 7  ;;  %2246 = vst.msk [vmem:[#allocation4 + $0x10] sm:$0xff] %vm1524_vm8, %v2193_v3 }
 0x1e2   : > { %2036 = vst.msk [vmem:[#allocation4 + $0xd0] sm:$0xff] %vm1304_vm4, %v1989_v6  ;;  %1496 = vrot.lane.b32.xlu1 %v1447_v60, %s4736_s18  ;;  %2338 = vrot.lane.b32.xlu0 %v2301_v9, %s4735_s14  ;;  %v1451_v60 = vld [vmem:[#allocation3 + $0x129] sm:$0x1]  ;;  %v1587_v9 = vld [vmem:[#allocation3 + $0x218] sm:$0x1] }
 0x1e3   : > { %2144 = vst.msk [vmem:[#allocation4 + $0xd0] sm:$0xff] %vm1414_vm5, %v5384_v45  ;;  %v2663_v31 = vsel %vm2657_vm10, %v2658_v55, %v2662_v4 }
 0x1e4   : > { %v2195_v11 = vpop.permute.xlu1 %2194  ;;  %2682 = vst [vmem:[#allocation5 + $0x80] sm:$0x3] %v2663_v31  ;;  %v1271_v12 = vpop.permute.xlu0 %1270 }
 0x1e5   : > { %2247 = vst.msk [vmem:[#allocation4 + $0x30] sm:$0x1] %vm1526_vm9, %v2195_v11 }
 0x1e6   : > { %1316 = vst.msk [vmem:[#allocation4 + $0x140] sm:$0xff] %vm1304_vm4, %v1271_v12  ;;  %2212 = vrot.lane.b32.xlu1 %v1446_v50, %s4736_s18  ;;  %2554 = vrot.lane.b32.xlu0 %v2517_v13, %s4736_s18  ;;  %v5572_v50 = vld [vmem:[#allocation3 + $0x121] sm:$0xff] }
 0x1e7   : > { %1426 = vst.msk [vmem:[#allocation4 + $0x140] sm:$0xff] %vm1414_vm5, %v5396_v59  ;;  %v872_v59 = vpop.f32.mrf.mxu0 }
 0x1e8   : > { %v2626_v45 = vld [vmem:[#allocation4 + $0x10] sm:$0xff]  ;;  %v1259_v14 = vpop.permute.xlu1 %1258  ;;  %v1993_v36 = vpop.permute.xlu0 %1992  ;;  %v873_v23 = vadd.f32 %v5320_v53, %v872_v59 }
 0x1e9   : > { %2634 = vst [vmem:[#allocation5 + $0x10] sm:$0xff] %v2626_v45  ;;  %1310 = vst.msk [vmem:[#allocation4 + $0x80] sm:$0xff] %vm1304_vm4, %v1259_v14  ;;  %v874_v27 = vpop.f32.mrf.mxu0  ;;  %v1688_v14 = vld [vmem:[#allocation3 + $0x141] sm:$0xff] }
 0x1ea   : > { %2038 = vst.msk [vmem:[#allocation4 + $0x110] sm:$0xff] %vm1304_vm4, %v1993_v36  ;;  %1998 = vrot.lane.b32.xlu1 %v1951_v21, %s4735_s14  ;;  %1624 = vrot.lane.b32.xlu0 %v1584_v16, %s4735_s14  ;;  %v1689_v36 = vld [vmem:[#allocation3 + $0x149] sm:$0x1] }
 0x1eb   : > { %1420 = vst.msk [vmem:[#allocation4 + $0x80] sm:$0xff] %vm1414_vm5, %v5313_v48  ;;  %2146 = vst.msk [vmem:[#allocation4 + $0x110] sm:$0xff] %vm1414_vm5, %v5405_v7  ;;  %v925_v48 = vmax.f32 %v873_v23, 0.0  ;;  %v1691_v23 = vld [vmem:[#allocation3 + $0x159] sm:$0x1] }
 0x1ec   : > { %v2630_v22 = vld [vmem:[#allocation4 + $0x30] sm:$0x1]  ;;  %v1479_v46 = vpop.permute.xlu1 %1478  ;;  %v1275_v24 = vpop.permute.xlu0 %1274 }
 0x1ed   : > { %2638 = vst [vmem:[#allocation5 + $0xf8] sm:$0x1] %v2630_v22  ;;  %1530 = vst.msk [vmem:[#allocation4 + $0x80] sm:$0xff] %vm1524_vm8, %v1479_v46 }
 0x1ee   : > { %1318 = vst.msk [vmem:[#allocation4 + $0x180] sm:$0xff] %vm1304_vm4, %v1275_v24  ;;  %1498 = vrot.lane.b32.xlu1 %v5534_v26, %s4736_s18  ;;  %2340 = vrot.lane.b32.xlu0 %v1584_v16, %s4735_s14  ;;  %v2305_v24 = vld [vmem:[#allocation3 + $0x218] sm:$0x1] }
 0x1ef   : > { %1428 = vst.msk [vmem:[#allocation4 + $0x180] sm:$0xff] %vm1414_vm5, %v5414_v17 }
 0x1f0   : > { %v1261_v7 = vpop.permute.xlu1 %1260  ;;  %976 = vst.msk [vmem:[#allocation2 + $0x188] sm:$0xff] %vm926_vm1, %v925_v48  ;;  %v1997_v53 = vpop.permute.xlu0 %1996 }
 0x1f1   : > { %1311 = vst.msk [vmem:[#allocation4 + $0xa0] sm:$0x1] %vm1306_vm6, %v1261_v7  ;;  %v2409_v7 = vld [vmem:[#allocation3 + $0x159] sm:$0x1] }
 0x1f2   : > { %2040 = vst.msk [vmem:[#allocation4 + $0x150] sm:$0xff] %vm1304_vm4, %v1997_v53  ;;  %1280 = vrot.lane.b32.xlu1 %v1229_v35, %s4735_s14  ;;  %1840 = vrot.lane.b32.xlu0 %v5547_v32, %s4736_s18  ;;  %v1588_v53 = vld [vmem:[#allocation3 + $0x220] sm:$0xff] }
 0x1f3   : > { %1421 = vst.msk [vmem:[#allocation4 + $0xa0] sm:$0x1] %vm1416_vm7, %v5355_v19  ;;  %v1585_v19 = vld [vmem:[#allocation3 + $0x208] sm:$0x1] }
 0x1f4   : > { %2148 = vst.msk [vmem:[#allocation4 + $0x150] sm:$0xff] %vm1414_vm5, %v5424_v30  ;;  %v2687_v17 = vld [vmem:[#allocation4 + $0x80] sm:$0xff]  ;;  %v1481_v33 = vpop.permute.xlu1 %1480  ;;  %v1279_v37 = vpop.permute.xlu0 %1278 }
 0x1f5   : > { %v2704_v34 = vrot.slane %v2687_v17, 6  ;;  %1531 = vst.msk [vmem:[#allocation4 + $0xa0] sm:$0x1] %vm1526_vm9, %v1481_v33 }
 0x1f6   : > { %1320 = vst.msk [vmem:[#allocation4 + $0x1c0] sm:$0xff] %vm1304_vm4, %v1279_v37  ;;  %1500 = vrot.lane.b32.xlu1 %v1449_v8, %s4736_s18  ;;  %1626 = vrot.lane.b32.xlu0 %v1585_v19, %s4735_s14  ;;  %v1693_v37 = vld [vmem:[#allocation3 + $0x169] sm:$0x1]  ;;  %v1804_v8 = vld [vmem:[#allocation3 + $0x221] sm:$0xff] }
 0x1f7   : > { %2724 = vst [vmem:[#allocation5 + $0x80] sm:$0xfc] %v2704_v34  ;;  %1430 = vst.msk [vmem:[#allocation4 + $0x1c0] sm:$0xff] %vm1414_vm5, %v5434_v42  ;;  %v1172_v30 = vld [vmem:[#allocation2 + $0x186] sm:$0xff]  ;;  %v1173_v38 = vld [vmem:[#allocation2 + $0x18e] sm:$0x3] }
 0x1f8   : > { %v2197_v39 = vpop.permute.xlu1 %2196  ;;  %1175 = vst.msk [vmem:[#allocation3 + $0x270] sm:$0xff] %vm926_vm1, %v1172_v30  ;;  %v2001_v41 = vpop.permute.xlu0 %2000  ;;  %v2411_v30 = vld [vmem:[#allocation3 + $0x169] sm:$0x1]  ;;  %vm2933_vm1 = vcmask 1046528  }
 0x1f9   : > { %1176 = vst.msk [vmem:[#allocation3 + $0x278] sm:$0x3] %vm980_vm2, %v1173_v38  ;;  %v1589_v38 = vld [vmem:[#allocation3 + $0x228] sm:$0x1]  ;;  %vm3355_vm2 = vcmask 516096  }
 0x1fa   : > { %2248 = vst.msk [vmem:[#allocation4 + $0x50] sm:$0xff] %vm1524_vm8, %v2197_v39  ;;  %1282 = vrot.lane.b32.xlu1 %v5563_v44, %s4735_s14  ;;  %2342 = vrot.lane.b32.xlu0 %v2303_v47, %s4735_s14  ;;  %v3054_v39 = vld [vmem:[%s6692_s3 + $0xf8] sm:$0xff] }
 0x1fb   : > { %2042 = vst.msk [vmem:[#allocation4 + $0x190] sm:$0xff] %vm1304_vm4, %v2001_v41  ;;  %4421 = vmatprep.subr.mxu1 %v3054_v39  ;;  %v1699_v39 = vld [vmem:[#allocation3 + $0x199] sm:$0x1] }
 0x1fc   : > { %v2691_v42 = vld [vmem:[#allocation4 + $0xa0] sm:$0x1]  ;;  %v2199_v29 = vpop.permute.xlu1 %2198  ;;  %v5569_v58 = vpop.permute.xlu0 %1728 }
 0x1fd   : > { %v2708_v49 = vrot.slane %v2691_v42, 6  ;;  %2249 = vst.msk [vmem:[#allocation4 + $0x70] sm:$0x1] %vm1526_vm9, %v2199_v29  ;;  %v3038_v42 = vld [vmem:[%s6692_s3 + $0x78] sm:$0xff] }
 0x1fe   : > { %1502 = vrot.lane.b32.xlu1 %v5572_v50, %s4736_s18  ;;  %1628 = vrot.lane.b32.xlu0 %v1586_v52, %s4735_s14 }
 0x1ff   : > { %v2709_v62 = vsel %vm2703_vm11, %v2704_v34, %v2708_v49  ;;  %4422 = vmatpush3.msra.mxu1 %v3038_v42  ;;  %v3029_v42 = vld [vmem:[%s6692_s3 + $0x30] sm:$0xff] }
 0x200   : > { %v1483_v55 = vpop.permute.xlu1 %1482  ;;  %2728 = vst [vmem:[#allocation5 + $0x18] sm:$0x7] %v2709_v62  ;;  %v5578_v61 = vpop.permute.xlu0 %2444  ;;  %v3053_v62 = vld [vmem:[%s6692_s3 + $0xf0] sm:$0xff] }
 0x201   : > { %v2643_v54 = vld [vmem:[#allocation4 + $0x50] sm:$0xff]  ;;  %1532 = vst.msk [vmem:[#allocation4 + $0xc0] sm:$0xff] %vm1524_vm8, %v1483_v55  ;;  %4423 = vmatprep.subr.mxu1 %v3053_v62  ;;  %v3052_v55 = vld [vmem:[%s6692_s3 + $0xe8] sm:$0xff] }
 0x202   : > { %v2660_v57 = vrot.slane %v2643_v54, 7  ;;  %1284 = vrot.lane.b32.xlu1 %v1231_v10, %s4735_s14  ;;  %1844 = vrot.lane.b32.xlu0 %v1802_v63, %s4736_s18  ;;  %v3037_v54 = vld [vmem:[%s6692_s3 + $0x70] sm:$0xff]  ;;  %v3028_v62 = vld [vmem:[%s6692_s3 + $0x28] sm:$0xff] }
 0x203   : > { %4424 = vmatpush3.msra.mxu1 %v3037_v54 }
 0x204   : > { %2680 = vst [vmem:[#allocation5 + $0xf8] sm:$0xfe] %v2660_v57  ;;  %v2647_v0 = vld [vmem:[#allocation4 + $0x70] sm:$0x1]  ;;  %v1265_v3 = vpop.permute.xlu1 %1264  ;;  %v5583_v6 = vpop.permute.xlu0 %1732  ;;  %4425 = vmatprep.subr.mxu1 %v3052_v55  ;;  %v2417_v55 = vld [vmem:[#allocation3 + $0x199] sm:$0x1] }
 0x205   : > { %v2666_v4 = vrot.slane %v2647_v0, 7  ;;  %1313 = vst.msk [vmem:[#allocation4 + $0xe0] sm:$0x1] %vm1306_vm6, %v1265_v3 }
 0x206   : > { %1423 = vst.msk [vmem:[#allocation4 + $0xe0] sm:$0x1] %vm1416_vm7, %v5380_v43  ;;  %1504 = vrot.lane.b32.xlu1 %v1451_v60, %s4736_s18  ;;  %1630 = vrot.lane.b32.xlu0 %v1587_v9, %s4735_s14  ;;  %v3051_v60 = vld [vmem:[%s6692_s3 + $0xe0] sm:$0xff] }
 0x207   : > { %v2667_v31 = vsel %vm2657_vm10, %v2660_v57, %v2666_v4  ;;  %v2413_v4 = vld [vmem:[#allocation3 + $0x179] sm:$0x1]  ;;  %v3035_v9 = vld [vmem:[%s6692_s3 + $0x60] sm:$0xff] }
 0x208   : > { %v2733_v11 = vld [vmem:[#allocation4 + $0xc0] sm:$0xff]  ;;  %v1485_v12 = vpop.permute.xlu1 %1484  ;;  %2684 = vst [vmem:[#allocation5 + $0x138] sm:$0x3] %v2667_v31  ;;  %v5591_v45 = vpop.permute.xlu0 %2448  ;;  %v3050_v31 = vld [vmem:[%s6692_s3 + $0xd8] sm:$0xff] }
 0x209   : > { %v2750_v13 = vrot.slane %v2733_v11, 5  ;;  %1533 = vst.msk [vmem:[#allocation4 + $0xe0] sm:$0x1] %vm1526_vm9, %v1485_v12  ;;  %v3034_v12 = vld [vmem:[%s6692_s3 + $0x58] sm:$0xff] }
 0x20a   : > { %1724 = vrot.lane.b32.xlu1 %v1688_v14, %s4734_s17  ;;  %2344 = vrot.lane.b32.xlu0 %v1586_v52, %s4735_s14  ;;  %v1695_v52 = vld [vmem:[#allocation3 + $0x179] sm:$0x1]  ;;  %v1697_v14 = vld [vmem:[#allocation3 + $0x189] sm:$0x1] }
 0x20b   : > { %2770 = vst [vmem:[#allocation5 + $0x18] sm:$0xf8] %v2750_v13 }
 0x20c   : > { %v1985_v43 = vpop.permute.xlu1 %1984  ;;  %v5596_v16 = vpop.permute.xlu0 %1736 }
 0x20d   : > { %2034 = vst.msk [vmem:[#allocation4 + $0x90] sm:$0xff] %vm1304_vm4, %v1985_v43  ;;  %v3049_v43 = vld [vmem:[%s6692_s3 + $0xd0] sm:$0xff] }
 0x20e   : > { %2142 = vst.msk [vmem:[#allocation4 + $0x90] sm:$0xff] %vm1414_vm5, %v5359_v20  ;;  %1726 = vrot.lane.b32.xlu1 %v1689_v36, %s4734_s17  ;;  %2560 = vrot.lane.b32.xlu0 %v1802_v63, %s4736_s18  ;;  %v2307_v36 = vld [vmem:[#allocation3 + $0x228] sm:$0x1] }
 0x210   : > { %v2737_v21 = vld [vmem:[#allocation4 + $0xe0] sm:$0x1]  ;;  %v2201_v59 = vpop.permute.xlu1 %2200  ;;  %v5603_v46 = vpop.permute.xlu0 %2452 }
 0x211   : > { %v2754_v22 = vrot.slane %v2737_v21, 5  ;;  %2250 = vst.msk [vmem:[#allocation4 + $0x90] sm:$0xff] %vm1524_vm8, %v2201_v59  ;;  %v3033_v21 = vld [vmem:[%s6692_s3 + $0x50] sm:$0xff]  ;;  %v3048_v59 = vld [vmem:[%s6692_s3 + $0xc8] sm:$0xff] }
 0x212   : > { %1730 = vrot.lane.b32.xlu1 %v1691_v23, %s4734_s17  ;;  %2346 = vrot.lane.b32.xlu0 %v2305_v24, %s4735_s14  ;;  %v3032_v24 = vld [vmem:[%s6692_s3 + $0x48] sm:$0xff] }
 0x213   : > { %v2755_v20 = vsel %vm2749_vm12, %v2750_v13, %v2754_v22 }
 0x214   : > { %v1987_v27 = vpop.permute.xlu1 %1986  ;;  %2774 = vst [vmem:[#allocation5 + $0x128] sm:$0xf] %v2755_v20  ;;  %v5609_v48 = vpop.permute.xlu0 %1740 }
 0x215   : > { %2035 = vst.msk [vmem:[#allocation4 + $0xb0] sm:$0x1] %vm1306_vm6, %v1987_v27 }
 0x216   : > { %2143 = vst.msk [vmem:[#allocation4 + $0xb0] sm:$0x1] %vm1416_vm7, %v5394_v56  ;;  %2446 = vrot.lane.b32.xlu1 %v2409_v7, %s4734_s17  ;;  %1632 = vrot.lane.b32.xlu0 %v1588_v53, %s4735_s14  ;;  %v2415_v7 = vld [vmem:[#allocation3 + $0x189] sm:$0x1] }
 0x218   : > { %v2689_v35 = vld [vmem:[#allocation4 + $0x90] sm:$0xff]  ;;  %v2203_v17 = vpop.permute.xlu1 %2202  ;;  %v5616_v34 = vpop.permute.xlu0 %2456 }
 0x219   : > { %v2706_v33 = vrot.slane %v2689_v35, 6  ;;  %2251 = vst.msk [vmem:[#allocation4 + $0xb0] sm:$0x1] %vm1526_vm9, %v2203_v17  ;;  %v1590_v35 = vld [vmem:[#allocation3 + $0x230] sm:$0xff] }
 0x21a   : > { %1734 = vrot.lane.b32.xlu1 %v1693_v37, %s4734_s17  ;;  %1848 = vrot.lane.b32.xlu0 %v1804_v8, %s4736_s18  ;;  %v3031_v17 = vld [vmem:[%s6692_s3 + $0x40] sm:$0xff] }
 0x21b   : > { %2726 = vst [vmem:[#allocation5 + $0x138] sm:$0xfc] %v2706_v33 }
 0x21c   : > { %v1487_v56 = vpop.permute.xlu1 %1486  ;;  %v5621_v19 = vpop.permute.xlu0 %1744 }
 0x21d   : > { %1534 = vst.msk [vmem:[#allocation4 + $0x100] sm:$0xff] %vm1524_vm8, %v1487_v56 }
 0x21e   : > { %2450 = vrot.lane.b32.xlu1 %v2411_v30, %s4734_s17  ;;  %1634 = vrot.lane.b32.xlu0 %v1589_v38, %s4735_s14 }
 0x220   : > { %v2693_v41 = vld [vmem:[#allocation4 + $0xb0] sm:$0x1]  ;;  %v1269_v47 = vpop.permute.xlu1 %1268  ;;  %v5632_v49 = vpop.permute.xlu0 %2460 }
 0x221   : > { %v2712_v29 = vrot.slane %v2693_v41, 6  ;;  %1315 = vst.msk [vmem:[#allocation4 + $0x120] sm:$0x1] %vm1306_vm6, %v1269_v47  ;;  %v3045_v41 = vld [vmem:[%s6692_s3 + $0xb0] sm:$0xff]  ;;  %v1806_v47 = vld [vmem:[#allocation3 + $0x231] sm:$0xff] }
 0x222   : > { %1425 = vst.msk [vmem:[#allocation4 + $0x120] sm:$0x1] %vm1416_vm7, %v5403_v5  ;;  %1738 = vrot.lane.b32.xlu1 %v1695_v52, %s4734_s17  ;;  %2348 = vrot.lane.b32.xlu0 %v1588_v53, %s4735_s14  ;;  %v3036_v5 = vld [vmem:[%s6692_s3 + $0x68] sm:$0xff]  ;;  %v3047_v53 = vld [vmem:[%s6692_s3 + $0xc0] sm:$0xff] }
 0x223   : > { %v2713_v57 = vsel %vm2703_vm11, %v2706_v33, %v2712_v29  ;;  %4426 = vmatpush3.msra.mxu1 %v3036_v5  ;;  %v3046_v33 = vld [vmem:[%s6692_s3 + $0xb8] sm:$0xff]  ;;  %v3044_v29 = vld [vmem:[%s6692_s3 + $0xa8] sm:$0xff] }
 0x224   : > { %v2779_v10 = vld [vmem:[#allocation4 + $0x100] sm:$0xff]  ;;  %v1489_v63 = vpop.permute.xlu1 %1488  ;;  %2730 = vst [vmem:[#allocation5 + $0x70] sm:$0x7] %v2713_v57  ;;  %v5652_v3 = vpop.permute.xlu0 %1748  ;;  %4427 = vmatprep.subr.mxu1 %v3051_v60  ;;  %v3043_v57 = vld [vmem:[%s6692_s3 + $0xa0] sm:$0xff]  ;;  %v3042_v5 = vld [vmem:[%s6692_s3 + $0x98] sm:$0xff] }
 0x225   : > { %v2796_v0 = vrot.slane %v2779_v10, 4  ;;  %1535 = vst.msk [vmem:[#allocation4 + $0x120] sm:$0x1] %vm1526_vm9, %v1489_v63  ;;  %4428 = vmatpush3.msra.mxu1 %v3035_v9  ;;  %v1591_v10 = vld [vmem:[#allocation3 + $0x238] sm:$0x1]  ;;  %v3027_v63 = vld [vmem:[%s6692_s3 + $0x20] sm:$0xff] }
 0x226   : > { %2454 = vrot.lane.b32.xlu1 %v2413_v4, %s4734_s17  ;;  %2564 = vrot.lane.b32.xlu0 %v1804_v8, %s4736_s18  ;;  %v3026_v60 = vld [vmem:[%s6692_s3 + $0x18] sm:$0xff] }
 0x227   : > { %2816 = vst [vmem:[#allocation5 + $0x128] sm:$0xf0] %v2796_v0  ;;  %4429 = vmatprep.subr.mxu1 %v3050_v31 }
 0x228   : > { %v2205_v11 = vpop.permute.xlu1 %2204  ;;  %v5669_v13 = vpop.permute.xlu0 %2464  ;;  %4430 = vmatpush3.msra.mxu1 %v3034_v12  ;;  %v3041_v12 = vld [vmem:[%s6692_s3 + $0x90] sm:$0xff] }
 0x229   : > { %2252 = vst.msk [vmem:[#allocation4 + $0xd0] sm:$0xff] %vm1524_vm8, %v2205_v11  ;;  %4431 = vmatprep.subr.mxu1 %v3049_v43  ;;  %v1701_v11 = vld [vmem:[#allocation3 + $0x1a9] sm:$0x1]  ;;  %v3040_v43 = vld [vmem:[%s6692_s3 + $0x88] sm:$0xff] }
 0x22a   : > { %1742 = vrot.lane.b32.xlu1 %v1697_v14, %s4734_s17  ;;  %2350 = vrot.lane.b32.xlu0 %v2307_v36, %s4735_s14  ;;  %v3025_v14 = vld [vmem:[%s6692_s3 + $0x10] sm:$0xff] }
 0x22b   : > { %4432 = vmatpush3.msra.mxu1 %v3033_v21 }
 0x22c   : > { %v2783_v22 = vld [vmem:[#allocation4 + $0x120] sm:$0x1]  ;;  %v1991_v23 = vpop.permute.xlu1 %1990  ;;  %4433 = vmatprep.subr.mxu1 %v3048_v59  ;;  %v5686_v27 = vpop.permute.xlu0 %1752 }
 0x22d   : > { %v2800_v20 = vrot.slane %v2783_v22, 4  ;;  %2037 = vst.msk [vmem:[#allocation4 + $0xf0] sm:$0x1] %vm1306_vm6, %v1991_v23  ;;  %4434 = vmatpush3.msra.mxu1 %v3032_v24  ;;  %v2419_v24 = vld [vmem:[#allocation3 + $0x1a9] sm:$0x1] }
 0x22e   : > { %2145 = vst.msk [vmem:[#allocation4 + $0xf0] sm:$0x1] %vm1416_vm7, %v5412_v15  ;;  %2458 = vrot.lane.b32.xlu1 %v2415_v7, %s4734_s17  ;;  %4435 = vmatprep.subr.mxu1 %v3047_v53  ;;  %v3030_v15 = vld [vmem:[%s6692_s3 + $0x38] sm:$0xff]  ;;  %v3023_v7 = vld [vmem:[%s6692_s3] sm:$0xff] }
 0x22f   : > { %1636 = vrot.lane.b32.xlu0 %v1590_v35, %s4735_s14  ;;  %4436 = vmatpush3.msra.mxu1 %v3031_v17  ;;  %v2801_v37 = vsel %vm2795_vm13, %v2796_v0, %v2800_v20  ;;  %v3039_v20 = vld [vmem:[%s6692_s3 + $0x80] sm:$0xff]  ;;  %v1796_v17 = vld [vmem:[#allocation3 + $0x1e1] sm:$0xff] }
 0x230   : > { %v2735_v8 = vld [vmem:[#allocation4 + $0xd0] sm:$0xff]  ;;  %v2207_v56 = vpop.permute.xlu1 %2206  ;;  %4437 = vmatprep.subr.mxu1 %v3046_v33  ;;  %2820 = vst [vmem:[#allocation5 + $0xa8] sm:$0x1f] %v2801_v37  ;;  %v5706_v38 = vpop.permute.xlu0 %1754  ;;  %v2309_v33 = vld [vmem:[#allocation3 + $0x238] sm:$0x1] }
 0x231   : > { %v2752_v30 = vrot.slane %v2735_v8, 5  ;;  %2253 = vst.msk [vmem:[#allocation4 + $0xf0] sm:$0x1] %vm1526_vm9, %v2207_v56  ;;  %4438 = vmatpush3.msra.mxu1 %v3030_v15  ;;  %v1592_v56 = vld [vmem:[#allocation3 + $0x240] sm:$0xff] }
 0x232   : > { %1746 = vrot.lane.b32.xlu1 %v1699_v39, %s4734_s17  ;;  %4439 = vmatprep.subr.mxu1 %v3045_v41  ;;  %v1798_v39 = vld [vmem:[#allocation3 + $0x1f1] sm:$0xff] }
 0x233   : > { %2772 = vst [vmem:[#allocation5 + $0x70] sm:$0xf8] %v2752_v30  ;;  %1852 = vrot.lane.b32.xlu0 %v1806_v47, %s4736_s18  ;;  %4440 = vmatpush3.msra.mxu1 %v3029_v42 }
 0x234   : > { %v1491_v52 = vpop.permute.xlu1 %1490  ;;  %4441 = vmatprep.subr.mxu1 %v3044_v29  ;;  %v5723_v54 = vpop.permute.xlu0 %1756 }
 0x235   : > { %1536 = vst.msk [vmem:[#allocation4 + $0x140] sm:$0xff] %vm1524_vm8, %v1491_v52  ;;  %4442 = vmatpush3.msra.mxu1 %v3028_v62  ;;  %v1799_v62 = vld [vmem:[#allocation3 + $0x1f9] sm:$0x1] }
 0x236   : > { %2462 = vrot.lane.b32.xlu1 %v2417_v55, %s4734_s17  ;;  %4443 = vmatprep.subr.mxu1 %v3043_v57  ;;  %v1808_v57 = vld [vmem:[#allocation3 + $0x241] sm:$0xff] }
 0x237   : > { %1638 = vrot.lane.b32.xlu0 %v1591_v10, %s4735_s14  ;;  %4444 = vmatpush3.msra.mxu1 %v3027_v63 }
 0x238   : > { %v2739_v0 = vld [vmem:[#allocation4 + $0xf0] sm:$0x1]  ;;  %v1273_v4 = vpop.permute.xlu1 %1272  ;;  %4445 = vmatprep.subr.mxu1 %v3042_v5  ;;  %v5740_v31 = vpop.permute.xlu0 %1758 }
 0x239   : > { %v2758_v9 = vrot.slane %v2739_v0, 5  ;;  %1317 = vst.msk [vmem:[#allocation4 + $0x160] sm:$0x1] %vm1306_vm6, %v1273_v4  ;;  %4446 = vmatpush3.msra.mxu1 %v3026_v60  ;;  %v1593_v4 = vld [vmem:[#allocation3 + $0x248] sm:$0x1] }
 0x23a   : > { %1427 = vst.msk [vmem:[#allocation4 + $0x160] sm:$0x1] %vm1416_vm7, %v5422_v28  ;;  %1750 = vrot.lane.b32.xlu1 %v1701_v11, %s4734_s17  ;;  %4447 = vmatprep.subr.mxu1 %v3041_v12  ;;  %v3024_v28 = vld [vmem:[%s6692_s3 + $0x8] sm:$0xff] }
 0x23b   : > { %2352 = vrot.lane.b32.xlu0 %v1590_v35, %s4735_s14  ;;  %4448 = vmatpush3.msra.mxu1 %v3025_v14  ;;  %v2759_v36 = vsel %vm2749_vm12, %v2752_v30, %v2758_v9 }
 0x23c   : > { %v2825_v21 = vld [vmem:[#allocation4 + $0x140] sm:$0xff]  ;;  %v1493_v59 = vpop.permute.xlu1 %1492  ;;  %4449 = vmatprep.subr.mxu1 %v3040_v43  ;;  %2776 = vst [vmem:[#allocation5 + $0x8] sm:$0xf] %v2759_v36  ;;  %v1617_v23 = vpop.permute.xlu0 %1616  ;;  %v2519_v36 = vld [vmem:[#allocation3 + $0x209] sm:$0x1] }
 0x23d   : > { %v2842_v22 = vrot.slane %v2825_v21, 3  ;;  %1537 = vst.msk [vmem:[#allocation4 + $0x160] sm:$0x1] %vm1526_vm9, %v1493_v59  ;;  %4450 = vmatpush3.msra.mxu1 %v3024_v28  ;;  %v2060_v21 = vld [vmem:[#allocation3 + $0x71] sm:$0xff] }
 0x23e   : > { %1670 = vst.msk [vmem:[#allocation4 + $0x8] sm:$0xff] %vm1304_vm4, %v1617_v23  ;;  %2466 = vrot.lane.b32.xlu1 %v2419_v24, %s4734_s17  ;;  %4451 = vmatprep.subr.mxu1 %v3039_v20 }
 0x23f   : > { %2862 = vst [vmem:[#allocation5 + $0xa8] sm:$0xe0] %v2842_v22  ;;  %2568 = vrot.lane.b32.xlu0 %v1806_v47, %s4736_s18  ;;  %4452 = vmatpush3.msra.mxu1 %v3023_v7 }
 0x240   : > { %v2209_v53 = vpop.permute.xlu1 %2208  ;;  %v1619_v35 = vpop.permute.xlu0 %1618 }
 0x241   : > { %2254 = vst.msk [vmem:[#allocation4 + $0x110] sm:$0xff] %vm1524_vm8, %v2209_v53 }
 0x242   : > { %1671 = vst.msk [vmem:[#allocation4 + $0x28] sm:$0x1] %vm1306_vm6, %v1619_v35  ;;  %1832 = vrot.lane.b32.xlu1 %v1796_v17, %s4736_s18  ;;  %v2521_v17 = vld [vmem:[#allocation3 + $0x219] sm:$0x1] }
 0x243   : > { %2354 = vrot.lane.b32.xlu0 %v2309_v33, %s4735_s14  ;;  %v2311_v33 = vld [vmem:[#allocation3 + $0x248] sm:$0x1] }
 0x244   : > { %v2829_v37 = vld [vmem:[#allocation4 + $0x160] sm:$0x1]  ;;  %v1995_v8 = vpop.permute.xlu1 %1994  ;;  %v5774_v30 = vpop.permute.xlu0 %1834 }
 0x245   : > { %v2846_v15 = vrot.slane %v2829_v37, 3  ;;  %2039 = vst.msk [vmem:[#allocation4 + $0x130] sm:$0x1] %vm1306_vm6, %v1995_v8  ;;  %v1805_v8 = vld [vmem:[#allocation3 + $0x229] sm:$0x1] }
 0x246   : > { %2147 = vst.msk [vmem:[#allocation4 + $0x130] sm:$0x1] %vm1416_vm7, %v5432_v40  ;;  %1836 = vrot.lane.b32.xlu1 %v1798_v39, %s4736_s18 }
 0x247   : > { %1640 = vrot.lane.b32.xlu0 %v1592_v56, %s4735_s14  ;;  %v2847_v41 = vsel %vm2841_vm14, %v2842_v22, %v2846_v15 }
 0x248   : > { %v2781_v47 = vld [vmem:[#allocation4 + $0x110] sm:$0xff]  ;;  %v2211_v42 = vpop.permute.xlu1 %2210  ;;  %2866 = vst [vmem:[#allocation5 + $0x150] sm:$0x3f] %v2847_v41  ;;  %v1621_v52 = vpop.permute.xlu0 %1620 }
 0x249   : > { %v2798_v29 = vrot.slane %v2781_v47, 4  ;;  %2255 = vst.msk [vmem:[#allocation4 + $0x130] sm:$0x1] %vm1526_vm9, %v2211_v42  ;;  %v2523_v47 = vld [vmem:[#allocation3 + $0x229] sm:$0x1]  ;;  %v1810_v42 = vld [vmem:[#allocation3 + $0x251] sm:$0xff] }
 0x24a   : > { %1672 = vst.msk [vmem:[#allocation4 + $0x48] sm:$0xff] %vm1304_vm4, %v1621_v52  ;;  %1838 = vrot.lane.b32.xlu1 %v1799_v62, %s4736_s18  ;;  %v1807_v62 = vld [vmem:[#allocation3 + $0x239] sm:$0x1] }
 0x24b   : > { %2818 = vst [vmem:[#allocation5 + $0x8] sm:$0xf0] %v2798_v29  ;;  %1780 = vst.msk [vmem:[#allocation4 + $0x48] sm:$0xff] %vm1414_vm5, %v5569_v58  ;;  %2356 = vrot.lane.b32.xlu0 %v1592_v56, %s4735_s14  ;;  %v1801_v58 = vld [vmem:[#allocation3 + $0x209] sm:$0x1]  ;;  %v1594_v56 = vld [vmem:[#allocation3 + $0x250] sm:$0xff] }
 0x24c   : > { %v1495_v40 = vpop.permute.xlu1 %1494  ;;  %v1623_v55 = vpop.permute.xlu0 %1622 }
 0x24d   : > { %1538 = vst.msk [vmem:[#allocation4 + $0x180] sm:$0xff] %vm1524_vm8, %v1495_v40 }
 0x24e   : > { %1673 = vst.msk [vmem:[#allocation4 + $0x68] sm:$0x1] %vm1306_vm6, %v1623_v55  ;;  %2552 = vrot.lane.b32.xlu1 %v1798_v39, %s4736_s18  ;;  %v1595_v55 = vld [vmem:[#allocation3 + $0x258] sm:$0x1] }
 0x24f   : > { %1856 = vrot.lane.b32.xlu0 %v1808_v57, %s4736_s18 }
 0x250   : > { %v2785_v10 = vld [vmem:[#allocation4 + $0x130] sm:$0x1]  ;;  %v1277_v63 = vpop.permute.xlu1 %1276  ;;  %v2337_v0 = vpop.permute.xlu0 %2336 }
 0x251   : > { %v2804_v5 = vrot.slane %v2785_v10, 4  ;;  %1319 = vst.msk [vmem:[#allocation4 + $0x1a0] sm:$0x1] %vm1306_vm6, %v1277_v63 }
 0x252   : > { %2390 = vst.msk [vmem:[#allocation4 + $0x18] sm:$0xff] %vm1304_vm4, %v2337_v0  ;;  %1842 = vrot.lane.b32.xlu1 %v1801_v58, %s4736_s18  ;;  %v1811_v58 = vld [vmem:[#allocation3 + $0x259] sm:$0x1] }
 0x253   : > { %1429 = vst.msk [vmem:[#allocation4 + $0x1a0] sm:$0x1] %vm1416_vm7, %v5441_v51  ;;  %1642 = vrot.lane.b32.xlu0 %v1593_v4, %s4735_s14  ;;  %v2805_v60 = vsel %vm2795_vm13, %v2798_v29, %v2804_v5  ;;  %v2420_v51 = vld [vmem:[#allocation3 + $0x1b1] sm:$0xff] }
 0x254   : > { %2498 = vst.msk [vmem:[#allocation4 + $0x18] sm:$0xff] %vm1414_vm5, %v5578_v61  ;;  %v2871_v9 = vld [vmem:[#allocation4 + $0x180] sm:$0xff]  ;;  %v1497_v11 = vpop.permute.xlu1 %1496  ;;  %2822 = vst [vmem:[#allocation5 + $0xd8] sm:$0x1f] %v2805_v60  ;;  %v2339_v14 = vpop.permute.xlu0 %2338 }
 0x255   : > { %v2888_v12 = vrot.slane %v2871_v9, 2  ;;  %1539 = vst.msk [vmem:[#allocation4 + $0x1a0] sm:$0x1] %vm1526_vm9, %v1497_v11  ;;  %v1809_v11 = vld [vmem:[#allocation3 + $0x249] sm:$0x1] }
 0x256   : > { %2391 = vst.msk [vmem:[#allocation4 + $0x38] sm:$0x1] %vm1306_vm6, %v2339_v14  ;;  %2556 = vrot.lane.b32.xlu1 %v5547_v32, %s4736_s18  ;;  %v1803_v32 = vld [vmem:[#allocation3 + $0x219] sm:$0x1] }
 0x257   : > { %2908 = vst [vmem:[#allocation5 + $0x150] sm:$0xc0] %v2888_v12  ;;  %2468 = vrot.lane.b32.xlu0 %v2420_v51, %s4734_s17  ;;  %v2059_v51 = vld [vmem:[#allocation3 + $0x69] sm:$0x1] }
 0x258   : > { %v2213_v61 = vpop.permute.xlu1 %2212  ;;  %v5806_v43 = vpop.permute.xlu0 %2554 }
 0x259   : > { %2256 = vst.msk [vmem:[#allocation4 + $0x150] sm:$0xff] %vm1524_vm8, %v2213_v61 }
 0x25a   : > { %2558 = vrot.lane.b32.xlu1 %v2519_v36, %s4736_s18 }
 0x25b   : > { %2108 = vrot.lane.b32.xlu0 %v2060_v21, %s4734_s17  ;;  %v2167_v21 = vld [vmem:[#allocation3 + $0x109] sm:$0x1] }
 0x25c   : > { %v2875_v59 = vld [vmem:[#allocation4 + $0x1a0] sm:$0x1]  ;;  %v1999_v28 = vpop.permute.xlu1 %1998  ;;  %v1625_v23 = vpop.permute.xlu0 %1624 }
 0x25d   : > { %v2892_v22 = vrot.slane %v2875_v59, 2  ;;  %2041 = vst.msk [vmem:[#allocation4 + $0x170] sm:$0x1] %vm1306_vm6, %v1999_v28  ;;  %v5877_v28 = vld [vmem:[#allocation3 + $0x260] sm:$0xff] }
 0x25e   : > { %1674 = vst.msk [vmem:[#allocation4 + $0x88] sm:$0xff] %vm1304_vm4, %v1625_v23  ;;  %1846 = vrot.lane.b32.xlu1 %v1803_v32, %s4736_s18 }
 0x25f   : > { %1782 = vst.msk [vmem:[#allocation4 + $0x88] sm:$0xff] %vm1414_vm5, %v5583_v6  ;;  %2572 = vrot.lane.b32.xlu0 %v1808_v57, %s4736_s18  ;;  %v2893_v24 = vsel %vm2887_vm15, %v2888_v12, %v2892_v22  ;;  %v3086_v57 = vld [vmem:[%s6692_s3 + $0x1f8] sm:$0xff] }
 0x260   : > { %v5818_v20 = vld [vmem:[#allocation4 + $0x150] sm:$0xff]  ;;  %v1499_v7 = vpop.permute.xlu1 %1498  ;;  %2912 = vst [vmem:[#allocation5 + $0x118] sm:$0x7f] %v2893_v24  ;;  %v2341_v35 = vpop.permute.xlu0 %2340  ;;  %4486 = vmatprep.subr.mxu1 %v3086_v57  ;;  %v5890_v24 = vld [vmem:[#allocation3 + $0x261] sm:$0xff] }
 0x261   : > { %v2844_v53 = vrot.slane %v5818_v20, 3  ;;  %1540 = vst.msk [vmem:[#allocation4 + $0x1c0] sm:$0xff] %vm1524_vm8, %v1499_v7 }
 0x262   : > { %2392 = vst.msk [vmem:[#allocation4 + $0x58] sm:$0xff] %vm1304_vm4, %v2341_v35  ;;  %2562 = vrot.lane.b32.xlu1 %v2521_v17, %s4736_s18  ;;  %v2527_v35 = vld [vmem:[#allocation3 + $0x249] sm:$0x1]  ;;  %v1597_v17 = vld [vmem:[#allocation3 + $0x268] sm:$0x1] }
 0x263   : > { %2864 = vst [vmem:[#allocation5 + $0xd8] sm:$0xe0] %v2844_v53  ;;  %2500 = vst.msk [vmem:[#allocation4 + $0x58] sm:$0xff] %vm1414_vm5, %v5591_v45  ;;  %2358 = vrot.lane.b32.xlu0 %v2311_v33, %s4735_s14 }
 0x264   : > { %v1281_v6 = vpop.permute.xlu1 %1280  ;;  %v1841_v37 = vpop.permute.xlu0 %1840 }
 0x265   : > { %1321 = vst.msk [vmem:[#allocation4 + $0x1e0] sm:$0x1] %vm1306_vm6, %v1281_v6 }
 0x266   : > { %1890 = vst.msk [vmem:[#allocation4 + $0x88] sm:$0xff] %vm1524_vm8, %v1841_v37  ;;  %1850 = vrot.lane.b32.xlu1 %v1805_v8, %s4736_s18 }
 0x267   : > { %1431 = vst.msk [vmem:[#allocation4 + $0x1e0] sm:$0x1] %vm1416_vm7, %v5450_v2  ;;  %1644 = vrot.lane.b32.xlu0 %v1594_v56, %s4735_s14 }
 0x268   : > { %v2917_v15 = vld [vmem:[#allocation4 + $0x1c0] sm:$0xff]  ;;  %v1501_v39 = vpop.permute.xlu1 %1500  ;;  %v1627_v41 = vpop.permute.xlu0 %1626 }
 0x269   : > { %v2934_v45 = vrot.slane %v2917_v15, 1  ;;  %1541 = vst.msk [vmem:[#allocation4 + $0x1e0] sm:$0x1] %vm1526_vm9, %v1501_v39 }
 0x26a   : > { %1675 = vst.msk [vmem:[#allocation4 + $0xa8] sm:$0x1] %vm1306_vm6, %v1627_v41  ;;  %2566 = vrot.lane.b32.xlu1 %v2523_v47, %s4736_s18 }
 0x26b   : > { %2954 = vst [vmem:[#allocation5 + $0x118] sm:$0x80] %v2934_v45  ;;  %1860 = vrot.lane.b32.xlu0 %v1810_v42, %s4736_s18 }
 0x26c   : > { %v1283_v2 = vpop.permute.xlu1 %1282  ;;  %v2343_v52 = vpop.permute.xlu0 %2342 }
 0x26d   : > { %v5839_v29 = vld [vmem:[#allocation4 + $0x88] sm:$0xff]  ;;  %1322 = vst.msk [vmem:[#allocation4 + $0x200] sm:$0xff] %vm1304_vm4, %v1283_v2 }
 0x26e   : > { %v2705_v40 = vrot.slane %v5839_v29, 6  ;;  %2393 = vst.msk [vmem:[#allocation4 + $0x78] sm:$0x1] %vm1306_vm6, %v2343_v52  ;;  %1854 = vrot.lane.b32.xlu1 %v1807_v62, %s4736_s18  ;;  %v3060_v29 = vld [vmem:[%s6692_s3 + $0x128] sm:$0xff] }
 0x26f   : > { %1432 = vst.msk [vmem:[#allocation4 + $0x200] sm:$0xff] %vm1414_vm5, %v5459_v25  ;;  %1646 = vrot.lane.b32.xlu0 %v1595_v55, %s4735_s14  ;;  %v2525_v25 = vld [vmem:[#allocation3 + $0x239] sm:$0x1] }
 0x270   : > { %2725 = vst [vmem:[#allocation5 + $0x108] sm:$0xfc] %v2705_v40  ;;  %v2921_v10 = vld [vmem:[#allocation4 + $0x1e0] sm:$0x1]  ;;  %v1503_v63 = vpop.permute.xlu1 %1502  ;;  %v1629_v0 = vpop.permute.xlu0 %1628  ;;  %v2529_v55 = vld [vmem:[#allocation3 + $0x259] sm:$0x1] }
 0x271   : > { %v2938_v5 = vrot.slane %v2921_v10, 1  ;;  %1542 = vst.msk [vmem:[#allocation4 + $0x200] sm:$0xff] %vm1524_vm8, %v1503_v63  ;;  %v2422_v10 = vld [vmem:[#allocation3 + $0x1c1] sm:$0xff] }
 0x272   : > { %1676 = vst.msk [vmem:[#allocation4 + $0xc8] sm:$0xff] %vm1304_vm4, %v1629_v0  ;;  %2570 = vrot.lane.b32.xlu1 %v2525_v25, %s4736_s18  ;;  %v2062_v0 = vld [vmem:[#allocation3 + $0x81] sm:$0xff] }
 0x273   : > { %1784 = vst.msk [vmem:[#allocation4 + $0xc8] sm:$0xff] %vm1414_vm5, %v5596_v16  ;;  %1862 = vrot.lane.b32.xlu0 %v1811_v58, %s4736_s18  ;;  %v5860_v4 = vsel %vm2933_vm1, %v2934_v45, %v2938_v5  ;;  %v2421_v45 = vld [vmem:[#allocation3 + $0x1b9] sm:$0x1] }
 0x274   : > { %v1285_v60 = vpop.permute.xlu1 %1284  ;;  %v1845_v9 = vpop.permute.xlu0 %1844  ;;  %v2169_v5 = vld [vmem:[#allocation3 + $0x119] sm:$0x1] }
 0x275   : > { %1323 = vst.msk [vmem:[#allocation4 + $0x220] sm:$0x1] %vm1306_vm6, %v1285_v60 }
 0x276   : > { %1892 = vst.msk [vmem:[#allocation4 + $0xc8] sm:$0xff] %vm1524_vm8, %v1845_v9  ;;  %1858 = vrot.lane.b32.xlu1 %v1809_v11, %s4736_s18 }
 0x277   : > { %1433 = vst.msk [vmem:[#allocation4 + $0x220] sm:$0x1] %vm1416_vm7, %v5466_v18  ;;  %2360 = vrot.lane.b32.xlu0 %v1594_v56, %s4735_s14  ;;  %v1813_v56 = vld [vmem:[#allocation3 + $0x269] sm:$0x1] }
 0x278   : > { %v2963_v16 = vld [vmem:[#allocation4 + $0x200] sm:$0xff]  ;;  %v1505_v12 = vpop.permute.xlu1 %1504  ;;  %v1631_v14 = vpop.permute.xlu0 %1630 }
 0x279   : > { %2971 = vst [vmem:[#allocation5 + $0x58] sm:$0xff] %v2963_v16  ;;  %1543 = vst.msk [vmem:[#allocation4 + $0x220] sm:$0x1] %vm1526_vm9, %v1505_v12  ;;  %v1955_v16 = vld [vmem:[#allocation3 + $0x128] sm:$0x1] }
 0x27a   : > { %1677 = vst.msk [vmem:[#allocation4 + $0xe8] sm:$0x1] %vm1306_vm6, %v1631_v14  ;;  %2106 = vrot.lane.b32.xlu1 %v2059_v51, %s4734_s17  ;;  %v2063_v51 = vld [vmem:[#allocation3 + $0x89] sm:$0x1] }
 0x27b   : > { %2576 = vrot.lane.b32.xlu0 %v1810_v42, %s4736_s18 }
 0x27c   : > { %v1725_v61 = vpop.permute.xlu1 %1724  ;;  %v2345_v18 = vpop.permute.xlu0 %2344 }
 0x27d   : > { %v5872_v36 = vld [vmem:[#allocation4 + $0xc8] sm:$0xff]  ;;  %1778 = vst.msk [vmem:[#allocation4 + $0x8] sm:$0xff] %vm1414_vm5, %v1725_v61 }
 0x27e   : > { %v2751_v59 = vrot.slane %v5872_v36, 5  ;;  %2394 = vst.msk [vmem:[#allocation4 + $0x98] sm:$0xff] %vm1304_vm4, %v2345_v18  ;;  %2214 = vrot.lane.b32.xlu1 %v2167_v21, %s4736_s18  ;;  %v2171_v21 = vld [vmem:[#allocation3 + $0x129] sm:$0x1] }
 0x27f   : > { %2502 = vst.msk [vmem:[#allocation4 + $0x98] sm:$0xff] %vm1414_vm5, %v5603_v46  ;;  %1648 = vrot.lane.b32.xlu0 %v5877_v28, %s4735_s14 }
 0x280   : > { %2771 = vst [vmem:[#allocation5 + $0xc8] sm:$0xf8] %v2751_v59  ;;  %v2967_v22 = vld [vmem:[#allocation4 + $0x220] sm:$0x1]  ;;  %v1727_v23 = vpop.permute.xlu1 %1726  ;;  %v2561_v32 = vpop.permute.xlu0 %2560 }
 0x281   : > { %2975 = vst [vmem:[#allocation5 + $0x68] sm:$0x1] %v2967_v22  ;;  %1779 = vst.msk [vmem:[#allocation4 + $0x28] sm:$0x1] %vm1416_vm7, %v1727_v23 }
 0x282   : > { %2610 = vst.msk [vmem:[#allocation4 + $0x98] sm:$0xff] %vm1524_vm8, %v2561_v32  ;;  %2216 = vrot.lane.b32.xlu1 %v5534_v26, %s4736_s18  ;;  %v1953_v26 = vld [vmem:[#allocation3 + $0x118] sm:$0x1]  ;;  %v1956_v32 = vld [vmem:[#allocation3 + $0x130] sm:$0xff] }
 0x283   : > { %1887 = vst.msk [vmem:[#allocation4 + $0x28] sm:$0x1] %vm1526_vm9, %v5774_v30  ;;  %1864 = vrot.lane.b32.xlu0 %v5890_v24, %s4736_s18 }
 0x284   : > { %v1731_v46 = vpop.permute.xlu1 %1730  ;;  %v2347_v7 = vpop.permute.xlu0 %2346 }
 0x285   : > { %1781 = vst.msk [vmem:[#allocation4 + $0x68] sm:$0x1] %vm1416_vm7, %v1731_v46  ;;  %v2531_v46 = vld [vmem:[#allocation3 + $0x269] sm:$0x1] }
 0x286   : > { %2395 = vst.msk [vmem:[#allocation4 + $0xb8] sm:$0x1] %vm1306_vm6, %v2347_v7  ;;  %2574 = vrot.lane.b32.xlu1 %v2527_v35, %s4736_s18 }
 0x287   : > { %1650 = vrot.lane.b32.xlu0 %v1597_v17, %s4735_s14  ;;  %v2064_v17 = vld [vmem:[#allocation3 + $0x91] sm:$0xff] }
 0x288   : > { %v2447_v30 = vpop.permute.xlu1 %2446  ;;  %v1633_v6 = vpop.permute.xlu0 %1632 }
 0x289   : > { %v5900_v33 = vld [vmem:[#allocation4 + $0x98] sm:$0xff]  ;;  %2499 = vst.msk [vmem:[#allocation4 + $0x38] sm:$0x1] %vm1416_vm7, %v2447_v30 }
 0x28a   : > { %v2629_v37 = vld [vmem:[#allocation4 + $0x28] sm:$0x1]  ;;  %v2707_v8 = vrot.slane %v5900_v33, 6  ;;  %1678 = vst.msk [vmem:[#allocation4 + $0x108] sm:$0xff] %vm1304_vm4, %v1633_v6  ;;  %2002 = vrot.lane.b32.xlu1 %v1953_v26, %s4735_s14  ;;  %v2424_v30 = vld [vmem:[#allocation3 + $0x1d1] sm:$0xff] }
 0x28b   : > { %2607 = vst.msk [vmem:[#allocation4 + $0x38] sm:$0x1] %vm1526_vm9, %v5806_v43  ;;  %2637 = vst [vmem:[#allocation5 + $0x38] sm:$0x1] %v2629_v37  ;;  %1866 = vrot.lane.b32.xlu0 %v1813_v56, %s4736_s18  ;;  %v2313_v43 = vld [vmem:[#allocation3 + $0x258] sm:$0x1] }
 0x28c   : > { %1786 = vst.msk [vmem:[#allocation4 + $0x108] sm:$0xff] %vm1414_vm5, %v5609_v48  ;;  %2727 = vst [vmem:[#allocation5 + $0xf0] sm:$0xfc] %v2707_v8  ;;  %v1735_v15 = vpop.permute.xlu1 %1734  ;;  %v1849_v39 = vpop.permute.xlu0 %1848  ;;  %v2061_v48 = vld [vmem:[#allocation3 + $0x79] sm:$0x1]  ;;  %v2316_v37 = vld [vmem:[#allocation3 + $0x270] sm:$0xff] }
 0x28d   : > { %1783 = vst.msk [vmem:[#allocation4 + $0xa8] sm:$0x1] %vm1416_vm7, %v1735_v15 }
 0x28e   : > { %1894 = vst.msk [vmem:[#allocation4 + $0x108] sm:$0xff] %vm1524_vm8, %v1849_v39  ;;  %2470 = vrot.lane.b32.xlu1 %v2421_v45, %s4734_s17  ;;  %v1957_v45 = vld [vmem:[#allocation3 + $0x138] sm:$0x1] }
 0x28f   : > { %2362 = vrot.lane.b32.xlu0 %v2313_v43, %s4735_s14 }
 0x290   : > { %v2451_v41 = vpop.permute.xlu1 %2450  ;;  %v1635_v47 = vpop.permute.xlu0 %1634 }
 0x291   : > { %2501 = vst.msk [vmem:[#allocation4 + $0x78] sm:$0x1] %vm1416_vm7, %v2451_v41  ;;  %v2532_v41 = vld [vmem:[#allocation3 + $0x271] sm:$0xff] }
 0x292   : > { %v2631_v42 = vld [vmem:[#allocation4 + $0x38] sm:$0x1]  ;;  %1679 = vst.msk [vmem:[#allocation4 + $0x128] sm:$0x1] %vm1306_vm6, %v1635_v47  ;;  %2110 = vrot.lane.b32.xlu1 %v2061_v48, %s4734_s17 }
 0x293   : > { %2639 = vst [vmem:[#allocation5 + $0x100] sm:$0x1] %v2631_v42  ;;  %2004 = vrot.lane.b32.xlu0 %v5563_v44, %s4735_s14  ;;  %v3070_v42 = vld [vmem:[%s6692_s3 + $0x178] sm:$0xff] }
 0x294   : > { %v1739_v2 = vpop.permute.xlu1 %1738  ;;  %v2349_v62 = vpop.permute.xlu0 %2348 }
 0x295   : > { %v5922_v52 = vld [vmem:[#allocation4 + $0x108] sm:$0xff]  ;;  %1785 = vst.msk [vmem:[#allocation4 + $0xe8] sm:$0x1] %vm1416_vm7, %v1739_v2 }
 0x296   : > { %v2797_v57 = vrot.slane %v5922_v52, 4  ;;  %2396 = vst.msk [vmem:[#allocation4 + $0xd8] sm:$0xff] %vm1304_vm4, %v2349_v62  ;;  %2578 = vrot.lane.b32.xlu1 %v2529_v55, %s4736_s18  ;;  %v2065_v62 = vld [vmem:[#allocation3 + $0x99] sm:$0x1]  ;;  %v2979_v55 = vld [vmem:[#allocation5 + $0xb0] sm:$0xff] }
 0x297   : > { %2504 = vst.msk [vmem:[#allocation4 + $0xd8] sm:$0xff] %vm1414_vm5, %v5616_v34  ;;  %2472 = vrot.lane.b32.xlu0 %v2422_v10, %s4734_s17  ;;  %v2423_v34 = vld [vmem:[#allocation3 + $0x1c9] sm:$0x1]  ;;  %v2425_v10 = vld [vmem:[#allocation3 + $0x1d9] sm:$0x1] }
 0x298   : > { %2817 = vst [vmem:[#allocation5 + $0x110] sm:$0xf0] %v2797_v57  ;;  %v2455_v44 = vpop.permute.xlu1 %2454  ;;  %v2565_v63 = vpop.permute.xlu0 %2564 }
 0x299   : > { %2503 = vst.msk [vmem:[#allocation4 + $0xb8] sm:$0x1] %vm1416_vm7, %v2455_v44  ;;  %v3069_v44 = vld [vmem:[%s6692_s3 + $0x170] sm:$0xff] }
 0x29a   : > { %2612 = vst.msk [vmem:[#allocation4 + $0xd8] sm:$0xff] %vm1524_vm8, %v2565_v63  ;;  %2218 = vrot.lane.b32.xlu1 %v2169_v5, %s4736_s18  ;;  %v3084_v63 = vld [vmem:[%s6692_s3 + $0x1e8] sm:$0xff] }
 0x29b   : > { %2112 = vrot.lane.b32.xlu0 %v2062_v0, %s4734_s17 }
 0x29c   : > { %v1743_v25 = vpop.permute.xlu1 %1742  ;;  %v2351_v58 = vpop.permute.xlu0 %2350 }
 0x29d   : > { %1787 = vst.msk [vmem:[#allocation4 + $0x128] sm:$0x1] %vm1416_vm7, %v1743_v25  ;;  %v2317_v25 = vld [vmem:[#allocation3 + $0x278] sm:$0x1] }
 0x29e   : > { %2397 = vst.msk [vmem:[#allocation4 + $0xf8] sm:$0x1] %vm1306_vm6, %v2351_v58  ;;  %2220 = vrot.lane.b32.xlu1 %v5572_v50, %s4736_s18  ;;  %v3068_v58 = vld [vmem:[%s6692_s3 + $0x168] sm:$0xff] }
 0x29f   : > { %2474 = vrot.lane.b32.xlu0 %v2423_v34, %s4734_s17 }
 0x2a0   : > { %v2459_v60 = vpop.permute.xlu1 %2458 }
 0x2a1   : > { %v5942_v9 = vld [vmem:[#allocation4 + $0xd8] sm:$0xff]  ;;  %v1637_v11 = vpop.permute.xlu0 %1636  ;;  %2505 = vst.msk [vmem:[#allocation4 + $0xf8] sm:$0x1] %vm1416_vm7, %v2459_v60 }
 0x2a2   : > { %v2753_v12 = vrot.slane %v5942_v9, 5  ;;  %1680 = vst.msk [vmem:[#allocation4 + $0x148] sm:$0xff] %vm1304_vm4, %v1637_v11  ;;  %2006 = vrot.lane.b32.xlu1 %v1955_v16, %s4735_s14  ;;  %v3083_v11 = vld [vmem:[%s6692_s3 + $0x1e0] sm:$0xff] }
 0x2a3   : > { %1788 = vst.msk [vmem:[#allocation4 + $0x148] sm:$0xff] %vm1414_vm5, %v5621_v19  ;;  %2364 = vrot.lane.b32.xlu0 %v5877_v28, %s4735_s14  ;;  %v2315_v19 = vld [vmem:[#allocation3 + $0x268] sm:$0x1]  ;;  %v3067_v16 = vld [vmem:[%s6692_s3 + $0x160] sm:$0xff] }
 0x2a4   : > { %2773 = vst [vmem:[#allocation5 + $0x20] sm:$0xf8] %v2753_v12  ;;  %v1747_v50 = vpop.permute.xlu1 %1746 }
 0x2a5   : > { %v1853_v14 = vpop.permute.xlu0 %1852 }
 0x2a6   : > { %1896 = vst.msk [vmem:[#allocation4 + $0x148] sm:$0xff] %vm1524_vm8, %v1853_v14  ;;  %2114 = vrot.lane.b32.xlu1 %v2063_v51, %s4734_s17 }
 0x2a7   : > { %2580 = vrot.lane.b32.xlu0 %v5890_v24, %s4736_s18 }
 0x2a8   : > { %v2463_v61 = vpop.permute.xlu1 %2462 }
 0x2a9   : > { %v1639_v18 = vpop.permute.xlu0 %1638 }
 0x2aa   : > { %1681 = vst.msk [vmem:[#allocation4 + $0x168] sm:$0x1] %vm1306_vm6, %v1639_v18  ;;  %2222 = vrot.lane.b32.xlu1 %v2171_v21, %s4736_s18  ;;  %v3066_v18 = vld [vmem:[%s6692_s3 + $0x158] sm:$0xff] }
 0x2ab   : > { %1789 = vst.msk [vmem:[#allocation4 + $0x168] sm:$0x1] %vm1416_vm7, %v1747_v50  ;;  %2366 = vrot.lane.b32.xlu0 %v2315_v19, %s4735_s14  ;;  %v3082_v50 = vld [vmem:[%s6692_s3 + $0x1d8] sm:$0xff] }
 0x2ac   : > { %v5962_v28 = vpop.permute.xlu1 %1750 }
 0x2ad   : > { %v5964_v22 = vld [vmem:[#allocation4 + $0x148] sm:$0xff]  ;;  %v2353_v23 = vpop.permute.xlu0 %2352 }
 0x2ae   : > { %v2843_v24 = vrot.slane %v5964_v22, 3  ;;  %2398 = vst.msk [vmem:[#allocation4 + $0x118] sm:$0xff] %vm1304_vm4, %v2353_v23  ;;  %2008 = vrot.lane.b32.xlu1 %v1956_v32, %s4735_s14  ;;  %v3081_v23 = vld [vmem:[%s6692_s3 + $0x1d0] sm:$0xff] }
 0x2af   : > { %2506 = vst.msk [vmem:[#allocation4 + $0x118] sm:$0xff] %vm1414_vm5, %v5632_v49  ;;  %2582 = vrot.lane.b32.xlu0 %v2531_v46, %s4736_s18  ;;  %v2172_v49 = vld [vmem:[#allocation3 + $0x131] sm:$0xff]  ;;  %v3065_v32 = vld [vmem:[%s6692_s3 + $0x150] sm:$0xff] }
 0x2b0   : > { %2863 = vst [vmem:[#allocation5 + $0x158] sm:$0xe0] %v2843_v24  ;;  %v5974_v7 = vpop.permute.xlu1 %2466 }
 0x2b1   : > { %v2569_v35 = vpop.permute.xlu0 %2568 }
 0x2b2   : > { %2614 = vst.msk [vmem:[#allocation4 + $0x118] sm:$0xff] %vm1524_vm8, %v2569_v35  ;;  %2116 = vrot.lane.b32.xlu1 %v2064_v17, %s4734_s17  ;;  %v3080_v35 = vld [vmem:[%s6692_s3 + $0x1c8] sm:$0xff] }
 0x2b3   : > { %2476 = vrot.lane.b32.xlu0 %v2424_v30, %s4734_s17 }
 0x2b4   : > { %v1833_v6 = vpop.permute.xlu1 %1832 }
 0x2b5   : > { %v2355_v26 = vpop.permute.xlu0 %2354  ;;  %1886 = vst.msk [vmem:[#allocation4 + $0x8] sm:$0xff] %vm1524_vm8, %v1833_v6  ;;  %v3064_v6 = vld [vmem:[%s6692_s3 + $0x148] sm:$0xff] }
 0x2b6   : > { %2399 = vst.msk [vmem:[#allocation4 + $0x138] sm:$0x1] %vm1306_vm6, %v2355_v26  ;;  %2224 = vrot.lane.b32.xlu1 %v2172_v49, %s4736_s18  ;;  %v3079_v49 = vld [vmem:[%s6692_s3 + $0x1c0] sm:$0xff] }
 0x2b7   : > { %2507 = vst.msk [vmem:[#allocation4 + $0x138] sm:$0x1] %vm1416_vm7, %v2463_v61  ;;  %2368 = vrot.lane.b32.xlu0 %v2316_v37, %s4735_s14  ;;  %v2533_v61 = vld [vmem:[#allocation3 + $0x279] sm:$0x1] }
 0x2b8   : > { %v1837_v56 = vpop.permute.xlu1 %1836 }
 0x2b9   : > { %v5984_v15 = vld [vmem:[#allocation4 + $0x118] sm:$0xff]  ;;  %v1641_v39 = vpop.permute.xlu0 %1640  ;;  %1888 = vst.msk [vmem:[#allocation4 + $0x48] sm:$0xff] %vm1524_vm8, %v1837_v56 }
 0x2ba   : > { %v2799_v43 = vrot.slane %v5984_v15, 4  ;;  %1682 = vst.msk [vmem:[#allocation4 + $0x188] sm:$0xff] %vm1304_vm4, %v1641_v39  ;;  %2010 = vrot.lane.b32.xlu1 %v1957_v45, %s4735_s14  ;;  %v3063_v39 = vld [vmem:[%s6692_s3 + $0x140] sm:$0xff]  ;;  %v2983_v45 = vld [vmem:[#allocation5 + $0x120] sm:$0xff] }
 0x2bb   : > { %1790 = vst.msk [vmem:[#allocation4 + $0x188] sm:$0xff] %vm1414_vm5, %v5652_v3  ;;  %2584 = vrot.lane.b32.xlu0 %v2532_v41, %s4736_s18  ;;  %v3085_v3 = vld [vmem:[%s6692_s3 + $0x1f0] sm:$0xff]  ;;  %v3078_v41 = vld [vmem:[%s6692_s3 + $0x1b8] sm:$0xff] }
 0x2bc   : > { %2819 = vst [vmem:[#allocation5 + $0x98] sm:$0xf0] %v2799_v43  ;;  %v1839_v47 = vpop.permute.xlu1 %1838  ;;  %v2625_v48 = vld [vmem:[#allocation4 + $0x8] sm:$0xff] }
 0x2bd   : > { %v2357_v2 = vpop.permute.xlu0 %2356  ;;  %1889 = vst.msk [vmem:[#allocation4 + $0x68] sm:$0x1] %vm1526_vm9, %v1839_v47  ;;  %3158 = vmatprep.mubr.f32.mxu1 %v2625_v48 }
 0x2be   : > { %2400 = vst.msk [vmem:[#allocation4 + $0x158] sm:$0xff] %vm1304_vm4, %v2357_v2  ;;  %2118 = vrot.lane.b32.xlu1 %v2065_v62, %s4734_s17  ;;  %3159 = vmatmul.mubr.f32.vlgmr.msra.gmra.mxu1 %v2979_v55  ;;  %v3077_v55 = vld [vmem:[%s6692_s3 + $0x1b0] sm:$0xff] }
 0x2bf   : > { %2508 = vst.msk [vmem:[#allocation4 + $0x158] sm:$0xff] %vm1414_vm5, %v5669_v13  ;;  %2478 = vrot.lane.b32.xlu0 %v2425_v10, %s4734_s17  ;;  %4487 = vmatpush3.msra.mxu1 %v3070_v42  ;;  %v2173_v13 = vld [vmem:[#allocation3 + $0x139] sm:$0x1]  ;;  %v3062_v42 = vld [vmem:[%s6692_s3 + $0x138] sm:$0xff] }
 0x2c0   : > { %v2642_v5 = vld [vmem:[#allocation4 + $0x48] sm:$0xff]  ;;  %v2553_v0 = vpop.permute.xlu1 %2552  ;;  %4488 = vmatprep.subr.mxu1 %v3085_v3 }
 0x2c1   : > { %v2659_v34 = vrot.slane %v2642_v5, 7  ;;  %v1857_v60 = vpop.permute.xlu0 %1856  ;;  %2606 = vst.msk [vmem:[#allocation4 + $0x18] sm:$0xff] %vm1524_vm8, %v2553_v0  ;;  %4489 = vmatpush3.msra.mxu1 %v3069_v44  ;;  %v3061_v44 = vld [vmem:[%s6692_s3 + $0x130] sm:$0xff] }
 0x2c2   : > { %1898 = vst.msk [vmem:[#allocation4 + $0x188] sm:$0xff] %vm1524_vm8, %v1857_v60  ;;  %2226 = vrot.lane.b32.xlu1 %v2173_v13, %s4736_s18  ;;  %4490 = vmatprep.subr.mxu1 %v3084_v63  ;;  %v2987_v0 = vld [vmem:[#allocation5 + $0x80] sm:$0xff]  ;;  %v3059_v60 = vld [vmem:[%s6692_s3 + $0x120] sm:$0xff] }
 0x2c3   : > { %2679 = vst [vmem:[#allocation5 + $0x38] sm:$0xfe] %v2659_v34  ;;  %2370 = vrot.lane.b32.xlu0 %v2317_v25, %s4735_s14  ;;  %4491 = vmatpush3.msra.mxu1 %v3068_v58  ;;  %v3076_v25 = vld [vmem:[%s6692_s3 + $0x1a8] sm:$0xff] }
 0x2c4   : > { %v2646_v14 = vld [vmem:[#allocation4 + $0x68] sm:$0x1]  ;;  %v1843_v51 = vpop.permute.xlu1 %1842  ;;  %4492 = vmatprep.subr.mxu1 %v3083_v11 }
 0x2c5   : > { %v2664_v21 = vrot.slane %v2646_v14, 7  ;;  %v1643_v19 = vpop.permute.xlu0 %1642  ;;  %1891 = vst.msk [vmem:[#allocation4 + $0xa8] sm:$0x1] %vm1526_vm9, %v1843_v51  ;;  %4493 = vmatpush3.msra.mxu1 %v3067_v16  ;;  %v3074_v16 = vld [vmem:[%s6692_s3 + $0x198] sm:$0xff] }
 0x2c6   : > { %1683 = vst.msk [vmem:[#allocation4 + $0x1a8] sm:$0x1] %vm1306_vm6, %v1643_v19  ;;  %4494 = vmatprep.subr.mxu1 %v3082_v50  ;;  %v3058_v51 = vld [vmem:[%s6692_s3 + $0x118] sm:$0xff] }
 0x2c7   : > { %1791 = vst.msk [vmem:[#allocation4 + $0x1a8] sm:$0x1] %vm1416_vm7, %v5962_v28  ;;  %2586 = vrot.lane.b32.xlu0 %v2533_v61, %s4736_s18  ;;  %v2665_v46 = vsel %vm2657_vm10, %v2659_v34, %v2664_v21  ;;  %4495 = vmatpush3.msra.mxu1 %v3066_v18  ;;  %v3073_v61 = vld [vmem:[%s6692_s3 + $0x190] sm:$0xff]  ;;  %s4710_s18 = smul.u32 56, %s6698_s25 }
 0x2c8   : > { %v6047_v17 = vld [vmem:[#allocation4 + $0x18] sm:$0xff]  ;;  %v2557_v30 = vpop.permute.xlu1 %2556  ;;  %2683 = vst [vmem:[#allocation5 + $0x108] sm:$0x3] %v2665_v46  ;;  %4496 = vmatprep.subr.mxu1 %v3081_v23  ;;  %v3057_v21 = vld [vmem:[%s6692_s3 + $0x110] sm:$0xff] }
 0x2c9   : > { %v6052_v26 = vld [vmem:[#allocation4 + $0x188] sm:$0xff]  ;;  %v6054_v28 = vpop.permute.xlu0 %2468  ;;  %2608 = vst.msk [vmem:[#allocation4 + $0x58] sm:$0xff] %vm1524_vm8, %v2557_v30  ;;  %4497 = vmatpush3.msra.mxu1 %v3065_v32  ;;  %v2991_v46 = vld [vmem:[#allocation5 + $0x18] sm:$0xff]  ;;  %s6670_s26 = scalar_lea.vmem %s6696_s7, %s4710_s18 }
 0x2ca   : > { %v2889_v37 = vrot.slane %v6052_v26, 2  ;;  %v2984_v56 = vld [vmem:[#allocation5 + $0x38] sm:$0xff]  ;;  %4498 = vmatprep.subr.mxu1 %v3080_v35 }
 0x2cb   : > { %3163 = vmatprep.mubr.f32.mxu1 %v2984_v56  ;;  %4499 = vmatpush3.msra.mxu1 %v3064_v6  ;;  %v3072_v35 = vld [vmem:[%s6692_s3 + $0x188] sm:$0xff] }
 0x2cc   : > { %2909 = vst [vmem:[#allocation5 + $0x78] sm:$0xc0] %v2889_v37  ;;  %v2692_v47 = vld [vmem:[#allocation4 + $0xa8] sm:$0x1]  ;;  %v2559_v48 = vpop.permute.xlu1 %2558  ;;  %3164 = vmatmul.mubr.f32.gmra.mxu1 %v2983_v45  ;;  %4500 = vmatprep.subr.mxu1 %v3079_v49  ;;  %v3056_v49 = vld [vmem:[%s6692_s3 + $0x108] sm:$0xff] }
 0x2cd   : > { %v2710_v2 = vrot.slane %v2692_v47, 6  ;;  %v2109_v62 = vpop.permute.xlu0 %2108  ;;  %2609 = vst.msk [vmem:[#allocation4 + $0x78] sm:$0x1] %vm1526_vm9, %v2559_v48  ;;  %4501 = vmatpush3.msra.mxu1 %v3063_v39  ;;  %v3071_v39 = vld [vmem:[%s6692_s3 + $0x180] sm:$0xff] }
 0x2ce   : > { %2150 = vst.msk [vmem:[#allocation4 + $0x190] sm:$0xff] %vm1414_vm5, %v2109_v62  ;;  %4502 = vmatprep.subr.mxu1 %v3078_v41  ;;  %v3055_v41 = vld [vmem:[%s6692_s3 + $0x100] sm:$0xff] }
 0x2cf   : > { %v2988_v3 = vld [vmem:[#allocation5 + $0x108] sm:$0xff]  ;;  %v2711_v10 = vsel %vm2703_vm11, %v2705_v40, %v2710_v2  ;;  %4503 = vmatpush3.msra.mxu1 %v3062_v42  ;;  %v3075_v40 = vld [vmem:[%s6692_s3 + $0x1a0] sm:$0xff] }
 0x2d0   : > { %v2644_v63 = vld [vmem:[#allocation4 + $0x58] sm:$0xff]  ;;  %v1847_v5 = vpop.permute.xlu1 %1846  ;;  %3168 = vmatprep.mubr.f32.mxu1 %v2988_v3  ;;  %2729 = vst [vmem:[#allocation5 + $0xc8] sm:$0x7] %v2711_v10  ;;  %4504 = vmatprep.subr.mxu1 %v3077_v55 }
 0x2d1   : > { %v2661_v58 = vrot.slane %v2644_v63, 7  ;;  %v2573_v34 = vpop.permute.xlu0 %2572  ;;  %1893 = vst.msk [vmem:[#allocation4 + $0xe8] sm:$0x1] %vm1526_vm9, %v1847_v5  ;;  %3169 = vmatmul.mubr.f32.gmra.mxu1 %v2987_v0 }
 0x2d2   : > { %2616 = vst.msk [vmem:[#allocation4 + $0x158] sm:$0xff] %vm1524_vm8, %v2573_v34  ;;  %4505 = vmatpush3.msra.mxu1 %v3061_v44 }
 0x2d3   : > { %2681 = vst [vmem:[#allocation5 + $0x100] sm:$0xfe] %v2661_v58  ;;  %4506 = vmatprep.subr.mxu1 %v3076_v25 }
 0x2d4   : > { %v2648_v13 = vld [vmem:[#allocation4 + $0x78] sm:$0x1]  ;;  %v2563_v11 = vpop.permute.xlu1 %2562  ;;  %4507 = vmatpush3.msra.mxu1 %v3060_v29 }
 0x2d5   : > { %v2668_v50 = vrot.slane %v2648_v13, 7  ;;  %v2359_v14 = vpop.permute.xlu0 %2358  ;;  %2611 = vst.msk [vmem:[#allocation4 + $0xb8] sm:$0x1] %vm1526_vm9, %v2563_v11  ;;  %4508 = vmatprep.subr.mxu1 %v3075_v40 }
 0x2d6   : > { %2401 = vst.msk [vmem:[#allocation4 + $0x178] sm:$0x1] %vm1306_vm6, %v2359_v14  ;;  %4509 = vmatpush3.msra.mxu1 %v3059_v60  ;;  %v2999_v60 = vld [vmem:[#allocation5 + $0xa8] sm:$0xff] }
 0x2d7   : > { %2509 = vst.msk [vmem:[#allocation4 + $0x178] sm:$0x1] %vm1416_vm7, %v5974_v7  ;;  %v2992_v18 = vld [vmem:[#allocation5 + $0xc8] sm:$0xff]  ;;  %4510 = vmatprep.subr.mxu1 %v3074_v16  ;;  %v2669_v19 = vsel %vm2657_vm10, %v2661_v58, %v2668_v50  ;;  %vm3775_vm10 = vcmask 523268  }
 0x2d8   : > { %v2738_v23 = vld [vmem:[#allocation4 + $0xe8] sm:$0x1]  ;;  %v1851_v32 = vpop.permute.xlu1 %1850  ;;  %3173 = vmatprep.mubr.f32.mxu1 %v2992_v18  ;;  %4511 = vmatpush3.msra.mxu1 %v3058_v51  ;;  %2685 = vst [vmem:[#allocation5 + $0xf0] sm:$0x3] %v2669_v19 }
 0x2d9   : > { %v6117_v30 = vld [vmem:[#allocation4 + $0x158] sm:$0xff]  ;;  %v2756_v7 = vrot.slane %v2738_v23, 5  ;;  %v1645_v6 = vpop.permute.xlu0 %1644  ;;  %1895 = vst.msk [vmem:[#allocation4 + $0x128] sm:$0x1] %vm1526_vm9, %v1851_v32  ;;  %3174 = vmatmul.mubr.f32.gmra.mxu1 %v2991_v46  ;;  %4512 = vmatprep.subr.mxu1 %v3073_v61 }
 0x2da   : > { %v2845_v56 = vrot.slane %v6117_v30, 3  ;;  %1684 = vst.msk [vmem:[#allocation4 + $0x1c8] sm:$0xff] %vm1304_vm4, %v1645_v6  ;;  %4513 = vmatpush3.msra.mxu1 %v3057_v21  ;;  %v3003_v21 = vld [vmem:[#allocation5 + $0x150] sm:$0xff] }
 0x2db   : > { %1792 = vst.msk [vmem:[#allocation4 + $0x1c8] sm:$0xff] %vm1414_vm5, %v5686_v27  ;;  %v2757_v45 = vsel %vm2749_vm12, %v2751_v59, %v2756_v7  ;;  %4514 = vmatprep.subr.mxu1 %v3072_v35 }
 0x2dc   : > { %2865 = vst [vmem:[#allocation5 + $0xe8] sm:$0xe0] %v2845_v56  ;;  %v2694_v47 = vld [vmem:[#allocation4 + $0xb8] sm:$0x1]  ;;  %v2567_v48 = vpop.permute.xlu1 %2566  ;;  %2775 = vst [vmem:[#allocation5 + $0x110] sm:$0xf] %v2757_v45  ;;  %4515 = vmatpush3.msra.mxu1 %v3056_v49 }
 0x2dd   : > { %v2714_v42 = vrot.slane %v2694_v47, 6  ;;  %v1861_v2 = vpop.permute.xlu0 %1860  ;;  %2613 = vst.msk [vmem:[#allocation4 + $0xf8] sm:$0x1] %vm1526_vm9, %v2567_v48  ;;  %4516 = vmatprep.subr.mxu1 %v3071_v39  ;;  %v3007_v39 = vld [vmem:[#allocation5 + $0x118] sm:$0xff] }
 0x2de   : > { %1900 = vst.msk [vmem:[#allocation4 + $0x1c8] sm:$0xff] %vm1524_vm8, %v1861_v2  ;;  %4517 = vmatpush3.msra.mxu1 %v3055_v41 }
 0x2df   : > { %v2715_v27 = vsel %vm2703_vm11, %v2707_v8, %v2714_v42  ;;  %v2995_v8 = vld [vmem:[#allocation5 + $0x128] sm:$0xff]  ;;  %vm3781_vm11 = vcmask 518144  }
 0x2e0   : > { %v2784_v36 = vld [vmem:[#allocation4 + $0x128] sm:$0x1]  ;;  %v1855_v59 = vpop.permute.xlu1 %1854  ;;  %2731 = vst [vmem:[#allocation5 + $0x20] sm:$0x7] %v2715_v27  ;;  %v3015_v27 = vld [vmem:[#allocation5 + $0x58] sm:$0xff] }
 0x2e1   : > { %v2802_v62 = vrot.slane %v2784_v36, 4  ;;  %v1647_v55 = vpop.permute.xlu0 %1646  ;;  %1897 = vst.msk [vmem:[#allocation4 + $0x168] sm:$0x1] %vm1526_vm9, %v1855_v59 }
 0x2e2   : > { %1685 = vst.msk [vmem:[#allocation4 + $0x1e8] sm:$0x1] %vm1306_vm6, %v1647_v55 }
 0x2e3   : > { %1793 = vst.msk [vmem:[#allocation4 + $0x1e8] sm:$0x1] %vm1416_vm7, %v5706_v38  ;;  %v2996_v3 = vld [vmem:[#allocation5 + $0x110] sm:$0xff]  ;;  %v2803_v10 = vsel %vm2795_vm13, %v2797_v57, %v2802_v62 }
 0x2e4   : > { %v2740_v33 = vld [vmem:[#allocation4 + $0xf8] sm:$0x1]  ;;  %v2571_v44 = vpop.permute.xlu1 %2570  ;;  %3178 = vmatprep.mubr.f32.mxu1 %v2996_v3  ;;  %2821 = vst [vmem:[#allocation5 + $0x158] sm:$0x1f] %v2803_v10 }
 0x2e5   : > { %v2918_v63 = vld [vmem:[#allocation4 + $0x1c8] sm:$0xff]  ;;  %v2760_v5 = vrot.slane %v2740_v33, 5  ;;  %v1863_v0 = vpop.permute.xlu0 %1862  ;;  %2615 = vst.msk [vmem:[#allocation4 + $0x138] sm:$0x1] %vm1526_vm9, %v2571_v44  ;;  %3179 = vmatmul.mubr.f32.gmra.mxu1 %v2995_v8 }
 0x2e6   : > { %v2935_v25 = vrot.slane %v2918_v63, 1  ;;  %1901 = vst.msk [vmem:[#allocation4 + $0x1e8] sm:$0x1] %vm1526_vm9, %v1863_v0  ;;  %v2981_v63 = vld [vmem:[#allocation5 + $0x10] sm:$0xff] }
 0x2e7   : > { %v2761_v38 = vsel %vm2749_vm12, %v2753_v12, %v2760_v5  ;;  %v2986_v5 = vld [vmem:[#allocation5 + $0x100] sm:$0xff]  ;;  %vm3808_vm12 = vcmask 523267  }
 0x2e8   : > { %2955 = vst [vmem:[#allocation5 + $0x130] sm:$0x80] %v2935_v25  ;;  %v2830_v52 = vld [vmem:[#allocation4 + $0x168] sm:$0x1]  ;;  %v1859_v57 = vpop.permute.xlu1 %1858  ;;  %2777 = vst [vmem:[#allocation5 + $0x98] sm:$0xf] %v2761_v38 }
 0x2e9   : > { %v2848_v58 = vrot.slane %v2830_v52, 3  ;;  %v2361_v34 = vpop.permute.xlu0 %2360  ;;  %1899 = vst.msk [vmem:[#allocation4 + $0x1a8] sm:$0x1] %vm1526_vm9, %v1859_v57 }
 0x2ea   : > { %2402 = vst.msk [vmem:[#allocation4 + $0x198] sm:$0xff] %vm1304_vm4, %v2361_v34 }
 0x2eb   : > { %2510 = vst.msk [vmem:[#allocation4 + $0x198] sm:$0xff] %vm1414_vm5, %v6054_v28  ;;  %v3000_v29 = vld [vmem:[#allocation5 + $0x158] sm:$0xff]  ;;  %v2849_v9 = vsel %vm2841_vm14, %v2843_v24, %v2848_v58  ;;  %v2990_v58 = vld [vmem:[#allocation5 + $0xf0] sm:$0xff] }
 0x2ec   : > { %v2786_v40 = vld [vmem:[#allocation4 + $0x138] sm:$0x1]  ;;  %v2107_v12 = vpop.permute.xlu1 %2106  ;;  %3183 = vmatprep.mubr.f32.mxu1 %v3000_v29  ;;  %2867 = vst [vmem:[#allocation5 + $0x78] sm:$0x3f] %v2849_v9 }
 0x2ed   : > { %v2922_v13 = vld [vmem:[#allocation4 + $0x1e8] sm:$0x1]  ;;  %v2806_v11 = vrot.slane %v2786_v40, 4  ;;  %v2577_v16 = vpop.permute.xlu0 %2576  ;;  %2149 = vst.msk [vmem:[#allocation4 + $0x170] sm:$0x1] %vm1416_vm7, %v2107_v12  ;;  %3184 = vmatmul.mubr.f32.gmra.mxu1 %v2999_v60  ;;  %v2989_v60 = vld [vmem:[#allocation5 + $0x138] sm:$0xff] }
 0x2ee   : > { %v2940_v50 = vrot.slane %v2922_v13, 1  ;;  %2618 = vst.msk [vmem:[#allocation4 + $0x198] sm:$0xff] %vm1524_vm8, %v2577_v16  ;;  %v2994_v13 = vld [vmem:[#allocation5 + $0x20] sm:$0xff] }
 0x2ef   : > { %v2807_v22 = vsel %vm2795_vm13, %v2799_v43, %v2806_v11  ;;  %vm3814_vm13 = vcmask 517120  }
 0x2f0   : > { %v2876_v28 = vld [vmem:[#allocation4 + $0x1a8] sm:$0x1]  ;;  %v2215_v24 = vpop.permute.xlu1 %2214  ;;  %v2941_v14 = vsel %vm2933_vm1, %v2935_v25, %v2940_v50  ;;  %2823 = vst [vmem:[#allocation5 + $0xe8] sm:$0x1f] %v2807_v22  ;;  %v2993_v50 = vld [vmem:[#allocation5 + $0x70] sm:$0xff]  ;;  %v2998_v22 = vld [vmem:[#allocation5 + $0x98] sm:$0xff] }
 0x2f1   : > { %v2894_v51 = vrot.slane %v2876_v28, 2  ;;  %v1649_v61 = vpop.permute.xlu0 %1648  ;;  %2257 = vst.msk [vmem:[#allocation4 + $0x170] sm:$0x1] %vm1526_vm9, %v2215_v24 }
 0x2f2   : > { %1686 = vst.msk [vmem:[#allocation4 + $0x208] sm:$0xff] %vm1304_vm4, %v1649_v61  ;;  %v2997_v61 = vld [vmem:[#allocation5 + $0x8] sm:$0xff] }
 0x2f3   : > { %1794 = vst.msk [vmem:[#allocation4 + $0x208] sm:$0xff] %vm1414_vm5, %v5723_v54  ;;  %v3004_v18 = vld [vmem:[#allocation5 + $0x78] sm:$0xff]  ;;  %v2895_v15 = vsel %vm2887_vm15, %v2889_v37, %v2894_v51 }
 0x2f4   : > { %v2217_v43 = vpop.permute.xlu1 %2216  ;;  %3188 = vmatprep.mubr.f32.mxu1 %v3004_v18  ;;  %2913 = vst [vmem:[#allocation5 + $0x130] sm:$0x7f] %v2895_v15 }
 0x2f5   : > { %v6175_v19 = vld [vmem:[#allocation4 + $0x198] sm:$0xff]  ;;  %v1865_v23 = vpop.permute.xlu0 %1864  ;;  %2258 = vst.msk [vmem:[#allocation4 + $0x190] sm:$0xff] %vm1524_vm8, %v2217_v43  ;;  %3189 = vmatmul.mubr.f32.gmra.mxu1 %v3003_v21 }
 0x2f6   : > { %v2891_v32 = vrot.slane %v6175_v19, 2  ;;  %1902 = vst.msk [vmem:[#allocation4 + $0x208] sm:$0xff] %vm1524_vm8, %v1865_v23  ;;  %v3001_v23 = vld [vmem:[#allocation5 + $0xd8] sm:$0xff] }
 0x2f7   : > { %v3002_v18 = vld [vmem:[#allocation5 + $0xe8] sm:$0xff] }
 0x2f8   : > { %2911 = vst [vmem:[#allocation5] sm:$0xc0] %v2891_v32  ;;  %v2831_v54 = vld [vmem:[#allocation4 + $0x170] sm:$0x1]  ;;  %v2575_v26 = vpop.permute.xlu1 %2574 }
 0x2f9   : > { %v2850_v37 = vrot.slane %v2831_v54, 3  ;;  %v1651_v46 = vpop.permute.xlu0 %1650  ;;  %2617 = vst.msk [vmem:[#allocation4 + $0x178] sm:$0x1] %vm1526_vm9, %v2575_v26 }
 0x2fa   : > { %1687 = vst.msk [vmem:[#allocation4 + $0x228] sm:$0x1] %vm1306_vm6, %v1651_v46 }
 0x2fb   : > { %1795 = vst.msk [vmem:[#allocation4 + $0x228] sm:$0x1] %vm1416_vm7, %v5740_v31  ;;  %v3008_v35 = vld [vmem:[#allocation5 + $0x130] sm:$0xff]  ;;  %v2851_v7 = vsel %vm2841_vm14, %v2844_v53, %v2850_v37 }
 0x2fc   : > { %v6189_v6 = vld [vmem:[#allocation4 + $0x190] sm:$0xff]  ;;  %v2003_v49 = vpop.permute.xlu1 %2002  ;;  %3193 = vmatprep.mubr.f32.mxu1 %v3008_v35  ;;  %2868 = vst [vmem:[#allocation5 + $0x90] sm:$0x3f] %v2851_v7 }
 0x2fd   : > { %v2964_v45 = vld [vmem:[#allocation4 + $0x208] sm:$0xff]  ;;  %v2890_v41 = vrot.slane %v6189_v6, 2  ;;  %v1867_v47 = vpop.permute.xlu0 %1866  ;;  %2043 = vst.msk [vmem:[#allocation4 + $0x1b0] sm:$0x1] %vm1306_vm6, %v2003_v49  ;;  %3194 = vmatmul.mubr.f32.gmra.mxu1 %v3007_v39 }
 0x2fe   : > { %1903 = vst.msk [vmem:[#allocation4 + $0x228] sm:$0x1] %vm1526_vm9, %v1867_v47  ;;  %3198 = vmatprep.mubr.f32.mxu1 %v2941_v14 }
 0x2ff   : > { %2910 = vst [vmem:[#allocation5 + $0x90] sm:$0xc0] %v2890_v41 }
 0x300   : > { %v2832_v31 = vld [vmem:[#allocation4 + $0x178] sm:$0x1]  ;;  %v2471_v20 = vpop.permute.xlu1 %2470 }
 0x301   : > { %v2852_v53 = vrot.slane %v2832_v31, 3  ;;  %v2363_v48 = vpop.permute.xlu0 %2362  ;;  %3199 = vmatmul.mubr.f32.gmra.mxu1 %v5860_v4 }
 0x302   : > { %2403 = vst.msk [vmem:[#allocation4 + $0x1b8] sm:$0x1] %vm1306_vm6, %v2363_v48  ;;  %3203 = vmatprep.mubr.f32.mxu1 %v2964_v45 }
 0x303   : > { %2511 = vst.msk [vmem:[#allocation4 + $0x1b8] sm:$0x1] %vm1416_vm7, %v2471_v20  ;;  %v2853_v42 = vsel %vm2841_vm14, %v2845_v56, %v2852_v53  ;;  %v3019_v56 = vld [vmem:[#allocation5 + $0x68] sm:$0x1]  ;;  %vm3841_vm14 = vcmask 523266  }
 0x304   : > { %v2111_v2 = vpop.permute.xlu1 %2110  ;;  %2869 = vst [vmem:[#allocation5] sm:$0x3f] %v2853_v42 }
 0x305   : > { %v2968_v36 = vld [vmem:[#allocation4 + $0x228] sm:$0x1]  ;;  %v2005_v59 = vpop.permute.xlu0 %2004  ;;  %2151 = vst.msk [vmem:[#allocation4 + $0x1b0] sm:$0x1] %vm1416_vm7, %v2111_v2  ;;  %3204 = vmatmul.mubr.f32.gmra.mxu1 %v3015_v27 }
 0x306   : > { %2976 = vst [vmem:[#allocation5 + $0x140] sm:$0x1] %v2968_v36  ;;  %2044 = vst.msk [vmem:[#allocation4 + $0x1d0] sm:$0xff] %vm1304_vm4, %v2005_v59  ;;  %v3005_v7 = vld [vmem:[#allocation5 + $0x90] sm:$0xff] }
 0x308   : > { %v2579_v4 = vpop.permute.xlu1 %2578 }
 0x309   : > { %v2473_v62 = vpop.permute.xlu0 %2472  ;;  %2619 = vst.msk [vmem:[#allocation4 + $0x1b8] sm:$0x1] %vm1526_vm9, %v2579_v4 }
 0x30c   : > { %v2219_v55 = vpop.permute.xlu1 %2218 }
 0x30d   : > { %v2113_v3 = vpop.permute.xlu0 %2112  ;;  %2259 = vst.msk [vmem:[#allocation4 + $0x1b0] sm:$0x1] %vm1526_vm9, %v2219_v55  ;;  %v3020_v30 = vld [vmem:[#allocation5 + $0x140] sm:$0x1] }
 0x30e   : > { %2152 = vst.msk [vmem:[#allocation4 + $0x1d0] sm:$0xff] %vm1414_vm5, %v2113_v3  ;;  %3208 = vmatprep.mubr.f32.mxu1 %v3020_v30 }
 0x30f   : > { %3209 = vmatmul.mubr.f32.gmra.mxu1 %v3019_v56 }
 0x310   : > { %v2878_v10 = vld [vmem:[#allocation4 + $0x1b8] sm:$0x1]  ;;  %3278 = vmatprep.mubr.f32.mxu1 %v6047_v17  ;;  %v2221_v33 = vpop.permute.xlu1 %2220 }
 0x311   : > { %v2898_v44 = vrot.slane %v2878_v10, 2  ;;  %v2475_v8 = vpop.permute.xlu0 %2474  ;;  %2260 = vst.msk [vmem:[#allocation4 + $0x1d0] sm:$0xff] %vm1524_vm8, %v2221_v33  ;;  %v2985_v17 = vld [vmem:[#allocation5 + $0xf8] sm:$0xff] }
 0x313   : > { %3279 = vmatmul.mubr.f32.vlgmr.msra.gmra.mxu1 %v2981_v63  ;;  %v2899_v0 = vsel %vm2887_vm15, %v2891_v32, %v2898_v44  ;;  %v3006_v32 = vld [vmem:[#allocation5] sm:$0xff]  ;;  %v3914_v63 = vld [vmem:[%s6694_s5 + $0xf8] sm:$0xff] }
 0x314   : > { %v2877_v25 = vld [vmem:[#allocation4 + $0x1b0] sm:$0x1]  ;;  %3283 = vmatprep.mubr.f32.mxu1 %v2986_v5  ;;  %v2007_v38 = vpop.permute.xlu1 %2006  ;;  %2915 = vst [vmem:[#allocation5 + $0xb8] sm:$0x7f] %v2899_v0  ;;  %v3898_v5 = vld [vmem:[%s6694_s5 + $0x78] sm:$0xff]  ;;  %v3913_v0 = vld [vmem:[%s6694_s5 + $0xf0] sm:$0xff]  ;;  %4551 = vmatprep.subr.mxu1 %v3914_v63 }
 0x315   : > { %v2896_v52 = vrot.slane %v2877_v25, 2  ;;  %v2365_v57 = vpop.permute.xlu0 %2364  ;;  %2045 = vst.msk [vmem:[#allocation4 + $0x1f0] sm:$0x1] %vm1306_vm6, %v2007_v38  ;;  %v3897_v25 = vld [vmem:[%s6694_s5 + $0x70] sm:$0xff]  ;;  %4552 = vmatpush3.msra.mxu1 %v3898_v5  ;;  %v3912_v38 = vld [vmem:[%s6694_s5 + $0xe8] sm:$0xff] }
 0x316   : > { %2404 = vst.msk [vmem:[#allocation4 + $0x1d8] sm:$0xff] %vm1304_vm4, %v2365_v57  ;;  %4553 = vmatprep.subr.mxu1 %v3913_v0  ;;  %v3896_v57 = vld [vmem:[%s6694_s5 + $0x68] sm:$0xff] }
 0x317   : > { %2512 = vst.msk [vmem:[#allocation4 + $0x1d8] sm:$0xff] %vm1414_vm5, %v2473_v62  ;;  %3284 = vmatmul.mubr.f32.gmra.mxu1 %v2985_v17  ;;  %v2897_v34 = vsel %vm2887_vm15, %v2890_v41, %v2896_v52  ;;  %v3911_v17 = vld [vmem:[%s6694_s5 + $0xe0] sm:$0xff]  ;;  %vm3451_vm15 = vcmask 1047040  }
 0x318   : > { %v2919_v29 = vld [vmem:[#allocation4 + $0x1d0] sm:$0xff]  ;;  %3288 = vmatprep.mubr.f32.mxu1 %v2990_v58  ;;  %v2115_v9 = vpop.permute.xlu1 %2114  ;;  %2914 = vst [vmem:[#allocation5 + $0x50] sm:$0x7f] %v2897_v34  ;;  %4554 = vmatpush3.msra.mxu1 %v3897_v25 }
 0x319   : > { %v2936_v40 = vrot.slane %v2919_v29, 1  ;;  %v2581_v12 = vpop.permute.xlu0 %2580  ;;  %2153 = vst.msk [vmem:[#allocation4 + $0x1f0] sm:$0x1] %vm1416_vm7, %v2115_v9  ;;  %4555 = vmatprep.subr.mxu1 %v3912_v38  ;;  %v3895_v34 = vld [vmem:[%s6694_s5 + $0x60] sm:$0xff]  ;;  %v3910_v29 = vld [vmem:[%s6694_s5 + $0xd8] sm:$0xff] }
 0x31a   : > { %2620 = vst.msk [vmem:[#allocation4 + $0x1d8] sm:$0xff] %vm1524_vm8, %v2581_v12  ;;  %4556 = vmatpush3.msra.mxu1 %v3896_v57  ;;  %v3894_v9 = vld [vmem:[%s6694_s5 + $0x58] sm:$0xff] }
 0x31b   : > { %2956 = vst [vmem:[#allocation5 + $0x50] sm:$0x80] %v2936_v40  ;;  %3289 = vmatmul.mubr.f32.gmra.mxu1 %v2989_v60  ;;  %4557 = vmatprep.subr.mxu1 %v3911_v17  ;;  %v3893_v60 = vld [vmem:[%s6694_s5 + $0x50] sm:$0xff] }
 0x31c   : > { %3293 = vmatprep.mubr.f32.mxu1 %v2994_v13  ;;  %v2223_v11 = vpop.permute.xlu1 %2222  ;;  %4558 = vmatpush3.msra.mxu1 %v3895_v34  ;;  %v3908_v13 = vld [vmem:[%s6694_s5 + $0xc8] sm:$0xff] }
 0x31d   : > { %v2367_v16 = vpop.permute.xlu0 %2366  ;;  %2261 = vst.msk [vmem:[#allocation4 + $0x1f0] sm:$0x1] %vm1526_vm9, %v2223_v11  ;;  %4559 = vmatprep.subr.mxu1 %v3910_v29 }
 0x31e   : > { %2405 = vst.msk [vmem:[#allocation4 + $0x1f8] sm:$0x1] %vm1306_vm6, %v2367_v16  ;;  %4560 = vmatpush3.msra.mxu1 %v3894_v9  ;;  %v3892_v16 = vld [vmem:[%s6694_s5 + $0x48] sm:$0xff] }
 0x31f   : > { %2513 = vst.msk [vmem:[#allocation4 + $0x1f8] sm:$0x1] %vm1416_vm7, %v2475_v8  ;;  %3294 = vmatmul.mubr.f32.gmra.mxu1 %v2993_v50 }
 0x320   : > { %3298 = vmatprep.mubr.f32.mxu1 %v2998_v22  ;;  %v2009_v28 = vpop.permute.xlu1 %2008 }
 0x321   : > { %v2920_v24 = vld [vmem:[#allocation4 + $0x1d8] sm:$0xff]  ;;  %v2583_v14 = vpop.permute.xlu0 %2582  ;;  %2046 = vst.msk [vmem:[#allocation4 + $0x210] sm:$0xff] %vm1304_vm4, %v2009_v28 }
 0x322   : > { %v2937_v51 = vrot.slane %v2920_v24, 1  ;;  %2621 = vst.msk [vmem:[#allocation4 + $0x1f8] sm:$0x1] %vm1526_vm9, %v2583_v14  ;;  %v3009_v41 = vld [vmem:[#allocation5 + $0x50] sm:$0xff] }
 0x323   : > { %3299 = vmatmul.mubr.f32.gmra.mxu1 %v2997_v61 }
 0x324   : > { %2957 = vst [vmem:[#allocation5 + $0xb8] sm:$0x80] %v2937_v51  ;;  %v2923_v15 = vld [vmem:[#allocation4 + $0x1f0] sm:$0x1]  ;;  %3303 = vmatprep.mubr.f32.mxu1 %v3002_v18  ;;  %v2117_v43 = vpop.permute.xlu1 %2116 }
 0x325   : > { %v2942_v21 = vrot.slane %v2923_v15, 1  ;;  %v2477_v19 = vpop.permute.xlu0 %2476  ;;  %2154 = vst.msk [vmem:[#allocation4 + $0x210] sm:$0xff] %vm1414_vm5, %v2117_v43 }
 0x327   : > { %3304 = vmatmul.mubr.f32.gmra.mxu1 %v3001_v23  ;;  %v2943_v54 = vsel %vm2933_vm1, %v2936_v40, %v2942_v21  ;;  %v3909_v40 = vld [vmem:[%s6694_s5 + $0xd0] sm:$0xff]  ;;  %v6303_v21 = vld [vmem:[%s6693_s4] ss:$0 sm:$0xff] }
 0x328   : > { %3308 = vmatprep.mubr.f32.mxu1 %v3006_v32  ;;  %v2225_v26 = vpop.permute.xlu1 %2224  ;;  %4561 = vmatprep.subr.mxu1 %v3909_v40 }
 0x329   : > { %v2924_v37 = vld [vmem:[#allocation4 + $0x1f8] sm:$0x1]  ;;  %v2369_v46 = vpop.permute.xlu0 %2368  ;;  %2262 = vst.msk [vmem:[#allocation4 + $0x210] sm:$0xff] %vm1524_vm8, %v2225_v26  ;;  %4562 = vmatpush3.msra.mxu1 %v3893_v60 }
 0x32a   : > { %v2944_v35 = vrot.slane %v2924_v37, 1  ;;  %2406 = vst.msk [vmem:[#allocation4 + $0x218] sm:$0xff] %vm1304_vm4, %v2369_v46  ;;  %4563 = vmatprep.subr.mxu1 %v3908_v13  ;;  %vm3676_vm4 = vcmask 523271  }
 0x32b   : > { %2514 = vst.msk [vmem:[#allocation4 + $0x218] sm:$0xff] %vm1414_vm5, %v2477_v19  ;;  %3309 = vmatmul.mubr.f32.gmra.mxu1 %v3005_v7  ;;  %v3010_v6 = vld [vmem:[#allocation5 + $0xb8] sm:$0xff]  ;;  %vm3682_vm5 = vcmask 521216  }
 0x32c   : > { %3313 = vmatprep.mubr.f32.mxu1 %v3010_v6  ;;  %v2011_v49 = vpop.permute.xlu1 %2010  ;;  %v2945_v39 = vsel %vm2933_vm1, %v2937_v51, %v2944_v35  ;;  %4564 = vmatpush3.msra.mxu1 %v3892_v16  ;;  %vm4737_vm1 = vmmov 0  }
 0x32d   : > { %v2585_v45 = vpop.permute.xlu0 %2584  ;;  %2047 = vst.msk [vmem:[#allocation4 + $0x230] sm:$0x1] %vm1306_vm6, %v2011_v49 }
 0x32e   : > { %2622 = vst.msk [vmem:[#allocation4 + $0x218] sm:$0xff] %vm1524_vm8, %v2585_v45  ;;  %vm3742_vm8 = vcmask 523269  }
 0x32f   : > { %3314 = vmatmul.mubr.f32.gmra.mxu1 %v3009_v41 }
 0x330   : > { %v2965_v47 = vld [vmem:[#allocation4 + $0x210] sm:$0xff]  ;;  %v2119_v31 = vpop.permute.xlu1 %2118  ;;  %3318 = vmatprep.mubr.f32.mxu1 %v2945_v39 }
 0x331   : > { %v2479_v20 = vpop.permute.xlu0 %2478  ;;  %2155 = vst.msk [vmem:[#allocation4 + $0x230] sm:$0x1] %vm1416_vm7, %v2119_v31 }
 0x333   : > { %3319 = vmatmul.mubr.f32.gmra.mxu1 %v2943_v54 }
 0x334   : > { %v2227_v53 = vpop.permute.xlu1 %2226 }
 0x335   : > { %v2966_v48 = vld [vmem:[#allocation4 + $0x218] sm:$0xff]  ;;  %v2371_v42 = vpop.permute.xlu0 %2370  ;;  %2263 = vst.msk [vmem:[#allocation4 + $0x230] sm:$0x1] %vm1526_vm9, %v2227_v53 }
 0x336   : > { %2407 = vst.msk [vmem:[#allocation4 + $0x238] sm:$0x1] %vm1306_vm6, %v2371_v42  ;;  %3323 = vmatprep.mubr.f32.mxu1 %v2966_v48  ;;  %vm3709_vm6 = vcmask 523270  }
 0x337   : > { %2515 = vst.msk [vmem:[#allocation4 + $0x238] sm:$0x1] %vm1416_vm7, %v2479_v20  ;;  %3324 = vmatmul.mubr.f32.gmra.mxu1 %v2965_v47  ;;  %vm3715_vm7 = vcmask 520192  }
 0x339   : > { %v2587_v2 = vpop.permute.xlu0 %2586 }
 0x33a   : > { %2623 = vst.msk [vmem:[#allocation4 + $0x238] sm:$0x1] %vm1526_vm9, %v2587_v2  ;;  %vm3748_vm9 = vcmask 519168  }
 0x33c   : > { %v2969_v27 = vld [vmem:[#allocation4 + $0x230] sm:$0x1] }
 0x33d   : > { %2977 = vst [vmem:[#allocation5 + $0xc0] sm:$0x1] %v2969_v27 }
 0x341   : > { %v2970_v36 = vld [vmem:[#allocation4 + $0x238] sm:$0x1] }
 0x342   : > { %2978 = vst [vmem:[#allocation5 + $0x30] sm:$0x1] %v2970_v36 }
 0x344   : > { %v3021_v4 = vld [vmem:[#allocation5 + $0xc0] sm:$0x1] }
 0x349   : > { %v3022_v59 = vld [vmem:[#allocation5 + $0x30] sm:$0x1] }
 0x34a   : > { %3328 = vmatprep.mubr.f32.mxu1 %v3022_v59 }
 0x34b   : > { %3329 = vmatmul.mubr.f32.gmra.mxu1 %v3021_v4 }
 0x37e   : > { %v4453_v62 = vpop.f32.mrf.mxu1 }
 0x380   : > { %v4454_v55 = vpop.f32.mrf.mxu1 }
 0x381   : > { %v4455_v43 = vadd.f32 %v4454_v55, %v4453_v62 }
 0x383   : > { %v3161_v32 = vadd.f32 %v4455_v43, %v6303_v21 }
 0x38c   : > { %v4456_v3 = vpop.f32.mrf.mxu1 }
 0x38e   : > { %v4457_v30 = vpop.f32.mrf.mxu1 }
 0x38f   : > { %v4458_v54 = vadd.f32 %v4457_v30, %v4456_v3 }
 0x391   : > { %v4459_v56 = vpop.f32.mrf.mxu1  ;;  %v3166_v7 = vadd.f32 %v4458_v54, %v6303_v21 }
 0x393   : > { %v4460_v10 = vpop.f32.mrf.mxu1 }
 0x394   : > { %v4461_v6 = vadd.f32 %v4460_v10, %v4459_v56 }
 0x396   : > { %v3171_v31 = vadd.f32 %v4461_v6, %v6303_v21 }
 0x399   : > { %v6234_v33 = vpop.f32.mrf.mxu1 }
 0x39b   : > { %v4463_v44 = vpop.f32.mrf.mxu1 }
 0x39c   : > { %v4464_v20 = vadd.f32 %v4463_v44, %v6234_v33 }
 0x39e   : > { %v3176_v36 = vadd.f32 %v4464_v20, %v6303_v21 }
 0x3a5   : > { %v6236_v8 = vpop.f32.mrf.mxu1 }
 0x3a7   : > { %v4466_v52 = vpop.f32.mrf.mxu1 }
 0x3a8   : > { %v4467_v59 = vadd.f32 %v4466_v52, %v6236_v8 }
 0x3aa   : > { %v3181_v10 = vadd.f32 %v4467_v59, %v6303_v21 }
 0x3ad   : > { %v6259_v58 = vpop.f32.mrf.mxu1 }
 0x3af   : > { %v4469_v12 = vpop.f32.mrf.mxu1 }
 0x3b0   : > { %v4470_v33 = vadd.f32 %v4469_v12, %v6259_v58 }
 0x3b2   : > { %v3186_v38 = vadd.f32 %v4470_v33, %v6303_v21 }
 0x3b5   : > { %v6279_v11 = vpop.f32.mrf.mxu1 }
 0x3b7   : > { %v4472_v50 = vpop.f32.mrf.mxu1 }
 0x3b8   : > { %v4473_v52 = vadd.f32 %v4472_v50, %v6279_v11  ;;  %v3907_v50 = vld [vmem:[%s6694_s5 + $0xc0] sm:$0xff] }
 0x3b9   : > { %4565 = vmatprep.subr.mxu1 %v3907_v50 }
 0x3ba   : > { %v3191_v60 = vadd.f32 %v4473_v52, %v6303_v21  ;;  %v3902_v52 = vld [vmem:[%s6694_s5 + $0x98] sm:$0xff] }
 0x3bd   : > { %v6284_v22 = vpop.f32.mrf.mxu1 }
 0x3bf   : > { %v6286_v28 = vpop.f32.mrf.mxu1 }
 0x3c0   : > { %v4476_v13 = vadd.f32 %v6286_v28, %v6284_v22  ;;  %v3906_v22 = vld [vmem:[%s6694_s5 + $0xb8] sm:$0xff] }
 0x3c1   : > { %v6288_v24 = vpop.f32.mrf.mxu1 }
 0x3c3   : > { %v6290_v14 = vpop.f32.mrf.mxu1 }
 0x3c5   : > { %v6292_v51 = vpop.f32.mrf.mxu1 }
 0x3c7   : > { %v6294_v61 = vpop.f32.mrf.mxu1 }
 0x3cf   : > { %v6296_v18 = vpop.f32.mrf.mxu1 }
 0x3d1   : > { %v6298_v15 = vpop.f32.mrf.mxu1 }
 0x3d3   : > { %v4518_v19 = vpop.f32.mrf.mxu1 }
 0x3d5   : > { %v4519_v23 = vpop.f32.mrf.mxu1 }
 0x3d6   : > { %v4520_v26 = vadd.f32 %v4519_v23, %v4518_v19 }
 0x3d7   : > { %v4521_v37 = vpop.f32.mrf.mxu1 }
 0x3d8   : > { %v3281_v46 = vadd.f32 %v4520_v26, %v3161_v32  ;;  %v3891_v32 = vld [vmem:[%s6694_s5 + $0x40] sm:$0xff] }
 0x3d9   : > { %v4522_v35 = vpop.f32.mrf.mxu1  ;;  %4566 = vmatpush3.msra.mxu1 %v3891_v32 }
 0x3da   : > { %v3334_v49 = vmax.f32 %v3281_v46, 0.0  ;;  %v4523_v39 = vadd.f32 %v4522_v35, %v4521_v37  ;;  %4567 = vmatprep.subr.mxu1 %v3906_v22  ;;  %v3890_v37 = vld [vmem:[%s6694_s5 + $0x38] sm:$0xff]  ;;  %v3196_v46 = vadd.f32 %v4476_v13, %v6303_v21  ;;  %v4479_v35 = vadd.f32 %v6290_v14, %v6288_v24 }
 0x3db   : > { %v4524_v45 = vpop.f32.mrf.mxu1  ;;  %4568 = vmatpush3.msra.mxu1 %v3890_v37  ;;  %v3899_v37 = vld [vmem:[%s6694_s5 + $0x80] sm:$0xff] }
 0x3dc   : > { %3345 = vst.msk [vmem:[#allocation6] sm:$0xff] %vm410_vm0, %v3334_v49  ;;  %v3286_v41 = vadd.f32 %v4523_v39, %v3166_v7  ;;  %v3905_v49 = vld [vmem:[%s6694_s5 + $0xb0] sm:$0xff] }
 0x3dd   : > { %v4525_v47 = vpop.f32.mrf.mxu1  ;;  %4569 = vmatprep.subr.mxu1 %v3905_v49 }
 0x3de   : > { %v3335_v53 = vmax.f32 %v3286_v41, 0.0  ;;  %v4526_v48 = vadd.f32 %v4525_v47, %v4524_v45 }
 0x3df   : > { %v4527_v42 = vpop.f32.mrf.mxu1 }
 0x3e0   : > { %3346 = vst.msk [vmem:[#allocation6 + $0x8] sm:$0xff] %vm410_vm0, %v3335_v53  ;;  %v3291_v2 = vadd.f32 %v4526_v48, %v3171_v31  ;;  %v3889_v53 = vld [vmem:[%s6694_s5 + $0x30] sm:$0xff]  ;;  %v3904_v48 = vld [vmem:[%s6694_s5 + $0xa8] sm:$0xff] }
 0x3e1   : > { %v4528_v27 = vpop.f32.mrf.mxu1  ;;  %4570 = vmatpush3.msra.mxu1 %v3889_v53 }
 0x3e2   : > { %v3336_v4 = vmax.f32 %v3291_v2, 0.0  ;;  %v4529_v62 = vadd.f32 %v4528_v27, %v4527_v42  ;;  %v3201_v42 = vadd.f32 %v4479_v35, %v6303_v21  ;;  %v4482_v2 = vadd.f32 %v6294_v61, %v6292_v51  ;;  %4571 = vmatprep.subr.mxu1 %v3904_v48 }
 0x3e3   : > { %v4530_v55 = vpop.f32.mrf.mxu1  ;;  %v3357_v3 = vld [vmem:[#allocation6] sm:$0xff] }
 0x3e4   : > { %3347 = vst.msk [vmem:[#allocation6 + $0x10] sm:$0xff] %vm410_vm0, %v3336_v4  ;;  %v3296_v30 = vadd.f32 %v4529_v62, %v3176_v36  ;;  %3359 = vst.msk [vmem:[#allocation7] sm:$0xff] %vm410_vm0, %v3357_v3  ;;  %v3888_v4 = vld [vmem:[%s6694_s5 + $0x28] sm:$0xff] }
 0x3e5   : > { %v4531_v56 = vpop.f32.mrf.mxu1  ;;  %4572 = vmatpush3.msra.mxu1 %v3888_v4 }
 0x3e6   : > { %v3337_v44 = vmax.f32 %v3296_v30, 0.0  ;;  %v4532_v63 = vadd.f32 %v4531_v56, %v4530_v55  ;;  %v3903_v56 = vld [vmem:[%s6694_s5 + $0xa0] sm:$0xff] }
 0x3e7   : > { %v3358_v5 = vld [vmem:[#allocation6 + $0x8] sm:$0x1]  ;;  %v4533_v0 = vpop.f32.mrf.mxu1  ;;  %4573 = vmatprep.subr.mxu1 %v3903_v56 }
 0x3e8   : > { %3348 = vst.msk [vmem:[#allocation6 + $0x18] sm:$0xff] %vm410_vm0, %v3337_v44  ;;  %v3301_v8 = vadd.f32 %v4532_v63, %v3181_v10 }
 0x3e9   : > { %3360 = vst.msk [vmem:[#allocation7 + $0x8] sm:$0x1] %vm3355_vm2, %v3358_v5  ;;  %v4534_v25 = vpop.f32.mrf.mxu1  ;;  %v3206_v5 = vadd.f32 %v4482_v2, %v6303_v21 }
 0x3ea   : > { %v3338_v57 = vmax.f32 %v3301_v8, 0.0  ;;  %v4535_v17 = vadd.f32 %v4534_v25, %v4533_v0 }
 0x3eb   : > { %v4536_v34 = vpop.f32.mrf.mxu1  ;;  %v3361_v29 = vld [vmem:[#allocation6 + $0x9] sm:$0xff]  ;;  %v3362_v58 = vld [vmem:[#allocation6 + $0x11] sm:$0x1]  ;;  %v3401_v40 = vld [vmem:[#allocation7] sm:$0x7f] }
 0x3ec   : > { %3349 = vst.msk [vmem:[#allocation6 + $0x20] sm:$0xff] %vm410_vm0, %v3338_v57  ;;  %v3306_v9 = vadd.f32 %v4535_v17, %v3186_v38  ;;  %3364 = vst.msk [vmem:[#allocation7 + $0x10] sm:$0xff] %vm410_vm0, %v3361_v29  ;;  %v3416_v59 = vld [vmem:[#allocation7 + $0x1] sm:$0x7f]  ;;  %v3887_v38 = vld [vmem:[%s6694_s5 + $0x20] sm:$0xff] }
 0x3ed   : > { %3365 = vst.msk [vmem:[#allocation7 + $0x18] sm:$0x1] %vm3355_vm2, %v3362_v58  ;;  %v4537_v12 = vpop.f32.mrf.mxu1  ;;  %4574 = vmatpush3.msra.mxu1 %v3887_v38 }
 0x3ee   : > { %3409 = vst.msk [vmem:[#allocation8] sm:$0x7f] %vm3408_vm3, %v3401_v40  ;;  %v3339_v11 = vmax.f32 %v3306_v9, 0.0  ;;  %v4538_v16 = vadd.f32 %v4537_v12, %v4536_v34  ;;  %v3886_v34 = vld [vmem:[%s6694_s5 + $0x18] sm:$0xff]  ;;  %4575 = vmatprep.subr.mxu1 %v3902_v52 }
 0x3ef   : > { %v4539_v43 = vpop.f32.mrf.mxu1  ;;  %v3366_v19 = vld [vmem:[#allocation6 + $0x12] sm:$0xff]  ;;  %v3367_v23 = vld [vmem:[#allocation6 + $0x1a] sm:$0x1]  ;;  %4576 = vmatpush3.msra.mxu1 %v3886_v34 }
 0x3f0   : > { %3350 = vst.msk [vmem:[#allocation6 + $0x28] sm:$0xff] %vm410_vm0, %v3339_v11  ;;  %v3311_v54 = vadd.f32 %v4538_v16, %v3191_v60  ;;  %3369 = vst.msk [vmem:[#allocation7 + $0x20] sm:$0xff] %vm410_vm0, %v3366_v19  ;;  %v3459_v28 = vld [vmem:[#allocation7 + $0x2] sm:$0x7f] }
 0x3f1   : > { %3370 = vst.msk [vmem:[#allocation7 + $0x28] sm:$0x1] %vm3355_vm2, %v3367_v23  ;;  %v4540_v26 = vpop.f32.mrf.mxu1  ;;  %v3901_v11 = vld [vmem:[%s6694_s5 + $0x90] sm:$0xff]  ;;  %v3900_v19 = vld [vmem:[%s6694_s5 + $0x88] sm:$0xff] }
 0x3f2   : > { %3466 = vst.msk [vmem:[#allocation8 + $0x8] sm:$0x7f] %vm3408_vm3, %v3459_v28  ;;  %v3340_v7 = vmax.f32 %v3311_v54, 0.0  ;;  %v4541_v6 = vadd.f32 %v4540_v26, %v4539_v43  ;;  %v3885_v16 = vld [vmem:[%s6694_s5 + $0x10] sm:$0xff]  ;;  %4577 = vmatprep.subr.mxu1 %v3901_v11  ;;  %v3884_v26 = vld [vmem:[%s6694_s5 + $0x8] sm:$0xff] }
 0x3f3   : > { %v3417_v39 = vld [vmem:[#allocation7 + $0x11] sm:$0x7f]  ;;  %v4542_v45 = vpop.f32.mrf.mxu1  ;;  %v3371_v41 = vld [vmem:[#allocation6 + $0x1b] sm:$0xff]  ;;  %v3372_v31 = vld [vmem:[#allocation6 + $0x23] sm:$0x1]  ;;  %4578 = vmatpush3.msra.mxu1 %v3885_v16 }
 0x3f4   : > { %3351 = vst.msk [vmem:[#allocation6 + $0x30] sm:$0xff] %vm410_vm0, %v3340_v7  ;;  %v3316_v47 = vadd.f32 %v4541_v6, %v3196_v46  ;;  %3432 = vrot.lane.b32.xlu1 %v3417_v39, %s4734_s17  ;;  %3374 = vst.msk [vmem:[#allocation7 + $0x30] sm:$0xff] %vm410_vm0, %v3371_v41  ;;  %v3402_v24 = vld [vmem:[#allocation7 + $0x10] sm:$0x7f]  ;;  %4579 = vmatprep.subr.mxu1 %v3900_v19  ;;  %v3883_v7 = vld [vmem:[%s6694_s5] sm:$0xff] }
 0x3f5   : > { %v4543_v14 = vpop.f32.mrf.mxu1  ;;  %3375 = vst.msk [vmem:[#allocation7 + $0x38] sm:$0x1] %vm3355_vm2, %v3372_v31  ;;  %v3460_v20 = vld [vmem:[#allocation7 + $0x12] sm:$0x7f]  ;;  %4580 = vmatpush3.msra.mxu1 %v3884_v26 }
 0x3f6   : > { %3410 = vst.msk [vmem:[#allocation8 + $0x28] sm:$0x7f] %vm3408_vm3, %v3402_v24  ;;  %v3341_v27 = vmax.f32 %v3316_v47, 0.0  ;;  %v4544_v36 = vadd.f32 %v4543_v14, %v4542_v45  ;;  %3467 = vst.msk [vmem:[#allocation8 + $0x30] sm:$0x7f] %vm3408_vm3, %v3460_v20  ;;  %4581 = vmatprep.subr.mxu1 %v3899_v37  ;;  %v3946_v41 = vld [vmem:[%s6694_s5 + $0x1f8] sm:$0xff] }
 0x3f7   : > { %v3515_v62 = vld [vmem:[#allocation7 + $0x11] sm:$0x7f]  ;;  %v3474_v55 = vld [vmem:[#allocation7 + $0x20] sm:$0x7f]  ;;  %v4545_v3 = vpop.f32.mrf.mxu1  ;;  %4582 = vmatpush3.msra.mxu1 %v3883_v7 }
 0x3f8   : > { %v3376_v30 = vld [vmem:[#allocation6 + $0x24] sm:$0xff]  ;;  %3522 = vst.msk [vmem:[#allocation8 + $0x10] sm:$0x7f] %vm3408_vm3, %v3515_v62  ;;  %v3321_v51 = vadd.f32 %v4544_v36, %v3201_v42  ;;  %3489 = vrot.lane.b32.xlu0 %v3474_v55, %s4734_s17  ;;  %3430 = vrot.lane.b32.xlu1 %v3416_v59, %s4734_s17  ;;  %v3627_v61 = vld [vmem:[#allocation7 + $0x22] sm:$0x7f]  ;;  %v4485_v42 = vadd.f32 %v6298_v15, %v6296_v18 }
 0x3f9   : > { %3352 = vst.msk [vmem:[#allocation6 + $0x38] sm:$0xff] %vm410_vm0, %v3341_v27  ;;  %3379 = vst.msk [vmem:[#allocation7 + $0x40] sm:$0xff] %vm410_vm0, %v3376_v30  ;;  %v4546_v10 = vpop.f32.mrf.mxu1  ;;  %v3377_v33 = vld [vmem:[#allocation6 + $0x2c] sm:$0x1]  ;;  %v3403_v44 = vld [vmem:[#allocation7 + $0x20] sm:$0x7f]  ;;  %4604 = vmatprep.subr.mxu1 %v3946_v41 }
 0x3fa   : > { %3634 = vst.msk [vmem:[#allocation8 + $0x20] sm:$0x7f] %vm3408_vm3, %v3627_v61  ;;  %v3461_v63 = vld [vmem:[#allocation7 + $0x22] sm:$0x7f]  ;;  %v3342_v0 = vmax.f32 %v3321_v51, 0.0  ;;  %v4547_v25 = vadd.f32 %v4546_v10, %v4545_v3  ;;  %v3211_v56 = vadd.f32 %v4485_v42, %v6303_v21 }
 0x3fb   : > { %v3473_v8 = vld [vmem:[#allocation7 + $0x10] sm:$0x7f]  ;;  %3380 = vst.msk [vmem:[#allocation7 + $0x48] sm:$0x1] %vm3355_vm2, %v3377_v33  ;;  %v3418_v57 = vld [vmem:[#allocation7 + $0x21] sm:$0x7f] }
 0x3fc   : > { %3411 = vst.msk [vmem:[#allocation8 + $0x50] sm:$0x7f] %vm3408_vm3, %v3403_v44  ;;  %3468 = vst.msk [vmem:[#allocation8 + $0x58] sm:$0x7f] %vm3408_vm3, %v3461_v63  ;;  %v3381_v17 = vld [vmem:[#allocation6 + $0x2d] sm:$0xff]  ;;  %3487 = vrot.lane.b32.xlu0 %v3473_v8, %s4734_s17  ;;  %3434 = vrot.lane.b32.xlu1 %v3418_v57, %s4734_s17  ;;  %v3326_v29 = vadd.f32 %v4547_v25, %v3206_v5 }
 0x3fd   : > { %3353 = vst.msk [vmem:[#allocation6 + $0x40] sm:$0xff] %vm410_vm0, %v3342_v0  ;;  %3384 = vst.msk [vmem:[#allocation7 + $0x50] sm:$0xff] %vm410_vm0, %v3381_v17  ;;  %v3628_v58 = vld [vmem:[#allocation7 + $0x32] sm:$0x7f]  ;;  %v3382_v9 = vld [vmem:[#allocation6 + $0x35] sm:$0x1] }
 0x3fe   : > { %3635 = vst.msk [vmem:[#allocation8 + $0x48] sm:$0x7f] %vm3408_vm3, %v3628_v58  ;;  %v3404_v40 = vld [vmem:[#allocation7 + $0x30] sm:$0x7f]  ;;  %v3343_v13 = vmax.f32 %v3326_v29, 0.0 }
 0x3ff   : > { %v3462_v12 = vld [vmem:[#allocation7 + $0x32] sm:$0x7f]  ;;  %3385 = vst.msk [vmem:[#allocation7 + $0x58] sm:$0x1] %vm3355_vm2, %v3382_v9  ;;  %v3516_v48 = vld [vmem:[#allocation7 + $0x21] sm:$0x7f] }
 0x400   : > { %v3475_v60 = vld [vmem:[#allocation7 + $0x30] sm:$0x7f]  ;;  %3412 = vst.msk [vmem:[#allocation8 + $0x78] sm:$0x7f] %vm3408_vm3, %v3404_v40  ;;  %3469 = vst.msk [vmem:[#allocation8 + $0x80] sm:$0x7f] %vm3408_vm3, %v3462_v12 }
 0x401   : > { %v3419_v50 = vld [vmem:[#allocation7 + $0x31] sm:$0x7f]  ;;  %v3386_v43 = vld [vmem:[#allocation6 + $0x36] sm:$0xff]  ;;  %3491 = vrot.lane.b32.xlu0 %v3475_v60, %s4734_s17  ;;  %3354 = vst.msk [vmem:[#allocation6 + $0x48] sm:$0xff] %vm410_vm0, %v3343_v13  ;;  %v3387_v23 = vld [vmem:[#allocation6 + $0x3e] sm:$0x1] }
 0x402   : > { %3436 = vrot.lane.b32.xlu1 %v3419_v50, %s4734_s17  ;;  %3389 = vst.msk [vmem:[#allocation7 + $0x60] sm:$0xff] %vm410_vm0, %v3386_v43  ;;  %v3405_v32 = vld [vmem:[#allocation7 + $0x40] sm:$0x7f]  ;;  %v3572_v2 = vld [vmem:[#allocation7 + $0x30] sm:$0x7f] }
 0x403   : > { %v3629_v54 = vld [vmem:[#allocation7 + $0x42] sm:$0x7f]  ;;  %3390 = vst.msk [vmem:[#allocation7 + $0x68] sm:$0x1] %vm3355_vm2, %v3387_v23  ;;  %v3517_v36 = vld [vmem:[#allocation7 + $0x31] sm:$0x7f] }
 0x404   : > { %3413 = vst.msk [vmem:[#allocation8 + $0xa0] sm:$0x7f] %vm3408_vm3, %v3405_v32  ;;  %v3463_v22 = vld [vmem:[#allocation7 + $0x42] sm:$0x7f]  ;;  %3636 = vst.msk [vmem:[#allocation8 + $0x70] sm:$0x7f] %vm3408_vm3, %v3629_v54 }
 0x405   : > { %v3476_v28 = vld [vmem:[#allocation7 + $0x40] sm:$0x7f]  ;;  %3470 = vst.msk [vmem:[#allocation8 + $0xa8] sm:$0x7f] %vm3408_vm3, %v3463_v22  ;;  %v3391_v35 = vld [vmem:[#allocation6 + $0x3f] sm:$0xff] }
 0x406   : > { %v3420_v46 = vld [vmem:[#allocation7 + $0x41] sm:$0x7f]  ;;  %3493 = vrot.lane.b32.xlu0 %v3476_v28, %s4734_s17  ;;  %3394 = vst.msk [vmem:[#allocation7 + $0x70] sm:$0xff] %vm410_vm0, %v3391_v35  ;;  %v3392_v6 = vld [vmem:[#allocation6 + $0x47] sm:$0x1] }
 0x407   : > { %3438 = vrot.lane.b32.xlu1 %v3420_v46, %s4734_s17  ;;  %v3406_v49 = vld [vmem:[#allocation7 + $0x50] sm:$0x7f]  ;;  %3395 = vst.msk [vmem:[#allocation7 + $0x78] sm:$0x1] %vm3355_vm2, %v3392_v6  ;;  %v3571_v27 = vld [vmem:[#allocation7 + $0x20] sm:$0x7f] }
 0x408   : > { %v3630_v39 = vld [vmem:[#allocation7 + $0x52] sm:$0x7f]  ;;  %3414 = vst.msk [vmem:[#allocation8 + $0xc8] sm:$0x7f] %vm3408_vm3, %v3406_v49  ;;  %3523 = vst.msk [vmem:[#allocation8 + $0x38] sm:$0x7f] %vm3408_vm3, %v3516_v48 }
 0x409   : > { %v3464_v45 = vld [vmem:[#allocation7 + $0x52] sm:$0x7f]  ;;  %3637 = vst.msk [vmem:[#allocation8 + $0x98] sm:$0x7f] %vm3408_vm3, %v3630_v39  ;;  %v3407_v20 = vld [vmem:[#allocation7 + $0x60] sm:$0x7f] }
 0x40a   : > { %3471 = vst.msk [vmem:[#allocation8 + $0xd0] sm:$0x7f] %vm3408_vm3, %v3464_v45  ;;  %v3477_v47 = vld [vmem:[#allocation7 + $0x50] sm:$0x7f]  ;;  %v3631_v24 = vld [vmem:[#allocation7 + $0x62] sm:$0x7f] }
 0x40b   : > { %v3421_v31 = vld [vmem:[#allocation7 + $0x51] sm:$0x7f]  ;;  %3495 = vrot.lane.b32.xlu0 %v3477_v47, %s4734_s17  ;;  %3638 = vst.msk [vmem:[#allocation8 + $0xc0] sm:$0x7f] %vm3408_vm3, %v3631_v24  ;;  %v3465_v53 = vld [vmem:[#allocation7 + $0x62] sm:$0x7f]  ;;  %v4548_v59 = vpop.f32.mrf.mxu1 }
 0x40c   : > { %3440 = vrot.lane.b32.xlu1 %v3421_v31, %s4734_s17  ;;  %v3396_v14 = vld [vmem:[#allocation6 + $0x48] sm:$0xff]  ;;  %3415 = vst.msk [vmem:[#allocation8 + $0xf0] sm:$0x7f] %vm3408_vm3, %v3407_v20  ;;  %3472 = vst.msk [vmem:[#allocation8 + $0xf8] sm:$0x7f] %vm3408_vm3, %v3465_v53 }
 0x40d   : > { %3399 = vst.msk [vmem:[#allocation7 + $0x80] sm:$0xff] %vm410_vm0, %v3396_v14  ;;  %v3478_v4 = vld [vmem:[#allocation7 + $0x60] sm:$0x7f]  ;;  %v4549_v3 = vpop.f32.mrf.mxu1  ;;  %v3479_v61 = vld [vmem:[#allocation7 + $0x70] sm:$0x7f] }
 0x40e   : > { %v3422_v62 = vld [vmem:[#allocation7 + $0x61] sm:$0x7f]  ;;  %3579 = vst.msk [vmem:[#allocation8 + $0x40] sm:$0x7f] %vm3408_vm3, %v3572_v2  ;;  %3578 = vst.msk [vmem:[#allocation8 + $0x18] sm:$0x7f] %vm3408_vm3, %v3571_v27  ;;  %v4550_v51 = vadd.f32 %v4549_v3, %v4548_v59 }
 0x40f   : > { %3524 = vst.msk [vmem:[#allocation8 + $0x60] sm:$0x7f] %vm3408_vm3, %v3517_v36  ;;  %v3573_v55 = vld [vmem:[#allocation7 + $0x40] sm:$0x7f]  ;;  %3497 = vrot.lane.b32.xlu0 %v3478_v4, %s4734_s17  ;;  %v3632_v18 = vld [vmem:[#allocation7 + $0x72] sm:$0x7f] }
 0x410   : > { %3442 = vrot.lane.b32.xlu1 %v3422_v62, %s4734_s17  ;;  %3580 = vst.msk [vmem:[#allocation8 + $0x68] sm:$0x7f] %vm3408_vm3, %v3573_v55  ;;  %v3518_v15 = vld [vmem:[#allocation7 + $0x41] sm:$0x7f]  ;;  %3639 = vst.msk [vmem:[#allocation8 + $0xe8] sm:$0x7f] %vm3408_vm3, %v3632_v18  ;;  %v3331_v0 = vadd.f32 %v4550_v51, %v3211_v56 }
 0x411   : > { %v3530_v30 = vld [vmem:[#allocation7 + $0x22] sm:$0x7f]  ;;  %3525 = vst.msk [vmem:[#allocation8 + $0x88] sm:$0x7f] %vm3408_vm3, %v3518_v15  ;;  %v3574_v10 = vld [vmem:[#allocation7 + $0x50] sm:$0x7f] }
 0x412   : > { %v3519_v33 = vld [vmem:[#allocation7 + $0x51] sm:$0x7f]  ;;  %3581 = vst.msk [vmem:[#allocation8 + $0x90] sm:$0x7f] %vm3408_vm3, %v3574_v10  ;;  %v3575_v44 = vld [vmem:[#allocation7 + $0x60] sm:$0x7f] }
 0x413   : > { %3526 = vst.msk [vmem:[#allocation8 + $0xb0] sm:$0x7f] %vm3408_vm3, %v3519_v33  ;;  %v3520_v63 = vld [vmem:[#allocation7 + $0x61] sm:$0x7f]  ;;  %v3576_v5 = vld [vmem:[#allocation7 + $0x70] sm:$0x7f]  ;;  %3499 = vrot.lane.b32.xlu0 %v3479_v61, %s4734_s17 }
 0x414   : > { %3545 = vrot.lane.b32.xlu1 %v3530_v30, %s4734_s17  ;;  %3582 = vst.msk [vmem:[#allocation8 + $0xb8] sm:$0x7f] %vm3408_vm3, %v3575_v44  ;;  %3527 = vst.msk [vmem:[#allocation8 + $0xd8] sm:$0x7f] %vm3408_vm3, %v3520_v63  ;;  %v3521_v21 = vld [vmem:[#allocation7 + $0x71] sm:$0x7f] }
 0x415   : > { %3583 = vst.msk [vmem:[#allocation8 + $0xe0] sm:$0x7f] %vm3408_vm3, %v3576_v5  ;;  %v3577_v8 = vld [vmem:[#allocation7 + $0x80] sm:$0x7f]  ;;  %v3586_v25 = vld [vmem:[#allocation7 + $0x31] sm:$0x7f] }
 0x416   : > { %v3529_v38 = vld [vmem:[#allocation7 + $0x12] sm:$0x7f]  ;;  %3528 = vst.msk [vmem:[#allocation8 + $0x100] sm:$0x7f] %vm3408_vm3, %v3521_v21  ;;  %3584 = vst.msk [vmem:[#allocation8 + $0x108] sm:$0x7f] %vm3408_vm3, %v3577_v8 }
 0x417   : > { %v3344_v52 = vmax.f32 %v3331_v0, 0.0  ;;  %v3645_v57 = vld [vmem:[#allocation8 + $0x20] sm:$0x7f]  ;;  %v3656_v17 = vld [vmem:[#allocation8 + $0x48] sm:$0x7f]  ;;  %3601 = vrot.lane.b32.xlu0 %v3586_v25, %s4734_s17  ;;  %v3945_v21 = vld [vmem:[%s6694_s5 + $0x1f0] sm:$0xff] }
 0x418   : > { %3650 = vst.msk [vmem:[#allocation9 + $0x20] sm:$0x7f] %vm3408_vm3, %v3645_v57  ;;  %v3666_v34 = vrot.slane %v3656_v17, 1  ;;  %v3689_v29 = vld [vmem:[#allocation8 + $0x70] sm:$0x7f]  ;;  %3543 = vrot.lane.b32.xlu1 %v3529_v38, %s4734_s17  ;;  %v3930_v56 = vld [vmem:[%s6694_s5 + $0x178] sm:$0xff] }
 0x419   : > { %v3722_v58 = vld [vmem:[#allocation8 + $0x98] sm:$0x7f]  ;;  %3356 = vst.msk [vmem:[#allocation6 + $0x50] sm:$0x1] %vm3355_vm2, %v3344_v52  ;;  %v3699_v9 = vrot.slane %v3689_v29, 2  ;;  %v3944_v25 = vld [vmem:[%s6694_s5 + $0x1e8] sm:$0xff] }
 0x41a   : > { %v3732_v40 = vrot.slane %v3722_v58, 3  ;;  %v3755_v12 = vld [vmem:[#allocation8 + $0xc0] sm:$0x7f]  ;;  %v3788_v60 = vld [vmem:[#allocation8 + $0xe8] sm:$0x7f]  ;;  %v3929_v8 = vld [vmem:[%s6694_s5 + $0x170] sm:$0xff] }
 0x41b   : > { %3677 = vst.msk [vmem:[#allocation9 + $0x20] sm:$0x80] %vm3676_vm4, %v3666_v34  ;;  %v3765_v13 = vrot.slane %v3755_v12, 4  ;;  %v3798_v11 = vrot.slane %v3788_v60, 5  ;;  %v3585_v16 = vld [vmem:[#allocation7 + $0x21] sm:$0x7f] }
 0x41c   : > { %3683 = vst.msk [vmem:[#allocation9 + $0x48] sm:$0x3f] %vm3682_vm5, %v3666_v34  ;;  %v3531_v50 = vld [vmem:[#allocation7 + $0x32] sm:$0x7f]  ;;  %3599 = vrot.lane.b32.xlu0 %v3585_v16, %s4734_s17  ;;  %v3587_v19 = vld [vmem:[#allocation7 + $0x41] sm:$0x7f] }
 0x41d   : > { %3710 = vst.msk [vmem:[#allocation9 + $0x48] sm:$0xc0] %vm3709_vm6, %v3699_v9  ;;  %3547 = vrot.lane.b32.xlu1 %v3531_v50, %s4734_s17  ;;  %v3532_v23 = vld [vmem:[#allocation7 + $0x42] sm:$0x7f]  ;;  %v3588_v32 = vld [vmem:[#allocation7 + $0x51] sm:$0x7f] }
 0x41e   : > { %3716 = vst.msk [vmem:[#allocation9 + $0x70] sm:$0x1f] %vm3715_vm7, %v3699_v9  ;;  %v3533_v54 = vld [vmem:[#allocation7 + $0x52] sm:$0x7f]  ;;  %v3589_v22 = vld [vmem:[#allocation7 + $0x61] sm:$0x7f] }
 0x41f   : > { %3743 = vst.msk [vmem:[#allocation9 + $0x70] sm:$0xe0] %vm3742_vm8, %v3732_v40  ;;  %v3534_v28 = vld [vmem:[#allocation7 + $0x62] sm:$0x7f]  ;;  %v3590_v37 = vld [vmem:[#allocation7 + $0x71] sm:$0x7f] }
 0x420   : > { %3749 = vst.msk [vmem:[#allocation9 + $0x98] sm:$0xf] %vm3748_vm9, %v3732_v40  ;;  %v3397_v43 = vld [vmem:[#allocation6 + $0x50] sm:$0x1]  ;;  %3603 = vrot.lane.b32.xlu0 %v3587_v19, %s4734_s17  ;;  %v3591_v35 = vld [vmem:[#allocation7 + $0x81] sm:$0x7f] }
 0x421   : > { %3776 = vst.msk [vmem:[#allocation9 + $0x98] sm:$0xf0] %vm3775_vm10, %v3765_v13  ;;  %3549 = vrot.lane.b32.xlu1 %v3532_v23, %s4734_s17  ;;  %v3535_v46 = vld [vmem:[#allocation7 + $0x72] sm:$0x7f]  ;;  %v3928_v34 = vld [vmem:[%s6694_s5 + $0x168] sm:$0xff] }
 0x422   : > { %3782 = vst.msk [vmem:[#allocation9 + $0xc0] sm:$0x7] %vm3781_vm11, %v3765_v13  ;;  %v3943_v9 = vld [vmem:[%s6694_s5 + $0x1e0] sm:$0xff]  ;;  %v3942_v13 = vld [vmem:[%s6694_s5 + $0x1d8] sm:$0xff] }
 0x423   : > { %3809 = vst.msk [vmem:[#allocation9 + $0xc0] sm:$0xf8] %vm3808_vm12, %v3798_v11  ;;  %v3927_v12 = vld [vmem:[%s6694_s5 + $0x160] sm:$0xff]  ;;  %v3926_v19 = vld [vmem:[%s6694_s5 + $0x158] sm:$0xff] }
 0x424   : > { %3815 = vst.msk [vmem:[#allocation9 + $0xe8] sm:$0x3] %vm3814_vm13, %v3798_v11  ;;  %3605 = vrot.lane.b32.xlu0 %v3588_v32, %s4734_s17 }
 0x425   : > { %3400 = vst.msk [vmem:[#allocation7 + $0x88] sm:$0x1] %vm3355_vm2, %v3397_v43  ;;  %3551 = vrot.lane.b32.xlu1 %v3533_v54, %s4734_s17  ;;  %v3941_v54 = vld [vmem:[%s6694_s5 + $0x1d0] sm:$0xff] }
 0x428   : > { %3607 = vrot.lane.b32.xlu0 %v3589_v22, %s4734_s17 }
 0x429   : > { %3553 = vrot.lane.b32.xlu1 %v3534_v28, %s4734_s17  ;;  %v3925_v28 = vld [vmem:[%s6694_s5 + $0x150] sm:$0xff] }
 0x42c   : > { %v3633_v26 = vld [vmem:[#allocation7 + $0x82] sm:$0x7f]  ;;  %3609 = vrot.lane.b32.xlu0 %v3590_v37, %s4734_s17 }
 0x42d   : > { %3640 = vst.msk [vmem:[#allocation8 + $0x110] sm:$0x7f] %vm3408_vm3, %v3633_v26  ;;  %3555 = vrot.lane.b32.xlu1 %v3535_v46, %s4734_s17  ;;  %v3940_v37 = vld [vmem:[%s6694_s5 + $0x1c8] sm:$0xff] }
 0x430   : > { %3611 = vrot.lane.b32.xlu0 %v3591_v35, %s4734_s17 }
 0x434   : > { %v3821_v7 = vld [vmem:[#allocation8 + $0x110] sm:$0x7f] }
 0x435   : > { %v3831_v6 = vrot.slane %v3821_v7, 6 }
 0x437   : > { %3842 = vst.msk [vmem:[#allocation9 + $0xe8] sm:$0xfc] %vm3841_vm14, %v3831_v6 }
 0x438   : > { %3847 = vst.msk [vmem:[#allocation9 + $0x110] sm:$0x1] %vm3355_vm2, %v3831_v6 }
 0x466   : > { %v3433_v49 = vpop.permute.xlu1 %3432 }
 0x467   : > { %3453 = vst.msk [vmem:[#allocation8 + $0x28] sm:$0x7f] %vm3451_vm15, %v3433_v49  ;;  %v3924_v49 = vld [vmem:[%s6694_s5 + $0x148] sm:$0xff] }
 0x46a   : > { %v3490_v39 = vpop.permute.xlu0 %3489  ;;  %v3431_v45 = vpop.permute.xlu1 %3430 }
 0x46b   : > { %3509 = vst.msk [vmem:[#allocation8 + $0x30] sm:$0x7f] %vm3451_vm15, %v3490_v39  ;;  %3452 = vst.msk [vmem:[#allocation8] sm:$0x7f] %vm3451_vm15, %v3431_v45 }
 0x46e   : > { %v3652_v41 = vld [vmem:[#allocation8 + $0x28] sm:$0x7f]  ;;  %v3488_v47 = vpop.permute.xlu0 %3487  ;;  %v3435_v31 = vpop.permute.xlu1 %3434 }
 0x46f   : > { %v3662_v24 = vrot.slane %v3652_v41, 1  ;;  %3508 = vst.msk [vmem:[#allocation8 + $0x8] sm:$0x7f] %vm3451_vm15, %v3488_v47  ;;  %3454 = vst.msk [vmem:[#allocation8 + $0x50] sm:$0x7f] %vm3451_vm15, %v3435_v31  ;;  %v3939_v41 = vld [vmem:[%s6694_s5 + $0x1c0] sm:$0xff] }
 0x470   : > { %v3923_v31 = vld [vmem:[%s6694_s5 + $0x140] sm:$0xff] }
 0x471   : > { %3672 = vst [vmem:[#allocation9] sm:$0x80] %v3662_v24  ;;  %3678 = vst [vmem:[#allocation9 + $0x28] sm:$0x3f] %v3662_v24 }
 0x472   : > { %v3653_v14 = vld [vmem:[#allocation8 + $0x30] sm:$0x7f]  ;;  %v3641_v20 = vld [vmem:[#allocation8] sm:$0x7f] }
 0x473   : > { %v3492_v53 = vpop.permute.xlu0 %3491  ;;  %v3663_v42 = vrot.slane %v3653_v14, 1  ;;  %3646 = vst [vmem:[#allocation9] sm:$0x7f] %v3641_v20  ;;  %v3938_v14 = vld [vmem:[%s6694_s5 + $0x1b8] sm:$0xff] }
 0x474   : > { %v3437_v48 = vpop.permute.xlu1 %3436  ;;  %3510 = vst.msk [vmem:[#allocation8 + $0x58] sm:$0x7f] %vm3451_vm15, %v3492_v53 }
 0x475   : > { %3455 = vst.msk [vmem:[#allocation8 + $0x78] sm:$0x7f] %vm3451_vm15, %v3437_v48  ;;  %3673 = vst [vmem:[#allocation9 + $0x8] sm:$0x80] %v3663_v42 }
 0x476   : > { %3679 = vst [vmem:[#allocation9 + $0x30] sm:$0x3f] %v3663_v42  ;;  %v3642_v2 = vld [vmem:[#allocation8 + $0x8] sm:$0x7f]  ;;  %v3685_v27 = vld [vmem:[#allocation8 + $0x50] sm:$0x7f] }
 0x477   : > { %3647 = vst [vmem:[#allocation9 + $0x8] sm:$0x7f] %v3642_v2  ;;  %v3695_v4 = vrot.slane %v3685_v27, 2  ;;  %v3922_v2 = vld [vmem:[%s6694_s5 + $0x138] sm:$0xff] }
 0x478   : > { %v3494_v36 = vpop.permute.xlu0 %3493 }
 0x479   : > { %v3439_v59 = vpop.permute.xlu1 %3438  ;;  %3511 = vst.msk [vmem:[#allocation8 + $0x80] sm:$0x7f] %vm3451_vm15, %v3494_v36  ;;  %3705 = vst [vmem:[#allocation9 + $0x28] sm:$0xc0] %v3695_v4  ;;  %v3937_v36 = vld [vmem:[%s6694_s5 + $0x1b0] sm:$0xff] }
 0x47a   : > { %3456 = vst.msk [vmem:[#allocation8 + $0xa0] sm:$0x7f] %vm3451_vm15, %v3439_v59  ;;  %3711 = vst [vmem:[#allocation9 + $0x50] sm:$0x1f] %v3695_v4  ;;  %v3848_v0 = vld [vmem:[#allocation9] sm:$0xff] }
 0x47b   : > { %v3686_v62 = vld [vmem:[#allocation8 + $0x58] sm:$0x7f] }
 0x47c   : > { %v3718_v55 = vld [vmem:[#allocation8 + $0x78] sm:$0x7f]  ;;  %v3696_v3 = vrot.slane %v3686_v62, 2 }
 0x47d   : > { %v3496_v18 = vpop.permute.xlu0 %3495  ;;  %v3728_v30 = vrot.slane %v3718_v55, 3  ;;  %v3921_v4 = vld [vmem:[%s6694_s5 + $0x130] sm:$0xff]  ;;  %v3936_v55 = vld [vmem:[%s6694_s5 + $0x1a8] sm:$0xff] }
 0x47e   : > { %v3441_v15 = vpop.permute.xlu1 %3440  ;;  %3512 = vst.msk [vmem:[#allocation8 + $0xa8] sm:$0x7f] %vm3451_vm15, %v3496_v18  ;;  %3706 = vst [vmem:[#allocation9 + $0x30] sm:$0xc0] %v3696_v3  ;;  %v3849_v44 = vld [vmem:[#allocation9 + $0x8] sm:$0xff] }
 0x47f   : > { %3457 = vst.msk [vmem:[#allocation8 + $0xc8] sm:$0x7f] %vm3451_vm15, %v3441_v15  ;;  %3712 = vst [vmem:[#allocation9 + $0x58] sm:$0x1f] %v3696_v3  ;;  %4047 = vmatprep.mubr.f32.mxu1 %v3849_v44 }
 0x480   : > { %3738 = vst [vmem:[#allocation9 + $0x78] ss:$-36 sps:$4 sm:$0xef] %v3728_v30   ;;  %v3719_v51 = vld [vmem:[#allocation8 + $0x80] sm:$0x7f]  ;;  %4048 = vmatmul.mubr.f32.vlgmr.msra.gmra.mxu1 %v3848_v0 }
 0x481   : > { %v3751_v61 = vld [vmem:[#allocation8 + $0xa0] sm:$0x7f]  ;;  %v3498_v10 = vpop.permute.xlu0 %3497  ;;  %v3729_v63 = vrot.slane %v3719_v51, 3  ;;  %4605 = vmatpush3.msra.mxu1 %v3930_v56  ;;  %v3920_v56 = vld [vmem:[%s6694_s5 + $0x128] sm:$0xff] }
 0x482   : > { %v3443_v33 = vpop.permute.xlu1 %3442  ;;  %v3761_v5 = vrot.slane %v3751_v61, 4  ;;  %3513 = vst.msk [vmem:[#allocation8 + $0xd0] sm:$0x7f] %vm3451_vm15, %v3498_v10  ;;  %4606 = vmatprep.subr.mxu1 %v3945_v21  ;;  %v3853_v60 = vld [vmem:[#allocation9 + $0x28] sm:$0xff]  ;;  %v3935_v61 = vld [vmem:[%s6694_s5 + $0x1a0] sm:$0xff] }
 0x483   : > { %3458 = vst.msk [vmem:[#allocation8 + $0xf0] sm:$0x7f] %vm3451_vm15, %v3443_v33  ;;  %3739 = vst [vmem:[#allocation9 + $0x80] ss:$-36 sps:$4 sm:$0xef] %v3729_v63   ;;  %4607 = vmatpush3.msra.mxu1 %v3929_v8  ;;  %v3919_v33 = vld [vmem:[%s6694_s5 + $0x120] sm:$0xff] }
 0x484   : > { %3771 = vst [vmem:[#allocation9 + $0xa0] ss:$-36 sps:$4 sm:$0xf7] %v3761_v5   ;;  %4608 = vmatprep.subr.mxu1 %v3944_v25  ;;  %v3934_v63 = vld [vmem:[%s6694_s5 + $0x198] sm:$0xff] }
 0x485   : > { %v3752_v38 = vld [vmem:[#allocation8 + $0xa8] sm:$0x7f]  ;;  %v3500_v57 = vpop.permute.xlu0 %3499  ;;  %4609 = vmatpush3.msra.mxu1 %v3928_v34  ;;  %v3918_v5 = vld [vmem:[%s6694_s5 + $0x118] sm:$0xff]  ;;  %v3917_v34 = vld [vmem:[%s6694_s5 + $0x110] sm:$0xff] }
 0x486   : > { %v3784_v52 = vld [vmem:[#allocation8 + $0xc8] sm:$0x7f]  ;;  %v3546_v17 = vpop.permute.xlu1 %3545  ;;  %v3762_v29 = vrot.slane %v3752_v38, 4  ;;  %3514 = vst.msk [vmem:[#allocation8 + $0xf8] sm:$0x7f] %vm3451_vm15, %v3500_v57  ;;  %4610 = vmatprep.subr.mxu1 %v3943_v9  ;;  %v3916_v9 = vld [vmem:[%s6694_s5 + $0x108] sm:$0xff] }
 0x487   : > { %v3794_v58 = vrot.slane %v3784_v52, 5  ;;  %3565 = vst.msk [vmem:[#allocation8 + $0x38] sm:$0x7f] %vm3451_vm15, %v3546_v17  ;;  %v3854_v40 = vld [vmem:[#allocation9 + $0x30] sm:$0xff]  ;;  %4611 = vmatpush3.msra.mxu1 %v3927_v12  ;;  %v3933_v17 = vld [vmem:[%s6694_s5 + $0x190] sm:$0xff] }
 0x488   : > { %3772 = vst [vmem:[#allocation9 + $0xa8] ss:$-36 sps:$4 sm:$0xf7] %v3762_v29   ;;  %4052 = vmatprep.mubr.f32.mxu1 %v3854_v40  ;;  %4612 = vmatprep.subr.mxu1 %v3942_v13  ;;  %v3858_v26 = vld [vmem:[#allocation9 + $0x50] sm:$0xff] }
 0x489   : > { %3804 = vst [vmem:[#allocation9 + $0xa0] sm:$0xf8] %v3794_v58  ;;  %3810 = vst [vmem:[#allocation9 + $0xc8] sm:$0x3] %v3794_v58  ;;  %v3785_v11 = vld [vmem:[#allocation8 + $0xd0] sm:$0x7f]  ;;  %v3602_v50 = vpop.permute.xlu0 %3601  ;;  %4053 = vmatmul.mubr.f32.gmra.mxu1 %v3853_v60 }
 0x48a   : > { %v3817_v16 = vld [vmem:[#allocation8 + $0xf0] sm:$0x7f]  ;;  %v3544_v43 = vpop.permute.xlu1 %3543  ;;  %v3795_v23 = vrot.slane %v3785_v11, 5  ;;  %3621 = vst.msk [vmem:[#allocation8 + $0x40] sm:$0x7f] %vm3451_vm15, %v3602_v50  ;;  %4613 = vmatpush3.msra.mxu1 %v3926_v19  ;;  %v3915_v19 = vld [vmem:[%s6694_s5 + $0x100] sm:$0xff] }
 0x48b   : > { %v3827_v32 = vrot.slane %v3817_v16, 6  ;;  %3564 = vst.msk [vmem:[#allocation8 + $0x10] sm:$0x7f] %vm3451_vm15, %v3544_v43  ;;  %v3859_v22 = vld [vmem:[#allocation9 + $0x58] sm:$0xff]  ;;  %4614 = vmatprep.subr.mxu1 %v3941_v54  ;;  %v3931_v43 = vld [vmem:[%s6694_s5 + $0x180] sm:$0xff] }
 0x48c   : > { %3805 = vst [vmem:[#allocation9 + $0xa8] sm:$0xf8] %v3795_v23  ;;  %3811 = vst [vmem:[#allocation9 + $0xd0] sm:$0x3] %v3795_v23  ;;  %4057 = vmatprep.mubr.f32.mxu1 %v3859_v22  ;;  %4615 = vmatpush3.msra.mxu1 %v3925_v28  ;;  %v3863_v24 = vld [vmem:[#allocation9 + $0x78] sm:$0xff]  ;;  %v3954_v22 = vld [vmem:[%s6694_s5 + $0x238] sm:$0xff] }
 0x48d   : > { %3837 = vst [vmem:[#allocation9 + $0xc8] sm:$0xfc] %v3827_v32  ;;  %3843 = vst [vmem:[#allocation9 + $0xf0] sm:$0x1] %v3827_v32  ;;  %v3818_v46 = vld [vmem:[#allocation8 + $0xf8] sm:$0x7f]  ;;  %4058 = vmatmul.mubr.f32.gmra.mxu1 %v3858_v26  ;;  %4616 = vmatprep.subr.mxu1 %v3940_v37 }
 0x48e   : > { %v3654_v35 = vld [vmem:[#allocation8 + $0x38] sm:$0x7f]  ;;  %v3600_v7 = vpop.permute.xlu0 %3599  ;;  %v3828_v39 = vrot.slane %v3818_v46, 6  ;;  %4617 = vmatpush3.msra.mxu1 %v3924_v49  ;;  %v3932_v58 = vld [vmem:[%s6694_s5 + $0x188] sm:$0xff] }
 0x48f   : > { %v3548_v6 = vpop.permute.xlu1 %3547  ;;  %v3664_v45 = vrot.slane %v3654_v35, 1  ;;  %3620 = vst.msk [vmem:[#allocation8 + $0x18] sm:$0x7f] %vm3451_vm15, %v3600_v7  ;;  %v3864_v47 = vld [vmem:[#allocation9 + $0x80] sm:$0xff]  ;;  %4618 = vmatprep.subr.mxu1 %v3939_v41  ;;  %v3952_v49 = vld [vmem:[%s6694_s5 + $0x228] sm:$0xff] }
 0x490   : > { %3566 = vst.msk [vmem:[#allocation8 + $0x60] sm:$0x7f] %vm3451_vm15, %v3548_v6  ;;  %3838 = vst [vmem:[#allocation9 + $0xd0] sm:$0xfc] %v3828_v39  ;;  %4062 = vmatprep.mubr.f32.mxu1 %v3864_v47  ;;  %4619 = vmatpush3.msra.mxu1 %v3923_v31  ;;  %v3868_v62 = vld [vmem:[#allocation9 + $0xa0] sm:$0xff]  ;;  %v3951_v31 = vld [vmem:[%s6694_s5 + $0x220] sm:$0xff] }
 0x491   : > { %3844 = vst [vmem:[#allocation9 + $0xf8] sm:$0x1] %v3828_v39  ;;  %3674 = vst [vmem:[#allocation9 + $0x10] sm:$0x80] %v3664_v45  ;;  %v3655_v20 = vld [vmem:[#allocation8 + $0x40] sm:$0x7f]  ;;  %4063 = vmatmul.mubr.f32.gmra.mxu1 %v3863_v24  ;;  %4620 = vmatprep.subr.mxu1 %v3938_v14 }
 0x492   : > { %3680 = vst [vmem:[#allocation9 + $0x38] sm:$0x3f] %v3664_v45  ;;  %v3643_v53 = vld [vmem:[#allocation8 + $0x10] sm:$0x7f]  ;;  %v3604_v48 = vpop.permute.xlu0 %3603  ;;  %v3665_v27 = vrot.slane %v3655_v20, 1  ;;  %4621 = vmatpush3.msra.mxu1 %v3922_v2  ;;  %v3953_v35 = vld [vmem:[%s6694_s5 + $0x230] sm:$0xff] }
 0x493   : > { %v3550_v42 = vpop.permute.xlu1 %3549  ;;  %3648 = vst [vmem:[#allocation9 + $0x10] sm:$0x7f] %v3643_v53  ;;  %3622 = vst.msk [vmem:[#allocation8 + $0x68] sm:$0x7f] %vm3451_vm15, %v3604_v48  ;;  %v3869_v59 = vld [vmem:[#allocation9 + $0xa8] sm:$0xff]  ;;  %4622 = vmatprep.subr.mxu1 %v3937_v36  ;;  %v3948_v2 = vld [vmem:[%s6694_s5 + $0x208] sm:$0xff] }
 0x494   : > { %3567 = vst.msk [vmem:[#allocation8 + $0x88] sm:$0x7f] %vm3451_vm15, %v3550_v42  ;;  %3675 = vst [vmem:[#allocation9 + $0x18] sm:$0x80] %v3665_v27  ;;  %4067 = vmatprep.mubr.f32.mxu1 %v3869_v59  ;;  %4623 = vmatpush3.msra.mxu1 %v3921_v4  ;;  %v3873_v44 = vld [vmem:[#allocation9 + $0xc8] sm:$0xff]  ;;  %v3949_v42 = vld [vmem:[%s6694_s5 + $0x210] sm:$0xff] }
 0x495   : > { %3681 = vst [vmem:[#allocation9 + $0x40] sm:$0x3f] %v3665_v27  ;;  %4068 = vmatmul.mubr.f32.gmra.mxu1 %v3868_v62  ;;  %4624 = vmatprep.subr.mxu1 %v3936_v55  ;;  %v3878_v29 = vld [vmem:[#allocation9 + $0xf0] sm:$0x1]  ;;  %v3950_v14 = vld [vmem:[%s6694_s5 + $0x218] sm:$0xff] }
 0x496   : > { %v3644_v18 = vld [vmem:[#allocation8 + $0x18] sm:$0x7f]  ;;  %v3606_v3 = vpop.permute.xlu0 %3605  ;;  %4625 = vmatpush3.msra.mxu1 %v3920_v56  ;;  %v3947_v59 = vld [vmem:[%s6694_s5 + $0x200] sm:$0xff] }
 0x497   : > { %v3687_v15 = vld [vmem:[#allocation8 + $0x60] sm:$0x7f]  ;;  %v3552_v30 = vpop.permute.xlu1 %3551  ;;  %3649 = vst [vmem:[#allocation9 + $0x18] sm:$0x7f] %v3644_v18  ;;  %3623 = vst.msk [vmem:[#allocation8 + $0x90] sm:$0x7f] %vm3451_vm15, %v3606_v3  ;;  %4626 = vmatprep.subr.mxu1 %v3935_v61 }
 0x498   : > { %v3697_v51 = vrot.slane %v3687_v15, 2  ;;  %3568 = vst.msk [vmem:[#allocation8 + $0xb0] sm:$0x7f] %vm3451_vm15, %v3552_v30  ;;  %v3874_v10 = vld [vmem:[#allocation9 + $0xd0] sm:$0xff]  ;;  %v3879_v38 = vld [vmem:[#allocation9 + $0xf8] sm:$0x1]  ;;  %4627 = vmatpush3.msra.mxu1 %v3919_v33 }
 0x499   : > { %4072 = vmatprep.mubr.f32.mxu1 %v3874_v10  ;;  %4628 = vmatprep.subr.mxu1 %v3934_v63  ;;  %v3852_v3 = vld [vmem:[#allocation9 + $0x20] sm:$0xff]  ;;  %v3857_v30 = vld [vmem:[#allocation9 + $0x48] sm:$0xff]  ;;  %v3862_v56 = vld [vmem:[#allocation9 + $0x70] sm:$0xff] }
 0x49a   : > { %3707 = vst [vmem:[#allocation9 + $0x38] sm:$0xc0] %v3697_v51  ;;  %3713 = vst [vmem:[#allocation9 + $0x60] sm:$0x1f] %v3697_v51  ;;  %v3688_v0 = vld [vmem:[#allocation8 + $0x68] sm:$0x7f]  ;;  %v3608_v8 = vpop.permute.xlu0 %3607  ;;  %4073 = vmatmul.mubr.f32.gmra.mxu1 %v3873_v44 }
 0x49b   : > { %v3720_v21 = vld [vmem:[#allocation8 + $0x88] sm:$0x7f]  ;;  %v3554_v25 = vpop.permute.xlu1 %3553  ;;  %v3698_v52 = vrot.slane %v3688_v0, 2  ;;  %3624 = vst.msk [vmem:[#allocation8 + $0xb8] sm:$0x7f] %vm3451_vm15, %v3608_v8  ;;  %4077 = vmatprep.mubr.f32.mxu1 %v3879_v38  ;;  %4629 = vmatpush3.msra.mxu1 %v3918_v5  ;;  %v3867_v51 = vld [vmem:[#allocation9 + $0x98] sm:$0xff] }
 0x49c   : > { %v3730_v57 = vrot.slane %v3720_v21, 3  ;;  %3569 = vst.msk [vmem:[#allocation8 + $0xd8] sm:$0x7f] %vm3451_vm15, %v3554_v25  ;;  %4630 = vmatprep.subr.mxu1 %v3933_v17  ;;  %v3850_v37 = vld [vmem:[#allocation9 + $0x10] sm:$0xff]  ;;  %v3872_v61 = vld [vmem:[#allocation9 + $0xc0] sm:$0xff]  ;;  %v3877_v10 = vld [vmem:[#allocation9 + $0xe8] sm:$0xff] }
 0x49d   : > { %3708 = vst [vmem:[#allocation9 + $0x40] sm:$0xc0] %v3698_v52  ;;  %3714 = vst [vmem:[#allocation9 + $0x68] sm:$0x1f] %v3698_v52  ;;  %4631 = vmatpush3.msra.mxu1 %v3917_v34  ;;  %v3882_v33 = vld [vmem:[#allocation9 + $0x110] sm:$0x1] }
 0x49e   : > { %3740 = vst [vmem:[#allocation9 + $0x88] ss:$-36 sps:$4 sm:$0xef] %v3730_v57   ;;  %v3721_v40 = vld [vmem:[#allocation8 + $0x90] sm:$0x7f]  ;;  %v3610_v60 = vpop.permute.xlu0 %3609  ;;  %4078 = vmatmul.mubr.f32.gmra.mxu1 %v3878_v29  ;;  %4632 = vmatprep.subr.mxu1 %v3932_v58 }
 0x49f   : > { %v3753_v12 = vld [vmem:[#allocation8 + $0xb0] sm:$0x7f]  ;;  %v3556_v13 = vpop.permute.xlu1 %3555  ;;  %v3731_v16 = vrot.slane %v3721_v40, 3  ;;  %3625 = vst.msk [vmem:[#allocation8 + $0xe0] sm:$0x7f] %vm3451_vm15, %v3610_v60  ;;  %4633 = vmatpush3.msra.mxu1 %v3916_v9 }
 0x4a0   : > { %v3851_v11 = vld [vmem:[#allocation9 + $0x18] sm:$0xff]  ;;  %v3763_v50 = vrot.slane %v3753_v12, 4  ;;  %3570 = vst.msk [vmem:[#allocation8 + $0x100] sm:$0x7f] %vm3451_vm15, %v3556_v13  ;;  %4634 = vmatprep.subr.mxu1 %v3931_v43 }
 0x4a1   : > { %4147 = vmatprep.mubr.f32.mxu1 %v3851_v11  ;;  %3741 = vst [vmem:[#allocation9 + $0x90] ss:$-36 sps:$4 sm:$0xef] %v3731_v16   ;;  %4635 = vmatpush3.msra.mxu1 %v3915_v19  ;;  %v3855_v41 = vld [vmem:[#allocation9 + $0x38] sm:$0xff] }
 0x4a2   : > { %3773 = vst [vmem:[#allocation9 + $0xb0] ss:$-36 sps:$4 sm:$0xf7] %v3763_v50   ;;  %v3754_v23 = vld [vmem:[#allocation8 + $0xb8] sm:$0x7f]  ;;  %v3612_v54 = vpop.permute.xlu0 %3611  ;;  %4148 = vmatmul.mubr.f32.vlgmr.msra.gmra.mxu1 %v3850_v37  ;;  %4672 = vmatprep.subr.mxu1 %v4733_v1 }
 0x4a3   : > { %v3786_v32 = vld [vmem:[#allocation8 + $0xd8] sm:$0x7f]  ;;  %v3764_v28 = vrot.slane %v3754_v23, 4  ;;  %3626 = vst.msk [vmem:[#allocation8 + $0x108] sm:$0x7f] %vm3451_vm15, %v3612_v54  ;;  %4673 = vmatpush3.msra.mxu1 %v3954_v22 }
 0x4a4   : > { %v3796_v26 = vrot.slane %v3786_v32, 5  ;;  %v3856_v46 = vld [vmem:[#allocation9 + $0x40] sm:$0xff]  ;;  %4674 = vmatprep.subr.mxu1 %v4733_v1  ;;  %v4411_v32 = vld [vmem:[%s6695_s6] ss:$0 sm:$0xff] }
 0x4a5   : > { %3774 = vst [vmem:[#allocation9 + $0xb8] ss:$-36 sps:$4 sm:$0xf7] %v3764_v28   ;;  %4152 = vmatprep.mubr.f32.mxu1 %v3856_v46  ;;  %4675 = vmatpush3.msra.mxu1 %v3953_v35  ;;  %v3860_v53 = vld [vmem:[#allocation9 + $0x60] sm:$0xff] }
 0x4a6   : > { %3806 = vst [vmem:[#allocation9 + $0xb0] sm:$0xf8] %v3796_v26  ;;  %3812 = vst [vmem:[#allocation9 + $0xd8] sm:$0x3] %v3796_v26  ;;  %v3787_v7 = vld [vmem:[#allocation8 + $0xe0] sm:$0x7f]  ;;  %4153 = vmatmul.mubr.f32.gmra.mxu1 %v3855_v41  ;;  %4676 = vmatprep.subr.mxu1 %v4733_v1 }
 0x4a7   : > { %v3819_v6 = vld [vmem:[#allocation8 + $0x100] sm:$0x7f]  ;;  %v3797_v39 = vrot.slane %v3787_v7, 5  ;;  %4677 = vmatpush3.msra.mxu1 %v3952_v49 }
 0x4a8   : > { %v3829_v45 = vrot.slane %v3819_v6, 6  ;;  %v3861_v47 = vld [vmem:[#allocation9 + $0x68] sm:$0xff]  ;;  %4678 = vmatprep.subr.mxu1 %v4733_v1 }
 0x4a9   : > { %3807 = vst [vmem:[#allocation9 + $0xb8] sm:$0xf8] %v3797_v39  ;;  %3813 = vst [vmem:[#allocation9 + $0xe0] sm:$0x3] %v3797_v39  ;;  %4157 = vmatprep.mubr.f32.mxu1 %v3861_v47  ;;  %4679 = vmatpush3.msra.mxu1 %v3951_v31  ;;  %v3865_v27 = vld [vmem:[#allocation9 + $0x88] sm:$0xff] }
 0x4aa   : > { %3839 = vst [vmem:[#allocation9 + $0xd8] sm:$0xfc] %v3829_v45  ;;  %3845 = vst [vmem:[#allocation9 + $0x100] sm:$0x1] %v3829_v45  ;;  %v3820_v24 = vld [vmem:[#allocation8 + $0x108] sm:$0x7f]  ;;  %4158 = vmatmul.mubr.f32.gmra.mxu1 %v3860_v53  ;;  %4680 = vmatprep.subr.mxu1 %v4733_v1 }
 0x4ab   : > { %v3830_v20 = vrot.slane %v3820_v24, 6  ;;  %4681 = vmatpush3.msra.mxu1 %v3950_v14 }
 0x4ac   : > { %v3866_v48 = vld [vmem:[#allocation9 + $0x90] sm:$0xff]  ;;  %4682 = vmatprep.subr.mxu1 %v4733_v1 }
 0x4ad   : > { %3840 = vst [vmem:[#allocation9 + $0xe0] sm:$0xfc] %v3830_v20  ;;  %3846 = vst [vmem:[#allocation9 + $0x108] sm:$0x1] %v3830_v20  ;;  %4162 = vmatprep.mubr.f32.mxu1 %v3866_v48  ;;  %4683 = vmatpush3.msra.mxu1 %v3949_v42  ;;  %v3870_v4 = vld [vmem:[#allocation9 + $0xb0] sm:$0xff] }
 0x4ae   : > { %4163 = vmatmul.mubr.f32.gmra.mxu1 %v3865_v27  ;;  %4684 = vmatprep.subr.mxu1 %v4733_v1 }
 0x4af   : > { %4685 = vmatpush3.msra.mxu1 %v3948_v2 }
 0x4b0   : > { %v3871_v36 = vld [vmem:[#allocation9 + $0xb8] sm:$0xff]  ;;  %4686 = vmatprep.subr.mxu1 %v4733_v1 }
 0x4b1   : > { %4167 = vmatprep.mubr.f32.mxu1 %v3871_v36  ;;  %4687 = vmatpush3.msra.mxu1 %v3947_v59  ;;  %v3875_v55 = vld [vmem:[#allocation9 + $0xd8] sm:$0xff]  ;;  %v3880_v15 = vld [vmem:[#allocation9 + $0x100] sm:$0x1] }
 0x4b2   : > { %4168 = vmatmul.mubr.f32.gmra.mxu1 %v3870_v4 }
 0x4b4   : > { %v3876_v62 = vld [vmem:[#allocation9 + $0xe0] sm:$0xff]  ;;  %v3881_v18 = vld [vmem:[#allocation9 + $0x108] sm:$0x1] }
 0x4b5   : > { %4172 = vmatprep.mubr.f32.mxu1 %v3876_v62 }
 0x4b6   : > { %4173 = vmatmul.mubr.f32.gmra.mxu1 %v3875_v55 }
 0x4b7   : > { %4177 = vmatprep.mubr.f32.mxu1 %v3881_v18 }
 0x4ba   : > { %4178 = vmatmul.mubr.f32.gmra.mxu1 %v3880_v15 }
 0x4bb   : > { %4688 = vmatprep.mubr.msk.f32.mxu1 %vm4737_vm1, %v4733_v1 }
 0x4be   : > { %4689 = vmatmul.mubr.msk.f32.vlgmr.msra.gmra.mxu1 %vm410_vm0, %v3852_v3 }
 0x4bf   : > { %4691 = vmatprep.mubr.msk.f32.mxu1 %vm4737_vm1, %v4733_v1 }
 0x4c2   : > { %4692 = vmatmul.mubr.msk.f32.gmra.mxu1 %vm410_vm0, %v3857_v30 }
 0x4c3   : > { %4694 = vmatprep.mubr.msk.f32.mxu1 %vm4737_vm1, %v4733_v1 }
 0x4c6   : > { %4695 = vmatmul.mubr.msk.f32.gmra.mxu1 %vm410_vm0, %v3862_v56 }
 0x4c7   : > { %4697 = vmatprep.mubr.msk.f32.mxu1 %vm4737_vm1, %v4733_v1 }
 0x4ca   : > { %4698 = vmatmul.mubr.msk.f32.gmra.mxu1 %vm410_vm0, %v3867_v51 }
 0x4cb   : > { %4700 = vmatprep.mubr.msk.f32.mxu1 %vm4737_vm1, %v4733_v1 }
 0x4ce   : > { %4701 = vmatmul.mubr.msk.f32.gmra.mxu1 %vm410_vm0, %v3872_v61 }
 0x4cf   : > { %4703 = vmatprep.mubr.msk.f32.mxu1 %vm4737_vm1, %v4733_v1 }
 0x4d2   : > { %4704 = vmatmul.mubr.msk.f32.gmra.mxu1 %vm410_vm0, %v3877_v10 }
 0x4d3   : > { %4706 = vmatprep.mubr.msk.f32.mxu1 %vm4737_vm1, %v4733_v1 }
 0x4d6   : > { %4707 = vmatmul.mubr.msk.f32.gmra.mxu1 %vm410_vm0, %v3882_v33 }
 0x540   : > { %v4583_v44 = vpop.f32.mrf.mxu1 }
 0x542   : > { %v4584_v63 = vpop.f32.mrf.mxu1 }
 0x543   : > { %v4585_v23 = vadd.f32 %v4584_v63, %v4583_v44 }
 0x545   : > { %v4050_v26 = vadd.f32 %v4585_v23, %v4411_v32 }
 0x549   : > { %v4586_v5 = vpop.f32.mrf.mxu1 }
 0x54b   : > { %v4587_v0 = vpop.f32.mrf.mxu1 }
 0x54c   : > { %v4588_v37 = vadd.f32 %v4587_v0, %v4586_v5 }
 0x54d   : > { %v4589_v21 = vpop.f32.mrf.mxu1 }
 0x54e   : > { %v4055_v49 = vadd.f32 %v4588_v37, %v4411_v32 }
 0x54f   : > { %v4590_v8 = vpop.f32.mrf.mxu1 }
 0x550   : > { %v4591_v39 = vadd.f32 %v4590_v8, %v4589_v21 }
 0x551   : > { %v4592_v25 = vpop.f32.mrf.mxu1 }
 0x552   : > { %v4060_v20 = vadd.f32 %v4591_v39, %v4411_v32 }
 0x553   : > { %v4593_v38 = vpop.f32.mrf.mxu1 }
 0x554   : > { %v4594_v53 = vadd.f32 %v4593_v38, %v4592_v25 }
 0x555   : > { %v4595_v52 = vpop.f32.mrf.mxu1 }
 0x556   : > { %v4065_v4 = vadd.f32 %v4594_v53, %v4411_v32 }
 0x557   : > { %v4596_v57 = vpop.f32.mrf.mxu1 }
 0x558   : > { %v4597_v62 = vadd.f32 %v4596_v57, %v4595_v52 }
 0x55a   : > { %v4598_v17 = vpop.f32.mrf.mxu1  ;;  %v4070_v51 = vadd.f32 %v4597_v62, %v4411_v32 }
 0x55c   : > { %v4599_v34 = vpop.f32.mrf.mxu1 }
 0x55d   : > { %v4600_v61 = vadd.f32 %v4599_v34, %v4598_v17 }
 0x55e   : > { %v4601_v29 = vpop.f32.mrf.mxu1 }
 0x55f   : > { %v4075_v21 = vadd.f32 %v4600_v61, %v4411_v32 }
 0x560   : > { %v4602_v58 = vpop.f32.mrf.mxu1 }
 0x561   : > { %v4603_v8 = vadd.f32 %v4602_v58, %v4601_v29 }
 0x562   : > { %v4636_v9 = vpop.f32.mrf.mxu1 }
 0x564   : > { %v4637_v40 = vpop.f32.mrf.mxu1 }
 0x565   : > { %v4638_v22 = vadd.f32 %v4637_v40, %v4636_v9  ;;  %v4080_v9 = vadd.f32 %v4603_v8, %v4411_v32 }
 0x566   : > { %v4639_v1 = vpop.f32.mrf.mxu1 }
 0x567   : > { %v4150_v7 = vadd.f32 %v4638_v22, %v4050_v26 }
 0x568   : > { %v4640_v12 = vpop.f32.mrf.mxu1 }
 0x569   : > { %v4641_v35 = vadd.f32 %v4640_v12, %v4639_v1 }
 0x56a   : > { %v4642_v60 = vpop.f32.mrf.mxu1 }
 0x56b   : > { %v4155_v24 = vadd.f32 %v4641_v35, %v4055_v49 }
 0x56c   : > { %v4643_v13 = vpop.f32.mrf.mxu1 }
 0x56d   : > { %v4644_v47 = vadd.f32 %v4643_v13, %v4642_v60 }
 0x56e   : > { %v4645_v11 = vpop.f32.mrf.mxu1 }
 0x56f   : > { %v4160_v36 = vadd.f32 %v4644_v47, %v4060_v20 }
 0x570   : > { %v4646_v16 = vpop.f32.mrf.mxu1 }
 0x571   : > { %v4647_v2 = vadd.f32 %v4646_v16, %v4645_v11 }
 0x572   : > { %v4648_v50 = vpop.f32.mrf.mxu1 }
 0x573   : > { %v4165_v30 = vadd.f32 %v4647_v2, %v4065_v4 }
 0x574   : > { %v4649_v43 = vpop.f32.mrf.mxu1 }
 0x575   : > { %v4650_v15 = vadd.f32 %v4649_v43, %v4648_v50 }
 0x576   : > { %v4651_v19 = vpop.f32.mrf.mxu1 }
 0x577   : > { %v4170_v5 = vadd.f32 %v4650_v15, %v4070_v51 }
 0x578   : > { %v4652_v54 = vpop.f32.mrf.mxu1 }
 0x579   : > { %v4653_v44 = vadd.f32 %v4652_v54, %v4651_v19 }
 0x57a   : > { %v4654_v28 = vpop.f32.mrf.mxu1 }
 0x57b   : > { %v4175_v17 = vadd.f32 %v4653_v44, %v4075_v21 }
 0x57c   : > { %v4655_v46 = vpop.f32.mrf.mxu1 }
 0x57d   : > { %v4656_v52 = vadd.f32 %v4655_v46, %v4654_v28 }
 0x57e   : > { %v4249_v6 = vpop.f32.mrf.mxu1 }
 0x57f   : > { %v4250_v45 = vadd.f32 %v4249_v6, %v4150_v7  ;;  %v4180_v60 = vadd.f32 %v4656_v52, %v4080_v9 }
 0x580   : > { %v4690_v41 = vpop.f32.mrf.mxu1 }
 0x581   : > { %v4283_v31 = vmax.f32 %v4250_v45, 0.0 }
 0x582   : > { %v4254_v14 = vpop.f32.mrf.mxu1 }
 0x583   : > { %4290 = vst.msk [vmem:[%s6670_s26] sm:$0xff] %vm410_vm0, %v4283_v31  ;;  %v4255_v48 = vadd.f32 %v4254_v14, %v4155_v24 }
 0x584   : > { %v4693_v42 = vpop.f32.mrf.mxu1 }
 0x585   : > { %v4284_v27 = vmax.f32 %v4255_v48, 0.0 }
 0x586   : > { %v4259_v59 = vpop.f32.mrf.mxu1 }
 0x587   : > { %4291 = vst.msk [vmem:[%s6670_s26 + $0x8] sm:$0xff] %vm410_vm0, %v4284_v27  ;;  %v4260_v55 = vadd.f32 %v4259_v59, %v4160_v36 }
 0x588   : > { %v4696_v18 = vpop.f32.mrf.mxu1 }
 0x589   : > { %v4285_v3 = vmax.f32 %v4260_v55, 0.0 }
 0x58a   : > { %v4264_v56 = vpop.f32.mrf.mxu1 }
 0x58b   : > { %4292 = vst.msk [vmem:[%s6670_s26 + $0x10] sm:$0xff] %vm410_vm0, %v4285_v3  ;;  %v4265_v10 = vadd.f32 %v4264_v56, %v4165_v30 }
 0x58c   : > { %v4699_v33 = vpop.f32.mrf.mxu1 }
 0x58d   : > { %v4286_v63 = vmax.f32 %v4265_v10, 0.0 }
 0x58e   : > { %v4269_v0 = vpop.f32.mrf.mxu1 }
 0x58f   : > { %4293 = vst.msk [vmem:[%s6670_s26 + $0x18] sm:$0xff] %vm410_vm0, %v4286_v63  ;;  %v4270_v25 = vadd.f32 %v4269_v0, %v4170_v5 }
 0x590   : > { %v4702_v38 = vpop.f32.mrf.mxu1 }
 0x591   : > { %v4287_v57 = vmax.f32 %v4270_v25, 0.0 }
 0x592   : > { %v4274_v34 = vpop.f32.mrf.mxu1 }
 0x593   : > { %4294 = vst.msk [vmem:[%s6670_s26 + $0x20] sm:$0xff] %vm410_vm0, %v4287_v57  ;;  %v4275_v40 = vadd.f32 %v4274_v34, %v4175_v17 }
 0x594   : > { %v4705_v1 = vpop.f32.mrf.mxu1 }
 0x595   : > { %v4288_v12 = vmax.f32 %v4275_v40, 0.0 }
 0x596   : > { %v4279_v13 = vpop.f32.mrf.mxu1 }
 0x597   : > { %4295 = vst.msk [vmem:[%s6670_s26 + $0x28] sm:$0xff] %vm410_vm0, %v4288_v12  ;;  %v4280_v29 = vadd.f32 %v4279_v13, %v4180_v60 }
 0x598   : > { %v4708_v58 = vpop.f32.mrf.mxu1 }
 0x599   : > { %v4289_v11 = vmax.f32 %v4280_v29, 0.0 }
 0x59b   : > { %4296 = vst.msk [vmem:[%s6670_s26 + $0x30] sm:$0x1] %vm3355_vm2, %v4289_v11 }
 0x59c PF: > { %s17_s24 = sadd.s32 1, %s4731_s24  }
 0x59d   : > { %p14_p4 = scmp.ge.s32.totalorder %s17_s24, 4  }
 0x59f   :  { %16 = sbr.rel (!%p14_p4) target bundleno = 1 (0x1), region = 139 }

</bundles_post_ra>
